<compile_context>
chip_gen: v6e
topology: v6e:2x2x1
jax: 0.10.0
libtpu: 0.0.40
codegen_flags: <defaults>
</compile_context>

<pallas_src>
import functools

import jax
import jax.numpy as jnp
from jax.experimental import pallas as pl
from jax.experimental.pallas import tpu as pltpu

EPS = 1e-5    # nn.InstanceNorm2d default eps
LANE = 128    # TPU lane width


def _round_up(x, m):
    return (x + m - 1) // m * m


def _hin_res_block_kernel(x_ref, w1_ref, b1_ref, g_ref, bt_ref, w2_ref, b2_ref,
                          o_ref, *, H, W, Ws, half, slope):
    Cp = x_ref.shape[-1]
    HWs = H * Ws                       # flattened image length incl. the zero stride column
    P = _round_up(Ws + 1, 8)           # zero rows padded above/below the flattened image

    x = x_ref[0].astype(jnp.float32)   # (HWs, Cp)

    # Masks (hoisted, used only for the IN statistics / HIN select, never in the conv taps):
    col = jax.lax.broadcasted_iota(jnp.int32, (HWs, Cp), 0) % Ws
    valid = col < W                                     # False on the zero stride column
    chan = jax.lax.broadcasted_iota(jnp.int32, (HWs, Cp), 1)
    norm_sel = jnp.logical_and(valid, chan < half)      # pixels+channels that get InstanceNorm

    zeros_p = jnp.zeros((P, Cp), jnp.float32)

    def conv3x3(z, w_ref, b_ref):
        """3x3 conv, stride 1, zero pad 1, as 3 per-dy im2col matmuls (HWs,3Cp)@(3Cp,Cp).

        `z` must have zero stride columns, so all 9 taps are plain static row shifts of
        the padded flat buffer (no boundary masks needed)."""
        zp = jnp.concatenate([zeros_p, z, zeros_p], axis=0)          # (HWs + 2P, Cp)
        acc = None
        for g, dy in enumerate((-1, 0, 1)):
            s = P + dy * Ws
            grp = jnp.concatenate(                                    # (HWs, 3*Cp)
                [zp[s - 1:s - 1 + HWs, :],                            # dx = -1
                 zp[s:s + HWs, :],                                    # dx =  0
                 zp[s + 1:s + 1 + HWs, :]],                           # dx = +1
                axis=1).astype(jnp.bfloat16)
            part = jnp.dot(grp, w_ref[g], preferred_element_type=jnp.float32)
            acc = part if acc is None else acc + part
        return acc + b_ref[...]                                       # (HWs, Cp) f32

    def lrelu(v):
        return jnp.where(v >= 0, v, slope * v)

    # conv_1 + relu_1 ;  zero the stride column so stats & conv_2 taps stay exact.
    resi = jnp.where(valid, lrelu(conv3x3(x, w1_ref, b1_ref)), 0.0)   # (HWs, Cp)

    # HIN: InstanceNorm2d(affine) on the first `half` channels, identity on the rest.
    # Single-pass biased statistics (matches PyTorch); padded lanes / stride column excluded.
    inv_hw = 1.0 / (H * W)
    mean = jnp.sum(resi, axis=0, keepdims=True) * inv_hw              # (1, Cp)
    ex2 = jnp.sum(resi * resi, axis=0, keepdims=True) * inv_hw        # (1, Cp)
    var = ex2 - mean * mean
    scale = jax.lax.rsqrt(var + EPS) * g_ref[...]                     # gamma folded in
    shift = bt_ref[...] - mean * scale
    cat = jnp.where(norm_sel, resi * scale + shift, resi)             # (HWs, Cp)

    # conv_2 + relu_2 + residual  (stride-column garbage is sliced off by the wrapper).
    resi2 = lrelu(conv3x3(cat, w2_ref, b2_ref))
    o_ref[0] = (x + resi2).astype(o_ref.dtype)


def hin_res_block(x_nchw, w1, b1, gamma, beta, w2, b2, *, relu_slope=0.2):
    """x_nchw: (B, C, H, W) f32. Conv weights in HWIO: (3, 3, C, C). Returns NCHW."""
    B, C, H, W = x_nchw.shape
    half = C // 2
    Cp = _round_up(C, LANE)    # lane-dense channel width
    Ws = W + 1                 # one zero column per row -> row-shifts wrap into zeros
    HWs = H * Ws

    # NCHW -> (B, HWs, Cp): NHWC, pad one zero column per row and zero-pad channels.
    # Padded channels stay exactly zero through the whole block (zero weights/bias,
    # identity IN branch, zero residual) and are sliced off at the end.
    x_nhwc = jnp.transpose(x_nchw, (0, 2, 3, 1))                      # (B, H, W, C)
    x2d = jnp.pad(x_nhwc, ((0, 0), (0, 0), (0, Ws - W), (0, Cp - C))).reshape(B, HWs, Cp)

    def pack_w(w):   # HWIO (3,3,C,C) -> per-dy im2col weights (3, 3*Cp, Cp), bf16 for MXU
        wp = jnp.zeros((3, 3, Cp, Cp), jnp.float32).at[:, :, :C, :C].set(w)
        return wp.reshape(3, 3 * Cp, Cp).astype(jnp.bfloat16)

    def pack_v(v, fill):
        return jnp.full((1, Cp), fill, jnp.float32).at[0, :v.shape[0]].set(v)

    w1m, w2m = pack_w(w1), pack_w(w2)
    b1r, b2r = pack_v(b1, 0.0), pack_v(b2, 0.0)
    g_full = pack_v(gamma, 1.0)
    bt_full = pack_v(beta, 0.0)

    kernel = functools.partial(_hin_res_block_kernel, H=H, W=W, Ws=Ws, half=half,
                               slope=relu_slope)
    img_spec = pl.BlockSpec((1, HWs, Cp), lambda b: (b, 0, 0))
    w_spec = pl.BlockSpec((3, 3 * Cp, Cp), lambda b: (0, 0, 0))
    v_spec = pl.BlockSpec((1, Cp), lambda b: (0, 0))

    out2d = pl.pallas_call(
        kernel,
        out_shape=jax.ShapeDtypeStruct((B, HWs, Cp), x2d.dtype),
        grid=(B,),
        in_specs=[img_spec, w_spec, v_spec, v_spec, v_spec, w_spec, v_spec],
        out_specs=img_spec,
        compiler_params=pltpu.CompilerParams(
            dimension_semantics=("parallel",)),
    )(x2d, w1m, b1r, g_full, bt_full, w2m, b2r)

    out = out2d.reshape(B, H, Ws, Cp)[:, :, :W, :C]
    return jnp.transpose(out, (0, 3, 1, 2))


def _reference_nchw(x_nchw, w1, b1, gamma, beta, w2, b2, slope=0.2):
    """Pure-JAX reference mirroring the PyTorch forward (bf16 conv operands, f32 accumulate,
    to match the kernel's MXU precision)."""
    x = jnp.transpose(x_nchw, (0, 2, 3, 1))  # NHWC
    C = x.shape[-1]
    half = C // 2

    def conv(z, w, b):
        y = jax.lax.conv_general_dilated(
            z.astype(jnp.bfloat16), w.astype(jnp.bfloat16),
            window_strides=(1, 1), padding="SAME",
            dimension_numbers=("NHWC", "HWIO", "NHWC"),
            preferred_element_type=jnp.float32)
        return y + b

    def lrelu(v):
        return jnp.where(v >= 0, v, slope * v)

    r = lrelu(conv(x, w1, b1))
    o1, o2 = r[..., :half], r[..., half:]
    mean = o1.mean(axis=(1, 2), keepdims=True)
    var = ((o1 - mean) ** 2).mean(axis=(1, 2), keepdims=True)
    o1n = (o1 - mean) * jax.lax.rsqrt(var + EPS) * gamma + beta
    r2 = lrelu(conv(jnp.concatenate([o1n, o2], axis=-1), w2, b2))
    return jnp.transpose(x + r2, (0, 3, 1, 2))


if __name__ == "__main__":
    B, C, H, W = 2, 8, 16, 16  # in_size == out_size (required by the residual add)

    key = jax.random.PRNGKey(0)
    k = jax.random.split(key, 7)
    w1 = jax.random.normal(k[0], (3, 3, C, C), jnp.float32) * 0.1
    b1 = jax.random.normal(k[1], (C,), jnp.float32) * 0.1
    w2 = jax.random.normal(k[2], (3, 3, C, C), jnp.float32) * 0.1
    b2 = jax.random.normal(k[3], (C,), jnp.float32) * 0.1
    gamma = 1.0 + 0.1 * jax.random.normal(k[4], (C // 2,), jnp.float32)
    beta = 0.1 * jax.random.normal(k[5], (C // 2,), jnp.float32)
    x = jax.random.normal(k[6], (B, C, H, W), jnp.float32)  # NCHW, like the PyTorch module

    out = jax.block_until_ready(hin_res_block(x, w1, b1, gamma, beta, w2, b2))

    ref = _reference_nchw(x, w1, b1, gamma, beta, w2, b2)
    err = float(jnp.max(jnp.abs(out - ref)))
    assert out.shape == x.shape and err < 1e-2, f"mismatch: max abs err = {err}"

    print("KERNEL_OK")
</pallas_src>

<mosaic_0001>
module attributes {stable_mosaic.version = 11 : i64} {
  func.func @_hin_res_block_kernel(%arg0: i32, %arg1: memref<1x272x128xf32, #tpu.memory_space<vmem>>, %arg2: memref<3x384x128xbf16, #tpu.memory_space<vmem>>, %arg3: memref<1x128xf32, #tpu.memory_space<vmem>>, %arg4: memref<1x128xf32, #tpu.memory_space<vmem>>, %arg5: memref<1x128xf32, #tpu.memory_space<vmem>>, %arg6: memref<3x384x128xbf16, #tpu.memory_space<vmem>>, %arg7: memref<1x128xf32, #tpu.memory_space<vmem>>, %arg8: memref<1x272x128xf32, #tpu.memory_space<vmem>>) attributes {dimension_semantics = [#tpu.dimension_semantics<parallel>], iteration_bounds = array<i64: 2>, scalar_prefetch = 0 : i64, scratch_operands = 0 : i64, tpu.core_type = #tpu.core_type<tc>, window_params = [{transform_indices = @transform_0, window_bounds = array<i64: 1, 272, 128>}, {pipeline_mode = #tpu.pipeline_mode<synchronous>, transform_indices = @transform_1, window_bounds = array<i64: 3, 384, 128>}, {pipeline_mode = #tpu.pipeline_mode<synchronous>, transform_indices = @transform_2, window_bounds = array<i64: 1, 128>}, {pipeline_mode = #tpu.pipeline_mode<synchronous>, transform_indices = @transform_3, window_bounds = array<i64: 1, 128>}, {pipeline_mode = #tpu.pipeline_mode<synchronous>, transform_indices = @transform_4, window_bounds = array<i64: 1, 128>}, {pipeline_mode = #tpu.pipeline_mode<synchronous>, transform_indices = @transform_5, window_bounds = array<i64: 3, 384, 128>}, {pipeline_mode = #tpu.pipeline_mode<synchronous>, transform_indices = @transform_6, window_bounds = array<i64: 1, 128>}, {transform_indices = @transform_7, window_bounds = array<i64: 1, 272, 128>}]} {
    %c0 = arith.constant 0 : index
    %c0_0 = arith.constant 0 : index
    %c0_1 = arith.constant 0 : index
    %0 = vector.load %arg1[%c0, %c0_0, %c0_1] : memref<1x272x128xf32, #tpu.memory_space<vmem>>, vector<1x272x128xf32>
    %1 = vector.shape_cast %0 : vector<1x272x128xf32> to vector<272x128xf32>
    %2 = tpu.iota {dimensions = array<i32: 0>} : vector<272x128xi32>
    %c17_i32 = arith.constant 17 : i32
    %c0_i32 = arith.constant 0 : i32
    %3 = arith.cmpi eq, %c17_i32, %c0_i32 : i32
    %c1_i32 = arith.constant 1 : i32
    %4 = arith.select %3, %c1_i32, %c17_i32 : i32
    %5 = vector.broadcast %4 : i32 to vector<272x128xi32>
    %6 = arith.remsi %2, %5 : vector<272x128xi32>
    %c0_i32_2 = arith.constant 0 : i32
    %7 = vector.broadcast %c0_i32_2 : i32 to vector<272x128xi32>
    %8 = arith.cmpi ne, %6, %7 : vector<272x128xi32>
    %c0_i32_3 = arith.constant 0 : i32
    %9 = vector.broadcast %c0_i32_3 : i32 to vector<272x128xi32>
    %10 = arith.cmpi slt, %6, %9 : vector<272x128xi32>
    %c0_i32_4 = arith.constant 0 : i32
    %11 = arith.cmpi slt, %4, %c0_i32_4 : i32
    %12 = vector.broadcast %11 : i1 to vector<272x128xi1>
    %13 = vector.broadcast %12 : vector<272x128xi1> to vector<272x128xi1>
    %14 = arith.xori %10, %13 : vector<272x128xi1>
    %15 = arith.andi %14, %8 : vector<272x128xi1>
    %16 = vector.broadcast %4 : i32 to vector<272x128xi32>
    %17 = arith.addi %6, %16 : vector<272x128xi32>
    %18 = arith.select %15, %17, %6 : vector<272x128xi1>, vector<272x128xi32>
    %c16_i32 = arith.constant 16 : i32
    %19 = vector.broadcast %c16_i32 : i32 to vector<272x128xi32>
    %20 = arith.cmpi slt, %18, %19 : vector<272x128xi32>
    %21 = tpu.iota {dimensions = array<i32: 1>} : vector<272x128xi32>
    %c4_i32 = arith.constant 4 : i32
    %22 = vector.broadcast %c4_i32 : i32 to vector<272x128xi32>
    %23 = arith.cmpi slt, %21, %22 : vector<272x128xi32>
    %24 = arith.andi %20, %23 : vector<272x128xi1>
    %cst = arith.constant 0.000000e+00 : f32
    %25 = vector.broadcast %cst : f32 to vector<24x128xf32>
    %26 = tpu.concatenate %25, %1, %25 in 0 : vector<24x128xf32>, vector<272x128xf32>, vector<24x128xf32> -> vector<320x128xf32>
    %27 = vector.extract_strided_slice %26 {offsets = [6, 0], sizes = [272, 128], strides = [1, 1]} : vector<320x128xf32> to vector<272x128xf32>
    %28 = vector.extract_strided_slice %26 {offsets = [7, 0], sizes = [272, 128], strides = [1, 1]} : vector<320x128xf32> to vector<272x128xf32>
    %29 = vector.extract_strided_slice %26 {offsets = [8, 0], sizes = [272, 128], strides = [1, 1]} : vector<320x128xf32> to vector<272x128xf32>
    %30 = tpu.concatenate %27, %28, %29 in 1 : vector<272x128xf32>, vector<272x128xf32>, vector<272x128xf32> -> vector<272x384xf32>
    %31 = arith.truncf %30 : vector<272x384xf32> to vector<272x384xbf16>
    %c0_5 = arith.constant 0 : index
    %c0_6 = arith.constant 0 : index
    %c0_7 = arith.constant 0 : index
    %32 = vector.load %arg2[%c0_5, %c0_6, %c0_7] : memref<3x384x128xbf16, #tpu.memory_space<vmem>>, vector<1x384x128xbf16>
    %33 = vector.shape_cast %32 : vector<1x384x128xbf16> to vector<384x128xbf16>
    %cst_8 = arith.constant dense<0.000000e+00> : vector<272x128xf32>
    %34 = tpu.matmul %31, %33, %cst_8 {dimension_numbers = #tpu.dot_dimension_numbers<[1], [0], [0], [1], [0, 0, 1, 1], [], []>} : vector<272x384xbf16>, vector<384x128xbf16>, vector<272x128xf32> -> vector<272x128xf32>
    %35 = vector.extract_strided_slice %26 {offsets = [23, 0], sizes = [272, 128], strides = [1, 1]} : vector<320x128xf32> to vector<272x128xf32>
    %36 = vector.extract_strided_slice %26 {offsets = [24, 0], sizes = [272, 128], strides = [1, 1]} : vector<320x128xf32> to vector<272x128xf32>
    %37 = vector.extract_strided_slice %26 {offsets = [25, 0], sizes = [272, 128], strides = [1, 1]} : vector<320x128xf32> to vector<272x128xf32>
    %38 = tpu.concatenate %35, %36, %37 in 1 : vector<272x128xf32>, vector<272x128xf32>, vector<272x128xf32> -> vector<272x384xf32>
    %39 = arith.truncf %38 : vector<272x384xf32> to vector<272x384xbf16>
    %c1 = arith.constant 1 : index
    %c0_9 = arith.constant 0 : index
    %c0_10 = arith.constant 0 : index
    %40 = vector.load %arg2[%c1, %c0_9, %c0_10] : memref<3x384x128xbf16, #tpu.memory_space<vmem>>, vector<1x384x128xbf16>
    %41 = vector.shape_cast %40 : vector<1x384x128xbf16> to vector<384x128xbf16>
    %cst_11 = arith.constant dense<0.000000e+00> : vector<272x128xf32>
    %42 = tpu.matmul %39, %41, %cst_11 {dimension_numbers = #tpu.dot_dimension_numbers<[1], [0], [0], [1], [0, 0, 1, 1], [], []>} : vector<272x384xbf16>, vector<384x128xbf16>, vector<272x128xf32> -> vector<272x128xf32>
    %43 = arith.addf %34, %42 : vector<272x128xf32>
    %44 = vector.extract_strided_slice %26 {offsets = [40, 0], sizes = [272, 128], strides = [1, 1]} : vector<320x128xf32> to vector<272x128xf32>
    %45 = vector.extract_strided_slice %26 {offsets = [41, 0], sizes = [272, 128], strides = [1, 1]} : vector<320x128xf32> to vector<272x128xf32>
    %46 = vector.extract_strided_slice %26 {offsets = [42, 0], sizes = [272, 128], strides = [1, 1]} : vector<320x128xf32> to vector<272x128xf32>
    %47 = tpu.concatenate %44, %45, %46 in 1 : vector<272x128xf32>, vector<272x128xf32>, vector<272x128xf32> -> vector<272x384xf32>
    %48 = arith.truncf %47 : vector<272x384xf32> to vector<272x384xbf16>
    %c2 = arith.constant 2 : index
    %c0_12 = arith.constant 0 : index
    %c0_13 = arith.constant 0 : index
    %49 = vector.load %arg2[%c2, %c0_12, %c0_13] : memref<3x384x128xbf16, #tpu.memory_space<vmem>>, vector<1x384x128xbf16>
    %50 = vector.shape_cast %49 : vector<1x384x128xbf16> to vector<384x128xbf16>
    %cst_14 = arith.constant dense<0.000000e+00> : vector<272x128xf32>
    %51 = tpu.matmul %48, %50, %cst_14 {dimension_numbers = #tpu.dot_dimension_numbers<[1], [0], [0], [1], [0, 0, 1, 1], [], []>} : vector<272x384xbf16>, vector<384x128xbf16>, vector<272x128xf32> -> vector<272x128xf32>
    %52 = arith.addf %43, %51 : vector<272x128xf32>
    %c0_15 = arith.constant 0 : index
    %c0_16 = arith.constant 0 : index
    %53 = vector.load %arg3[%c0_15, %c0_16] : memref<1x128xf32, #tpu.memory_space<vmem>>, vector<1x128xf32>
    %54 = vector.broadcast %53 : vector<1x128xf32> to vector<272x128xf32>
    %55 = arith.addf %52, %54 : vector<272x128xf32>
    %cst_17 = arith.constant 0.000000e+00 : f32
    %56 = vector.broadcast %cst_17 : f32 to vector<272x128xf32>
    %57 = arith.cmpf oge, %55, %56 : vector<272x128xf32>
    %cst_18 = arith.constant 2.000000e-01 : f32
    %58 = vector.broadcast %cst_18 : f32 to vector<272x128xf32>
    %59 = arith.mulf %58, %55 : vector<272x128xf32>
    %60 = arith.select %57, %55, %59 : vector<272x128xi1>, vector<272x128xf32>
    %cst_19 = arith.constant 0.000000e+00 : f32
    %61 = vector.broadcast %cst_19 : f32 to vector<272x128xf32>
    %62 = arith.select %20, %60, %61 : vector<272x128xi1>, vector<272x128xf32>
    %cst_20 = arith.constant dense<0.000000e+00> : vector<128xf32>
    %63 = vector.multi_reduction <add>, %62, %cst_20 [0] : vector<272x128xf32> to vector<128xf32>
    %64 = vector.shape_cast %63 : vector<128xf32> to vector<1x128xf32>
    %cst_21 = arith.constant 3.906250e-03 : f32
    %65 = vector.broadcast %cst_21 : f32 to vector<1x128xf32>
    %66 = arith.mulf %64, %65 : vector<1x128xf32>
    %67 = arith.mulf %62, %62 : vector<272x128xf32>
    %cst_22 = arith.constant dense<0.000000e+00> : vector<128xf32>
    %68 = vector.multi_reduction <add>, %67, %cst_22 [0] : vector<272x128xf32> to vector<128xf32>
    %69 = vector.shape_cast %68 : vector<128xf32> to vector<1x128xf32>
    %cst_23 = arith.constant 3.906250e-03 : f32
    %70 = vector.broadcast %cst_23 : f32 to vector<1x128xf32>
    %71 = arith.mulf %69, %70 : vector<1x128xf32>
    %72 = arith.mulf %66, %66 : vector<1x128xf32>
    %73 = arith.subf %71, %72 : vector<1x128xf32>
    %cst_24 = arith.constant 9.99999974E-6 : f32
    %74 = vector.broadcast %cst_24 : f32 to vector<1x128xf32>
    %75 = arith.addf %73, %74 : vector<1x128xf32>
    %76 = math.rsqrt %75 : vector<1x128xf32>
    %c0_25 = arith.constant 0 : index
    %c0_26 = arith.constant 0 : index
    %77 = vector.load %arg4[%c0_25, %c0_26] : memref<1x128xf32, #tpu.memory_space<vmem>>, vector<1x128xf32>
    %78 = arith.mulf %76, %77 : vector<1x128xf32>
    %c0_27 = arith.constant 0 : index
    %c0_28 = arith.constant 0 : index
    %79 = vector.load %arg5[%c0_27, %c0_28] : memref<1x128xf32, #tpu.memory_space<vmem>>, vector<1x128xf32>
    %80 = arith.mulf %66, %78 : vector<1x128xf32>
    %81 = arith.subf %79, %80 : vector<1x128xf32>
    %82 = vector.broadcast %78 : vector<1x128xf32> to vector<272x128xf32>
    %83 = arith.mulf %62, %82 : vector<272x128xf32>
    %84 = vector.broadcast %81 : vector<1x128xf32> to vector<272x128xf32>
    %85 = arith.addf %83, %84 : vector<272x128xf32>
    %86 = arith.select %24, %85, %62 : vector<272x128xi1>, vector<272x128xf32>
    %87 = tpu.concatenate %25, %86, %25 in 0 : vector<24x128xf32>, vector<272x128xf32>, vector<24x128xf32> -> vector<320x128xf32>
    %88 = vector.extract_strided_slice %87 {offsets = [6, 0], sizes = [272, 128], strides = [1, 1]} : vector<320x128xf32> to vector<272x128xf32>
    %89 = vector.extract_strided_slice %87 {offsets = [7, 0], sizes = [272, 128], strides = [1, 1]} : vector<320x128xf32> to vector<272x128xf32>
    %90 = vector.extract_strided_slice %87 {offsets = [8, 0], sizes = [272, 128], strides = [1, 1]} : vector<320x128xf32> to vector<272x128xf32>
    %91 = tpu.concatenate %88, %89, %90 in 1 : vector<272x128xf32>, vector<272x128xf32>, vector<272x128xf32> -> vector<272x384xf32>
    %92 = arith.truncf %91 : vector<272x384xf32> to vector<272x384xbf16>
    %c0_29 = arith.constant 0 : index
    %c0_30 = arith.constant 0 : index
    %c0_31 = arith.constant 0 : index
    %93 = vector.load %arg6[%c0_29, %c0_30, %c0_31] : memref<3x384x128xbf16, #tpu.memory_space<vmem>>, vector<1x384x128xbf16>
    %94 = vector.shape_cast %93 : vector<1x384x128xbf16> to vector<384x128xbf16>
    %cst_32 = arith.constant dense<0.000000e+00> : vector<272x128xf32>
    %95 = tpu.matmul %92, %94, %cst_32 {dimension_numbers = #tpu.dot_dimension_numbers<[1], [0], [0], [1], [0, 0, 1, 1], [], []>} : vector<272x384xbf16>, vector<384x128xbf16>, vector<272x128xf32> -> vector<272x128xf32>
    %96 = vector.extract_strided_slice %87 {offsets = [23, 0], sizes = [272, 128], strides = [1, 1]} : vector<320x128xf32> to vector<272x128xf32>
    %97 = vector.extract_strided_slice %87 {offsets = [24, 0], sizes = [272, 128], strides = [1, 1]} : vector<320x128xf32> to vector<272x128xf32>
    %98 = vector.extract_strided_slice %87 {offsets = [25, 0], sizes = [272, 128], strides = [1, 1]} : vector<320x128xf32> to vector<272x128xf32>
    %99 = tpu.concatenate %96, %97, %98 in 1 : vector<272x128xf32>, vector<272x128xf32>, vector<272x128xf32> -> vector<272x384xf32>
    %100 = arith.truncf %99 : vector<272x384xf32> to vector<272x384xbf16>
    %c1_33 = arith.constant 1 : index
    %c0_34 = arith.constant 0 : index
    %c0_35 = arith.constant 0 : index
    %101 = vector.load %arg6[%c1_33, %c0_34, %c0_35] : memref<3x384x128xbf16, #tpu.memory_space<vmem>>, vector<1x384x128xbf16>
    %102 = vector.shape_cast %101 : vector<1x384x128xbf16> to vector<384x128xbf16>
    %cst_36 = arith.constant dense<0.000000e+00> : vector<272x128xf32>
    %103 = tpu.matmul %100, %102, %cst_36 {dimension_numbers = #tpu.dot_dimension_numbers<[1], [0], [0], [1], [0, 0, 1, 1], [], []>} : vector<272x384xbf16>, vector<384x128xbf16>, vector<272x128xf32> -> vector<272x128xf32>
    %104 = arith.addf %95, %103 : vector<272x128xf32>
    %105 = vector.extract_strided_slice %87 {offsets = [40, 0], sizes = [272, 128], strides = [1, 1]} : vector<320x128xf32> to vector<272x128xf32>
    %106 = vector.extract_strided_slice %87 {offsets = [41, 0], sizes = [272, 128], strides = [1, 1]} : vector<320x128xf32> to vector<272x128xf32>
    %107 = vector.extract_strided_slice %87 {offsets = [42, 0], sizes = [272, 128], strides = [1, 1]} : vector<320x128xf32> to vector<272x128xf32>
    %108 = tpu.concatenate %105, %106, %107 in 1 : vector<272x128xf32>, vector<272x128xf32>, vector<272x128xf32> -> vector<272x384xf32>
    %109 = arith.truncf %108 : vector<272x384xf32> to vector<272x384xbf16>
    %c2_37 = arith.constant 2 : index
    %c0_38 = arith.constant 0 : index
    %c0_39 = arith.constant 0 : index
    %110 = vector.load %arg6[%c2_37, %c0_38, %c0_39] : memref<3x384x128xbf16, #tpu.memory_space<vmem>>, vector<1x384x128xbf16>
    %111 = vector.shape_cast %110 : vector<1x384x128xbf16> to vector<384x128xbf16>
    %cst_40 = arith.constant dense<0.000000e+00> : vector<272x128xf32>
    %112 = tpu.matmul %109, %111, %cst_40 {dimension_numbers = #tpu.dot_dimension_numbers<[1], [0], [0], [1], [0, 0, 1, 1], [], []>} : vector<272x384xbf16>, vector<384x128xbf16>, vector<272x128xf32> -> vector<272x128xf32>
    %113 = arith.addf %104, %112 : vector<272x128xf32>
    %c0_41 = arith.constant 0 : index
    %c0_42 = arith.constant 0 : index
    %114 = vector.load %arg7[%c0_41, %c0_42] : memref<1x128xf32, #tpu.memory_space<vmem>>, vector<1x128xf32>
    %115 = vector.broadcast %114 : vector<1x128xf32> to vector<272x128xf32>
    %116 = arith.addf %113, %115 : vector<272x128xf32>
    %cst_43 = arith.constant 0.000000e+00 : f32
    %117 = vector.broadcast %cst_43 : f32 to vector<272x128xf32>
    %118 = arith.cmpf oge, %116, %117 : vector<272x128xf32>
    %cst_44 = arith.constant 2.000000e-01 : f32
    %119 = vector.broadcast %cst_44 : f32 to vector<272x128xf32>
    %120 = arith.mulf %119, %116 : vector<272x128xf32>
    %121 = arith.select %118, %116, %120 : vector<272x128xi1>, vector<272x128xf32>
    %122 = arith.addf %1, %121 : vector<272x128xf32>
    %c0_45 = arith.constant 0 : index
    %c0_46 = arith.constant 0 : index
    %c0_47 = arith.constant 0 : index
    %123 = vector.load %arg8[%c0_45, %c0_46, %c0_47] : memref<1x272x128xf32, #tpu.memory_space<vmem>>, vector<1x272x128xf32>
    %124 = vector.shape_cast %123 : vector<1x272x128xf32> to vector<272x128xf32>
    %125 = vector.shape_cast %122 : vector<272x128xf32> to vector<1x272x128xf32>
    tpu.vector_store %arg8[%c0_45, %c0_46, %c0_47], %125 {strides = array<i32>} : memref<1x272x128xf32, #tpu.memory_space<vmem>>, vector<1x272x128xf32>,
    return
  }
  func.func @transform_0(%arg0: i32) -> (i32, i32, i32) {
    %c0_i32 = arith.constant 0 : i32
    %c0_i32_0 = arith.constant 0 : i32
    %c0_i32_1 = arith.constant 0 : i32
    return %arg0, %c0_i32, %c0_i32_0 : i32, i32, i32
  }
  func.func @transform_1(%arg0: i32) -> (i32, i32, i32) {
    %c0_i32 = arith.constant 0 : i32
    %c0_i32_0 = arith.constant 0 : i32
    %c0_i32_1 = arith.constant 0 : i32
    %c0_i32_2 = arith.constant 0 : i32
    return %c0_i32, %c0_i32_0, %c0_i32_1 : i32, i32, i32
  }
  func.func @transform_2(%arg0: i32) -> (i32, i32) {
    %c0_i32 = arith.constant 0 : i32
    %c0_i32_0 = arith.constant 0 : i32
    %c0_i32_1 = arith.constant 0 : i32
    return %c0_i32, %c0_i32_0 : i32, i32
  }
  func.func @transform_3(%arg0: i32) -> (i32, i32) {
    %c0_i32 = arith.constant 0 : i32
    %c0_i32_0 = arith.constant 0 : i32
    %c0_i32_1 = arith.constant 0 : i32
    return %c0_i32, %c0_i32_0 : i32, i32
  }
  func.func @transform_4(%arg0: i32) -> (i32, i32) {
    %c0_i32 = arith.constant 0 : i32
    %c0_i32_0 = arith.constant 0 : i32
    %c0_i32_1 = arith.constant 0 : i32
    return %c0_i32, %c0_i32_0 : i32, i32
  }
  func.func @transform_5(%arg0: i32) -> (i32, i32, i32) {
    %c0_i32 = arith.constant 0 : i32
    %c0_i32_0 = arith.constant 0 : i32
    %c0_i32_1 = arith.constant 0 : i32
    %c0_i32_2 = arith.constant 0 : i32
    return %c0_i32, %c0_i32_0, %c0_i32_1 : i32, i32, i32
  }
  func.func @transform_6(%arg0: i32) -> (i32, i32) {
    %c0_i32 = arith.constant 0 : i32
    %c0_i32_0 = arith.constant 0 : i32
    %c0_i32_1 = arith.constant 0 : i32
    return %c0_i32, %c0_i32_0 : i32, i32
  }
  func.func @transform_7(%arg0: i32) -> (i32, i32, i32) {
    %c0_i32 = arith.constant 0 : i32
    %c0_i32_0 = arith.constant 0 : i32
    %c0_i32_1 = arith.constant 0 : i32
    return %arg0, %c0_i32, %c0_i32_0 : i32, i32, i32
  }
}

</mosaic_0001>

<bundles_post_ra>
// kernel: tpu_custom_call.1
= control target key start
LH: loop header
LB: loop body
LE: loop exit
PB: predicated region body
PF: predicated region fallthrough
CT: control target
= control target key end

     0   :  { %s14400_s0 = inlined_call_operand.hbm [shape: f32[2,272,128], index: 0, kind: input, shape index: {}]   ;;  %s14401_s1 = inlined_call_operand.hbm [shape: bf16[3,384,128], index: 1, kind: input, shape index: {}]   ;;  %s14402_s2 = inlined_call_operand.vmem [shape: f32[1,128], index: 2, kind: input, shape index: {}]   ;;  %s14403_s3 = inlined_call_operand.vmem [shape: f32[1,128], index: 3, kind: input, shape index: {}]   ;;  %s14404_s4 = inlined_call_operand.vmem [shape: f32[1,128], index: 4, kind: input, shape index: {}]   ;;  %s14405_s5 = inlined_call_operand.hbm [shape: bf16[3,384,128], index: 5, kind: input, shape index: {}]   ;;  %s14406_s6 = inlined_call_operand.vmem [shape: f32[1,128], index: 6, kind: input, shape index: {}]   ;;  %s14407_s7 = inlined_call_operand.hbm [shape: f32[2,272,128], index: 7, kind: output, shape index: {}]  }
   0x1   :  { %14846 = sst [smem:[#allocation135_spill]] %s14401_s1 }
   0x2   :  { %12 = vsyncpa [#allocation3], 0 }
   0x3   :  { %14 = vsyncpa [#allocation3 + $0x1], 0 }
   0x4   :  { %15 = vsyncpa [#allocation6], 0 }
   0x5   :  { %16 = vsyncpa [#allocation4], 0 }
   0x6   :  { %18 = vsyncpa [#allocation4 + $0x1], 0  ;;  %s8592_s24 = smov 0   ;;  %s8594_s25 = smov 0  }
   0x7   :  { %s8596_s26 = smov 0   ;;  %s8598_s27 = smov 0  }
   0x8 LB: > { %s8613_s28 = sadd.s32 4294967295, %s8536_s27   ;;  %s7198_s29 = sadd.s32 4294967294, %s8536_s27   ;;  %s8536_s27 = sphi %s8598_s27, %s16200_s27   ;;  %s8532_s26 = sphi %s8596_s26, %s16199_s26   ;;  %s8528_s25 = sphi %s8594_s25, %s16198_s25   ;;  %s8524_s24 = sphi %s8592_s24, %s16197_s24  }
   0x9   : > { %p44_p0 = scmp.ne.s32.totalorder %s8528_s25, %s8524_s24  ;;  %p14408_p1 = scmp.eq.s32.totalorder %s8613_s28, 0 }
   0xa   : > { %p200_p3 = scmp.eq.s32.totalorder %s7198_s29, 1  ;;  %p7199_p5 = scmp.ge.s32.totalorder %s8536_s27, 1 }
   0xb   : > { %p8622_p4 = por %p14408_p1, %p44_p0  ;;  %p207_p7 = scmp.lt.s32.totalorder %s8536_s27, 3 }
   0xc   : > { %p8627_p6 = por %p200_p3, %p44_p0  ;;  %s8538_s10 = smov [#allocation5]  }
   0xd   : > { %s14847_s30 = scalar_select %p8622_p4, 1, 0 }
   0xe   : > { %s14848_s8 = scalar_select %p8627_p6, 1, 0 }
   0xf   : > { %p8632_p8 = pnand %p7199_p5, %p207_p7  ;;  %s219_s11 = sshll.u32 %s8538_s10, 4  ;;  %s220_s11 = int_to_ptr.vmem [resolvable:$true] %s219_s11 }
  0x10   : > { %s8539_s13 = smov [#allocation7]   ;;  %s8399_s15 = scalar_lea.vmem %s220_s11, 9216 }
  0x11   : > { %s14849_s9 = scalar_select %p8632_p8, 1, 0 }
  0x12   : > { %p8110_p9 = pneg %p8632_p8  ;;  %s241_s14 = sshll.u32 %s8539_s13, 4  ;;  %s242_s14 = int_to_ptr.vmem [resolvable:$true] %s241_s14 }
  0x13   : > { %p8400_p13 = scmp.ne.s32.totalorder %s220_s11, %s8399_s15  ;;  %p8407_p5 = scmp.lt.s32.totalorder %s220_s11, %s220_s11 }
  0x14   : > { %p8641_p11 = pnand %p8110_p9, %p14408_p1  ;;  %p8408_p7 = scmp.lt.s32.totalorder %s8399_s15, %s8399_s15 }
  0x16   : > { %p8390_p12 = pneg %p8641_p11  ;;  %p8409_p10 = por %p8408_p7, %p8407_p5 }
  0x18   : > { %p8402_p0 = pnand %p8400_p13, %p8390_p12 }
  0x1a   : > { %p8403_p3 = pneg %p8402_p0 }
  0x1c   : > { %p8410_p9 = pnand %p8409_p10, %p8403_p3 }
  0x1e   : > { %8413 = shalt.err (!%p8410_p9)
}
  0x1f   : > { %s8540_s16 = smov 64   ;;  %s8541_s17 = smov 4  }
  0x20   : > { %s14851_s1 = sld [smem:[#allocation135_spill]]  ;;  %s8425_s20 = scalar_lea.vmem %s242_s14, 9216 }
  0x21   : > { %p8426_p1 = scmp.ne.s32.totalorder %s242_s14, %s8425_s20  ;;  %p8433_p2 = scmp.lt.s32.totalorder %s242_s14, %s242_s14 }
  0x22   : > { %p8434_p6 = scmp.lt.s32.totalorder %s8425_s20, %s8425_s20 }
  0x23   : > { %p8428_p13 = pnand %p8426_p1, %p8390_p12 }
  0x24   : > { %p8435_p5 = por %p8434_p6, %p8433_p2 }
  0x25   : > { %p8429_p0 = pneg %p8428_p13 }
  0x26   : > { %8113 = dma.hbm_to_vmem [thread:$0]  (!%p8641_p11), %s14851_s1, 9216, %s220_s11, [#allocation6], %s8540_s16, %s8540_s16, %s8541_s17  }
  0x27   : > { %p8436_p10 = pnand %p8435_p5, %p8429_p0 }
  0x29   : > { %8439 = shalt.err (!%p8436_p10)
}
  0x2a   : > { %8116 = dma.hbm_to_vmem [thread:$0]  (!%p8641_p11), %s14405_s5, 9216, %s242_s14, [#allocation6], %s8540_s16, %s8540_s16, %s8541_s17  }
  0x2b   : > { %s8664_s23 = sadd.s32 1, %s8536_s27   ;;  %s31_s29 = sadd.s32 1, %s8532_s26 }
  0x2c   : > { %s28_s10 = ssub.s32 %s8536_s27, %s8664_s23  ;;  %p38_p1 = scmp.ne.s32.totalorder %s8532_s26, %s8528_s25 }
  0x2d   : > { %p29_p2 = scmp.eq.s32.totalorder %s28_s10, 0  ;;  %p39_p6 = scmp.eq.s32.totalorder %s8536_s27, 0 }
  0x2e   : > { %p14852_p12 = scmp.eq.s32.totalorder %s8613_s28, 1  ;;  %p8127_p7 = scmp.lt.s32.totalorder %s8536_s27, 2 }
  0x2f   : > { %s8680_s12 = scalar_select %p29_p2, %s8532_s26, %s31_s29  }
  0x30   : > { %p8674_p3 = por %p14852_p12, %p38_p1  ;;  %p40_p9 = por %p39_p6, %p38_p1 }
  0x31   : > { %s258_s13 = sand.u32 1, %s8532_s26   ;;  %s8027_s14 = smul.u32 4352, %s8536_s27 }
  0x32   : > { %s14853_s11 = scalar_select %p8674_p3, 1, 0 }
  0x33   : > { %s8026_s15 = smul.u32 272, %s258_s13  ;;  %p8684_p11 = pnand %p8127_p7, %p40_p9 }
  0x34   : > { %s8691_s19 = scalar_lea.hbm %s14400_s0, %s8027_s14  ;;  %s8695_s22 = scalar_lea.sflag [#allocation3], %s258_s13 }
  0x35   : > { %s262_s20 = scalar_lea.vmem [#allocation2], %s8026_s15  ;;  %s8440_s29 = scalar_lea.hbm %s8691_s19, 4352 }
  0x36   : > { %s269_s21 = sshll.u32 %s262_s20, 4  ;;  %p8441_p13 = scmp.ne.s32.totalorder %s8691_s19, %s8440_s29  ;;  %s8693_s21 = int_to_ptr.vmem [resolvable:$true] %s269_s21 }
  0x37   : > { %p8442_p0 = pneg %p8684_p11  ;;  %s8445_s14 = scalar_lea.hbm %s14400_s0, 8704 }
  0x38   : > { %p8446_p1 = scmp.lt.s32.totalorder %s8691_s19, %s14400_s0  ;;  %p8447_p2 = scmp.lt.s32.totalorder %s8445_s14, %s8440_s29 }
  0x39   : > { %p8443_p5 = pnand %p8442_p0, %p8441_p13 }
  0x3a   : > { %p8448_p6 = por %p8447_p2, %p8446_p1 }
  0x3b   : > { %p8444_p10 = pneg %p8443_p5 }
  0x3d   : > { %p8449_p12 = pnand %p8448_p6, %p8444_p10 }
  0x3f   : > { %8452 = shalt.err (!%p8449_p12)
}
  0x40   : > { %s8453_s13 = scalar_lea.vmem %s8693_s21, 4352  ;;  %s8542_s15 = smov [#allocation2]  }
  0x41   : > { %p8454_p7 = scmp.ne.s32.totalorder %s8693_s21, %s8453_s13  ;;  %s8458_s20 = sshll.u32 %s8542_s15, 4  ;;  %s8459_s20 = int_to_ptr.vmem [resolvable:$false] %s8458_s20 }
  0x42   : > { %s8460_s10 = scalar_lea.vmem %s8459_s20, 8704  ;;  %p8461_p5 = scmp.lt.s32.totalorder %s8693_s21, %s8459_s20 }
  0x43   : > { %p8456_p9 = pnand %p8454_p7, %p8442_p0  ;;  %p8462_p3 = scmp.lt.s32.totalorder %s8460_s10, %s8453_s13 }
  0x45   : > { %p8457_p13 = pneg %p8456_p9  ;;  %p8463_p4 = por %p8462_p3, %p8461_p5 }
  0x47   : > { %p8464_p8 = pnand %p8463_p4, %p8457_p13 }
  0x49   : > { %8467 = shalt.err (!%p8464_p8)
}
  0x4a   : > { %s8543_s1 = smov 128   ;;  %s8544_s29 = smov 8  }
  0x4b   : > { %8120 = dma.hbm_to_vmem [thread:$0]  (!%p8684_p11), %s8691_s19, 4352, %s8693_s21, %s8695_s22, %s8543_s1, %s8543_s1, %s8544_s29  }
  0x4c   : > { %p14855_p0 = scmp.ne.s32.totalorder %s14849_s9, 0 }
  0x4e   : > { %281 = sbr.rel (%p14855_p0) target bundleno = 1549 (0x60d), region = 48 }
  0x53   : > { %s8719_s17 = sand.u32 1, %s8528_s25   ;;  %p14856_p4 = scmp.ne.s32.totalorder %s14847_s30, 0 }
  0x54   : > { %s8028_s14 = smul.u32 272, %s8719_s17  ;;  %s284_s18 = scalar_lea.sflag [#allocation3], %s8719_s17 }
  0x56   : > { %s8725_s13 = scalar_lea.vmem [#allocation2], %s8028_s14 }
  0x57   : > { %8511 = dma.done.wait (%p14856_p4), %s284_s18, 4352  }
  0x58   : > { %8513 = vsyncadd (%p14856_p4), %s284_s18, 4294962944  ;;  %p14857_p8 = scmp.eq.s32.totalorder %s8613_s28, 0 }
  0x5a   : > { %8515 = dma.done.wait (%p14857_p8), [#allocation6], 18432   ;;  %p14858_p3 = pmov %p14857_p8 }
  0x5b   : > { %v14415_v0 = vmov 0   ;;  %v14412_v1 = vmov 0.0   ;;  %vm14526_vm0 = vmmov 0   ;;  %v8175_v2 = vld [vmem:[#allocation5 + $0xf8] sm:$0xff]   ;;  %v8177_v4 = vld [vmem:[#allocation5 + $0xf0] sm:$0xff]   ;;  %v8179_v6 = vld [vmem:[#allocation5 + $0xe8] sm:$0xff]  }
  0x5c   : > { %8517 = vsyncadd (%p14858_p3), [#allocation6], 4294948864  ;;  %2104 = vmatprep.subr.bf16.mxu0 %v14415_v0  ;;  %7506 = vmatprep.subr.bf16.mxu1 %v14412_v1  ;;  %v8176_v3 = vld [vmem:[#allocation5 + $0x178] sm:$0xff]   ;;  %v8178_v5 = vld [vmem:[#allocation5 + $0x170] sm:$0xff]   ;;  %vm14529_vm1 = vcmask 1045504   ;;  %vm14532_vm2 = vcmask 1046528  }
  0x5d   : > { %7522 = vmatprep.mubr.msk.bf16.mxu1 %vm14526_vm0, %v14412_v1  ;;  %2105 = vmatpush1.bf16.msra.mxu0 %v8175_v2  ;;  %v8180_v7 = vld [vmem:[#allocation5 + $0x168] sm:$0xff]   ;;  %v8181_v8 = vld [vmem:[#allocation5 + $0xe0] sm:$0xff]   ;;  %v8183_v10 = vld [vmem:[#allocation5 + $0xd8] sm:$0xff]   ;;  %vm14528_vm3 = vsmask.f32 4352  ;;  %vm14518_vm4 = vcmask 1044480  }
  0x5e   : > { %7507 = vmatpush3.bf16.msra.mxu1 %v8176_v3  ;;  %2106 = vmatprep.subr.bf16.mxu0 %v14415_v0  ;;  %v8182_v9 = vld [vmem:[#allocation5 + $0x160] sm:$0xff]   ;;  %v8184_v11 = vld [vmem:[#allocation5 + $0x158] sm:$0xff]   ;;  %v8185_v19 = vld [vmem:[#allocation5 + $0xd0] sm:$0xff]   ;;  %s14218_s29 = scalar_lea.vmem [#allocation8], %s8028_s14  ;;  %s8097_s14 = smul.u32 4352, %s8613_s28 }
  0x5f   : > { %7508 = vmatprep.subr.bf16.mxu1 %v14412_v1  ;;  %v8748_v12 = vld [vmem:[%s8725_s13] sm:$0xff]  ;;  %v8751_v13 = vld [vmem:[%s8725_s13 + $0x8] sm:$0xff]  ;;  %v8754_v14 = vld [vmem:[%s8725_s13 + $0x10] sm:$0xff]  ;;  %s7106_s18 = sshll.u32 %s14218_s29, 4  ;;  %s7093_s28 = scalar_lea.sflag [#allocation4], %s8719_s17  ;;  %s14356_s18 = int_to_ptr.vmem [resolvable:$true] %s7106_s18 }
  0x60   : > { %v8757_v15 = vld [vmem:[%s8725_s13 + $0x18] sm:$0xff]  ;;  %v8760_v16 = vrot.slane %v8748_v12, 2  ;;  %v1150_v17 = vrot.slane %v8751_v13, 2  ;;  %v1152_v18 = vrot.slane %v8754_v14, 2  ;;  %v8186_v21 = vld [vmem:[#allocation5 + $0x150] sm:$0xff]   ;;  %v8775_v25 = vrot.slane %v8748_v12, 1  ;;  %s14353_s16 = scalar_lea.hbm %s14407_s7, %s8097_s14 }
  0x61   : > { %2107 = vmatpush1.bf16.msra.mxu0 %v8177_v4  ;;  %v1154_v20 = vrot.slane %v8757_v15, 2  ;;  %v8772_v24 = vld [vmem:[%s8725_s13 + $0x20] sm:$0xff]  ;;  %v1049_v26 = vrot.slane %v8751_v13, 1  ;;  %v8785_v29 = vld [vmem:[%s8725_s13 + $0x28] sm:$0xff]  ;;  %v8796_v38 = vld [vmem:[%s8725_s13 + $0x30] sm:$0xff]  ;;  %v1051_v53 = vrot.slane %v8754_v14, 1 }
  0x62   : > { %7509 = vmatpush3.bf16.msra.mxu1 %v8178_v5  ;;  %2108 = vmatprep.subr.bf16.mxu0 %v14415_v0  ;;  %v8768_v22 = vsel %vm14529_vm1, %v8760_v16, %v1150_v17  ;;  %v1153_v23 = vsel %vm14529_vm1, %v1150_v17, %v1152_v18  ;;  %v1156_v30 = vrot.slane %v8772_v24, 2  ;;  %v8187_v31 = vld [vmem:[#allocation5 + $0xc8] sm:$0xff]   ;;  %v1158_v33 = vrot.slane %v8785_v29, 2  ;;  %v8189_v45 = vld [vmem:[#allocation5 + $0xc0] sm:$0xff]   ;;  %v8191_v5 = vld [vmem:[#allocation5 + $0x138] sm:$0xff]   ;;  %s8468_s19 = scalar_lea.vmem %s14356_s18, 4352 }
  0x63   : > { %7510 = vmatprep.subr.bf16.mxu1 %v14412_v1  ;;  %v8780_v27 = vsel %vm14529_vm1, %v1152_v18, %v1154_v20  ;;  %v1369_v28 = vpack.c.bf16 %v8768_v22, %v8760_v16  ;;  %v8188_v34 = vld [vmem:[#allocation5 + $0x148] sm:$0xff]   ;;  %v8803_v40 = vsel %vm14532_vm2, %v8775_v25, %v1049_v26  ;;  %v1160_v49 = vrot.slane %v8796_v38, 2  ;;  %v8824_v57 = vld [vmem:[%s8725_s13 + $0x40] sm:$0xff]  ;;  %p8469_p11 = scmp.ne.s32.totalorder %s14356_s18, %s8468_s19  ;;  %p16194_p10 = scmp.ne.s32.totalorder %s14853_s11, 0 }
  0x64   : > { %14859 = vst [vmem:[#allocation12_spill] sm:$0xff] %v8780_v27  ;;  %v8789_v32 = vpack.c.bf16 %v8780_v27, %v1153_v23  ;;  %v8793_v37 = vsel %vm14529_vm1, %v1154_v20, %v1156_v30  ;;  %v8799_v39 = vld [vmem:[%s8725_s13 + $0x38] sm:$0xff]  ;;  %v8809_v43 = vsel %vm14529_vm1, %v1156_v30, %v1158_v33  ;;  %v8827_v58 = vld [vmem:[%s8725_s13 + $0x48] sm:$0xff]  ;;  %v8190_v59 = vld [vmem:[#allocation5 + $0x140] sm:$0xff]   ;;  %v1164_v63 = vrot.slane %v8824_v57, 2  ;;  %s8549_s21 = smov [#allocation8]  }
  0x65   : > { %2109 = vmatpush1.bf16.msra.mxu0 %v8179_v6  ;;  %v1461_v35 = vshrl.u32 %v1369_v28, 16  ;;  %v1464_v36 = vshll.u32 %v1369_v28, 16  ;;  %14860 = vst [vmem:[#allocation13_spill] sm:$0xff] %v8793_v37  ;;  %14861 = vst [vmem:[#allocation14_spill] sm:$0xff] %v8809_v43  ;;  %v8816_v48 = vpack.c.bf16 %v8809_v43, %v8793_v37  ;;  %v1162_v52 = vrot.slane %v8799_v39, 2  ;;  %v8199_v20 = vld [vmem:[#allocation5 + $0x38] sm:$0xff]   ;;  %p8470_p1 = pnand %p8469_p11, %p16194_p10 }
  0x66   : > { %7511 = vmatpush3.bf16.msra.mxu1 %v8180_v7  ;;  %2110 = vmatprep.subr.bf16.mxu0 %v14415_v0  ;;  %v1469_v41 = vshrl.u32 %v8789_v32, 16  ;;  %v1472_v42 = vshll.u32 %v8789_v32, 16  ;;  %v8831_v61 = vsel %vm14529_vm1, %v1158_v33, %v1160_v49  ;;  %v1368_v2 = vpack.c.bf16 %v8803_v40, %v8775_v25  ;;  %v8192_v30 = vld [vmem:[#allocation5 + $0x130] sm:$0xff]   ;;  %s8472_s22 = sshll.u32 %s8549_s21, 4  ;;  %s8473_s22 = int_to_ptr.vmem [resolvable:$false] %s8472_s22 }
  0x67   : > { %7512 = vmatprep.subr.bf16.mxu1 %v14412_v1  ;;  %v1463_v46 = vrot.slane %v1461_v35, 3  ;;  %v1466_v47 = vrot.slane %v1464_v36, 4  ;;  %14862 = vst [vmem:[#allocation15_spill] sm:$0xff] %v8816_v48  ;;  %v1496_v55 = vshrl.u32 %v8816_v48, 16  ;;  %v1499_v56 = vshll.u32 %v8816_v48, 16  ;;  %14863 = vst [vmem:[#allocation16_spill] sm:$0xff] %v8831_v61  ;;  %p8471_p2 = pneg %p8470_p1  ;;  %p8475_p6 = scmp.lt.s32.totalorder %s14356_s18, %s8473_s22 }
  0x68   : > { %v1471_v50 = vrot.slane %v1469_v41, 3  ;;  %v1474_v51 = vrot.slane %v1472_v42, 4  ;;  %v8834_v62 = vsel %vm14529_vm1, %v1160_v49, %v1162_v52  ;;  %v1166_v3 = vrot.slane %v8827_v58, 2  ;;  %v8866_v33 = vld [vmem:[%s8725_s13 + $0x50] sm:$0xff]  ;;  %v8875_v42 = vld [vmem:[%s8725_s13 + $0x58] sm:$0xff]  ;;  %s8474_s15 = scalar_lea.vmem %s8473_s22, 8704 }
  0x69   : > { %2111 = vmatpush1.bf16.msra.mxu0 %v8181_v8  ;;  %v1467_v54 = vor.u32 %v1466_v47, %v1463_v46  ;;  %14864 = vst [vmem:[#allocation17_spill] sm:$0xff] %v8834_v62  ;;  %v1053_v4 = vrot.slane %v8757_v15, 1  ;;  %v1498_v6 = vrot.slane %v1496_v55, 3  ;;  %v1501_v7 = vrot.slane %v1499_v56, 4  ;;  %v8201_v46 = vld [vmem:[#allocation5 + $0x30] sm:$0xff]   ;;  %p8476_p12 = scmp.lt.s32.totalorder %s8474_s15, %s8468_s19 }
  0x6a   : > { %7513 = vmatpush3.bf16.msra.mxu1 %v8182_v9  ;;  %2112 = vmatprep.subr.bf16.mxu0 %v14415_v0  ;;  %v1475_v60 = vor.u32 %v1474_v51, %v1471_v50  ;;  %v8844_v8 = vpack.c.bf16 %v8834_v62, %v8831_v61  ;;  %v1052_v9 = vsel %vm14532_vm2, %v1049_v26, %v1051_v53  ;;  %v1444_v17 = vshrl.u32 %v1368_v2, 16 }
  0x6b   : > { %7514 = vmatprep.subr.bf16.mxu1 %v14412_v1  ;;  %v1447_v18 = vshll.u32 %v1368_v2, 16  ;;  %v1168_v51 = vrot.slane %v8866_v33, 2  ;;  %v8194_v2 = vld [vmem:[#allocation5 + $0x120] sm:$0xff]   ;;  %v9005_v62 = vpack.c.bf16 %v8796_v38, %v8785_v29  ;;  %p8477_p7 = por %p8476_p12, %p8475_p6 }
  0x6c   : > { %14865 = vst [vmem:[#allocation18_spill] sm:$0xff] %v8844_v8  ;;  %v1446_v26 = vrot.slane %v1444_v17, 3  ;;  %v1526_v35 = vshll.u32 %v8844_v8, 16 }
  0x6d   : > { %2113 = vmatpush1.bf16.msra.mxu0 %v8183_v10  ;;  %v1476_v10 = vsel %vm14528_vm3, %v1467_v54, %v1475_v60  ;;  %v1449_v28 = vrot.slane %v1447_v18, 4  ;;  %v1170_v54 = vrot.slane %v8875_v42, 2  ;;  %v8904_v18 = vld [vmem:[%s8725_s13 + $0x60] sm:$0xff]  ;;  %p8478_p9 = pnand %p8477_p7, %p8471_p2 }
  0x6e   : > { %7515 = vmatpush3.bf16.msra.mxu1 %v8184_v11  ;;  %2114 = vmatprep.subr.bf16.mxu0 %v14415_v0  ;;  %v8852_v11 = vsel %vm14532_vm2, %v1051_v53, %v1053_v4  ;;  %v1528_v56 = vrot.slane %v1526_v35, 4 }
  0x6f   : > { %7516 = vmatprep.subr.bf16.mxu1 %v14412_v1  ;;  %14866 = vst [vmem:[#allocation19_spill] sm:$0xff] %v8852_v11  ;;  %v8862_v23 = vpack.c.bf16 %v8852_v11, %v1052_v9  ;;  %v1450_v47 = vor.u32 %v1449_v28, %v1446_v26  ;;  %v8901_v17 = vsel %vm14529_vm1, %v1168_v51, %v1170_v54  ;;  %v8913_v26 = vld [vmem:[%s8725_s13 + $0x68] sm:$0xff] }
  0x70   : > { %14871 = vst [vmem:[#allocation24_spill] sm:$0xff] %v8901_v17 }
  0x71   : > { %2115 = vmatpush1.bf16.msra.mxu0 %v8185_v19  ;;  %v8855_v19 = vsel %vm14529_vm1, %v1162_v52, %v1164_v63  ;;  %v1452_v36 = vshrl.u32 %v8862_v23, 16  ;;  %v1455_v41 = vshll.u32 %v8862_v23, 16  ;;  %v8193_v52 = vld [vmem:[#allocation5 + $0x128] sm:$0xff]  }
  0x72   : > { %7517 = vmatpush3.bf16.msra.mxu1 %v8186_v21  ;;  %2116 = vmatprep.subr.bf16.mxu0 %v14415_v0  ;;  %14867 = vst [vmem:[#allocation20_spill] sm:$0xff] %v8855_v19  ;;  %v8859_v21 = vsel %vm14529_vm1, %v1164_v63, %v1166_v3  ;;  %v1055_v63 = vrot.slane %v8772_v24, 1 }
  0x73   : > { %7518 = vmatprep.subr.bf16.mxu1 %v14412_v1  ;;  %14868 = vst [vmem:[#allocation21_spill] sm:$0xff] %v8859_v21  ;;  %v1454_v49 = vrot.slane %v1452_v36, 3  ;;  %v1457_v50 = vrot.slane %v1455_v41, 4  ;;  %v1172_v41 = vrot.slane %v8904_v18, 2 }
  0x74   : > { %v8921_v28 = vsel %vm14532_vm2, %v1053_v4, %v1055_v63  ;;  %v1174_v4 = vrot.slane %v8913_v26, 2 }
  0x75   : > { %2117 = vmatpush1.bf16.msra.mxu0 %v8187_v31  ;;  %v1523_v31 = vshrl.u32 %v8844_v8, 16  ;;  %14872 = vst [vmem:[#allocation25_spill] sm:$0xff] %v8921_v28 }
  0x76   : > { %7519 = vmatpush3.bf16.msra.mxu1 %v8188_v34  ;;  %2118 = vmatprep.subr.bf16.mxu0 %v14415_v0  ;;  %v1502_v34 = vor.u32 %v1501_v7, %v1498_v6  ;;  %v1057_v6 = vrot.slane %v8785_v29, 1  ;;  %v8202_v7 = vld [vmem:[#allocation5 + $0x28] sm:$0xff]   ;;  %v8962_v44 = vsel %vm14529_vm1, %v1172_v41, %v1174_v4 }
  0x77   : > { %7520 = vmatprep.subr.bf16.mxu1 %v14412_v1  ;;  %v1525_v53 = vrot.slane %v1523_v31, 3  ;;  %v8204_v31 = vld [vmem:[#allocation5 + $0x20] sm:$0xff]   ;;  %14876 = vst [vmem:[#allocation29_spill] sm:$0xff] %v8962_v44  ;;  %v8208_v29 = vld [vmem:[#allocation5 + $0x8] sm:$0xff]  }
  0x78   : > { %v1503_v55 = vsel %vm14528_vm3, %v1475_v60, %v1502_v34 }
  0x79   : > { %2119 = vmatpush1.bf16.msra.mxu0 %v8189_v45  ;;  %v8879_v45 = vpack.c.bf16 %v8859_v21, %v8855_v19 }
  0x7a   : > { %7521 = vmatpush3.bf16.msra.mxu1 %v8190_v59  ;;  %2120 = vmatprep.subr.bf16.mxu0 %v14415_v0  ;;  %v8886_v59 = vor.u32 %v1457_v50, %v1454_v49  ;;  %v1059_v50 = vrot.slane %v8796_v38, 1 }
  0x7b   : > { %2797 = vmatprep.subr.bf16.mxu1 %v14415_v0  ;;  %14869 = vst [vmem:[#allocation22_spill] sm:$0xff] %v8879_v45  ;;  %v1550_v9 = vshrl.u32 %v8879_v45, 16 }
  0x7c   : > { %v1459_v60 = vsel %vm14528_vm3, %v1450_v47, %v8886_v59 }
  0x7d   : > { %7523 = vmatmul.mubr.bf16.vlgmr.msra.gmra.mxu1 %v1476_v10  ;;  %2121 = vmatpush2.bf16.msra.mxu0 %v8191_v5  ;;  %v8891_v5 = vpack.c.bf16 %v8748_v12, %v14412_v1  ;;  %v8898_v10 = vsel %vm14529_vm1, %v1166_v3, %v1168_v51  ;;  %v1553_v12 = vshll.u32 %v8879_v45, 16  ;;  %v1529_v3 = vor.u32 %v1528_v56, %v1525_v53  ;;  %v8946_v56 = vld [vmem:[%s8725_s13 + $0x70] sm:$0xff] }
  0x7e   : > { %2122 = vmatprep.subr.bf16.mxu0 %v14415_v0  ;;  %7526 = vmatprep.mubr.msk.bf16.mxu1 %vm14526_vm0, %v14412_v1  ;;  %14870 = vst [vmem:[#allocation23_spill] sm:$0xff] %v8898_v10  ;;  %v1552_v35 = vrot.slane %v1550_v9, 3  ;;  %v8952_v9 = vpack.c.bf16 %v8772_v24, %v8757_v15  ;;  %v8969_v24 = vsel %vm14532_vm2, %v1057_v6, %v1059_v50 }
  0x7f   : > { %2798 = vmatpush1.bf16.msra.mxu1 %v8199_v20  ;;  %v8910_v20 = vpack.c.bf16 %v8754_v14, %v8751_v13  ;;  %2136 = vmatprep.mubr.bf16.mxu0 %v1459_v60  ;;  %v1427_v13 = vshrl.u32 %v8891_v5, 16  ;;  %v8929_v14 = vpack.c.bf16 %v8901_v17, %v8898_v10  ;;  %v1430_v36 = vshll.u32 %v8891_v5, 16  ;;  %14877 = vst [vmem:[#allocation30_spill] sm:$0xff] %v8969_v24 }
  0x80   : > { %2799 = vmatprep.subr.bf16.mxu1 %v14415_v0  ;;  %v1555_v47 = vrot.slane %v1553_v12, 4  ;;  %v8959_v12 = vsel %vm14529_vm1, %v1170_v54, %v1172_v41  ;;  %v1478_v17 = vshrl.u32 %v8952_v9, 16  ;;  %v1481_v21 = vshll.u32 %v8952_v9, 16 }
  0x81   : > { %2123 = vmatpush2.bf16.msra.mxu0 %v8192_v30  ;;  %v8924_v30 = vsel %vm14532_vm2, %v1055_v63, %v1057_v6  ;;  %14874 = vst [vmem:[#allocation27_spill] sm:$0xff] %v8929_v14  ;;  %v1435_v53 = vshrl.u32 %v8910_v20, 16  ;;  %v8205_v63 = vld [vmem:[#allocation5 + $0x18] sm:$0xff]   ;;  %v8954_v60 = vrot.slane %v1427_v13, 3  ;;  %14875 = vst [vmem:[#allocation28_spill] sm:$0xff] %v8959_v12  ;;  %v14878_v13 = vrot.slane %v8799_v39, 1 }
  0x82   : > { %2124 = vmatprep.subr.bf16.mxu0 %v14415_v0  ;;  %14873 = vst [vmem:[#allocation26_spill] sm:$0xff] %v8924_v30  ;;  %v8937_v49 = vpack.c.bf16 %v8924_v30, %v8921_v28  ;;  %v8965_v51 = vor.u32 %v1555_v47, %v1552_v35  ;;  %v1176_v47 = vrot.slane %v8946_v56, 2  ;;  %v8203_v28 = vld [vmem:[#allocation5 + $0xb0] sm:$0xff]  }
  0x83   : > { %2800 = vmatpush1.bf16.msra.mxu1 %v8201_v46  ;;  %v8195_v46 = vld [vmem:[#allocation5 + $0x118] sm:$0xff]   ;;  %v8974_v54 = vsel %vm14532_vm2, %v1059_v50, %v14878_v13  ;;  %v1437_v41 = vrot.slane %v1435_v53, 3  ;;  %v8987_v50 = vpack.c.bf16 %v8962_v44, %v8959_v12  ;;  %v8207_v13 = vld [vmem:[#allocation5 + $0x10] sm:$0xff]  }
  0x84   : > { %2801 = vmatprep.subr.bf16.mxu1 %v14415_v0  ;;  %v1487_v15 = vshrl.u32 %v8937_v49, 16  ;;  %14879 = vst [vmem:[#allocation31_spill] sm:$0xff] %v8974_v54  ;;  %v1557_v44 = vsel %vm14528_vm3, %v1529_v3, %v8965_v51 }
  0x85   : > { %7527 = vmatmul.mubr.bf16.gmra.mxu1 %v1503_v55  ;;  %2125 = vmatpush2.bf16.msra.mxu0 %v8193_v52  ;;  %v1530_v52 = vsel %vm14528_vm3, %v1502_v34, %v1529_v3  ;;  %v1438_v55 = vshll.u32 %v8910_v20, 16  ;;  %v8956_v34 = vrot.slane %v1430_v36, 4  ;;  %v14880_v36 = vmov 0.0   ;;  %14881 = vst [vmem:[#allocation32_spill] sm:$0xff] %v8987_v50  ;;  %v9014_v3 = vld [vmem:[%s8725_s13 + $0x80] sm:$0xff] }
  0x86   : > { %2126 = vmatprep.subr.bf16.mxu0 %v14415_v0  ;;  %7530 = vmatprep.mubr.msk.bf16.mxu1 %vm14526_vm0, %v14412_v1  ;;  %v8196_v1 = vld [vmem:[#allocation5 + $0x110] sm:$0xff]   ;;  %v1489_v10 = vrot.slane %v1487_v15, 3  ;;  %v1607_v15 = vshll.u32 %v8987_v50, 16 }
  0x87   : > { %2802 = vmatpush1.bf16.msra.mxu1 %v8202_v7  ;;  %v1580_v7 = vshll.u32 %v8929_v14, 16  ;;  %v1440_v35 = vrot.slane %v1438_v55, 4  ;;  %v1063_v55 = vrot.slane %v8824_v57, 1  ;;  %v1433_v12 = vor.u32 %v8956_v34, %v8954_v60 }
  0x88   : > { %2803 = vmatprep.subr.bf16.mxu1 %v14415_v0  ;;  %v1480_v60 = vrot.slane %v1478_v17, 3  ;;  %v1604_v34 = vshrl.u32 %v8987_v50, 16  ;;  %v8198_v17 = vld [vmem:[#allocation5 + $0x100] sm:$0xff]   ;;  %v1609_v37 = vrot.slane %v1607_v15, 4 }
  0x89   : > { %2127 = vmatpush2.bf16.msra.mxu0 %v8194_v2  ;;  %v1577_v2 = vshrl.u32 %v8929_v14, 16  ;;  %v9016_v43 = vor.u32 %v1440_v35, %v1437_v41  ;;  %v1483_v35 = vrot.slane %v1481_v21, 4  ;;  %v1067_v21 = vrot.slane %v8866_v33, 1 }
  0x8a   : > { %2128 = vmatprep.subr.bf16.mxu0 %v14415_v0 }
  0x8b   : > { %2804 = vmatpush1.bf16.msra.mxu1 %v8204_v31  ;;  %v8977_v31 = vld [vmem:[%s8725_s13 + $0x78] sm:$0xff]  ;;  %v1579_v6 = vrot.slane %v1577_v2, 3  ;;  %v1065_v2 = vrot.slane %v8827_v58, 1 }
  0x8c   : > { %2805 = vmatprep.subr.bf16.mxu1 %v14415_v0  ;;  %v1178_v53 = vrot.slane %v8977_v31, 2 }
  0x8d   : > { %7531 = vmatmul.mubr.bf16.gmra.mxu1 %v1530_v52  ;;  %2129 = vmatpush2.bf16.msra.mxu0 %v8195_v46  ;;  %v1490_v46 = vshll.u32 %v8937_v49, 16  ;;  %v1582_v52 = vrot.slane %v1580_v7, 4  ;;  %v14882_v7 = vmov 0   ;;  %v9032_v41 = vsel %vm14532_vm2, %v1063_v55, %v1065_v2 }
  0x8e   : > { %2130 = vmatprep.subr.bf16.mxu0 %v14415_v0  ;;  %7534 = vmatprep.mubr.msk.bf16.mxu1 %vm14526_vm0, %v14880_v36  ;;  %v8991_v0 = vpack.c.bf16 %v8974_v54, %v8969_v24  ;;  %v9011_v61 = vsel %vm14529_vm1, %v1176_v47, %v1178_v53  ;;  %14887 = vst [vmem:[#allocation36_spill] sm:$0xff] %v9032_v41  ;;  %v8210_v54 = vld [vmem:[#allocation5] sm:$0xff]   ;;  %v14435_v24 = vrot.slane %v8875_v42, 1 }
  0x8f   : > { %2806 = vmatpush1.bf16.msra.mxu1 %v8205_v63  ;;  %v8197_v63 = vld [vmem:[#allocation5 + $0x108] sm:$0xff]   ;;  %v1492_v19 = vrot.slane %v1490_v46, 4  ;;  %14884 = vst [vmem:[#allocation34_spill] sm:$0xff] %v9011_v61  ;;  %v9023_v38 = vor.u32 %v1582_v52, %v1579_v6  ;;  %v1180_v52 = vrot.slane %v9014_v3, 2 }
  0x90   : > { %2807 = vmatprep.subr.bf16.mxu1 %v14882_v7  ;;  %v9021_v46 = vld [vmem:[%s8725_s13 + $0x88] sm:$0xff] }
  0x91   : > { %2131 = vmatpush2.bf16.msra.mxu0 %v8196_v1  ;;  %v9008_v1 = vsel %vm14529_vm1, %v1174_v4, %v1176_v47  ;;  %v1514_v4 = vshrl.u32 %v8991_v0, 16  ;;  %v14885_v47 = vrot.slane %v8799_v39, 1  ;;  %v14895_v14 = vrot.slane %v9021_v46, 2 }
  0x92   : > { %2132 = vmatprep.subr.bf16.mxu0 %v14882_v7  ;;  %14883 = vst [vmem:[#allocation33_spill] sm:$0xff] %v9008_v1  ;;  %v9038_v6 = vpack.c.bf16 %v9011_v61, %v9008_v1  ;;  %v1508_v61 = vshll.u32 %v9005_v62, 16 }
  0x93   : > { %2808 = vmatpush1.bf16.msra.mxu1 %v8207_v13  ;;  %v9029_v27 = vsel %vm14532_vm2, %v14885_v47, %v1063_v55  ;;  %v1517_v13 = vshll.u32 %v8991_v0, 16  ;;  %v9044_v55 = vor.u32 %v1492_v19, %v1489_v10  ;;  %v1606_v47 = vrot.slane %v1604_v34, 3  ;;  %v8200_v34 = vld [vmem:[#allocation5 + $0xb8] sm:$0xff]  }
  0x94   : > { %14886 = vst [vmem:[#allocation35_spill] sm:$0xff] %v9029_v27  ;;  %2809 = vmatprep.subr.bf16.mxu1 %v14882_v7  ;;  %14888 = vst [vmem:[#allocation37_spill] sm:$0xff] %v9038_v6  ;;  %v9052_v1 = vpack.c.bf16 %v9032_v41, %v9029_v27  ;;  %v1442_v19 = vsel %vm14528_vm3, %v1433_v12, %v9016_v43  ;;  %v1584_v10 = vsel %vm14528_vm3, %v8965_v51, %v9023_v38 }
  0x95   : > { %7535 = vmatmul.mubr.bf16.gmra.mxu1 %v1557_v44  ;;  %2133 = vmatpush2.bf16.msra.mxu0 %v8197_v63  ;;  %v1505_v44 = vshrl.u32 %v9005_v62, 16  ;;  %v1516_v63 = vrot.slane %v1514_v4, 3  ;;  %v1519_v15 = vrot.slane %v1517_v13, 4  ;;  %v1631_v41 = vshrl.u32 %v9038_v6, 16 }
  0x96   : > { %2134 = vmatprep.subr.bf16.mxu0 %v14882_v7  ;;  %7538 = vmatprep.mubr.msk.bf16.mxu1 %vm14526_vm0, %v14880_v36  ;;  %v9067_v12 = vsel %vm14529_vm1, %v1178_v53, %v1180_v52  ;;  %v1634_v51 = vshll.u32 %v9038_v6, 16  ;;  %v14890_v4 = vrot.slane %v9021_v46, 2  ;;  %v9077_v13 = vsel %vm14532_vm2, %v1065_v2, %v1067_v21 }
  0x97   : > { %2810 = vmatpush1.bf16.msra.mxu1 %v8208_v29  ;;  %v9064_v29 = vpack.c.bf16 %v8824_v57, %v8799_v39  ;;  %14889 = vst [vmem:[#allocation38_spill] sm:$0xff] %v9067_v12  ;;  %14892 = vst [vmem:[#allocation40_spill] sm:$0xff] %v9077_v13  ;;  %v9082_v39 = vsel %vm14532_vm2, %v1067_v21, %v14435_v24  ;;  %v8211_v57 = vld [vmem:[#allocation5 + $0x78] sm:$0xff]   ;;  %v1494_v53 = vsel %vm14528_vm3, %v8886_v59, %v9044_v55  ;;  %v9094_v21 = vld [vmem:[%s8725_s13 + $0x90] sm:$0xff] }
  0x98   : > { %2811 = vmatprep.subr.bf16.mxu1 %v14882_v7  ;;  %14893 = vst [vmem:[#allocation41_spill] sm:$0xff] %v9082_v39  ;;  %v1541_v27 = vshrl.u32 %v9052_v1, 16  ;;  %v1544_v30 = vshll.u32 %v9052_v1, 16  ;;  %v9091_v2 = vor.u32 %v1609_v37, %v1606_v47  ;;  %v9097_v59 = vor.u32 %v1519_v15, %v1516_v63  ;;  %v9108_v37 = vld [vmem:[%s8725_s13 + $0x98] sm:$0xff] }
  0x99   : > { %2135 = vmatpush2.bf16.msra.mxu0 %v8198_v17  ;;  %v9074_v17 = vsel %vm14529_vm1, %v1180_v52, %v14890_v4  ;;  %v9089_v52 = vor.u32 %v1483_v35, %v1480_v60  ;;  %v1507_v4 = vrot.slane %v1505_v44, 3  ;;  %v1510_v24 = vrot.slane %v1508_v61, 4  ;;  %v8213_v60 = vld [vmem:[#allocation5 + $0x70] sm:$0xff]  }
  0x9a   : > { %7590 = vmatprep.subr.bf16.mxu0 %v14880_v36  ;;  %14891 = vst [vmem:[#allocation39_spill] sm:$0xff] %v9074_v17  ;;  %v9101_v11 = vpack.c.bf16 %v9074_v17, %v9067_v12  ;;  %v1633_v35 = vrot.slane %v1631_v41, 3  ;;  %v1636_v44 = vrot.slane %v1634_v51, 4  ;;  %v1532_v61 = vshrl.u32 %v9064_v29, 16  ;;  %v8206_v41 = vld [vmem:[#allocation5 + $0xa8] sm:$0xff]  }
  0x9b   : > { %2812 = vmatpush1.bf16.msra.mxu1 %v8210_v54  ;;  %v9105_v54 = vpack.c.bf16 %v9082_v39, %v9077_v13  ;;  %v1535_v63 = vshll.u32 %v9064_v29, 16  ;;  %v1543_v47 = vrot.slane %v1541_v27, 3  ;;  %v1071_v12 = vrot.slane %v8904_v18, 1  ;;  %v9144_v13 = vld [vmem:[%s8725_s13 + $0xa8] sm:$0xff] }
  0x9c   : > { %2137 = vmatmul.mubr.bf16.vlgmr.msra.gmra.mxu0 %v1442_v19  ;;  %2813 = vmatprep.subr.bf16.mxu1 %v14882_v7  ;;  %14894 = vst [vmem:[#allocation42_spill] sm:$0xff] %v9101_v11  ;;  %v1546_v19 = vrot.slane %v1544_v30, 4  ;;  %v1658_v15 = vshrl.u32 %v9101_v11, 16  ;;  %v1661_v51 = vshll.u32 %v9101_v11, 16  ;;  %v1184_v30 = vrot.slane %v9094_v21, 2 }
  0x9d   : > { %7539 = vmatmul.mubr.bf16.gmra.mxu1 %v1584_v10  ;;  %7591 = vmatpush3.bf16.msra.mxu0 %v8200_v34  ;;  %v1485_v10 = vsel %vm14528_vm3, %v9016_v43, %v9089_v52  ;;  %v9120_v34 = vpack.c.bf16 %v8866_v33, %v8827_v58  ;;  %v1568_v27 = vshrl.u32 %v9105_v54, 16  ;;  %v1611_v43 = vsel %vm14528_vm3, %v9023_v38, %v9091_v2 }
  0x9e   : > { %2144 = vmatprep.mubr.bf16.mxu0 %v1494_v53  ;;  %7542 = vmatprep.mubr.msk.bf16.mxu1 %vm14526_vm0, %v14880_v36  ;;  %v1521_v58 = vsel %vm14528_vm3, %v9044_v55, %v9097_v59  ;;  %v1571_v33 = vshll.u32 %v9105_v54, 16  ;;  %v9139_v53 = vor.u32 %v1510_v24, %v1507_v4  ;;  %v1534_v17 = vrot.slane %v1532_v61, 3  ;;  %v8214_v24 = vld [vmem:[#allocation5 + $0x68] sm:$0xff]  }
  0x9f   : > { %7592 = vmatprep.subr.bf16.mxu0 %v14880_v36  ;;  %2814 = vmatpush2.bf16.msra.mxu1 %v8211_v57  ;;  %v9128_v57 = vld [vmem:[%s8725_s13 + $0xa0] sm:$0xff]  ;;  %v1073_v39 = vrot.slane %v8913_v26, 1  ;;  %v9146_v38 = vor.u32 %v1636_v44, %v1633_v35  ;;  %v9148_v55 = vor.u32 %v1546_v19, %v1543_v47  ;;  %v1537_v11 = vrot.slane %v1535_v63, 4 }
  0xa0   : > { %2815 = vmatprep.subr.bf16.mxu1 %v14882_v7  ;;  %v1559_v6 = vshrl.u32 %v9120_v34, 16  ;;  %v1660_v4 = vrot.slane %v1658_v15, 3  ;;  %v1663_v61 = vrot.slane %v1661_v51, 4  ;;  %v1570_v50 = vrot.slane %v1568_v27, 3  ;;  %v8209_v35 = vld [vmem:[#allocation5 + $0xa0] sm:$0xff]  }
  0xa1   : > { %7593 = vmatpush3.bf16.msra.mxu0 %v8203_v28  ;;  %v1186_v28 = vrot.slane %v9108_v37, 2  ;;  %v1573_v44 = vrot.slane %v1571_v33, 4  ;;  %v1188_v47 = vrot.slane %v9128_v57, 2  ;;  %v1190_v19 = vrot.slane %v9144_v13, 2  ;;  %v9185_v33 = vld [vmem:[%s8725_s13 + $0xb0] sm:$0xff] }
  0xa2   : > { %7594 = vmatprep.subr.bf16.mxu0 %v14880_v36  ;;  %v14898_v15 = vrot.slane %v8875_v42, 1  ;;  %v9170_v51 = vsel %vm14532_vm2, %v1071_v12, %v1073_v39  ;;  %v1512_v27 = vsel %vm14528_vm3, %v9089_v52, %v9139_v53  ;;  %v1638_v52 = vsel %vm14528_vm3, %v9091_v2, %v9146_v38 }
  0xa3   : > { %2816 = vmatpush2.bf16.msra.mxu1 %v8213_v60  ;;  %v9155_v60 = vsel %vm14529_vm1, %v14895_v14, %v1184_v30  ;;  %v9160_v63 = vsel %vm14529_vm1, %v1184_v30, %v1186_v28  ;;  %14900 = vst [vmem:[#allocation46_spill] sm:$0xff] %v9170_v51  ;;  %v9208_v2 = vpack.c.bf16 %v8904_v18, %v8875_v42 }
  0xa4   : > { %2145 = vmatmul.mubr.bf16.gmra.mxu0 %v1485_v10  ;;  %2817 = vmatprep.subr.bf16.mxu1 %v14882_v7  ;;  %14896 = vst [vmem:[#allocation43_spill] sm:$0xff] %v9155_v60  ;;  %14897 = vst [vmem:[#allocation44_spill] sm:$0xff] %v9160_v63  ;;  %v8215_v10 = vld [vmem:[#allocation5 + $0x60] sm:$0xff]   ;;  %v9167_v14 = vsel %vm14532_vm2, %v14898_v15, %v1071_v12  ;;  %v9180_v30 = vpack.c.bf16 %v9160_v63, %v9155_v60  ;;  %v9188_v12 = vld [vmem:[%s8725_s13 + $0xb8] sm:$0xff]  ;;  %v1561_v60 = vrot.slane %v1559_v6, 3 }
  0xa5   : > { %7543 = vmatmul.mubr.bf16.gmra.mxu1 %v1611_v43  ;;  %2152 = vmatprep.mubr.bf16.mxu0 %v1521_v58  ;;  %14899 = vst [vmem:[#allocation45_spill] sm:$0xff] %v9167_v14  ;;  %v1075_v43 = vrot.slane %v8946_v56, 1  ;;  %v8212_v15 = vld [vmem:[#allocation5 + $0x98] sm:$0xff]   ;;  %v9202_v58 = vor.u32 %v1663_v61, %v1660_v4  ;;  %v9204_v63 = vor.u32 %v1573_v44, %v1570_v50  ;;  %14903 = vst [vmem:[#allocation49_spill] sm:$0xff] %v9208_v2 }
  0xa6   : > { %7546 = vmatprep.mubr.msk.bf16.mxu1 %vm14526_vm0, %v14880_v36  ;;  %7595 = vmatpush3.bf16.msra.mxu0 %v8206_v41  ;;  %v9176_v41 = vor.u32 %v1537_v11, %v1534_v17  ;;  %14901 = vst [vmem:[#allocation47_spill] sm:$0xff] %v9180_v30  ;;  %v1548_v11 = vsel %vm14528_vm3, %v9097_v59, %v9148_v55  ;;  %v1562_v17 = vshll.u32 %v9120_v34, 16  ;;  %v8217_v59 = vld [vmem:[#allocation5 + $0x58] sm:$0xff]   ;;  %v1192_v4 = vrot.slane %v9185_v33, 2 }
  0xa7   : > { %7596 = vmatprep.subr.bf16.mxu0 %v14880_v36  ;;  %2818 = vmatpush2.bf16.msra.mxu1 %v8214_v24  ;;  %v9200_v24 = vpack.c.bf16 %v9170_v51, %v9167_v14  ;;  %v9212_v45 = vsel %vm14529_vm1, %v1186_v28, %v1188_v47  ;;  %v9215_v51 = vsel %vm14529_vm1, %v1188_v47, %v1190_v19  ;;  %v14453_v50 = vrot.slane %v9188_v12, 2  ;;  %v8222_v14 = vld [vmem:[#allocation5 + $0x80] sm:$0xff]  }
  0xa8   : > { %2819 = vmatprep.subr.bf16.mxu1 %v14882_v7  ;;  %14904 = vst [vmem:[#allocation50_spill] sm:$0xff] %v9212_v45  ;;  %14905 = vst [vmem:[#allocation51_spill] sm:$0xff] %v9215_v51  ;;  %v1685_v42 = vshrl.u32 %v9180_v30, 16  ;;  %v1688_v18 = vshll.u32 %v9180_v30, 16  ;;  %v9222_v6 = vsel %vm14532_vm2, %v1073_v39, %v1075_v43  ;;  %v14907_v28 = vrot.slane %v8977_v31, 1 }
  0xa9   : > { %14902 = vst [vmem:[#allocation48_spill] sm:$0xff] %v9200_v24  ;;  %14906 = vst [vmem:[#allocation52_spill] sm:$0xff] %v9222_v6  ;;  %v1539_v44 = vsel %vm14528_vm3, %v9139_v53, %v9176_v41  ;;  %v1595_v47 = vshrl.u32 %v9200_v24, 16  ;;  %v1665_v39 = vsel %vm14528_vm3, %v9146_v38, %v9202_v58  ;;  %v1589_v53 = vshll.u32 %v9208_v2, 16 }
  0xaa   : > { %7597 = vmatpush3.bf16.msra.mxu0 %v8209_v35  ;;  %v9227_v61 = vsel %vm14532_vm2, %v1075_v43, %v14907_v28  ;;  %v8216_v35 = vld [vmem:[#allocation5 + $0x90] sm:$0xff]   ;;  %v1586_v43 = vshrl.u32 %v9208_v2, 16  ;;  %v9257_v38 = vsel %vm14529_vm1, %v1192_v4, %v14453_v50  ;;  %v1575_v28 = vsel %vm14528_vm3, %v9148_v55, %v9204_v63 }
  0xab   : > { %7598 = vmatprep.subr.bf16.mxu0 %v14880_v36  ;;  %2820 = vmatpush2.bf16.msra.mxu1 %v8215_v10  ;;  %14908 = vst [vmem:[#allocation53_spill] sm:$0xff] %v9227_v61  ;;  %v1598_v10 = vshll.u32 %v9200_v24, 16  ;;  %14912 = vst [vmem:[#allocation57_spill] sm:$0xff] %v9257_v38  ;;  %v14915_v30 = vrot.slane %v8977_v31, 1 }
  0xac   : > { %2153 = vmatmul.mubr.bf16.gmra.mxu0 %v1512_v27  ;;  %v1564_v27 = vrot.slane %v1562_v17, 4  ;;  %2821 = vmatprep.subr.bf16.mxu1 %v14882_v7  ;;  %v8218_v17 = vld [vmem:[#allocation5 + $0x50] sm:$0xff]  }
  0xad   : > { %7547 = vmatmul.mubr.bf16.gmra.mxu1 %v1638_v52  ;;  %2160 = vmatprep.mubr.bf16.mxu0 %v1548_v11  ;;  %v9242_v52 = vpack.c.bf16 %v9215_v51, %v9212_v45  ;;  %v9249_v11 = vpack.c.bf16 %v9227_v61, %v9222_v6  ;;  %v1687_v51 = vrot.slane %v1685_v42, 3  ;;  %v1690_v45 = vrot.slane %v1688_v18, 4  ;;  %v8221_v18 = vld [vmem:[#allocation5 + $0x88] sm:$0xff]  }
  0xae   : > { %7550 = vmatprep.mubr.msk.bf16.mxu1 %vm14526_vm0, %v14880_v36  ;;  %7599 = vmatpush3.bf16.msra.mxu0 %v8212_v15  ;;  %v9252_v15 = vsel %vm14529_vm1, %v1190_v19, %v1192_v4  ;;  %v9264_v61 = vpack.c.bf16 %v8946_v56, %v8913_v26  ;;  %v1597_v19 = vrot.slane %v1595_v47, 3  ;;  %v1600_v6 = vrot.slane %v1598_v10, 4  ;;  %v8219_v56 = vld [vmem:[#allocation5 + $0x48] sm:$0xff]  }
  0xaf   : > { %14909 = vst [vmem:[#allocation54_spill] sm:$0xff] %v9242_v52  ;;  %7600 = vmatprep.subr.bf16.mxu0 %v14880_v36  ;;  %14910 = vst [vmem:[#allocation55_spill] sm:$0xff] %v9249_v11  ;;  %2822 = vmatpush2.bf16.msra.mxu1 %v8217_v59  ;;  %v1079_v4 = vrot.slane %v9014_v3, 1  ;;  %v9269_v50 = vor.u32 %v1564_v27, %v1561_v60  ;;  %v1712_v55 = vshrl.u32 %v9242_v52, 16  ;;  %v1715_v42 = vshll.u32 %v9242_v52, 16  ;;  %v9284_v60 = vld [vmem:[%s8725_s13 + $0xc8] sm:$0xff] }
  0xb0   : > { %14911 = vst [vmem:[#allocation56_spill] sm:$0xff] %v9252_v15  ;;  %14913 = vst [vmem:[#allocation58_spill] sm:$0xff] %v9264_v61  ;;  %2823 = vmatprep.subr.bf16.mxu1 %v14882_v7  ;;  %v9275_v26 = vpack.c.bf16 %v9257_v38, %v9252_v15  ;;  %v1622_v47 = vshrl.u32 %v9249_v11, 16  ;;  %v1625_v10 = vshll.u32 %v9249_v11, 16  ;;  %v1588_v27 = vrot.slane %v1586_v43, 3 }
  0xb1   : > { %v1591_v59 = vrot.slane %v1589_v53, 4  ;;  %v1613_v38 = vshrl.u32 %v9264_v61, 16  ;;  %v1616_v15 = vshll.u32 %v9264_v61, 16  ;;  %v1601_v52 = vor.u32 %v1600_v6, %v1597_v19  ;;  %v8220_v53 = vld [vmem:[#allocation5 + $0x40] sm:$0xff]  }
  0xb2   : > { %7601 = vmatpush3.bf16.msra.mxu0 %v8216_v35  ;;  %14914 = vst [vmem:[#allocation59_spill] sm:$0xff] %v9275_v26  ;;  %v9281_v35 = vld [vmem:[%s8725_s13 + $0xc0] sm:$0xff]  ;;  %v9293_v8 = vsel %vm14532_vm2, %v14915_v30, %v1079_v4  ;;  %v1739_v61 = vshrl.u32 %v9275_v26, 16  ;;  %v1624_v30 = vrot.slane %v1622_v47, 3  ;;  %v1627_v6 = vrot.slane %v1625_v10, 4 }
  0xb3   : > { %7602 = vmatprep.subr.bf16.mxu0 %v14880_v36  ;;  %2824 = vmatpush2.bf16.msra.mxu1 %v8218_v17  ;;  %14916 = vst [vmem:[#allocation60_spill] sm:$0xff] %v9293_v8  ;;  %v1566_v17 = vsel %vm14528_vm3, %v9176_v41, %v9269_v50  ;;  %v1742_v19 = vshll.u32 %v9275_v26, 16  ;;  %v1592_v41 = vor.u32 %v1591_v59, %v1588_v27  ;;  %v1085_v59 = vrot.slane %v9108_v37, 1 }
  0xb4   : > { %2161 = vmatmul.mubr.bf16.gmra.mxu0 %v1539_v44  ;;  %v1691_v44 = vor.u32 %v1690_v45, %v1687_v51  ;;  %v9306_v45 = vpack.c.bf16 %v9014_v3, %v8977_v31  ;;  %2825 = vmatprep.subr.bf16.mxu1 %v14882_v7  ;;  %v1717_v51 = vrot.slane %v1715_v42, 4  ;;  %v1196_v31 = vrot.slane %v9281_v35, 2 }
  0xb5   : > { %7551 = vmatmul.mubr.bf16.gmra.mxu1 %v1665_v39  ;;  %2168 = vmatprep.mubr.bf16.mxu0 %v1575_v28  ;;  %v14917_v39 = vrot.slane %v9021_v46, 1  ;;  %v1714_v28 = vrot.slane %v1712_v55, 3  ;;  %v1198_v3 = vrot.slane %v9284_v60, 2  ;;  %v1602_v42 = vsel %vm14528_vm3, %v9204_v63, %v1601_v52 }
  0xb6   : > { %7554 = vmatprep.mubr.msk.bf16.mxu1 %vm14526_vm0, %v14880_v36  ;;  %14919 = vst [vmem:[#allocation62_spill] sm:$0xff] %v9306_v45  ;;  %7603 = vmatpush3.bf16.msra.mxu0 %v8221_v18  ;;  %v1692_v55 = vsel %vm14528_vm3, %v9202_v58, %v1691_v44  ;;  %v1615_v18 = vrot.slane %v1613_v38, 3  ;;  %v1618_v47 = vrot.slane %v1616_v15, 4  ;;  %v1741_v10 = vrot.slane %v1739_v61, 3 }
  0xb7   : > { %v9298_v43 = vsel %vm14532_vm2, %v1079_v4, %v14917_v39  ;;  %2826 = vmatpush2.bf16.msra.mxu1 %v8219_v56  ;;  %7604 = vmatprep.subr.bf16.mxu0 %v14880_v36  ;;  %v1083_v56 = vrot.slane %v9094_v21, 1  ;;  %v1640_v27 = vshrl.u32 %v9306_v45, 16  ;;  %v9326_v39 = vld [vmem:[%s8725_s13 + $0xd0] sm:$0xff]  ;;  %v1628_v58 = vor.u32 %v1627_v6, %v1624_v30 }
  0xb8   : > { %14918 = vst [vmem:[#allocation61_spill] sm:$0xff] %v9298_v43  ;;  %v9313_v4 = vpack.c.bf16 %v9298_v43, %v9293_v8  ;;  %2827 = vmatprep.subr.bf16.mxu1 %v14882_v7  ;;  %v9329_v43 = vld [vmem:[%s8725_s13 + $0xd8] sm:$0xff]  ;;  %v1718_v8 = vor.u32 %v1717_v51, %v1714_v28  ;;  %v1744_v26 = vrot.slane %v1742_v19, 4  ;;  %v1643_v63 = vshll.u32 %v9306_v45, 16  ;;  %v9377_v45 = vld [vmem:[%s8725_s13 + $0xe0] sm:$0xff] }
  0xb9   : > { %v14921_v15 = vrot.slane %v9188_v12, 2  ;;  %v9350_v28 = vsel %vm14532_vm2, %v1083_v56, %v1085_v59  ;;  %v1593_v51 = vsel %vm14528_vm3, %v9269_v50, %v1592_v41  ;;  %v1619_v30 = vor.u32 %v1618_v47, %v1615_v18 }
  0xba   : > { %14920 = vst [vmem:[#allocation63_spill] sm:$0xff] %v9313_v4  ;;  %7605 = vmatpush3.bf16.msra.mxu0 %v8222_v14  ;;  %v1649_v38 = vshrl.u32 %v9313_v4, 16  ;;  %v1652_v61 = vshll.u32 %v9313_v4, 16  ;;  %v9340_v14 = vsel %vm14529_vm1, %v1196_v31, %v1198_v3  ;;  %14926 = vst [vmem:[#allocation67_spill] sm:$0xff] %v9350_v28  ;;  %v1200_v19 = vrot.slane %v9326_v39, 2  ;;  %v9477_v4 = vld [vmem:[%s8725_s13 + $0x108] sm:$0xff] }
  0xbb   : > { %2828 = vmatpush2.bf16.msra.mxu1 %v8220_v53  ;;  %v9337_v11 = vsel %vm14529_vm1, %v14921_v15, %v1196_v31  ;;  %14923 = vst [vmem:[#allocation65_spill] sm:$0xff] %v9340_v14  ;;  %7674 = vmatprep.subr.bf16.mxu0 %v14880_v36  ;;  %v1202_v31 = vrot.slane %v9329_v43, 2  ;;  %v1642_v50 = vrot.slane %v1640_v27, 3  ;;  %v9368_v15 = vor.u32 %v1744_v26, %v1741_v10 }
  0xbc   : > { %2169 = vmatmul.mubr.bf16.gmra.mxu0 %v1566_v17  ;;  %14922 = vst [vmem:[#allocation64_spill] sm:$0xff] %v9337_v11  ;;  %v14924_v17 = vrot.slane %v9021_v46, 1  ;;  %3379 = vmatprep.subr.bf16.mxu1 %v14882_v7  ;;  %v9358_v6 = vpack.c.bf16 %v9340_v14, %v9337_v11  ;;  %v1651_v18 = vrot.slane %v1649_v38, 3  ;;  %v1654_v47 = vrot.slane %v1652_v61, 4 }
  0xbd   : > { %7555 = vmatmul.mubr.bf16.gmra.mxu1 %v1692_v55  ;;  %2176 = vmatprep.mubr.bf16.mxu0 %v1602_v42  ;;  %v1719_v55 = vsel %vm14528_vm3, %v1691_v44, %v1718_v8  ;;  %v1629_v42 = vsel %vm14528_vm3, %v1601_v52, %v1628_v58  ;;  %v9372_v14 = vpack.c.bf16 %v9094_v21, %v9021_v46  ;;  %v1087_v11 = vrot.slane %v9128_v57, 1  ;;  %v9380_v52 = vld [vmem:[%s8725_s13 + $0xe8] sm:$0xff] }
  0xbe   : > { %7558 = vmatprep.mubr.msk.bf16.mxu1 %vm14526_vm0, %v14880_v36  ;;  %v9347_v53 = vsel %vm14532_vm2, %v14924_v17, %v1083_v56  ;;  %14927 = vst [vmem:[#allocation68_spill] sm:$0xff] %v9358_v6  ;;  %v1645_v17 = vrot.slane %v1643_v63, 4  ;;  %v1089_v44 = vrot.slane %v9144_v13, 1  ;;  %v1766_v27 = vshrl.u32 %v9358_v6, 16 }
  0xbf   : > { %14925 = vst [vmem:[#allocation66_spill] sm:$0xff] %v9347_v53  ;;  %v9366_v56 = vpack.c.bf16 %v9350_v28, %v9347_v53  ;;  %14929 = vst [vmem:[#allocation70_spill] sm:$0xff] %v9372_v14  ;;  %v1769_v26 = vshll.u32 %v9358_v6, 16  ;;  %v9385_v10 = vsel %vm14529_vm1, %v1198_v3, %v1200_v19  ;;  %v9388_v63 = vsel %vm14529_vm1, %v1200_v19, %v1202_v31 }
  0xc0   : > { %14930 = vst [vmem:[#allocation71_spill] sm:$0xff] %v9385_v10  ;;  %14931 = vst [vmem:[#allocation72_spill] sm:$0xff] %v9388_v63  ;;  %v1620_v38 = vsel %vm14528_vm3, %v1592_v41, %v1619_v30  ;;  %v1746_v61 = vsel %vm14528_vm3, %v1718_v8, %v9368_v15  ;;  %v9397_v3 = vor.u32 %v1645_v17, %v1642_v50  ;;  %v1667_v8 = vshrl.u32 %v9372_v14, 16 }
  0xc1   : > { %14928 = vst [vmem:[#allocation69_spill] sm:$0xff] %v9366_v56  ;;  %v1676_v46 = vshrl.u32 %v9366_v56, 16  ;;  %v1679_v21 = vshll.u32 %v9366_v56, 16  ;;  %v9401_v19 = vpack.c.bf16 %v9388_v63, %v9385_v10  ;;  %v9411_v41 = vpack.c.bf16 %v9128_v57, %v9108_v37 }
  0xc2   : > { %v1670_v50 = vshll.u32 %v9372_v14, 16  ;;  %v1768_v17 = vrot.slane %v1766_v27, 3  ;;  %v1091_v37 = vrot.slane %v9185_v33, 1  ;;  %v1093_v57 = vrot.slane %v9188_v12, 1  ;;  %v9427_v14 = vld [vmem:[%s8725_s13 + $0xf0] sm:$0xff]  ;;  %v9430_v27 = vld [vmem:[%s8725_s13 + $0xf8] sm:$0xff] }
  0xc3   : > { %14932 = vst [vmem:[#allocation73_spill] sm:$0xff] %v9401_v19  ;;  %v1678_v63 = vrot.slane %v1676_v46, 3  ;;  %v1681_v10 = vrot.slane %v1679_v21, 4  ;;  %v1793_v53 = vshrl.u32 %v9401_v19, 16  ;;  %v1694_v6 = vshrl.u32 %v9411_v41, 16 }
  0xc4   : > { %2177 = vmatmul.mubr.bf16.gmra.mxu0 %v1593_v51  ;;  %v1655_v51 = vor.u32 %v1654_v47, %v1651_v18  ;;  %v1204_v18 = vrot.slane %v9377_v45, 2  ;;  %v1206_v47 = vrot.slane %v9380_v52, 2  ;;  %v1796_v56 = vshll.u32 %v9401_v19, 16  ;;  %v9474_v19 = vld [vmem:[%s8725_s13 + $0x100] sm:$0xff] }
  0xc5   : > { %7559 = vmatmul.mubr.bf16.gmra.mxu1 %v1719_v55  ;;  %2184 = vmatprep.mubr.bf16.mxu0 %v1629_v42  ;;  %v9404_v55 = vsel %vm14532_vm2, %v1085_v59, %v1087_v11  ;;  %v9407_v42 = vsel %vm14532_vm2, %v1087_v11, %v1089_v44  ;;  %v1771_v59 = vrot.slane %v1769_v26, 4 }
  0xc6   : > { %7562 = vmatprep.mubr.msk.bf16.mxu1 %vm14526_vm0, %v14880_v36  ;;  %14933 = vst [vmem:[#allocation74_spill] sm:$0xff] %v9404_v55  ;;  %14934 = vst [vmem:[#allocation75_spill] sm:$0xff] %v9407_v42  ;;  %v1656_v11 = vsel %vm14528_vm3, %v1628_v58, %v1655_v51  ;;  %v9420_v28 = vpack.c.bf16 %v9407_v42, %v9404_v55  ;;  %v1647_v58 = vsel %vm14528_vm3, %v1619_v30, %v9397_v3 }
  0xc7   : > { %v9435_v26 = vsel %vm14529_vm1, %v1202_v31, %v1204_v18  ;;  %v9438_v46 = vsel %vm14529_vm1, %v1204_v18, %v1206_v47  ;;  %v1772_v21 = vor.u32 %v1771_v59, %v1768_v17  ;;  %v1682_v42 = vor.u32 %v1681_v10, %v1678_v63 }
  0xc8   : > { %14935 = vst [vmem:[#allocation76_spill] sm:$0xff] %v9435_v26  ;;  %14936 = vst [vmem:[#allocation77_spill] sm:$0xff] %v9438_v46  ;;  %v1669_v55 = vrot.slane %v1667_v8, 3  ;;  %v1706_v30 = vshll.u32 %v9420_v28, 16  ;;  %v9446_v31 = vsel %vm14532_vm2, %v1089_v44, %v1091_v37  ;;  %v9449_v18 = vsel %vm14532_vm2, %v1091_v37, %v1093_v57 }
  0xc9   : > { %14937 = vst [vmem:[#allocation78_spill] sm:$0xff] %v9446_v31  ;;  %14938 = vst [vmem:[#allocation79_spill] sm:$0xff] %v9449_v18  ;;  %v1696_v17 = vrot.slane %v1694_v6, 3  ;;  %v1697_v10 = vshll.u32 %v9411_v41, 16  ;;  %v9454_v63 = vpack.c.bf16 %v9438_v46, %v9435_v26  ;;  %v1795_v8 = vrot.slane %v1793_v53, 3 }
  0xca   : > { %v9458_v59 = vpack.c.bf16 %v9185_v33, %v9144_v13  ;;  %v1208_v44 = vrot.slane %v9427_v14, 2  ;;  %v9466_v6 = vpack.c.bf16 %v9449_v18, %v9446_v31  ;;  %v1095_v37 = vrot.slane %v9281_v35, 1 }
  0xcb   : > { %14939 = vst [vmem:[#allocation80_spill] sm:$0xff] %v9454_v63  ;;  %v1097_v46 = vrot.slane %v9284_v60, 1  ;;  %v1773_v53 = vsel %vm14528_vm3, %v9368_v15, %v1772_v21  ;;  %v1683_v13 = vsel %vm14528_vm3, %v1655_v51, %v1682_v42  ;;  %v1708_v26 = vrot.slane %v1706_v30, 4 }
  0xcc   : > { %2185 = vmatmul.mubr.bf16.gmra.mxu0 %v1620_v38  ;;  %v1703_v38 = vshrl.u32 %v9420_v28, 16  ;;  %v1699_v2 = vrot.slane %v1697_v10, 4  ;;  %v1820_v18 = vshrl.u32 %v9454_v63, 16  ;;  %v1823_v31 = vshll.u32 %v9454_v63, 16 }
  0xcd   : > { %7563 = vmatmul.mubr.bf16.gmra.mxu1 %v1746_v61  ;;  %2192 = vmatprep.mubr.bf16.mxu0 %v1656_v11  ;;  %v1672_v61 = vrot.slane %v1670_v50, 4  ;;  %v9462_v11 = vrot.slane %v9430_v27, 2  ;;  %v1798_v50 = vrot.slane %v1796_v56, 4  ;;  %v1721_v48 = vshrl.u32 %v9458_v59, 16 }
  0xce   : > { %7566 = vmatprep.mubr.msk.bf16.mxu1 %vm14526_vm0, %v14880_v36  ;;  %v1705_v33 = vrot.slane %v1703_v38, 3  ;;  %v9483_v24 = vsel %vm14529_vm1, %v1206_v47, %v1208_v44  ;;  %v1730_v51 = vshrl.u32 %v9466_v6, 16  ;;  %v9492_v38 = vsel %vm14532_vm2, %v1093_v57, %v1095_v37 }
  0xcf   : > { %14940 = vst [vmem:[#allocation81_spill] sm:$0xff] %v9462_v11  ;;  %v1673_v56 = vor.u32 %v1672_v61, %v1669_v55  ;;  %14941 = vst [vmem:[#allocation82_spill] sm:$0xff] %v9483_v24  ;;  %v9487_v15 = vsel %vm14529_vm1, %v1208_v44, %v9462_v11  ;;  %v1733_v55 = vshll.u32 %v9466_v6, 16  ;;  %v1799_v47 = vor.u32 %v1798_v50, %v1795_v8 }
  0xd0   : > { %14942 = vst [vmem:[#allocation83_spill] sm:$0xff] %v9487_v15  ;;  %14943 = vst [vmem:[#allocation84_spill] sm:$0xff] %v9492_v38  ;;  %v1709_v30 = vor.u32 %v1708_v26, %v1705_v33  ;;  %v9503_v10 = vpack.c.bf16 %v9487_v15, %v9483_v24  ;;  %v1359_v44 = vrot.slane %v9474_v19, 2  ;;  %v1361_v57 = vrot.slane %v9477_v4, 2 }
  0xd1   : > { %v1674_v61 = vsel %vm14528_vm3, %v9397_v3, %v1673_v56  ;;  %v1825_v26 = vrot.slane %v1823_v31, 4  ;;  %v1732_v50 = vrot.slane %v1730_v51, 3  ;;  %v1735_v3 = vrot.slane %v1733_v55, 4 }
  0xd2   : > { %14945 = vst [vmem:[#allocation86_spill] sm:$0xff] %v9503_v10  ;;  %v1723_v33 = vrot.slane %v1721_v48, 3  ;;  %v1800_v15 = vsel %vm14528_vm3, %v1772_v21, %v1799_v47  ;;  %v1710_v24 = vsel %vm14528_vm3, %v1682_v42, %v1709_v30  ;;  %v1099_v63 = vrot.slane %v9326_v39, 1 }
  0xd3   : > { %v9525_v31 = vsel %vm14529_vm1, %v1359_v44, %v1361_v57  ;;  %v1736_v51 = vor.u32 %v1735_v3, %v1732_v50 }
  0xd4   : > { %2193 = vmatmul.mubr.bf16.gmra.mxu0 %v1647_v58  ;;  %v9495_v58 = vsel %vm14532_vm2, %v1095_v37, %v1097_v46  ;;  %v1822_v37 = vrot.slane %v1820_v18, 3  ;;  %v1847_v18 = vshrl.u32 %v9503_v10, 16  ;;  %14947 = vst [vmem:[#allocation88_spill] sm:$0xff] %v9525_v31 }
  0xd5   : > { %7567 = vmatmul.mubr.bf16.gmra.mxu1 %v1773_v53  ;;  %2200 = vmatprep.mubr.bf16.mxu0 %v1683_v13  ;;  %14944 = vst [vmem:[#allocation85_spill] sm:$0xff] %v9495_v58  ;;  %v9507_v53 = vor.u32 %v1699_v2, %v1696_v17  ;;  %v1724_v13 = vshll.u32 %v9458_v59, 16  ;;  %v9512_v8 = vpack.c.bf16 %v9495_v58, %v9492_v38  ;;  %v1101_v2 = vrot.slane %v9329_v43, 1 }
  0xd6   : > { %7570 = vmatprep.mubr.msk.bf16.mxu1 %vm14526_vm0, %v14880_v36  ;;  %v1850_v17 = vshll.u32 %v9503_v10, 16  ;;  %v9522_v58 = vsel %vm14529_vm1, %v9462_v11, %v1359_v44  ;;  %v1826_v21 = vor.u32 %v1825_v26, %v1822_v37  ;;  %v9531_v38 = vpack.c.bf16 %v9281_v35, %v9188_v12 }
  0xd7   : > { %14946 = vst [vmem:[#allocation87_spill] sm:$0xff] %v9522_v58  ;;  %v1757_v48 = vshrl.u32 %v9512_v8, 16  ;;  %v1760_v42 = vshll.u32 %v9512_v8, 16  ;;  %v1726_v55 = vrot.slane %v1724_v13, 4  ;;  %v1372_v44 = vpack.c.bf16 %v9525_v31, %v9522_v58 }
  0xd8   : > { %v9541_v11 = vsel %vm14532_vm2, %v1099_v63, %v1101_v2  ;;  %v1103_v12 = vrot.slane %v9377_v45, 1  ;;  %v14496_v35 = vrot.slane %v9380_v52, 1  ;;  %v1849_v37 = vrot.slane %v1847_v18, 3 }
  0xd9   : > { %14949 = vst [vmem:[#allocation90_spill] sm:$0xff] %v9541_v11  ;;  %v1852_v13 = vrot.slane %v1850_v17, 4  ;;  %v1759_v26 = vrot.slane %v1757_v48, 3  ;;  %v1762_v50 = vrot.slane %v1760_v42, 4  ;;  %v1748_v3 = vshrl.u32 %v9531_v38, 16 }
  0xda   : > { %v1874_v58 = vshrl.u32 %v1372_v44, 16  ;;  %v1877_v10 = vshll.u32 %v1372_v44, 16  ;;  %v9564_v17 = vpack.c.bf16 %v9326_v39, %v9284_v60  ;;  %v9572_v48 = vsel %vm14532_vm2, %v1103_v12, %v14496_v35 }
  0xdb   : > { %14953 = vst [vmem:[#allocation94_spill] sm:$0xff] %v9572_v48  ;;  %v1853_v42 = vor.u32 %v1852_v13, %v1849_v37  ;;  %v1763_v44 = vor.u32 %v1762_v50, %v1759_v26  ;;  %v1750_v39 = vrot.slane %v1748_v3, 3 }
  0xdc   : > { %2201 = vmatmul.mubr.bf16.gmra.mxu0 %v1674_v61  ;;  %v9538_v61 = vsel %vm14532_vm2, %v1097_v46, %v1099_v63  ;;  %v1827_v46 = vsel %vm14528_vm3, %v1799_v47, %v1826_v21  ;;  %v1751_v63 = vshll.u32 %v9531_v38, 16  ;;  %v9567_v47 = vsel %vm14532_vm2, %v1101_v2, %v1103_v12 }
  0xdd   : > { %7571 = vmatmul.mubr.bf16.gmra.mxu1 %v1800_v15  ;;  %2208 = vmatprep.mubr.bf16.mxu0 %v1710_v24  ;;  %14948 = vst [vmem:[#allocation89_spill] sm:$0xff] %v9538_v61  ;;  %v9544_v24 = vrot.slane %v14880_v36, 2  ;;  %v1701_v15 = vsel %vm14528_vm3, %v1673_v56, %v9507_v53  ;;  %v9555_v31 = vpack.c.bf16 %v9541_v11, %v9538_v61  ;;  %14952 = vst [vmem:[#allocation93_spill] sm:$0xff] %v9567_v47 }
  0xde   : > { %7574 = vmatprep.mubr.msk.bf16.mxu1 %vm14526_vm0, %v14880_v36  ;;  %v1737_v56 = vsel %vm14528_vm3, %v1709_v30, %v1736_v51  ;;  %v1727_v30 = vor.u32 %v1726_v55, %v1723_v33  ;;  %v1753_v2 = vrot.slane %v1751_v63, 4  ;;  %v1876_v33 = vrot.slane %v1874_v58, 3 }
  0xdf   : > { %14950 = vst [vmem:[#allocation91_spill] sm:$0xff] %v9544_v24  ;;  %v9560_v18 = vsel %vm14529_vm1, %v1361_v57, %v9544_v24  ;;  %v1784_v57 = vshrl.u32 %v9555_v31, 16  ;;  %v1787_v11 = vshll.u32 %v9555_v31, 16  ;;  %v1879_v55 = vrot.slane %v1877_v10, 4 }
  0xe0   : > { %14951 = vst [vmem:[#allocation92_spill] sm:$0xff] %v9560_v18  ;;  %v1375_v60 = vpack.c.bf16 %v9560_v18, %v9560_v18  ;;  %v1775_v12 = vshrl.u32 %v9564_v17, 16  ;;  %v1778_v37 = vshll.u32 %v9564_v17, 16  ;;  %v1728_v13 = vsel %vm14528_vm3, %v9507_v53, %v1727_v30 }
  0xe1   : > { %v1854_v26 = vsel %vm14528_vm3, %v1826_v21, %v1853_v42  ;;  %v1764_v50 = vsel %vm14528_vm3, %v1736_v51, %v1763_v44  ;;  %v1789_v3 = vrot.slane %v1787_v11, 4  ;;  %v9593_v10 = vrot.slane %v14880_v36, 1 }
  0xe2   : > { %v1901_v63 = vshrl.u32 %v1375_v60, 16  ;;  %v9597_v18 = vpack.c.bf16 %v9377_v45, %v9329_v43  ;;  %v1107_v53 = vrot.slane %v9427_v14, 1  ;;  %v9601_v21 = vrot.slane %v9430_v27, 1 }
  0xe3   : > { %14954 = vst [vmem:[#allocation95_spill] sm:$0xff] %v9593_v10  ;;  %v1754_v11 = vor.u32 %v1753_v2, %v1750_v39  ;;  %v1880_v51 = vor.u32 %v1879_v55, %v1876_v33  ;;  %v1048_v45 = vsel %vm14532_vm2, %v9593_v10, %v8775_v25  ;;  %v14956_v55 = vrot.slane %v9380_v52, 1 }
  0xe4   : > { %2209 = vmatmul.mubr.bf16.gmra.mxu0 %v1701_v15  ;;  %v9582_v15 = vpack.c.bf16 %v9572_v48, %v9567_v47  ;;  %v1903_v47 = vrot.slane %v1901_v63, 3  ;;  %v1802_v39 = vshrl.u32 %v9597_v18, 16  ;;  %v1805_v33 = vshll.u32 %v9597_v18, 16 }
  0xe5   : > { %7575 = vmatmul.mubr.bf16.gmra.mxu1 %v1827_v46  ;;  %2216 = vmatprep.mubr.bf16.mxu0 %v1737_v56  ;;  %v1786_v46 = vrot.slane %v1784_v57, 3  ;;  %v1904_v56 = vshll.u32 %v1375_v60, 16  ;;  %v1777_v57 = vrot.slane %v1775_v12, 3  ;;  %v1780_v60 = vrot.slane %v1778_v37, 4 }
  0xe6   : > { %7578 = vmatprep.mubr.msk.bf16.mxu1 %vm14526_vm0, %v14880_v36  ;;  %v1811_v35 = vshrl.u32 %v9582_v15, 16  ;;  %v1814_v58 = vshll.u32 %v9582_v15, 16  ;;  %v9617_v12 = vsel %vm14532_vm2, %v14956_v55, %v1107_v53  ;;  %v1351_v25 = vrot.slane %v9474_v19, 1 }
  0xe7   : > { %v1790_v48 = vor.u32 %v1789_v3, %v1786_v46  ;;  %v1906_v61 = vrot.slane %v1904_v56, 4  ;;  %v9625_v37 = vrot.slane %v9477_v4, 1  ;;  %v1881_v46 = vsel %vm14528_vm3, %v1853_v42, %v1880_v51 }
  0xe8   : > { %v1813_v43 = vrot.slane %v1811_v35, 3  ;;  %v1816_v2 = vrot.slane %v1814_v58, 4  ;;  %v9621_v35 = vsel %vm14532_vm2, %v1107_v53, %v9601_v21  ;;  %v1781_v56 = vor.u32 %v1780_v60, %v1777_v57 }
  0xe9   : > { %v1791_v3 = vsel %vm14528_vm3, %v1763_v44, %v1790_v48  ;;  %v9633_v63 = vpack.c.bf16 %v9621_v35, %v9617_v12  ;;  %v9638_v53 = vpack.c.bf16 %v9427_v14, %v9380_v52  ;;  %v9645_v57 = vsel %vm14532_vm2, %v9601_v21, %v1351_v25 }
  0xea   : > { %v1817_v55 = vor.u32 %v1816_v2, %v1813_v43  ;;  %v9649_v14 = vsel %vm14532_vm2, %v1351_v25, %v9625_v37  ;;  %v1782_v2 = vsel %vm14528_vm3, %v1754_v11, %v1781_v56 }
  0xeb   : > { %v1838_v52 = vshrl.u32 %v9633_v63, 16  ;;  %v1829_v60 = vshrl.u32 %v9638_v53, 16 }
  0xec   : > { %2217 = vmatmul.mubr.bf16.gmra.mxu0 %v1728_v13  ;;  %v9610_v13 = vpack.c.bf16 %v9593_v10, %v9593_v10  ;;  %v1807_v10 = vrot.slane %v1805_v33, 4  ;;  %v1818_v25 = vsel %vm14528_vm3, %v1790_v48, %v1817_v55  ;;  %v14958_v48 = vrot.slane %v8862_v23, 3 }
  0xed   : > { %7579 = vmatmul.mubr.bf16.gmra.mxu1 %v1854_v26  ;;  %2224 = vmatprep.mubr.bf16.mxu0 %v1764_v50  ;;  %v1755_v26 = vsel %vm14528_vm3, %v1727_v30, %v1754_v11  ;;  %v1251_v50 = vpack.c.bf16 %v8803_v40, %v1048_v45  ;;  %v1907_v30 = vor.u32 %v1906_v61, %v1903_v47  ;;  %v1804_v40 = vrot.slane %v1802_v39, 3 }
  0xee   : > { %7582 = vmatprep.mubr.msk.bf16.mxu1 %vm14526_vm0, %v14880_v36  ;;  %14955 = vst [vmem:[#allocation96_spill] sm:$0xff] %v9610_v13  ;;  %v14505_v58 = vrot.slane %v9610_v13, 3  ;;  %v14503_v45 = vmov 0.0|0.0   ;;  %v1841_v61 = vshll.u32 %v9633_v63, 16  ;;  %v14506_v47 = vrot.slane %v8891_v5, 3 }
  0xef   : > { %v9641_v42 = vrot.slane %v14503_v45, 3  ;;  %v2501_v44 = vrot.slane %v1251_v50, 3  ;;  %v1371_v39 = vpack.c.bf16 %v9649_v14, %v9645_v57  ;;  %v1908_v33 = vsel %vm14528_vm3, %v1880_v51, %v1907_v30 }
  0xf0   : > { %v9666_v50 = vor.u32 %v1807_v10, %v1804_v40  ;;  %v1831_v43 = vrot.slane %v1829_v60, 3  ;;  %v1832_v11 = vshll.u32 %v9638_v53, 16  ;;  %v1370_v40 = vpack.c.bf16 %v9474_v19, %v9430_v27 }
  0xf1   : > { %14957 = vst [vmem:[#allocation97_spill] sm:$0xff] %v9641_v42  ;;  %v2499_v45 = vsel %vm14518_vm4, %v9641_v42, %v14506_v47  ;;  %v2509_v30 = vsel %vm14518_vm4, %v2501_v44, %v14958_v48  ;;  %v2568_v60 = vrot.slane %v9466_v6, 3  ;;  %v1868_v47 = vshll.u32 %v1371_v39, 16  ;;  %v8225_v42 = vld [vmem:[#allocation5 + $0x1b0] sm:$0xff]  }
  0xf2   : > { %v2574_v10 = vrot.slane %v9512_v8, 3  ;;  %v1834_v51 = vrot.slane %v1832_v11, 4  ;;  %v1856_v6 = vshrl.u32 %v1370_v40, 16  ;;  %v2580_v8 = vrot.slane %v9555_v31, 3 }
  0xf3   : > { %v1870_v11 = vrot.slane %v1868_v47, 4  ;;  %v2590_v47 = vrot.slane %v9638_v53, 3  ;;  %v14989_v53 = vld [vmem:[#allocation73_spill] sm:$0xff] }
  0xf4   : > { %2225 = vmatmul.mubr.bf16.gmra.mxu0 %v1755_v26  ;;  %v2502_v26 = vsel %vm14518_vm4, %v14505_v58, %v2501_v44  ;;  %v1865_v58 = vshrl.u32 %v1371_v39, 16  ;;  %v1809_v44 = vsel %vm14528_vm3, %v1781_v56, %v9666_v50  ;;  %v1374_v56 = vpack.c.bf16 %v9625_v37, %v9625_v37 }
  0xf5   : > { %7583 = vmatmul.mubr.bf16.gmra.mxu1 %v1881_v46  ;;  %2232 = vmatprep.mubr.bf16.mxu0 %v1791_v3  ;;  %v1840_v46 = vrot.slane %v1838_v52, 3  ;;  %v1843_v3 = vrot.slane %v1841_v61, 4  ;;  %v14508_v52 = vrot.slane %v9420_v28, 3  ;;  %v14507_v61 = vrot.slane %v9411_v41, 3 }
  0xf6   : > { %7586 = vmatprep.mubr.msk.bf16.mxu1 %vm14526_vm0, %v14880_v36  ;;  %v9701_v39 = vsel %vm14518_vm4, %v2568_v60, %v2574_v10 }
  0xf7   : > { %v1844_v48 = vor.u32 %v1843_v3, %v1840_v46  ;;  %v9690_v19 = vsel %vm14518_vm4, %v14508_v52, %v2568_v60  ;;  %v2578_v46 = vrot.slane %v9564_v17, 3  ;;  %v2586_v3 = vrot.slane %v9582_v15, 3 }
  0xf8   : > { %v2584_v60 = vrot.slane %v9597_v18, 3  ;;  %v1859_v52 = vshll.u32 %v1370_v40, 16  ;;  %v1835_v17 = vor.u32 %v1834_v51, %v1831_v43  ;;  %v1858_v15 = vrot.slane %v1856_v6, 3  ;;  %v8226_v6 = vld [vmem:[#allocation5 + $0x1a8] sm:$0xff]  }
  0xf9   : > { %v1892_v18 = vshrl.u32 %v1374_v56, 16 }
  0xfa   : > { %v9733_v43 = vsel %vm14518_vm4, %v2584_v60, %v2590_v47  ;;  %v1861_v51 = vrot.slane %v1859_v52, 4 }
  0xfc   : > { %2233 = vmatmul.mubr.bf16.gmra.mxu0 %v1782_v2  ;;  %v2566_v2 = vrot.slane %v9458_v59, 3  ;;  %v2572_v59 = vrot.slane %v9531_v38, 3  ;;  %v1845_v38 = vsel %vm14528_vm3, %v1817_v55, %v1844_v48  ;;  %v9722_v55 = vsel %vm14518_vm4, %v2578_v46, %v2584_v60 }
  0xfd   : > { %7587 = vmatmul.mubr.bf16.gmra.mxu1 %v1908_v33  ;;  %2240 = vmatprep.mubr.bf16.mxu0 %v1818_v25  ;;  %v1867_v33 = vrot.slane %v1865_v58, 3  ;;  %v8223_v25 = vld [vmem:[#allocation5 + $0x1b8] sm:$0xff]   ;;  %v9718_v58 = vsel %vm14518_vm4, %v2580_v8, %v2586_v3 }
  0xfe   : > { %2829 = vmatprep.mubr.bf16.mxu1 %v2502_v26  ;;  %v9695_v27 = vsel %vm14518_vm4, %v14507_v61, %v2566_v2  ;;  %v9705_v26 = vsel %vm14518_vm4, %v2566_v2, %v2572_v59  ;;  %v9711_v61 = vsel %vm14518_vm4, %v2574_v10, %v2580_v8  ;;  %v9715_v31 = vsel %vm14518_vm4, %v2572_v59, %v2578_v46 }
  0xff   : > { %v2592_v2 = vrot.slane %v9633_v63, 3  ;;  %v1895_v10 = vshll.u32 %v1374_v56, 16  ;;  %v1299_v59 = vpack.c.bf16 %v9601_v21, %v9601_v21  ;;  %v1871_v63 = vor.u32 %v1870_v11, %v1867_v33 }
 0x100   : > { %v1836_v56 = vsel %vm14528_vm3, %v9666_v50, %v1835_v17  ;;  %v14959_v21 = vrot.slane %v8910_v20, 3  ;;  %v2512_v50 = vrot.slane %v8952_v9, 3  ;;  %v1149_v20 = vsel %vm14529_vm1, %v9544_v24, %v8760_v16 }
 0x101   : > { %v9726_v40 = vsel %vm14518_vm4, %v2586_v3, %v2592_v2  ;;  %v1872_v52 = vsel %vm14528_vm3, %v1844_v48, %v1871_v63  ;;  %v1894_v3 = vrot.slane %v1892_v18, 3  ;;  %v1862_v48 = vor.u32 %v1861_v51, %v1858_v15 }
 0x102   : > { %v2518_v51 = vrot.slane %v9005_v62, 3 }
 0x104   : > { %2241 = vmatmul.mubr.bf16.gmra.mxu0 %v1809_v44  ;;  %v2598_v44 = vrot.slane %v1299_v59, 3  ;;  %v2519_v62 = vsel %vm14518_vm4, %v2512_v50, %v2518_v51 }
 0x105   : > { %2830 = vmatmul.mubr.bf16.vlgmr.msra.gmra.mxu1 %v2499_v45  ;;  %2248 = vmatprep.mubr.bf16.mxu0 %v1845_v38  ;;  %v1373_v45 = vpack.c.bf16 %v9477_v4, %v9477_v4  ;;  %v14961_v4 = vrot.slane %v8937_v49, 3  ;;  %v1897_v38 = vrot.slane %v1895_v10, 4 }
 0x106   : > { %2837 = vmatprep.mubr.bf16.mxu1 %v2509_v30  ;;  %3380 = vmatpush1.bf16.msra.mxu1 %v8223_v25  ;;  %v14960_v30 = vrot.slane %v8891_v5, 3  ;;  %v9746_v33 = vsel %vm14518_vm4, %v2592_v2, %v2598_v44  ;;  %v14962_v25 = vrot.slane %v8862_v23, 3  ;;  %v2520_v5 = vrot.slane %v8991_v0, 3  ;;  %v8228_v2 = vld [vmem:[#allocation5 + $0x1a0] sm:$0xff]  }
 0x107   : > { %3381 = vmatprep.subr.bf16.mxu1 %v14882_v7  ;;  %v1883_v11 = vshrl.u32 %v1373_v45, 16  ;;  %v1886_v60 = vshll.u32 %v1373_v45, 16  ;;  %v1898_v23 = vor.u32 %v1897_v38, %v1894_v3  ;;  %v14963_v0 = vmov %v14959_v21  ;;  %v8229_v45 = vld [vmem:[#allocation5 + $0x198] sm:$0xff]  }
 0x108   : > { %v2507_v8 = vsel %vm14518_vm4, %v14960_v30, %v14959_v21  ;;  %v2515_v46 = vsel %vm14518_vm4, %v14962_v25, %v14961_v4  ;;  %v2513_v10 = vsel %vm14518_vm4, %v14963_v0, %v2512_v50  ;;  %v14964_v44 = vmov %v14961_v4  ;;  %v8232_v30 = vld [vmem:[#allocation5 + $0x188] sm:$0xff]   ;;  %v8235_v50 = vld [vmem:[#allocation5 + $0x1f8] sm:$0xff]  }
 0x109   : > { %v1885_v18 = vrot.slane %v1883_v11, 3  ;;  %v1888_v9 = vrot.slane %v1886_v60, 4  ;;  %v1899_v59 = vsel %vm14528_vm3, %v1871_v63, %v1898_v23  ;;  %v2521_v15 = vsel %vm14518_vm4, %v14964_v44, %v2520_v5  ;;  %v8231_v63 = vld [vmem:[#allocation5 + $0x190] sm:$0xff]   ;;  %v14966_v11 = vld [vmem:[#allocation48_spill] sm:$0xff]  ;;  %v8230_v23 = vld [vmem:[#allocation5 + $0x228] sm:$0xff]  }
 0x10a   : > { %3382 = vmatpush1.bf16.msra.mxu1 %v8225_v42  ;;  %v1863_v42 = vsel %vm14528_vm3, %v1835_v17, %v1862_v48  ;;  %v1252_v21 = vpack.c.bf16 %v8768_v22, %v1149_v20  ;;  %v8234_v22 = vld [vmem:[#allocation5 + $0x180] sm:$0xff]   ;;  %v2532_v4 = vrot.slane %v9105_v54, 3  ;;  %v8227_v54 = vld [vmem:[#allocation5 + $0x230] sm:$0xff]   ;;  %v2538_v60 = vrot.slane %v14966_v11, 3  ;;  %v14968_v0 = vld [vmem:[#allocation49_spill] sm:$0xff] }
 0x10b   : > { %3383 = vmatprep.subr.bf16.mxu1 %v14882_v7  ;;  %v1889_v17 = vor.u32 %v1888_v9, %v1885_v18  ;;  %v14967_v18 = vld [vmem:[#allocation15_spill] sm:$0xff] }
 0x10c   : > { %2249 = vmatmul.mubr.bf16.gmra.mxu0 %v1836_v56  ;;  %v9776_v56 = vpack.c.bf16 %v9544_v24, %v9544_v24  ;;  %v2516_v9 = vrot.slane %v14967_v18, 3  ;;  %v8236_v20 = vld [vmem:[#allocation5 + $0x218] sm:$0xff]  }
 0x10d   : > { %2838 = vmatmul.mubr.bf16.gmra.mxu1 %v2507_v8  ;;  %2256 = vmatprep.mubr.bf16.mxu0 %v1872_v52  ;;  %v1890_v49 = vsel %vm14528_vm3, %v1862_v48, %v1889_v17  ;;  %v2504_v8 = vrot.slane %v1252_v21, 3  ;;  %v2524_v52 = vrot.slane %v9064_v29, 3  ;;  %v2510_v29 = vrot.slane %v8789_v32, 3 }
 0x10e   : > { %2845 = vmatprep.mubr.bf16.mxu1 %v2515_v46  ;;  %3384 = vmatpush1.bf16.msra.mxu1 %v8226_v6  ;;  %v2526_v6 = vrot.slane %v9052_v1, 3  ;;  %14965 = vst [vmem:[#allocation98_spill] sm:$0xff] %v9776_v56  ;;  %v14510_v1 = vrot.slane %v9776_v56, 3  ;;  %v8224_v46 = vld [vmem:[#allocation5 + $0x238] sm:$0xff]  }
 0x10f   : > { %3385 = vmatprep.subr.bf16.mxu1 %v14882_v7  ;;  %v2525_v3 = vsel %vm14518_vm4, %v2518_v51, %v2524_v52  ;;  %v2511_v48 = vsel %vm14518_vm4, %v2504_v8, %v2510_v29  ;;  %v2517_v17 = vsel %vm14518_vm4, %v2510_v29, %v2516_v9  ;;  %v14973_v29 = vld [vmem:[#allocation22_spill] sm:$0xff] }
 0x110   : > { %v2527_v16 = vsel %vm14518_vm4, %v2520_v5, %v2526_v6  ;;  %v2505_v25 = vsel %vm14518_vm4, %v14510_v1, %v2504_v8  ;;  %v2533_v38 = vsel %vm14518_vm4, %v2526_v6, %v2532_v4  ;;  %v2530_v5 = vrot.slane %v9120_v34, 3  ;;  %v8238_v34 = vld [vmem:[#allocation5 + $0x1e8] sm:$0xff]   ;;  %v8241_v6 = vld [vmem:[#allocation5 + $0x1d8] sm:$0xff]  }
 0x111   : > { %v14972_v8 = vld [vmem:[#allocation63_spill] sm:$0xff] }
 0x112   : > { %3386 = vmatpush1.bf16.msra.mxu1 %v8228_v2  ;;  %v8237_v2 = vld [vmem:[#allocation5 + $0x1f0] sm:$0xff]   ;;  %v2531_v32 = vsel %vm14518_vm4, %v2524_v52, %v2530_v5  ;;  %v2550_v52 = vrot.slane %v14972_v8, 3 }
 0x113   : > { %3387 = vmatprep.subr.bf16.mxu1 %v14882_v7 }
 0x114   : > { %2257 = vmatmul.mubr.bf16.gmra.mxu0 %v1863_v42  ;;  %v2539_v42 = vsel %vm14518_vm4, %v2532_v4, %v2538_v60 }
 0x115   : > { %2846 = vmatmul.mubr.bf16.gmra.mxu1 %v2513_v10  ;;  %2264 = vmatprep.mubr.bf16.mxu0 %v1899_v59  ;;  %v2536_v10 = vrot.slane %v14968_v0, 3  ;;  %v8233_v59 = vld [vmem:[#allocation5 + $0x220] sm:$0xff]  }
 0x116   : > { %2853 = vmatprep.mubr.bf16.mxu1 %v2521_v15  ;;  %3388 = vmatpush1.bf16.msra.mxu1 %v8229_v45  ;;  %v14969_v45 = vld [vmem:[#allocation55_spill] sm:$0xff]  ;;  %v8240_v15 = vld [vmem:[#allocation5 + $0x1e0] sm:$0xff]  }
 0x117   : > { %3389 = vmatprep.subr.bf16.mxu1 %v14882_v7  ;;  %v2544_v44 = vrot.slane %v14969_v45, 3  ;;  %v2537_v51 = vsel %vm14518_vm4, %v2530_v5, %v2536_v10  ;;  %v14974_v5 = vld [vmem:[#allocation62_spill] sm:$0xff] }
 0x118   : > { %v2548_v11 = vrot.slane %v14974_v5, 3 }
 0x11a   : > { %3390 = vmatpush1.bf16.msra.mxu1 %v8231_v63  ;;  %v2545_v63 = vsel %vm14518_vm4, %v2538_v60, %v2544_v44  ;;  %v8245_v60 = vld [vmem:[#allocation5 + $0x200] sm:$0xff]  }
 0x11b   : > { %3391 = vmatprep.subr.bf16.mxu1 %v14882_v7 }
 0x11c   : > { %2265 = vmatmul.mubr.bf16.gmra.mxu0 %v1890_v49  ;;  %v14970_v49 = vld [vmem:[#allocation18_spill] sm:$0xff] }
 0x11d   : > { %2854 = vmatmul.mubr.bf16.gmra.mxu1 %v2519_v62  ;;  %7606 = vmatprep.mubr.msk.bf16.mxu0 %vm14526_vm0, %v14880_v36  ;;  %v2522_v21 = vrot.slane %v14970_v49, 3  ;;  %v14971_v62 = vld [vmem:[#allocation58_spill] sm:$0xff]  ;;  %v14978_v49 = vrot.slane %v9420_v28, 3 }
 0x11e   : > { %2861 = vmatprep.mubr.bf16.mxu1 %v2527_v16  ;;  %3392 = vmatpush1.bf16.msra.mxu1 %v8232_v30  ;;  %v2542_v30 = vrot.slane %v14971_v62, 3  ;;  %v8239_v16 = vld [vmem:[#allocation5 + $0x210] sm:$0xff]  }
 0x11f   : > { %3393 = vmatprep.subr.bf16.mxu1 %v14882_v7  ;;  %v2523_v4 = vsel %vm14518_vm4, %v2516_v9, %v2522_v21 }
 0x120   : > { %v2549_v18 = vsel %vm14518_vm4, %v2542_v30, %v2548_v11 }
 0x122   : > { %3394 = vmatpush1.bf16.msra.mxu1 %v8234_v22  ;;  %v8243_v22 = vld [vmem:[#allocation5 + $0x1d0] sm:$0xff]  }
 0x123   : > { %3395 = vmatprep.subr.bf16.mxu1 %v14882_v7 }
 0x124   : > { %7607 = vmatmul.mubr.bf16.vlgmr.msra.gmra.mxu0 %v2505_v25  ;;  %v2543_v25 = vsel %vm14518_vm4, %v2536_v10, %v2542_v30  ;;  %v14979_v30 = vld [vmem:[#allocation32_spill] sm:$0xff] }
 0x125   : > { %2862 = vmatmul.mubr.bf16.gmra.mxu1 %v2525_v3  ;;  %7675 = vmatpush3.bf16.msra.mxu0 %v8224_v46  ;;  %v8242_v46 = vld [vmem:[#allocation5 + $0x208] sm:$0xff]   ;;  %v2551_v3 = vsel %vm14518_vm4, %v2544_v44, %v2550_v52  ;;  %v14977_v44 = vld [vmem:[#allocation70_spill] sm:$0xff] }
 0x126   : > { %2869 = vmatprep.mubr.bf16.mxu1 %v2533_v38  ;;  %7610 = vmatprep.mubr.msk.bf16.mxu0 %vm14526_vm0, %v14880_v36  ;;  %v8244_v38 = vld [vmem:[#allocation5 + $0x1c8] sm:$0xff]  }
 0x127   : > { %7676 = vmatprep.subr.bf16.mxu0 %v14880_v36  ;;  %3396 = vmatpush2.bf16.msra.mxu1 %v8235_v50 }
 0x128   : > { %3397 = vmatprep.subr.bf16.mxu1 %v14882_v7 }
 0x129   : > { %7677 = vmatpush3.bf16.msra.mxu0 %v8227_v54  ;;  %v2528_v54 = vrot.slane %v14973_v29, 3 }
 0x12a   : > { %7678 = vmatprep.subr.bf16.mxu0 %v14880_v36 }
 0x12b   : > { %3398 = vmatpush2.bf16.msra.mxu1 %v8237_v2 }
 0x12c   : > { %7611 = vmatmul.mubr.bf16.gmra.mxu0 %v2511_v48  ;;  %3399 = vmatprep.subr.bf16.mxu1 %v14882_v7  ;;  %v14975_v48 = vld [vmem:[#allocation69_spill] sm:$0xff] }
 0x12d   : > { %2870 = vmatmul.mubr.bf16.gmra.mxu1 %v2531_v32  ;;  %7614 = vmatprep.mubr.msk.bf16.mxu0 %vm14526_vm0, %v14880_v36  ;;  %v2556_v32 = vrot.slane %v14975_v48, 3  ;;  %v14982_v48 = vld [vmem:[#allocation42_spill] sm:$0xff] }
 0x12e   : > { %2877 = vmatprep.mubr.bf16.mxu1 %v2539_v42  ;;  %7679 = vmatpush3.bf16.msra.mxu0 %v8230_v23  ;;  %v8246_v23 = vld [vmem:[#allocation5 + $0x1c0] sm:$0xff]  }
 0x12f   : > { %7680 = vmatprep.subr.bf16.mxu0 %v14880_v36  ;;  %3400 = vmatpush2.bf16.msra.mxu1 %v8238_v34  ;;  %v2529_v34 = vsel %vm14518_vm4, %v2522_v21, %v2528_v54  ;;  %v2557_v0 = vsel %vm14518_vm4, %v2550_v52, %v2556_v32  ;;  %v2563_v21 = vsel %vm14518_vm4, %v2556_v32, %v14978_v49  ;;  %v2552_v32 = vrot.slane %v14982_v48, 3 }
 0x130   : > { %3401 = vmatprep.subr.bf16.mxu1 %v14882_v7 }
 0x132   : > { %7681 = vmatpush3.bf16.msra.mxu0 %v8233_v59  ;;  %v14976_v59 = vld [vmem:[#allocation27_spill] sm:$0xff] }
 0x133   : > { %7682 = vmatprep.subr.bf16.mxu0 %v14880_v36  ;;  %3402 = vmatpush2.bf16.msra.mxu1 %v8240_v15  ;;  %v2534_v45 = vrot.slane %v14976_v59, 3  ;;  %v2554_v15 = vrot.slane %v14977_v44, 3 }
 0x134   : > { %7615 = vmatmul.mubr.bf16.gmra.mxu0 %v2517_v17  ;;  %3403 = vmatprep.subr.bf16.mxu1 %v14882_v7 }
 0x135   : > { %2878 = vmatmul.mubr.bf16.gmra.mxu1 %v2537_v51  ;;  %7618 = vmatprep.mubr.msk.bf16.mxu0 %vm14526_vm0, %v14880_v36 }
 0x136   : > { %2885 = vmatprep.mubr.bf16.mxu1 %v2545_v63  ;;  %7683 = vmatpush3.bf16.msra.mxu0 %v8236_v20  ;;  %v2535_v20 = vsel %vm14518_vm4, %v2528_v54, %v2534_v45  ;;  %v2555_v63 = vsel %vm14518_vm4, %v2548_v11, %v2554_v15 }
 0x137   : > { %7684 = vmatprep.subr.bf16.mxu0 %v14880_v36  ;;  %3404 = vmatpush2.bf16.msra.mxu1 %v8241_v6 }
 0x138   : > { %3405 = vmatprep.subr.bf16.mxu1 %v14882_v7 }
 0x13a   : > { %7685 = vmatpush3.bf16.msra.mxu0 %v8239_v16  ;;  %v2540_v16 = vrot.slane %v14979_v30, 3 }
 0x13b   : > { %7686 = vmatprep.subr.bf16.mxu0 %v14880_v36  ;;  %3406 = vmatpush2.bf16.msra.mxu1 %v8243_v22 }
 0x13c   : > { %7619 = vmatmul.mubr.bf16.gmra.mxu0 %v2523_v4  ;;  %3407 = vmatprep.subr.bf16.mxu1 %v14882_v7  ;;  %v2541_v22 = vsel %vm14518_vm4, %v2534_v45, %v2540_v16  ;;  %v14980_v4 = vrot.slane %v9411_v41, 3 }
 0x13d   : > { %v2307_v50 = vpop.f32.mrf.mxu1  ;;  %2886 = vmatmul.mubr.bf16.gmra.mxu1 %v2543_v25  ;;  %7622 = vmatprep.mubr.msk.bf16.mxu0 %vm14526_vm0, %v14880_v36 }
 0x13e   : > { %2893 = vmatprep.mubr.bf16.mxu1 %v2551_v3  ;;  %7687 = vmatpush3.bf16.msra.mxu0 %v8242_v46  ;;  %v2561_v25 = vsel %vm14518_vm4, %v2554_v15, %v14980_v4  ;;  %v14981_v3 = vld [vmem:[#allocation37_spill] sm:$0xff] }
 0x13f   : > { %v7524_v2 = vpop.f32.mrf.mxu1  ;;  %7688 = vmatprep.subr.bf16.mxu0 %v14880_v36  ;;  %3408 = vmatpush2.bf16.msra.mxu1 %v8244_v38  ;;  %v2546_v38 = vrot.slane %v14981_v3, 3 }
 0x140   : > { %3409 = vmatprep.subr.bf16.mxu1 %v14882_v7 }
 0x141   : > { %v2310_v42 = vpop.f32.mrf.mxu1  ;;  %v2547_v5 = vsel %vm14518_vm4, %v2540_v16, %v2546_v38 }
 0x142   : > { %7689 = vmatpush3.bf16.msra.mxu0 %v8245_v60 }
 0x143   : > { %v7525_v9 = vpop.f32.mrf.mxu1  ;;  %3410 = vmatpush2.bf16.msra.mxu1 %v8246_v23  ;;  %7758 = vmatprep.subr.bf16.mxu0 %v14880_v36 }
 0x144   : > { %7623 = vmatmul.mubr.bf16.gmra.mxu0 %v2529_v34  ;;  %5242 = vmatprep.subr.bf16.mxu1 %v14882_v7 }
 0x145   : > { %v2315_v10 = vpop.f32.mrf.mxu1  ;;  %2894 = vmatmul.mubr.bf16.gmra.mxu1 %v2549_v18  ;;  %7626 = vmatprep.mubr.msk.bf16.mxu0 %vm14526_vm0, %v14880_v36 }
 0x146   : > { %2901 = vmatprep.mubr.bf16.mxu1 %v2557_v0 }
 0x147   : > { %v7528_v17 = vpop.f32.mrf.mxu1 }
 0x149   : > { %v2318_v51 = vpop.f32.mrf.mxu1 }
 0x14b   : > { %v7529_v6 = vpop.f32.mrf.mxu1 }
 0x14c   : > { %7627 = vmatmul.mubr.bf16.gmra.mxu0 %v2535_v20 }
 0x14d   : > { %v2323_v62 = vpop.f32.mrf.mxu1  ;;  %2902 = vmatmul.mubr.bf16.gmra.mxu1 %v2555_v63  ;;  %7630 = vmatprep.mubr.msk.bf16.mxu0 %vm14526_vm0, %v14880_v36 }
 0x14e   : > { %2909 = vmatprep.mubr.bf16.mxu1 %v2563_v21 }
 0x14f   : > { %v7532_v8 = vpop.f32.mrf.mxu1 }
 0x151   : > { %v2326_v52 = vpop.f32.mrf.mxu1 }
 0x153   : > { %v7533_v28 = vpop.f32.mrf.mxu1 }
 0x154   : > { %7631 = vmatmul.mubr.bf16.gmra.mxu0 %v2541_v22 }
 0x155   : > { %v2331_v46 = vpop.f32.mrf.mxu1  ;;  %2910 = vmatmul.mubr.bf16.gmra.mxu1 %v2561_v25  ;;  %7634 = vmatprep.mubr.msk.bf16.mxu0 %vm14526_vm0, %v14880_v36 }
 0x156   : > { %2917 = vmatprep.mubr.bf16.mxu1 %v9690_v19 }
 0x157   : > { %v7536_v29 = vpop.f32.mrf.mxu1 }
 0x159   : > { %v2334_v54 = vpop.f32.mrf.mxu1 }
 0x15b   : > { %v7537_v11 = vpop.f32.mrf.mxu1 }
 0x15c   : > { %v2138_v60 = vpop.f32.mrf.mxu0  ;;  %7635 = vmatmul.mubr.bf16.gmra.mxu0 %v2547_v5 }
 0x15d   : > { %v9863_v41 = vadd.f32 %v2307_v50, %v2138_v60  ;;  %v9865_v2 = vpop.f32.mrf.mxu1  ;;  %2918 = vmatmul.mubr.bf16.gmra.mxu1 %v9695_v27  ;;  %7638 = vmatprep.mubr.msk.bf16.mxu0 %vm14526_vm0, %v14880_v36  ;;  %v2553_v50 = vsel %vm14518_vm4, %v2546_v38, %v2552_v32 }
 0x15e   : > { %v2140_v23 = vpop.f32.mrf.mxu0  ;;  %2925 = vmatprep.mubr.bf16.mxu1 %v9701_v39  ;;  %v14983_v39 = vld [vmem:[#allocation47_spill] sm:$0xff] }
 0x15f   : > { %v7540_v19 = vpop.f32.mrf.mxu1 }
 0x160   : > { %v2141_v34 = vpop.f32.mrf.mxu0 }
 0x161   : > { %v9872_v18 = vadd.f32 %v2310_v42, %v2141_v34  ;;  %v9874_v9 = vpop.f32.mrf.mxu1  ;;  %v2558_v42 = vrot.slane %v14983_v39, 3  ;;  %v9920_v34 = vld [vmem:[%s8725_s13 + $0xf8] sm:$0xff] }
 0x162   : > { %v2143_v0 = vpop.f32.mrf.mxu0 }
 0x163   : > { %v7541_v59 = vpop.f32.mrf.mxu1 }
 0x164   : > { %v2146_v45 = vpop.f32.mrf.mxu0  ;;  %7639 = vmatmul.mubr.bf16.gmra.mxu0 %v2553_v50 }
 0x165   : > { %v9877_v27 = vadd.f32 %v2315_v10, %v2146_v45  ;;  %v9879_v44 = vpop.f32.mrf.mxu1  ;;  %2926 = vmatmul.mubr.bf16.gmra.mxu1 %v9705_v26  ;;  %7642 = vmatprep.mubr.msk.bf16.mxu0 %vm14526_vm0, %v14880_v36  ;;  %v2559_v10 = vsel %vm14518_vm4, %v2552_v32, %v2558_v42 }
 0x166   : > { %v2148_v15 = vpop.f32.mrf.mxu0  ;;  %2933 = vmatprep.mubr.bf16.mxu1 %v9711_v61  ;;  %v14984_v61 = vld [vmem:[#allocation54_spill] sm:$0xff] }
 0x167   : > { %v7544_v17 = vpop.f32.mrf.mxu1 }
 0x168   : > { %v2149_v20 = vpop.f32.mrf.mxu0 }
 0x169   : > { %v9886_v63 = vadd.f32 %v2318_v51, %v2149_v20  ;;  %v9888_v6 = vpop.f32.mrf.mxu1  ;;  %v2564_v51 = vrot.slane %v14984_v61, 3 }
 0x16a   : > { %v2151_v49 = vpop.f32.mrf.mxu0 }
 0x16b   : > { %v7545_v21 = vpop.f32.mrf.mxu1 }
 0x16c   : > { %v2154_v30 = vpop.f32.mrf.mxu0  ;;  %7643 = vmatmul.mubr.bf16.gmra.mxu0 %v2559_v10  ;;  %v14987_v21 = vld [vmem:[#allocation19_spill] sm:$0xff] }
 0x16d   : > { %v9891_v26 = vadd.f32 %v2323_v62, %v2154_v30  ;;  %v9893_v16 = vpop.f32.mrf.mxu1  ;;  %2934 = vmatmul.mubr.bf16.gmra.mxu1 %v9715_v31  ;;  %7646 = vmatprep.mubr.msk.bf16.mxu0 %vm14526_vm0, %v14880_v36  ;;  %v2565_v62 = vsel %vm14518_vm4, %v2558_v42, %v2564_v51  ;;  %v14988_v30 = vld [vmem:[#allocation25_spill] sm:$0xff] }
 0x16e   : > { %v2156_v8 = vpop.f32.mrf.mxu0  ;;  %2941 = vmatprep.mubr.bf16.mxu1 %v9718_v58  ;;  %v14985_v58 = vld [vmem:[#allocation59_spill] sm:$0xff]  ;;  %v3138_v61 = vpack.c.bf16 %v14988_v30, %v14987_v21 }
 0x16f   : > { %v7548_v22 = vpop.f32.mrf.mxu1  ;;  %v14993_v30 = vld [vmem:[#allocation31_spill] sm:$0xff] }
 0x170   : > { %v2157_v4 = vpop.f32.mrf.mxu0  ;;  %v2582_v22 = vrot.slane %v14989_v53, 3 }
 0x171   : > { %v9900_v25 = vadd.f32 %v2326_v52, %v2157_v4  ;;  %v9902_v28 = vpop.f32.mrf.mxu1  ;;  %v2570_v52 = vrot.slane %v14985_v58, 3  ;;  %v8323_v58 = vld [vmem:[%s8725_s13 + $0x18] sm:$0xff] }
 0x172   : > { %v2159_v3 = vpop.f32.mrf.mxu0 }
 0x173   : > { %v7549_v38 = vpop.f32.mrf.mxu1 }
 0x174   : > { %v2162_v31 = vpop.f32.mrf.mxu0  ;;  %7647 = vmatmul.mubr.bf16.gmra.mxu0 %v2565_v62 }
 0x175   : > { %v9905_v29 = vadd.f32 %v2331_v46, %v2162_v31  ;;  %v9907_v5 = vpop.f32.mrf.mxu1  ;;  %2942 = vmatmul.mubr.bf16.gmra.mxu1 %v9722_v55  ;;  %7650 = vmatprep.mubr.msk.bf16.mxu0 %vm14526_vm0, %v14880_v36  ;;  %v2571_v46 = vsel %vm14518_vm4, %v2564_v51, %v2570_v52  ;;  %v1298_v55 = vpack.c.bf16 %v9920_v34, %v9920_v34  ;;  %v8322_v31 = vld [vmem:[%s8725_s13 + $0x10] sm:$0xff] }
 0x176   : > { %v2164_v11 = vpop.f32.mrf.mxu0  ;;  %2949 = vmatprep.mubr.bf16.mxu1 %v9726_v40 }
 0x177   : > { %v7552_v60 = vpop.f32.mrf.mxu1  ;;  %v2596_v42 = vrot.slane %v1298_v55, 3 }
 0x178   : > { %v2165_v48 = vpop.f32.mrf.mxu0  ;;  %v14990_v60 = vld [vmem:[#allocation26_spill] sm:$0xff] }
 0x179   : > { %v9914_v32 = vadd.f32 %v2334_v54, %v2165_v48  ;;  %v9916_v23 = vpop.f32.mrf.mxu1  ;;  %v14986_v54 = vld [vmem:[#allocation68_spill] sm:$0xff]  ;;  %v14991_v48 = vld [vmem:[#allocation30_spill] sm:$0xff] }
 0x17a   : > { %v2167_v19 = vpop.f32.mrf.mxu0  ;;  %v2576_v45 = vrot.slane %v14986_v54, 3 }
 0x17b   : > { %v7553_v50 = vpop.f32.mrf.mxu1 }
 0x17c   : > { %v2170_v0 = vpop.f32.mrf.mxu0  ;;  %7651 = vmatmul.mubr.bf16.gmra.mxu0 %v2571_v46  ;;  %v2577_v10 = vsel %vm14518_vm4, %v2570_v52, %v2576_v45  ;;  %v3137_v52 = vpack.c.bf16 %v8323_v58, %v8322_v31  ;;  %v3141_v46 = vpack.c.bf16 %v14991_v48, %v14990_v60  ;;  %v8326_v48 = vld [vmem:[%s8725_s13 + $0x30] sm:$0xff] }
 0x17d   : > { %v9925_v59 = vadd.f32 %v9865_v2, %v2170_v0  ;;  %v9927_v40 = vpop.f32.mrf.mxu1  ;;  %2950 = vmatmul.mubr.bf16.gmra.mxu1 %v9733_v43  ;;  %7654 = vmatprep.mubr.msk.bf16.mxu0 %vm14526_vm0, %v14880_v36  ;;  %v2597_v43 = vsel %vm14518_vm4, %v2590_v47, %v2596_v42  ;;  %v14992_v0 = vld [vmem:[#allocation80_spill] sm:$0xff] }
 0x17e   : > { %v2172_v39 = vpop.f32.mrf.mxu0  ;;  %2957 = vmatprep.mubr.bf16.mxu1 %v9746_v33  ;;  %v2588_v54 = vrot.slane %v14992_v0, 3  ;;  %v14997_v0 = vld [vmem:[#allocation36_spill] sm:$0xff] }
 0x17f   : > { %v7556_v15 = vpop.f32.mrf.mxu1 }
 0x180   : > { %v2173_v17 = vpop.f32.mrf.mxu0 }
 0x181   : > { %v9935_v20 = vadd.f32 %v9874_v9, %v2173_v17  ;;  %v9937_v2 = vpop.f32.mrf.mxu1 }
 0x182   : > { %v2175_v49 = vpop.f32.mrf.mxu0 }
 0x183   : > { %v7557_v33 = vpop.f32.mrf.mxu1  ;;  %v8325_v49 = vld [vmem:[%s8725_s13 + $0x28] sm:$0xff] }
 0x184   : > { %v2178_v51 = vpop.f32.mrf.mxu0  ;;  %7655 = vmatmul.mubr.bf16.gmra.mxu0 %v2577_v10  ;;  %v8324_v10 = vld [vmem:[%s8725_s13 + $0x20] sm:$0xff] }
 0x185   : > { %v9946_v9 = vadd.f32 %v9879_v44, %v2178_v51  ;;  %v9948_v8 = vpop.f32.mrf.mxu1  ;;  %2958 = vmatmul.mubr.bf16.gmra.mxu1 %v2597_v43  ;;  %7658 = vmatprep.mubr.msk.bf16.mxu0 %vm14526_vm0, %v14880_v36  ;;  %v2583_v44 = vsel %vm14518_vm4, %v2576_v45, %v2582_v22  ;;  %v3140_v43 = vpack.c.bf16 %v8325_v49, %v8324_v10 }
 0x186   : > { %v2180_v47 = vpop.f32.mrf.mxu0  ;;  %3411 = vmatprep.mubr.bf16.mxu1 %v3138_v61  ;;  %v14994_v61 = vld [vmem:[#allocation35_spill] sm:$0xff] }
 0x187   : > { %v7560_v4 = vpop.f32.mrf.mxu1  ;;  %v3144_v33 = vpack.c.bf16 %v14994_v61, %v14993_v30 }
 0x188   : > { %v2181_v62 = vpop.f32.mrf.mxu0 }
 0x189   : > { %v9954_v3 = vadd.f32 %v9888_v6, %v2181_v62  ;;  %v9956_v38 = vpop.f32.mrf.mxu1 }
 0x18a   : > { %v2183_v11 = vpop.f32.mrf.mxu0 }
 0x18b   : > { %v7561_v19 = vpop.f32.mrf.mxu1  ;;  %v14996_v11 = vld [vmem:[#allocation81_spill] sm:$0xff] }
 0x18c   : > { %v2186_v55 = vpop.f32.mrf.mxu0  ;;  %7659 = vmatmul.mubr.bf16.gmra.mxu0 %v2583_v44  ;;  %v1300_v60 = vpack.c.bf16 %v14996_v11, %v14996_v11 }
 0x18d   : > { %v9964_v50 = vadd.f32 %v9893_v16, %v2186_v55  ;;  %v9966_v6 = vpop.f32.mrf.mxu1  ;;  %7662 = vmatprep.mubr.msk.bf16.mxu0 %vm14526_vm0, %v14880_v36  ;;  %3412 = vmatmul.mubr.bf16.vlgmr.msra.gmra.mxu1 %v3137_v52  ;;  %v2589_v16 = vsel %vm14518_vm4, %v2582_v22, %v2588_v54  ;;  %v14995_v22 = vld [vmem:[#allocation86_spill] sm:$0xff] }
 0x18e   : > { %v2188_v45 = vpop.f32.mrf.mxu0  ;;  %3419 = vmatprep.mubr.bf16.mxu1 %v3141_v46  ;;  %v2594_v4 = vrot.slane %v14995_v22, 3  ;;  %v8327_v46 = vld [vmem:[%s8725_s13 + $0x38] sm:$0xff] }
 0x18f   : > { %v7564_v39 = vpop.f32.mrf.mxu1  ;;  %v3143_v19 = vpack.c.bf16 %v8327_v46, %v8326_v48  ;;  %v14998_v45 = vld [vmem:[#allocation40_spill] sm:$0xff] }
 0x190   : > { %v2189_v42 = vpop.f32.mrf.mxu0  ;;  %v3147_v39 = vpack.c.bf16 %v14998_v45, %v14997_v0  ;;  %v8330_v0 = vld [vmem:[%s8725_s13 + $0x50] sm:$0xff]  ;;  %v8331_v45 = vld [vmem:[%s8725_s13 + $0x58] sm:$0xff] }
 0x191   : > { %v9972_v15 = vadd.f32 %v9902_v28, %v2189_v42  ;;  %v9974_v17 = vpop.f32.mrf.mxu1 }
 0x192   : > { %v2191_v21 = vpop.f32.mrf.mxu0 }
 0x193   : > { %v7565_v51 = vpop.f32.mrf.mxu1 }
 0x194   : > { %v2194_v53 = vpop.f32.mrf.mxu0  ;;  %7663 = vmatmul.mubr.bf16.gmra.mxu0 %v2589_v16  ;;  %v8329_v51 = vld [vmem:[%s8725_s13 + $0x48] sm:$0xff] }
 0x195   : > { %v9982_v47 = vadd.f32 %v9907_v5, %v2194_v53  ;;  %v9984_v28 = vpop.f32.mrf.mxu1  ;;  %7666 = vmatprep.mubr.msk.bf16.mxu0 %vm14526_vm0, %v14880_v36  ;;  %3420 = vmatmul.mubr.bf16.gmra.mxu1 %v3140_v43  ;;  %v2595_v5 = vsel %vm14518_vm4, %v2588_v54, %v2594_v4  ;;  %v2600_v54 = vrot.slane %v1300_v60, 3 }
 0x196   : > { %v2196_v62 = vpop.f32.mrf.mxu0  ;;  %3427 = vmatprep.mubr.bf16.mxu1 %v3144_v33 }
 0x197   : > { %v7568_v44 = vpop.f32.mrf.mxu1  ;;  %v2601_v33 = vsel %vm14518_vm4, %v2594_v4, %v2600_v54  ;;  %v14999_v62 = vld [vmem:[#allocation41_spill] sm:$0xff] }
 0x198   : > { %v2197_v31 = vpop.f32.mrf.mxu0  ;;  %v15000_v44 = vld [vmem:[#allocation45_spill] sm:$0xff] }
 0x199   : > { %v9990_v58 = vadd.f32 %v9916_v23, %v2197_v31  ;;  %v9992_v52 = vpop.f32.mrf.mxu1  ;;  %v3150_v31 = vpack.c.bf16 %v15000_v44, %v14999_v62  ;;  %v15006_v44 = vld [vmem:[#allocation14_spill] sm:$0xff] }
 0x19a   : > { %v2199_v55 = vpop.f32.mrf.mxu0 }
 0x19b   : > { %v7569_v42 = vpop.f32.mrf.mxu1 }
 0x19c   : > { %v2202_v16 = vpop.f32.mrf.mxu0  ;;  %7667 = vmatmul.mubr.bf16.gmra.mxu0 %v2595_v5  ;;  %v15001_v42 = vld [vmem:[#allocation46_spill] sm:$0xff] }
 0x19d   : > { %v10002_v23 = vadd.f32 %v9927_v40, %v2202_v16  ;;  %v10004_v10 = vpop.f32.mrf.mxu1  ;;  %7670 = vmatprep.mubr.msk.bf16.mxu0 %vm14526_vm0, %v14880_v36  ;;  %3428 = vmatmul.mubr.bf16.gmra.mxu1 %v3143_v19  ;;  %v8328_v40 = vld [vmem:[%s8725_s13 + $0x40] sm:$0xff] }
 0x19e   : > { %v2204_v49 = vpop.f32.mrf.mxu0  ;;  %3435 = vmatprep.mubr.bf16.mxu1 %v3147_v39  ;;  %v3146_v53 = vpack.c.bf16 %v8329_v51, %v8328_v40  ;;  %v3149_v39 = vpack.c.bf16 %v8331_v45, %v8330_v0  ;;  %v15002_v16 = vld [vmem:[#allocation52_spill] sm:$0xff]  ;;  %v15008_v45 = vld [vmem:[#allocation53_spill] sm:$0xff] }
 0x19f   : > { %v7572_v43 = vpop.f32.mrf.mxu1  ;;  %v3153_v54 = vpack.c.bf16 %v15002_v16, %v15001_v42 }
 0x1a0   : > { %v2205_v21 = vpop.f32.mrf.mxu0 }
 0x1a1   : > { %v10009_v30 = vadd.f32 %v9937_v2, %v2205_v21  ;;  %v10011_v61 = vpop.f32.mrf.mxu1  ;;  %v15003_v21 = vld [vmem:[#allocation13_spill] sm:$0xff] }
 0x1a2   : > { %v2207_v22 = vpop.f32.mrf.mxu0 }
 0x1a3   : > { %v7573_v5 = vpop.f32.mrf.mxu1 }
 0x1a4   : > { %v2210_v11 = vpop.f32.mrf.mxu0  ;;  %7671 = vmatmul.mubr.bf16.gmra.mxu0 %v2601_v33  ;;  %v15004_v33 = vld [vmem:[#allocation12_spill] sm:$0xff] }
 0x1a5   : > { %v10019_v60 = vadd.f32 %v9948_v8, %v2210_v11  ;;  %v10021_v2 = vpop.f32.mrf.mxu1  ;;  %7690 = vmatprep.mubr.msk.bf16.mxu0 %vm14526_vm0, %v14880_v36  ;;  %3436 = vmatmul.mubr.bf16.gmra.mxu1 %v3146_v53  ;;  %v15005_v40 = vpack.c.bf16 %v15003_v21, %v15004_v33  ;;  %v15010_v33 = vld [vmem:[#allocation17_spill] sm:$0xff] }
 0x1a6   : > { %v2212_v4 = vpop.f32.mrf.mxu0  ;;  %3443 = vmatprep.mubr.bf16.mxu1 %v3150_v31  ;;  %v15007_v31 = vld [vmem:[#allocation16_spill] sm:$0xff] }
 0x1a7   : > { %v7576_v48 = vpop.f32.mrf.mxu1  ;;  %v3142_v5 = vpack.c.bf16 %v15007_v31, %v15006_v44  ;;  %v8335_v44 = vld [vmem:[%s8725_s13 + $0x78] sm:$0xff] }
 0x1a8   : > { %v2213_v46 = vpop.f32.mrf.mxu0  ;;  %v8333_v48 = vld [vmem:[%s8725_s13 + $0x68] sm:$0xff] }
 0x1a9   : > { %v10026_v19 = vadd.f32 %v9956_v38, %v2213_v46  ;;  %v10028_v55 = vpop.f32.mrf.mxu1 }
 0x1aa   : > { %v2215_v8 = vpop.f32.mrf.mxu0 }
 0x1ab   : > { %v7577_v49 = vpop.f32.mrf.mxu1  ;;  %v15009_v8 = vld [vmem:[#allocation60_spill] sm:$0xff] }
 0x1ac   : > { %v2218_v43 = vpop.f32.mrf.mxu0  ;;  %7691 = vmatmul.mubr.bf16.vlgmr.msra.gmra.mxu0 %v15005_v40  ;;  %v15011_v40 = vld [vmem:[#allocation20_spill] sm:$0xff] }
 0x1ad   : > { %v10038_v38 = vadd.f32 %v9966_v6, %v2218_v43  ;;  %v10040_v51 = vpop.f32.mrf.mxu1  ;;  %7694 = vmatprep.mubr.msk.bf16.mxu0 %vm14526_vm0, %v14880_v36  ;;  %3444 = vmatmul.mubr.bf16.gmra.mxu1 %v3149_v39  ;;  %v8332_v6 = vld [vmem:[%s8725_s13 + $0x60] sm:$0xff]  ;;  %v3156_v39 = vpack.c.bf16 %v15009_v8, %v15008_v45 }
 0x1ae   : > { %v2220_v53 = vpop.f32.mrf.mxu0  ;;  %3451 = vmatprep.mubr.bf16.mxu1 %v3153_v54  ;;  %v3152_v46 = vpack.c.bf16 %v8333_v48, %v8332_v6  ;;  %v15012_v6 = vld [vmem:[#allocation61_spill] sm:$0xff]  ;;  %v15013_v48 = vld [vmem:[#allocation66_spill] sm:$0xff] }
 0x1af   : > { %v7580_v22 = vpop.f32.mrf.mxu1  ;;  %v3145_v53 = vpack.c.bf16 %v15011_v40, %v15010_v33 }
 0x1b0   : > { %v2221_v62 = vpop.f32.mrf.mxu0 }
 0x1b1   : > { %v10047_v11 = vadd.f32 %v9974_v17, %v2221_v62  ;;  %v10049_v4 = vpop.f32.mrf.mxu1 }
 0x1b2   : > { %v2223_v0 = vpop.f32.mrf.mxu0 }
 0x1b3   : > { %v7581_v42 = vpop.f32.mrf.mxu1 }
 0x1b4   : > { %v2226_v16 = vpop.f32.mrf.mxu0  ;;  %7695 = vmatmul.mubr.bf16.gmra.mxu0 %v3142_v5 }
 0x1b5   : > { %v10056_v54 = vadd.f32 %v9984_v28, %v2226_v16  ;;  %v10058_v49 = vpop.f32.mrf.mxu1  ;;  %7698 = vmatprep.mubr.msk.bf16.mxu0 %vm14526_vm0, %v14880_v36  ;;  %3452 = vmatmul.mubr.bf16.gmra.mxu1 %v3152_v46  ;;  %v8334_v28 = vld [vmem:[%s8725_s13 + $0x70] sm:$0xff]  ;;  %v3159_v46 = vpack.c.bf16 %v15013_v48, %v15012_v6 }
 0x1b6   : > { %v2228_v17 = vpop.f32.mrf.mxu0  ;;  %3459 = vmatprep.mubr.bf16.mxu1 %v3156_v39  ;;  %v3155_v31 = vpack.c.bf16 %v8335_v44, %v8334_v28  ;;  %v15017_v6 = vld [vmem:[#allocation74_spill] sm:$0xff] }
 0x1b7   : > { %v7584_v43 = vpop.f32.mrf.mxu1  ;;  %v15014_v17 = vld [vmem:[#allocation21_spill] sm:$0xff] }
 0x1b8   : > { %v2229_v21 = vpop.f32.mrf.mxu0  ;;  %v15015_v43 = vld [vmem:[#allocation23_spill] sm:$0xff] }
 0x1b9   : > { %v10065_v22 = vadd.f32 %v9992_v52, %v2229_v21  ;;  %v10067_v62 = vpop.f32.mrf.mxu1  ;;  %v3148_v21 = vpack.c.bf16 %v15015_v43, %v15014_v17  ;;  %v15018_v17 = vld [vmem:[#allocation24_spill] sm:$0xff] }
 0x1ba   : > { %v2231_v5 = vpop.f32.mrf.mxu0  ;;  %v15019_v43 = vld [vmem:[#allocation28_spill] sm:$0xff] }
 0x1bb   : > { %v7585_v0 = vpop.f32.mrf.mxu1  ;;  %v15016_v5 = vld [vmem:[#allocation67_spill] sm:$0xff] }
 0x1bc   : > { %v2234_v45 = vpop.f32.mrf.mxu0  ;;  %7699 = vmatmul.mubr.bf16.gmra.mxu0 %v3145_v53  ;;  %v8337_v53 = vld [vmem:[%s8725_s13 + $0x88] sm:$0xff]  ;;  %v3162_v48 = vpack.c.bf16 %v15017_v6, %v15016_v5 }
 0x1bd   : > { %v10074_v8 = vadd.f32 %v10004_v10, %v2234_v45  ;;  %v10076_v39 = vpop.f32.mrf.mxu1  ;;  %7702 = vmatprep.mubr.msk.bf16.mxu0 %vm14526_vm0, %v14880_v36  ;;  %3460 = vmatmul.mubr.bf16.gmra.mxu1 %v3155_v31  ;;  %v8336_v10 = vld [vmem:[%s8725_s13 + $0x80] sm:$0xff] }
 0x1be   : > { %v2236_v52 = vpop.f32.mrf.mxu0  ;;  %3467 = vmatprep.mubr.bf16.mxu1 %v3159_v46  ;;  %v3158_v28 = vpack.c.bf16 %v8337_v53, %v8336_v10  ;;  %v3151_v10 = vpack.c.bf16 %v15019_v43, %v15018_v17  ;;  %v8338_v53 = vld [vmem:[%s8725_s13 + $0x90] sm:$0xff]  ;;  %v15022_v43 = vld [vmem:[#allocation29_spill] sm:$0xff] }
 0x1bf   : > { %v7588_v42 = vpop.f32.mrf.mxu1 }
 0x1c0   : > { %v2237_v16 = vpop.f32.mrf.mxu0 }
 0x1c1   : > { %v10083_v33 = vadd.f32 %v10011_v61, %v2237_v16  ;;  %v10085_v40 = vpop.f32.mrf.mxu1 }
 0x1c2   : > { %v2239_v44 = vpop.f32.mrf.mxu0 }
 0x1c3   : > { %v7589_v31 = vpop.f32.mrf.mxu1  ;;  %v8339_v44 = vld [vmem:[%s8725_s13 + $0x98] sm:$0xff] }
 0x1c4   : > { %v2242_v46 = vpop.f32.mrf.mxu0  ;;  %7703 = vmatmul.mubr.bf16.gmra.mxu0 %v3148_v21  ;;  %v3161_v5 = vpack.c.bf16 %v8339_v44, %v8338_v53  ;;  %v15021_v31 = vld [vmem:[#allocation78_spill] sm:$0xff] }
 0x1c5   : > { %v10092_v0 = vadd.f32 %v10021_v2, %v2242_v46  ;;  %v2831_v45 = vpop.f32.mrf.mxu1  ;;  %7706 = vmatprep.mubr.msk.bf16.mxu0 %vm14526_vm0, %v14880_v36  ;;  %3468 = vmatmul.mubr.bf16.gmra.mxu1 %v3158_v28  ;;  %v8340_v44 = vld [vmem:[%s8725_s13 + $0xa0] sm:$0xff] }
 0x1c6   : > { %v10097_v61 = vadd.f32 %v2831_v45, %v9863_v41  ;;  %v2244_v52 = vpop.f32.mrf.mxu0  ;;  %3475 = vmatprep.mubr.bf16.mxu1 %v3162_v48  ;;  %v15020_v41 = vld [vmem:[#allocation75_spill] sm:$0xff] }
 0x1c7   : > { %v2833_v42 = vpop.f32.mrf.mxu1  ;;  %v3165_v46 = vpack.c.bf16 %v15021_v31, %v15020_v41 }
 0x1c8   : > { %v2245_v16 = vpop.f32.mrf.mxu0 }
 0x1c9   : > { %v10102_v21 = vadd.f32 %v10028_v55, %v2245_v16  ;;  %v2834_v2 = vpop.f32.mrf.mxu1 }
 0x1ca   : > { %v10107_v6 = vadd.f32 %v2834_v2, %v9872_v18  ;;  %v2247_v28 = vpop.f32.mrf.mxu0  ;;  %v15023_v2 = vld [vmem:[#allocation33_spill] sm:$0xff] }
 0x1cb   : > { %v2836_v48 = vpop.f32.mrf.mxu1  ;;  %v3154_v53 = vpack.c.bf16 %v15023_v2, %v15022_v43  ;;  %v8341_v28 = vld [vmem:[%s8725_s13 + $0xa8] sm:$0xff]  ;;  %v15026_v2 = vld [vmem:[#allocation34_spill] sm:$0xff] }
 0x1cc   : > { %v2250_v45 = vpop.f32.mrf.mxu0  ;;  %7707 = vmatmul.mubr.bf16.gmra.mxu0 %v3151_v10  ;;  %v3164_v41 = vpack.c.bf16 %v8341_v28, %v8340_v44  ;;  %v15025_v48 = vld [vmem:[#allocation84_spill] sm:$0xff] }
 0x1cd   : > { %v10112_v52 = vadd.f32 %v10040_v51, %v2250_v45  ;;  %v2839_v55 = vpop.f32.mrf.mxu1  ;;  %7710 = vmatprep.mubr.msk.bf16.mxu0 %vm14526_vm0, %v14880_v36  ;;  %3476 = vmatmul.mubr.bf16.gmra.mxu1 %v3161_v5  ;;  %v8342_v28 = vld [vmem:[%s8725_s13 + $0xb0] sm:$0xff] }
 0x1ce   : > { %v10117_v18 = vadd.f32 %v2839_v55, %v9877_v27  ;;  %v2252_v42 = vpop.f32.mrf.mxu0  ;;  %3483 = vmatprep.mubr.bf16.mxu1 %v3165_v46  ;;  %v15024_v27 = vld [vmem:[#allocation79_spill] sm:$0xff] }
 0x1cf   : > { %v2841_v16 = vpop.f32.mrf.mxu1  ;;  %v3168_v45 = vpack.c.bf16 %v15025_v48, %v15024_v27 }
 0x1d0   : > { %v2253_v17 = vpop.f32.mrf.mxu0 }
 0x1d1   : > { %v10122_v10 = vadd.f32 %v10049_v4, %v2253_v17  ;;  %v2842_v51 = vpop.f32.mrf.mxu1 }
 0x1d2   : > { %v10127_v31 = vadd.f32 %v2842_v51, %v9886_v63  ;;  %v2255_v5 = vpop.f32.mrf.mxu0  ;;  %v15027_v51 = vld [vmem:[#allocation38_spill] sm:$0xff] }
 0x1d3   : > { %v2844_v46 = vpop.f32.mrf.mxu1  ;;  %v3157_v44 = vpack.c.bf16 %v15027_v51, %v15026_v2  ;;  %v8343_v5 = vld [vmem:[%s8725_s13 + $0xb8] sm:$0xff] }
 0x1d4   : > { %v2258_v55 = vpop.f32.mrf.mxu0  ;;  %7711 = vmatmul.mubr.bf16.gmra.mxu0 %v3154_v53  ;;  %v3167_v27 = vpack.c.bf16 %v8343_v5, %v8342_v28  ;;  %v15029_v46 = vld [vmem:[#allocation89_spill] sm:$0xff]  ;;  %v15030_v51 = vld [vmem:[#allocation39_spill] sm:$0xff]  ;;  %v8344_v5 = vld [vmem:[%s8725_s13 + $0xc0] sm:$0xff] }
 0x1d5   : > { %v10132_v42 = vadd.f32 %v10058_v49, %v2258_v55  ;;  %v2847_v4 = vpop.f32.mrf.mxu1  ;;  %7714 = vmatprep.mubr.msk.bf16.mxu0 %vm14526_vm0, %v14880_v36  ;;  %3484 = vmatmul.mubr.bf16.gmra.mxu1 %v3164_v41 }
 0x1d6   : > { %v10137_v63 = vadd.f32 %v2847_v4, %v9891_v26  ;;  %v2260_v16 = vpop.f32.mrf.mxu0  ;;  %3491 = vmatprep.mubr.bf16.mxu1 %v3168_v45  ;;  %v15028_v26 = vld [vmem:[#allocation85_spill] sm:$0xff] }
 0x1d7   : > { %v2849_v17 = vpop.f32.mrf.mxu1  ;;  %v3171_v55 = vpack.c.bf16 %v15029_v46, %v15028_v26 }
 0x1d8   : > { %v2261_v43 = vpop.f32.mrf.mxu0 }
 0x1d9   : > { %v10142_v53 = vadd.f32 %v10067_v62, %v2261_v43  ;;  %v2850_v49 = vpop.f32.mrf.mxu1 }
 0x1da   : > { %v10147_v48 = vadd.f32 %v2850_v49, %v9900_v25  ;;  %v2263_v41 = vpop.f32.mrf.mxu0  ;;  %v15031_v49 = vld [vmem:[#allocation43_spill] sm:$0xff] }
 0x1db   : > { %v2852_v45 = vpop.f32.mrf.mxu1  ;;  %v3160_v28 = vpack.c.bf16 %v15031_v49, %v15030_v51  ;;  %v8345_v41 = vld [vmem:[%s8725_s13 + $0xc8] sm:$0xff]  ;;  %v15034_v49 = vld [vmem:[#allocation44_spill] sm:$0xff] }
 0x1dc   : > { %v2266_v4 = vpop.f32.mrf.mxu0  ;;  %7715 = vmatmul.mubr.bf16.gmra.mxu0 %v3157_v44  ;;  %v3170_v26 = vpack.c.bf16 %v8345_v41, %v8344_v5  ;;  %v15033_v45 = vld [vmem:[#allocation93_spill] sm:$0xff] }
 0x1dd   : > { %v10152_v16 = vadd.f32 %v10076_v39, %v2266_v4  ;;  %v2855_v62 = vpop.f32.mrf.mxu1  ;;  %7718 = vmatprep.mubr.msk.bf16.mxu0 %vm14526_vm0, %v14880_v36  ;;  %3492 = vmatmul.mubr.bf16.gmra.mxu1 %v3167_v27 }
 0x1de   : > { %v10157_v25 = vadd.f32 %v2855_v62, %v9905_v29  ;;  %v2268_v17 = vpop.f32.mrf.mxu0  ;;  %3499 = vmatprep.mubr.bf16.mxu1 %v3171_v55  ;;  %v15032_v29 = vld [vmem:[#allocation90_spill] sm:$0xff] }
 0x1df   : > { %v2857_v43 = vpop.f32.mrf.mxu1  ;;  %v3174_v4 = vpack.c.bf16 %v15033_v45, %v15032_v29 }
 0x1e0   : > { %v2269_v2 = vpop.f32.mrf.mxu0 }
 0x1e1   : > { %v10162_v44 = vadd.f32 %v10085_v40, %v2269_v2  ;;  %v2858_v39 = vpop.f32.mrf.mxu1 }
 0x1e2   : > { %v10167_v46 = vadd.f32 %v2858_v39, %v9914_v32  ;;  %v2271_v27 = vpop.f32.mrf.mxu0  ;;  %v15035_v39 = vld [vmem:[#allocation50_spill] sm:$0xff] }
 0x1e3   : > { %v2860_v55 = vpop.f32.mrf.mxu1  ;;  %v3163_v5 = vpack.c.bf16 %v15035_v39, %v15034_v49  ;;  %v8347_v27 = vld [vmem:[%s8725_s13 + $0xd8] sm:$0xff]  ;;  %v15038_v49 = vld [vmem:[#allocation56_spill] sm:$0xff] }
 0x1e4   : > { %v3000_v62 = vpop.f32.mrf.mxu0  ;;  %7719 = vmatmul.mubr.bf16.gmra.mxu0 %v3160_v28 }
 0x1e5   : > { %v2863_v17 = vpop.f32.mrf.mxu1  ;;  %v10172_v40 = vadd.f32 %v3000_v62, %v10097_v61  ;;  %7722 = vmatprep.mubr.msk.bf16.mxu0 %vm14526_vm0, %v14880_v36  ;;  %3500 = vmatmul.mubr.bf16.gmra.mxu1 %v3170_v26  ;;  %v8346_v61 = vld [vmem:[%s8725_s13 + $0xd0] sm:$0xff] }
 0x1e6   : > { %v10177_v32 = vadd.f32 %v2863_v17, %v9925_v59  ;;  %v7608_v43 = vpop.f32.mrf.mxu0  ;;  %3507 = vmatprep.mubr.bf16.mxu1 %v3174_v4  ;;  %v3173_v29 = vpack.c.bf16 %v8347_v27, %v8346_v61  ;;  %v15036_v59 = vld [vmem:[#allocation94_spill] sm:$0xff]  ;;  %v8349_v61 = vld [vmem:[%s8725_s13 + $0xe8] sm:$0xff] }
 0x1e7   : > { %v2865_v2 = vpop.f32.mrf.mxu1  ;;  %v3177_v55 = vpack.c.bf16 %v9617_v12, %v15036_v59 }
 0x1e8   : > { %v3003_v51 = vpop.f32.mrf.mxu0 }
 0x1e9   : > { %v2866_v41 = vpop.f32.mrf.mxu1  ;;  %v10182_v28 = vadd.f32 %v3003_v51, %v10107_v6  ;;  %v15037_v51 = vld [vmem:[#allocation51_spill] sm:$0xff] }
 0x1ea   : > { %v10187_v45 = vadd.f32 %v2866_v41, %v9935_v20  ;;  %v7609_v26 = vpop.f32.mrf.mxu0  ;;  %v3166_v39 = vpack.c.bf16 %v15038_v49, %v15037_v51 }
 0x1eb   : > { %v2868_v4 = vpop.f32.mrf.mxu1 }
 0x1ec   : > { %v3008_v62 = vpop.f32.mrf.mxu0  ;;  %7723 = vmatmul.mubr.bf16.gmra.mxu0 %v3163_v5 }
 0x1ed   : > { %v2871_v17 = vpop.f32.mrf.mxu1  ;;  %v10192_v43 = vadd.f32 %v3008_v62, %v10117_v18  ;;  %7726 = vmatprep.mubr.msk.bf16.mxu0 %vm14526_vm0, %v14880_v36  ;;  %3508 = vmatmul.mubr.bf16.gmra.mxu1 %v3173_v29  ;;  %v8348_v18 = vld [vmem:[%s8725_s13 + $0xe0] sm:$0xff] }
 0x1ee   : > { %v10197_v20 = vadd.f32 %v2871_v17, %v9946_v9  ;;  %v7612_v6 = vpop.f32.mrf.mxu0  ;;  %3515 = vmatprep.mubr.bf16.mxu1 %v3177_v55  ;;  %v3176_v27 = vpack.c.bf16 %v8349_v61, %v8348_v18  ;;  %v3180_v9 = vpack.c.bf16 %v9645_v57, %v9621_v35 }
 0x1ef   : > { %v2873_v2 = vpop.f32.mrf.mxu1  ;;  %v15039_v6 = vld [vmem:[#allocation95_spill] sm:$0xff] }
 0x1f0   : > { %v3011_v12 = vpop.f32.mrf.mxu0  ;;  %v3135_v35 = vsel %vm14532_vm2, %v9625_v37, %v15039_v6  ;;  %v15040_v2 = vld [vmem:[#allocation57_spill] sm:$0xff] }
 0x1f1   : > { %v2874_v41 = vpop.f32.mrf.mxu1  ;;  %v10202_v5 = vadd.f32 %v3011_v12, %v10127_v31  ;;  %v15041_v12 = vld [vmem:[#allocation64_spill] sm:$0xff]  ;;  %v3183_v61 = vpack.c.bf16 %v3135_v35, %v9649_v14  ;;  %v8352_v35 = vld [vmem:[%s8725_s13 + $0x108] sm:$0xff] }
 0x1f2   : > { %v10207_v26 = vadd.f32 %v2874_v41, %v9954_v3  ;;  %v7613_v29 = vpop.f32.mrf.mxu0  ;;  %v3169_v51 = vpack.c.bf16 %v15041_v12, %v15040_v2 }
 0x1f3   : > { %v2876_v59 = vpop.f32.mrf.mxu1 }
 0x1f4   : > { %v3016_v55 = vpop.f32.mrf.mxu0  ;;  %7727 = vmatmul.mubr.bf16.gmra.mxu0 %v3166_v39  ;;  %v8350_v39 = vld [vmem:[%s8725_s13 + $0xf0] sm:$0xff]  ;;  %v15042_v59 = vld [vmem:[#allocation65_spill] sm:$0xff] }
 0x1f5   : > { %v2879_v4 = vpop.f32.mrf.mxu1  ;;  %v10212_v62 = vadd.f32 %v3016_v55, %v10137_v63  ;;  %7730 = vmatprep.mubr.msk.bf16.mxu0 %vm14526_vm0, %v14880_v36  ;;  %3516 = vmatmul.mubr.bf16.gmra.mxu1 %v3176_v27  ;;  %v3179_v41 = vpack.c.bf16 %v9920_v34, %v8350_v39  ;;  %v15043_v55 = vld [vmem:[#allocation71_spill] sm:$0xff] }
 0x1f6   : > { %v10217_v31 = vadd.f32 %v2879_v4, %v9964_v50  ;;  %v7616_v3 = vpop.f32.mrf.mxu0  ;;  %3523 = vmatprep.mubr.bf16.mxu1 %v3180_v9  ;;  %v3172_v4 = vpack.c.bf16 %v15043_v55, %v15042_v59 }
 0x1f7   : > { %v2881_v17 = vpop.f32.mrf.mxu1 }
 0x1f8   : > { %v3019_v57 = vpop.f32.mrf.mxu0 }
 0x1f9   : > { %v2882_v63 = vpop.f32.mrf.mxu1  ;;  %v10225_v49 = vadd.f32 %v3019_v57, %v10147_v48 }
 0x1fa   : > { %v10230_v50 = vadd.f32 %v2882_v63, %v9972_v15  ;;  %v7617_v18 = vpop.f32.mrf.mxu0 }
 0x1fb   : > { %v2884_v27 = vpop.f32.mrf.mxu1 }
 0x1fc   : > { %v3024_v37 = vpop.f32.mrf.mxu0  ;;  %7731 = vmatmul.mubr.bf16.gmra.mxu0 %v3169_v51  ;;  %v15045_v27 = vld [vmem:[#allocation76_spill] sm:$0xff] }
 0x1fd   : > { %v2887_v29 = vpop.f32.mrf.mxu1  ;;  %v10234_v9 = vadd.f32 %v3024_v37, %v10157_v25  ;;  %7734 = vmatprep.mubr.msk.bf16.mxu0 %vm14526_vm0, %v14880_v36  ;;  %3524 = vmatmul.mubr.bf16.gmra.mxu1 %v3179_v41  ;;  %v8351_v25 = vld [vmem:[%s8725_s13 + $0x100] sm:$0xff] }
 0x1fe   : > { %v10239_v34 = vadd.f32 %v2887_v29, %v9982_v47  ;;  %v7620_v15 = vpop.f32.mrf.mxu0  ;;  %3531 = vmatprep.mubr.bf16.mxu1 %v3183_v61  ;;  %v3182_v57 = vpack.c.bf16 %v8352_v35, %v8351_v25 }
 0x1ff   : > { %v2889_v48 = vpop.f32.mrf.mxu1 }
 0x200   : > { %v3027_v14 = vpop.f32.mrf.mxu0 }
 0x201   : > { %v2890_v3 = vpop.f32.mrf.mxu1  ;;  %v10244_v17 = vadd.f32 %v3027_v14, %v10167_v46 }
 0x202   : > { %v2891_v2 = vadd.f32 %v2890_v3, %v9990_v58  ;;  %v7621_v12 = vpop.f32.mrf.mxu0  ;;  %v15044_v58 = vld [vmem:[#allocation72_spill] sm:$0xff] }
 0x203   : > { %v2892_v51 = vpop.f32.mrf.mxu1  ;;  %v3175_v37 = vpack.c.bf16 %v15045_v27, %v15044_v58 }
 0x204   : > { %v3032_v47 = vpop.f32.mrf.mxu0  ;;  %7735 = vmatmul.mubr.bf16.gmra.mxu0 %v3172_v4  ;;  %v15046_v4 = vmov 0.0|0.0  }
 0x205   : > { %v2895_v63 = vpop.f32.mrf.mxu1  ;;  %v10250_v39 = vadd.f32 %v3032_v47, %v10177_v32  ;;  %7738 = vmatprep.mubr.msk.bf16.mxu0 %vm14526_vm0, %v14880_v36  ;;  %3532 = vmatmul.mubr.bf16.gmra.mxu1 %v3182_v57  ;;  %v15047_v57 = vld [vmem:[#allocation77_spill] sm:$0xff] }
 0x206   : > { %v2896_v46 = vadd.f32 %v2895_v63, %v10002_v23  ;;  %v7624_v41 = vpop.f32.mrf.mxu0  ;;  %3539 = vmatprep.mubr.bf16.mxu1 %v9610_v13  ;;  %v15073_v13 = vmov 0 }
 0x207   : > { %v2897_v18 = vpop.f32.mrf.mxu1 }
 0x208   : > { %v3035_v61 = vpop.f32.mrf.mxu0 }
 0x209   : > { %v2898_v29 = vpop.f32.mrf.mxu1  ;;  %v10259_v15 = vadd.f32 %v3035_v61, %v10187_v45 }
 0x20a   : > { %v2899_v32 = vadd.f32 %v2898_v29, %v10009_v30  ;;  %v7625_v48 = vpop.f32.mrf.mxu0  ;;  %v15048_v30 = vld [vmem:[#allocation82_spill] sm:$0xff] }
 0x20b   : > { %v2900_v14 = vpop.f32.mrf.mxu1  ;;  %v3178_v12 = vpack.c.bf16 %v15048_v30, %v15047_v57  ;;  %v15052_v48 = vld [vmem:[#allocation87_spill] sm:$0xff] }
 0x20c   : > { %v3040_v59 = vpop.f32.mrf.mxu0  ;;  %7739 = vmatmul.mubr.bf16.gmra.mxu0 %v3175_v37 }
 0x20d   : > { %v2903_v55 = vpop.f32.mrf.mxu1  ;;  %v10263_v23 = vadd.f32 %v3040_v59, %v10197_v20  ;;  %7742 = vmatprep.mubr.msk.bf16.mxu0 %vm14526_vm0, %v14880_v36  ;;  %3540 = vmatmul.mubr.bf16.gmra.mxu1 %v15046_v4 }
 0x20e   : > { %v2904_v3 = vadd.f32 %v2903_v55, %v10019_v60  ;;  %v7628_v25 = vpop.f32.mrf.mxu0 }
 0x20f   : > { %v2905_v45 = vpop.f32.mrf.mxu1 }
 0x210   : > { %v3043_v35 = vpop.f32.mrf.mxu0 }
 0x211   : > { %v2906_v51 = vpop.f32.mrf.mxu1  ;;  %v10272_v47 = vadd.f32 %v3043_v35, %v10207_v26  ;;  %v15051_v26 = vld [vmem:[#allocation83_spill] sm:$0xff] }
 0x212   : > { %v2907_v20 = vadd.f32 %v2906_v51, %v10026_v19  ;;  %v7629_v63 = vpop.f32.mrf.mxu0  ;;  %v3181_v14 = vpack.c.bf16 %v15052_v48, %v15051_v26 }
 0x213   : > { %15049 = vst [vmem:[#allocation48_spill] sm:$0xff] %v10272_v47  ;;  %v2908_v41 = vpop.f32.mrf.mxu1  ;;  %v15056_v63 = vld [vmem:[#allocation92_spill] sm:$0xff] }
 0x214   : > { %v3048_v18 = vpop.f32.mrf.mxu0  ;;  %7743 = vmatmul.mubr.bf16.gmra.mxu0 %v3178_v12 }
 0x215   : > { %v2911_v61 = vpop.f32.mrf.mxu1  ;;  %v10276_v58 = vadd.f32 %v3048_v18, %v10217_v31  ;;  %7746 = vmatprep.mubr.msk.bf16.mxu0 %vm14526_vm0, %v14880_v36 }
 0x216   : > { %v2912_v60 = vadd.f32 %v2911_v61, %v10038_v38  ;;  %v7632_v27 = vpop.f32.mrf.mxu0 }
 0x217   : > { %15050 = vst [vmem:[#allocation15_spill] sm:$0xff] %v10276_v58  ;;  %v2913_v37 = vpop.f32.mrf.mxu1 }
 0x218   : > { %v3051_v29 = vpop.f32.mrf.mxu0 }
 0x219   : > { %v2914_v19 = vpop.f32.mrf.mxu1  ;;  %v10284_v59 = vadd.f32 %v3051_v29, %v10230_v50  ;;  %v15055_v50 = vld [vmem:[#allocation88_spill] sm:$0xff] }
 0x21a   : > { %v2915_v55 = vadd.f32 %v2914_v19, %v10047_v11  ;;  %v7633_v25 = vpop.f32.mrf.mxu0  ;;  %v3184_v41 = vpack.c.bf16 %v15056_v63, %v15055_v50 }
 0x21b   : > { %15053 = vst [vmem:[#allocation49_spill] sm:$0xff] %v10284_v59  ;;  %v2916_v31 = vpop.f32.mrf.mxu1  ;;  %v15104_v59 = vmov 0 }
 0x21c   : > { %v3056_v45 = vpop.f32.mrf.mxu0  ;;  %7747 = vmatmul.mubr.bf16.gmra.mxu0 %v3181_v14 }
 0x21d   : > { %v2919_v35 = vpop.f32.mrf.mxu1  ;;  %v10288_v57 = vadd.f32 %v3056_v45, %v10239_v34  ;;  %7750 = vmatprep.mubr.msk.bf16.mxu0 %vm14526_vm0, %v14880_v36 }
 0x21e   : > { %v2920_v38 = vadd.f32 %v2919_v35, %v10056_v54  ;;  %v7636_v30 = vpop.f32.mrf.mxu0 }
 0x21f   : > { %15054 = vst [vmem:[#allocation55_spill] sm:$0xff] %v10288_v57  ;;  %v2921_v12 = vpop.f32.mrf.mxu1 }
 0x220   : > { %v3059_v51 = vpop.f32.mrf.mxu0 }
 0x221   : > { %v2922_v11 = vpop.f32.mrf.mxu1  ;;  %v10295_v18 = vadd.f32 %v3059_v51, %v2891_v2 }
 0x222   : > { %v2923_v61 = vadd.f32 %v2922_v11, %v10065_v22  ;;  %v7637_v27 = vpop.f32.mrf.mxu0 }
 0x223   : > { %15057 = vst [vmem:[#allocation18_spill] sm:$0xff] %v10295_v18  ;;  %v2924_v37 = vpop.f32.mrf.mxu1 }
 0x224   : > { %v3064_v34 = vpop.f32.mrf.mxu0  ;;  %7751 = vmatmul.mubr.bf16.gmra.mxu0 %v3184_v41 }
 0x225   : > { %v2927_v29 = vpop.f32.mrf.mxu1  ;;  %v10298_v26 = vadd.f32 %v3064_v34, %v2896_v46  ;;  %7754 = vmatprep.mubr.msk.bf16.mxu0 %vm14526_vm0, %v14880_v36 }
 0x226   : > { %v2928_v54 = vadd.f32 %v2927_v29, %v10074_v8  ;;  %v7640_v48 = vpop.f32.mrf.mxu0 }
 0x227   : > { %15058 = vst [vmem:[#allocation58_spill] sm:$0xff] %v10298_v26  ;;  %v2929_v14 = vpop.f32.mrf.mxu1  ;;  %v14511_v48 = vlaneseq }
 0x228   : > { %v3067_v19 = vpop.f32.mrf.mxu0 }
 0x229   : > { %v2930_v25 = vpop.f32.mrf.mxu1  ;;  %v10303_v2 = vadd.f32 %v3067_v19, %v2899_v32 }
 0x22a   : > { %v10306_v22 = vadd.f32 %v2930_v25, %v10083_v33  ;;  %v7641_v31 = vpop.f32.mrf.mxu0 }
 0x22b   : > { %15059 = vst [vmem:[#allocation63_spill] sm:$0xff] %v10303_v2  ;;  %v2932_v45 = vpop.f32.mrf.mxu1 }
 0x22c   : > { %v3072_v35 = vpop.f32.mrf.mxu0  ;;  %7755 = vmatmul.mubr.bf16.gmra.mxu0 %v9776_v56  ;;  %v10332_v45 = vshrl.u32 %v14511_v48, 7  ;;  %v8250_v56 = vld [vmem:[#allocation7 + $0xe0] sm:$0xff]  }
 0x22d   : > { %v2935_v46 = vpop.f32.mrf.mxu1  ;;  %v10309_v30 = vadd.f32 %v3072_v35, %v2904_v3  ;;  %7774 = vmatprep.mubr.msk.bf16.mxu0 %vm14526_vm0, %v14880_v36 }
 0x22e   : > { %v10314_v8 = vadd.f32 %v2935_v46, %v10092_v0  ;;  %v7644_v12 = vpop.f32.mrf.mxu0  ;;  %v10629_v47 = vadd.s32 120, %v10332_v45 }
 0x22f   : > { %15060 = vst [vmem:[#allocation22_spill] sm:$0xff] %v10309_v30  ;;  %v2937_v32 = vpop.f32.mrf.mxu1 }
 0x230   : > { %v3075_v51 = vpop.f32.mrf.mxu0 }
 0x231   : > { %v2938_v50 = vpop.f32.mrf.mxu1  ;;  %v10316_v33 = vadd.f32 %v3075_v51, %v2907_v20 }
 0x232   : > { %v10319_v63 = vadd.f32 %v2938_v50, %v10102_v21  ;;  %v7645_v41 = vpop.f32.mrf.mxu0 }
 0x233   : > { %15061 = vst [vmem:[#allocation62_spill] sm:$0xff] %v10316_v33  ;;  %v2940_v11 = vpop.f32.mrf.mxu1 }
 0x234   : > { %v3080_v27 = vpop.f32.mrf.mxu0 }
 0x235   : > { %v2943_v3 = vpop.f32.mrf.mxu1  ;;  %v10321_v37 = vadd.f32 %v3080_v27, %v2912_v60 }
 0x236   : > { %v10324_v34 = vadd.f32 %v2943_v3, %v10112_v52  ;;  %v7648_v0 = vpop.f32.mrf.mxu0  ;;  %v8247_v52 = vld [vmem:[#allocation7 + $0xf8] sm:$0xff]  }
 0x237   : > { %15062 = vst [vmem:[#allocation69_spill] sm:$0xff] %v10321_v37  ;;  %v2945_v29 = vpop.f32.mrf.mxu1  ;;  %5243 = vmatpush1.bf16.msra.mxu1 %v8247_v52  ;;  %v10350_v0 = vadd.s32 8, %v10332_v45 }
 0x238   : > { %v3083_v14 = vpop.f32.mrf.mxu0  ;;  %5244 = vmatprep.subr.bf16.mxu1 %v14882_v7 }
 0x239   : > { %v2946_v19 = vpop.f32.mrf.mxu1  ;;  %v10326_v25 = vadd.f32 %v3083_v14, %v2915_v55  ;;  %v10340_v55 = vmul.u32.u64.low 4042322161, %v10332_v45  ;;  %v10341_v50 = vmul.u32.u64.high 4042322161, %v10332_v45, %v10340_v55 }
 0x23a   : > { %v10329_v20 = vadd.f32 %v2946_v19, %v10122_v10  ;;  %v7649_v21 = vpop.f32.mrf.mxu0  ;;  %v10355_v19 = vadd.s32 16, %v10332_v45 }
 0x23b   : > { %15063 = vst [vmem:[#allocation27_spill] sm:$0xff] %v10326_v25  ;;  %v2948_v31 = vpop.f32.mrf.mxu1  ;;  %v8248_v21 = vld [vmem:[#allocation7 + $0xf0] sm:$0xff]  }
 0x23c   : > { %v3088_v60 = vpop.f32.mrf.mxu0  ;;  %5245 = vmatpush1.bf16.msra.mxu1 %v8248_v21 }
 0x23d   : > { %v2951_v35 = vpop.f32.mrf.mxu1  ;;  %v10334_v46 = vadd.f32 %v3088_v60, %v2920_v38  ;;  %5246 = vmatprep.subr.bf16.mxu1 %v14882_v7 }
 0x23e   : > { %v10337_v12 = vadd.f32 %v2951_v35, %v10132_v42  ;;  %v7652_v32 = vpop.f32.mrf.mxu0  ;;  %v402_v35 = vshrl.u32 %v10341_v50, 4 }
 0x23f   : > { %15064 = vst [vmem:[#allocation70_spill] sm:$0xff] %v10334_v46  ;;  %v2953_v51 = vpop.f32.mrf.mxu1 }
 0x240   : > { %v3091_v10 = vpop.f32.mrf.mxu0  ;;  %v403_v21 = vmul.u32 17, %v402_v35 }
 0x241   : > { %v2954_v41 = vpop.f32.mrf.mxu1  ;;  %v10344_v11 = vadd.f32 %v3091_v10, %v2923_v61 }
 0x242   : > { %v10347_v38 = vadd.f32 %v2954_v41, %v10142_v53  ;;  %v7653_v27 = vpop.f32.mrf.mxu0  ;;  %v10361_v53 = vadd.s32 24, %v10332_v45  ;;  %v10402_v35 = vsub.s32 %v10332_v45, %v403_v21 }
 0x243   : > { %15065 = vst [vmem:[#allocation32_spill] sm:$0xff] %v10344_v11  ;;  %v2956_v3 = vpop.f32.mrf.mxu1 }
 0x244   : > { %v3096_v42 = vpop.f32.mrf.mxu0  ;;  %v10380_v27 = vmul.u32.u64.low 4042322161, %v10361_v53  ;;  %v10381_v3 = vmul.u32.u64.high 4042322161, %v10361_v53, %v10380_v27  ;;  %15069 = vst [vmem:[#allocation54_spill] sm:$0xff] %v10402_v35  ;;  %vm770_vm5 = vcmp.ne.s32.totalorder %v10402_v35, 0  ;;  %vm804_vm6 = vcmp.lt.s32.totalorder %v10402_v35, 0 }
 0x245   : > { %v2959_v29 = vpop.f32.mrf.mxu1  ;;  %v10352_v14 = vadd.f32 %v3096_v42, %v2928_v54  ;;  %v10365_v32 = vmul.u32.u64.low 4042322161, %v10350_v0  ;;  %v10366_v54 = vmul.u32.u64.high 4042322161, %v10350_v0, %v10365_v32  ;;  %v10384_v42 = vadd.s32 32, %v10332_v45  ;;  %vm10434_vm7 = vmand %vm804_vm6, %vm770_vm5 }
 0x246   : > { %v10358_v31 = vadd.f32 %v2959_v29, %v10152_v16  ;;  %v7656_v61 = vpop.f32.mrf.mxu0  ;;  %v10373_v16 = vmul.u32.u64.low 4042322161, %v10355_v19  ;;  %v10374_v10 = vmul.u32.u64.high 4042322161, %v10355_v19, %v10373_v16  ;;  %v15074_v13 = vsel %vm10434_vm7, 4294967295, %v15073_v13 }
 0x247   : > { %15066 = vst [vmem:[#allocation37_spill] sm:$0xff] %v10352_v14  ;;  %v2961_v60 = vpop.f32.mrf.mxu1  ;;  %15075 = vst [vmem:[#allocation25_spill] sm:$0xff] %v15074_v13 }
 0x248   : > { %v3099_v52 = vpop.f32.mrf.mxu0  ;;  %v10390_v60 = vadd.s32 48, %v10332_v45 }
 0x249   : > { %v2962_v51 = vpop.f32.mrf.mxu1  ;;  %v10370_v55 = vadd.f32 %v3099_v52, %v10306_v22  ;;  %v10387_v22 = vadd.s32 40, %v10332_v45 }
 0x24a   : > { %v10377_v41 = vadd.f32 %v2962_v51, %v10162_v44  ;;  %v7657_v50 = vpop.f32.mrf.mxu0  ;;  %v10398_v51 = vmul.u32.u64.low 4042322161, %v10384_v42  ;;  %v10399_v16 = vmul.u32.u64.high 4042322161, %v10384_v42, %v10398_v51 }
 0x24b   : > { %15067 = vst [vmem:[#allocation42_spill] sm:$0xff] %v10370_v55  ;;  %v2964_v29 = vpop.f32.mrf.mxu1  ;;  %v8249_v50 = vld [vmem:[#allocation7 + $0xe8] sm:$0xff]   ;;  %v413_v51 = vshrl.u32 %v10366_v54, 4  ;;  %v10430_v54 = vadd.s32 17, %v10402_v35 }
 0x24c   : > { %v3104_v61 = vpop.f32.mrf.mxu0  ;;  %v10405_v29 = vmul.u32.u64.low 4042322161, %v10387_v22  ;;  %v10406_v1 = vmul.u32.u64.high 4042322161, %v10387_v22, %v10405_v29  ;;  %5247 = vmatpush1.bf16.msra.mxu1 %v8249_v50  ;;  %v10424_v50 = vadd.s32 56, %v10332_v45  ;;  %v446_v24 = vshrl.u32 %v10399_v16, 4 }
 0x24d   : > { %v10393_v44 = vadd.f32 %v3104_v61, %v10314_v8  ;;  %v10395_v52 = vpop.f32.mrf.mxu1  ;;  %v10409_v8 = vmul.u32.u64.low 4042322161, %v10390_v60  ;;  %v10410_v61 = vmul.u32.u64.high 4042322161, %v10390_v60, %v10409_v8  ;;  %5248 = vmatprep.subr.bf16.mxu1 %v14882_v7  ;;  %v435_v29 = vshrl.u32 %v10381_v3, 4  ;;  %15072 = vst [vmem:[#allocation19_spill] sm:$0xff] %v10430_v54 }
 0x24e   : > { %v7660_v32 = vpop.f32.mrf.mxu0  ;;  %v447_v55 = vmul.u32 17, %v446_v24  ;;  %v10486_v24 = vadd.s32 88, %v10332_v45 }
 0x24f   : > { %15068 = vst [vmem:[#allocation47_spill] sm:$0xff] %v10393_v44  ;;  %v3415_v27 = vpop.f32.mrf.mxu1  ;;  %v436_v6 = vmul.u32 17, %v435_v29  ;;  %v10452_v29 = vadd.s32 80, %v10332_v45 }
 0x250   : > { %v3107_v48 = vpop.f32.mrf.mxu0  ;;  %v424_v27 = vshrl.u32 %v10374_v10, 4  ;;  %v414_v10 = vmul.u32 17, %v413_v51  ;;  %v10448_v51 = vadd.s32 72, %v10332_v45  ;;  %5249 = vmatpush1.bf16.msra.mxu1 %v8250_v56 }
 0x251   : > { %v10413_v32 = vadd.f32 %v3107_v48, %v10319_v63  ;;  %v10415_v4 = vpop.f32.mrf.mxu1  ;;  %5250 = vmatprep.subr.bf16.mxu1 %v14882_v7 }
 0x252   : > { %v7661_v21 = vpop.f32.mrf.mxu0 }
 0x253   : > { %15070 = vst [vmem:[#allocation59_spill] sm:$0xff] %v10413_v32  ;;  %v3418_v8 = vpop.f32.mrf.mxu1  ;;  %v10440_v32 = vadd.s32 64, %v10332_v45 }
 0x254   : > { %v3112_v63 = vpop.f32.mrf.mxu0  ;;  %v425_v8 = vmul.u32 17, %v424_v27  ;;  %v468_v27 = vshrl.u32 %v10410_v61, 4 }
 0x255   : > { %v10427_v48 = vadd.f32 %v3112_v63, %v10324_v34  ;;  %v10432_v21 = vpop.f32.mrf.mxu1  ;;  %v457_v63 = vshrl.u32 %v10406_v1, 4  ;;  %v10471_v14 = vmul.u32.u64.low 4042322161, %v10440_v32  ;;  %v10472_v11 = vmul.u32.u64.high 4042322161, %v10440_v32, %v10471_v14 }
 0x256   : > { %v7664_v3 = vpop.f32.mrf.mxu0  ;;  %v10468_v61 = vsub.s32 %v10355_v19, %v425_v8  ;;  %v469_v46 = vmul.u32 17, %v468_v27  ;;  %v8251_v8 = vld [vmem:[#allocation7 + $0x178] sm:$0xff]  }
 0x257   : > { %15071 = vst [vmem:[#allocation68_spill] sm:$0xff] %v10427_v48  ;;  %v3423_v34 = vpop.f32.mrf.mxu1  ;;  %v10444_v48 = vmul.u32.u64.low 4042322161, %v10424_v50  ;;  %v10445_v44 = vmul.u32.u64.high 4042322161, %v10424_v50, %v10444_v48  ;;  %7759 = vmatpush3.bf16.msra.mxu0 %v8251_v8 }
 0x258   : > { %v3115_v3 = vpop.f32.mrf.mxu0  ;;  %v10463_v48 = vsub.s32 %v10350_v0, %v414_v10  ;;  %15077 = vst [vmem:[#allocation26_spill] sm:$0xff] %v10468_v61  ;;  %v10478_v1 = vmul.u32.u64.low 4042322161, %v10448_v51  ;;  %v10479_v0 = vmul.u32.u64.high 4042322161, %v10448_v51, %v10478_v1  ;;  %vm772_vm10 = vcmp.ne.s32.totalorder %v10468_v61, 0  ;;  %7760 = vmatprep.subr.bf16.mxu0 %v14880_v36 }
 0x259   : > { %v10456_v16 = vadd.f32 %v3115_v3, %v10329_v20  ;;  %v10465_v56 = vpop.f32.mrf.mxu1  ;;  %v10475_v3 = vsub.s32 %v10361_v53, %v436_v6  ;;  %v10496_v53 = vadd.s32 96, %v10332_v45  ;;  %vm806_vm11 = vcmp.lt.s32.totalorder %v10468_v61, 0 }
 0x25a   : > { %v7665_v34 = vpop.f32.mrf.mxu0  ;;  %vm771_vm8 = vcmp.ne.s32.totalorder %v10463_v48, 0  ;;  %vm805_vm9 = vcmp.lt.s32.totalorder %v10463_v48, 0  ;;  %v10499_v1 = vadd.s32 17, %v10463_v48  ;;  %v10516_v25 = vsub.s32 %v10390_v60, %v469_v46  ;;  %vm10554_vm6 = vmand %vm806_vm11, %vm772_vm10 }
 0x25b   : > { %15076 = vst [vmem:[#allocation73_spill] sm:$0xff] %v10456_v16  ;;  %v3426_v20 = vpop.f32.mrf.mxu1  ;;  %15078 = vst [vmem:[#allocation30_spill] sm:$0xff] %v10475_v3  ;;  %v458_v16 = vmul.u32 17, %v457_v63  ;;  %v10482_v34 = vmul.u32.u64.low 4042322161, %v10452_v29  ;;  %v10483_v19 = vmul.u32.u64.high 4042322161, %v10452_v29, %v10482_v34  ;;  %v8252_v63 = vld [vmem:[#allocation7 + $0xd8] sm:$0xff]  }
 0x25c   : > { %v3120_v10 = vpop.f32.mrf.mxu0  ;;  %v10507_v20 = vadd.s32 17, %v10468_v61  ;;  %vm773_vm12 = vcmp.ne.s32.totalorder %v10475_v3, 0  ;;  %5251 = vmatpush1.bf16.msra.mxu1 %v8252_v63  ;;  %vm807_vm13 = vcmp.lt.s32.totalorder %v10475_v3, 0  ;;  %15083 = vst [vmem:[#allocation81_spill] sm:$0xff] %v10516_v25  ;;  %v10534_v46 = vadd.s32 104, %v10332_v45  ;;  %vm10540_vm14 = vmand %vm805_vm9, %vm771_vm8 }
 0x25d   : > { %v10489_v14 = vadd.f32 %v3120_v10, %v10337_v12  ;;  %v10493_v6 = vpop.f32.mrf.mxu1  ;;  %v10504_v12 = vsub.s32 %v10384_v42, %v447_v55  ;;  %v10511_v34 = vsub.s32 %v10387_v22, %v458_v16  ;;  %5252 = vmatprep.subr.bf16.mxu1 %v14882_v7  ;;  %vm10565_vm4 = vmand %vm807_vm13, %vm773_vm12  ;;  %vm776_vm10 = vcmp.ne.s32.totalorder %v10516_v25, 0 }
 0x25e   : > { %v7668_v27 = vpop.f32.mrf.mxu0  ;;  %15081 = vst [vmem:[#allocation35_spill] sm:$0xff] %v10507_v20  ;;  %v10519_v55 = vmul.u32.u64.low 4042322161, %v10486_v24  ;;  %v10520_v42 = vmul.u32.u64.high 4042322161, %v10486_v24, %v10519_v55  ;;  %v10530_v16 = vmul.u32.u64.low 4042322161, %v10496_v53  ;;  %v10531_v8 = vmul.u32.u64.high 4042322161, %v10496_v53, %v10530_v16 }
 0x25f   : > { %15079 = vst [vmem:[#allocation80_spill] sm:$0xff] %v10489_v14  ;;  %15080 = vst [vmem:[#allocation31_spill] sm:$0xff] %v10504_v12  ;;  %v3431_v10 = vpop.f32.mrf.mxu1  ;;  %v479_v27 = vshrl.u32 %v10445_v44, 4  ;;  %vm774_vm15 = vcmp.ne.s32.totalorder %v10504_v12, 0  ;;  %vm808_vm5 = vcmp.lt.s32.totalorder %v10504_v12, 0  ;;  %vm775_vm8 = vcmp.ne.s32.totalorder %v10511_v34, 0 }
 0x260   : > { %15082 = vst [vmem:[#allocation86_spill] sm:$0xff] %v10511_v34  ;;  %v3123_v14 = vpop.f32.mrf.mxu0  ;;  %v15088_v10 = vmov 0  ;;  %vm809_vm9 = vcmp.lt.s32.totalorder %v10511_v34, 0  ;;  %v10570_v37 = vadd.s32 17, %v10504_v12  ;;  %vm810_vm11 = vcmp.lt.s32.totalorder %v10516_v25, 0  ;;  %vm10582_vm12 = vmand %vm808_vm5, %vm774_vm15 }
 0x261   : > { %v10525_v22 = vadd.f32 %v3123_v14, %v10347_v38  ;;  %v10527_v44 = vpop.f32.mrf.mxu1  ;;  %v10545_v38 = vadd.s32 17, %v10475_v3  ;;  %v490_v14 = vshrl.u32 %v10472_v11, 4  ;;  %v15089_v10 = vsel %vm10554_vm6, 4294967295, %v15088_v10  ;;  %vm10603_vm13 = vmand %vm809_vm9, %vm775_vm8 }
 0x262   : > { %v7669_v60 = vpop.f32.mrf.mxu0  ;;  %15090 = vst [vmem:[#allocation41_spill] sm:$0xff] %v15089_v10  ;;  %v480_v16 = vmul.u32 17, %v479_v27  ;;  %v15091_v11 = vmov 0  ;;  %15094 = vst [vmem:[#allocation46_spill] sm:$0xff] %v10570_v37  ;;  %v512_v27 = vshrl.u32 %v10483_v19, 4  ;;  %v10589_v30 = vadd.s32 17, %v10511_v34 }
 0x263   : > { %15084 = vst [vmem:[#allocation36_spill] sm:$0xff] %v10525_v22  ;;  %15087 = vst [vmem:[#allocation40_spill] sm:$0xff] %v10545_v38  ;;  %v3434_v55 = vpop.f32.mrf.mxu1  ;;  %v501_v60 = vshrl.u32 %v10479_v0, 4  ;;  %v15092_v11 = vsel %vm10565_vm4, 4294967295, %v15091_v11  ;;  %v10592_v2 = vmul.u32.u64.low 4042322161, %v10534_v46  ;;  %v10593_v26 = vmul.u32.u64.high 4042322161, %v10534_v46, %v10592_v2 }
 0x264   : > { %v3128_v22 = vpop.f32.mrf.mxu0  ;;  %15093 = vst [vmem:[#allocation45_spill] sm:$0xff] %v15092_v11  ;;  %v15096_v55 = vmov 0  ;;  %15099 = vst [vmem:[#allocation12_spill] sm:$0xff] %v10589_v30  ;;  %v491_v18 = vmul.u32 17, %v490_v14  ;;  %v10611_v2 = vadd.s32 112, %v10332_v45  ;;  %v10626_v14 = vsub.s32 %v10424_v50, %v480_v16 }
 0x265   : > { %v10576_v0 = vadd.f32 %v3128_v22, %v10358_v31  ;;  %v15097_v55 = vsel %vm10582_vm12, 4294967295, %v15096_v55  ;;  %v10586_v33 = vpop.f32.mrf.mxu1  ;;  %v15100_v22 = vmov 0  ;;  %vm10621_vm15 = vmand %vm810_vm11, %vm776_vm10  ;;  %v502_v58 = vmul.u32 17, %v501_v60 }
 0x266   : > { %15098 = vst [vmem:[#allocation13_spill] sm:$0xff] %v15097_v55  ;;  %v7672_v19 = vpop.f32.mrf.mxu0  ;;  %v15101_v22 = vsel %vm10603_vm13, 4294967295, %v15100_v22  ;;  %v15105_v59 = vsel %vm10621_vm15, 4294967295, %v15104_v59  ;;  %15107 = vst [vmem:[#allocation60_spill] sm:$0xff] %v10626_v14  ;;  %v513_v31 = vmul.u32 17, %v512_v27  ;;  %v523_v61 = vshrl.u32 %v10520_v42, 4 }
 0x267   : > { %15095 = vst [vmem:[#allocation52_spill] sm:$0xff] %v10576_v0  ;;  %15102 = vst [vmem:[#allocation14_spill] sm:$0xff] %v15101_v22  ;;  %v10608_v0 = vadd.s32 17, %v10516_v25  ;;  %v8253_v19 = vld [vmem:[#allocation7 + $0xd0] sm:$0xff]   ;;  %v3439_v57 = vpop.f32.mrf.mxu1  ;;  %v10637_v20 = vadd.s32 128, %v10332_v45  ;;  %v534_v42 = vshrl.u32 %v10531_v8, 4  ;;  %v10667_v8 = vsub.s32 %v10448_v51, %v502_v58 }
 0x268   : > { %15106 = vst [vmem:[#allocation53_spill] sm:$0xff] %v15105_v59  ;;  %v3131_v35 = vpop.f32.mrf.mxu0  ;;  %5253 = vmatpush1.bf16.msra.mxu1 %v8253_v19  ;;  %v10662_v16 = vmul.u32.u64.low 4042322161, %v10611_v2  ;;  %v10663_v57 = vmul.u32.u64.high 4042322161, %v10611_v2, %v10662_v16  ;;  %vm777_vm5 = vcmp.ne.s32.totalorder %v10626_v14, 0  ;;  %vm811_vm8 = vcmp.lt.s32.totalorder %v10626_v14, 0 }
 0x269   : > { %15103 = vst [vmem:[#allocation16_spill] sm:$0xff] %v10608_v0  ;;  %v10640_v50 = vadd.f32 %v3131_v35, %v10377_v41  ;;  %v10650_v27 = vpop.f32.mrf.mxu1  ;;  %5254 = vmatprep.subr.bf16.mxu1 %v14882_v7  ;;  %v10659_v35 = vsub.s32 %v10440_v32, %v491_v18  ;;  %15110 = vst [vmem:[#allocation61_spill] sm:$0xff] %v10667_v8  ;;  %v10674_v41 = vsub.s32 %v10452_v29, %v513_v31  ;;  %v8254_v0 = vld [vmem:[#allocation7 + $0x170] sm:$0xff]   ;;  %v15135_v38 = vmov 0 }
 0x26a   : > { %v7673_v19 = vpop.f32.mrf.mxu0  ;;  %v524_v18 = vmul.u32 17, %v523_v61  ;;  %v10677_v32 = vmul.u32.u64.low 4042322161, %v10637_v20  ;;  %v10678_v25 = vmul.u32.u64.high 4042322161, %v10637_v20, %v10677_v32  ;;  %v545_v51 = vshrl.u32 %v10593_v26, 4  ;;  %7761 = vmatpush3.bf16.msra.mxu0 %v8254_v0  ;;  %vm10735_vm2 = vmand %vm811_vm8, %vm777_vm5 }
 0x26b   : > { %15108 = vst [vmem:[#allocation17_spill] sm:$0xff] %v10640_v50  ;;  %15109 = vst [vmem:[#allocation20_spill] sm:$0xff] %v10659_v35  ;;  %v3442_v60 = vpop.f32.mrf.mxu1  ;;  %v10670_v19 = vmul.u32.u64.low 4042322161, %v10629_v47  ;;  %v10671_v50 = vmul.u32.u64.high 4042322161, %v10629_v47, %v10670_v19  ;;  %v535_v58 = vmul.u32 17, %v534_v42  ;;  %v10686_v29 = vadd.s32 17, %v10626_v14  ;;  %7762 = vmatprep.subr.bf16.mxu0 %v14880_v36 }
 0x26c   : > { %v3582_v34 = vpop.f32.mrf.mxu0  ;;  %15111 = vst [vmem:[#allocation66_spill] sm:$0xff] %v10674_v41  ;;  %v8255_v19 = vld [vmem:[#allocation7 + $0xc8] sm:$0xff]   ;;  %vm778_vm9 = vcmp.ne.s32.totalorder %v10659_v35, 0  ;;  %vm812_vm10 = vcmp.lt.s32.totalorder %v10659_v35, 0  ;;  %v10691_v61 = vadd.s32 136, %v10332_v45  ;;  %v10697_v31 = vadd.s32 17, %v10659_v35 }
 0x26d   : > { %v3583_v16 = vadd.f32 %v3582_v34, %v10395_v52  ;;  %v10681_v60 = vpop.f32.mrf.mxu1  ;;  %15112 = vst [vmem:[#allocation21_spill] sm:$0xff] %v10686_v29  ;;  %vm779_vm11 = vcmp.ne.s32.totalorder %v10667_v8, 0  ;;  %5255 = vmatpush1.bf16.msra.mxu1 %v8255_v19  ;;  %vm813_vm0 = vcmp.lt.s32.totalorder %v10667_v8, 0  ;;  %v10705_v42 = vadd.s32 17, %v10667_v8  ;;  %vm10748_vm1 = vmand %vm812_vm10, %vm778_vm9  ;;  %v8256_v14 = vld [vmem:[#allocation7 + $0xc0] sm:$0xff]  }
 0x26e   : > { %v7692_v59 = vpop.f32.mrf.mxu0  ;;  %15113 = vst [vmem:[#allocation23_spill] sm:$0xff] %v10697_v31  ;;  %vm780_vm3 = vcmp.ne.s32.totalorder %v10674_v41, 0  ;;  %5256 = vmatprep.subr.bf16.mxu1 %v14882_v7  ;;  %v10718_v0 = vsub.s32 %v10496_v53, %v535_v58  ;;  %v546_v19 = vmul.u32 17, %v545_v51  ;;  %v556_v30 = vshrl.u32 %v10663_v57, 4  ;;  %vm10765_vm9 = vmand %vm813_vm0, %vm779_vm11 }
 0x26f   : > { %v10694_v52 = vadd.f32 %v3583_v16, %v10172_v40  ;;  %v3447_v34 = vpop.f32.mrf.mxu1  ;;  %v10701_v59 = vadd.s32 144, %v10332_v45  ;;  %15114 = vst [vmem:[#allocation67_spill] sm:$0xff] %v10705_v42  ;;  %v10709_v40 = vsub.s32 %v10486_v24, %v524_v18  ;;  %v10726_v22 = vadd.s32 152, %v10332_v45 }
 0x270   : > { %v3585_v26 = vpop.f32.mrf.mxu0  ;;  %15116 = vst [vmem:[#allocation24_spill] sm:$0xff] %v10718_v0  ;;  %v10722_v24 = vmul.u32.u64.low 4042322161, %v10691_v61  ;;  %v10723_v18 = vmul.u32.u64.high 4042322161, %v10691_v61, %v10722_v24  ;;  %v15117_v53 = vmov 0  ;;  %v567_v57 = vshrl.u32 %v10671_v50, 4 }
 0x271   : > { %15115 = vst [vmem:[#allocation74_spill] sm:$0xff] %v10709_v40  ;;  %v3586_v32 = vadd.f32 %v3585_v26, %v10415_v4  ;;  %v10714_v16 = vpop.f32.mrf.mxu1  ;;  %v15118_v53 = vsel %vm10735_vm2, 4294967295, %v15117_v53  ;;  %v10741_v51 = vmul.u32.u64.low 4042322161, %v10701_v59  ;;  %v10742_v26 = vmul.u32.u64.high 4042322161, %v10701_v59, %v10741_v51  ;;  %5257 = vmatpush1.bf16.msra.mxu1 %v8256_v14 }
 0x272   : > { %v7693_v34 = vpop.f32.mrf.mxu0  ;;  %15119 = vst [vmem:[#allocation28_spill] sm:$0xff] %v15118_v53  ;;  %v10756_v50 = vadd.s32 160, %v10332_v45  ;;  %v15123_v51 = vmov 0  ;;  %v10770_v36 = vadd.s32 17, %v10674_v41  ;;  %vm782_vm10 = vcmp.ne.s32.totalorder %v10718_v0, 0  ;;  %5258 = vmatprep.subr.bf16.mxu1 %v14882_v7 }
 0x273   : > { %v10729_v4 = vadd.f32 %v3586_v32, %v10182_v28  ;;  %v3450_v58 = vpop.f32.mrf.mxu1  ;;  %v15120_v28 = vmov 0  ;;  %v578_v32 = vshrl.u32 %v10678_v25, 4  ;;  %v15124_v51 = vsel %vm10765_vm9, 4294967295, %v15123_v51 }
 0x274   : > { %v3590_v34 = vpop.f32.mrf.mxu0  ;;  %v15121_v28 = vsel %vm10748_vm1, 4294967295, %v15120_v28  ;;  %15125 = vst [vmem:[#allocation78_spill] sm:$0xff] %v15124_v51  ;;  %15126 = vst [vmem:[#allocation29_spill] sm:$0xff] %v10770_v36  ;;  %vm816_vm8 = vcmp.lt.s32.totalorder %v10718_v0, 0  ;;  %vm15127_vm5 = vcmp.lt.s32.totalorder %v10674_v41, 0  ;;  %v10786_v12 = vadd.s32 17, %v10718_v0 }
 0x275   : > { %15122 = vst [vmem:[#allocation75_spill] sm:$0xff] %v15121_v28  ;;  %v3591_v24 = vadd.f32 %v3590_v34, %v10432_v21  ;;  %v10759_v58 = vpop.f32.mrf.mxu1  ;;  %vm10778_vm15 = vmand %vm15127_vm5, %vm780_vm3  ;;  %v15128_v21 = vmov 0  ;;  %v10783_v34 = vadd.s32 17, %v10709_v40  ;;  %vm15133_vm0 = vcmp.ne.s32.totalorder %v10709_v40, 0 }
 0x276   : > { %v7696_v25 = vpop.f32.mrf.mxu0  ;;  %v15129_v21 = vsel %vm10778_vm15, 4294967295, %v15128_v21  ;;  %15132 = vst [vmem:[#allocation84_spill] sm:$0xff] %v10786_v12  ;;  %v10789_v37 = vmul.u32.u64.low 4042322161, %v10726_v22  ;;  %v10790_v55 = vmul.u32.u64.high 4042322161, %v10726_v22, %v10789_v37  ;;  %vm15134_vm3 = vcmp.lt.s32.totalorder %v10709_v40, 0  ;;  %vm10814_vm5 = vmand %vm816_vm8, %vm782_vm10 }
 0x277   : > { %15130 = vst [vmem:[#allocation33_spill] sm:$0xff] %v15129_v21  ;;  %15131 = vst [vmem:[#allocation79_spill] sm:$0xff] %v10783_v34  ;;  %v10793_v25 = vadd.f32 %v3591_v24, %v10192_v43  ;;  %v3455_v3 = vpop.f32.mrf.mxu1  ;;  %v10804_v11 = vsub.s32 %v10534_v46, %v546_v19  ;;  %v557_v10 = vmul.u32 17, %v556_v30  ;;  %v568_v54 = vmul.u32 17, %v567_v57 }
 0x278   : > { %vm10799_vm11 = vmand %vm15134_vm3, %vm15133_vm0  ;;  %v3593_v13 = vpop.f32.mrf.mxu0  ;;  %v15139_v37 = vmov 0  ;;  %v579_v3 = vmul.u32 17, %v578_v32  ;;  %v10819_v46 = vmul.u32.u64.low 4042322161, %v10756_v50  ;;  %v10820_v19 = vmul.u32.u64.high 4042322161, %v10756_v50, %v10819_v46 }
 0x279   : > { %v15136_v38 = vsel %vm10799_vm11, 4294967295, %v15135_v38  ;;  %15138 = vst [vmem:[#allocation38_spill] sm:$0xff] %v10804_v11  ;;  %v15140_v37 = vsel %vm10814_vm5, 4294967295, %v15139_v37  ;;  %v3594_v30 = vadd.f32 %v3593_v13, %v10465_v56  ;;  %v10831_v43 = vpop.f32.mrf.mxu1  ;;  %v10834_v32 = vadd.s32 168, %v10332_v45 }
 0x27a   : > { %15137 = vst [vmem:[#allocation34_spill] sm:$0xff] %v15136_v38  ;;  %15141 = vst [vmem:[#allocation85_spill] sm:$0xff] %v15140_v37  ;;  %v7697_v29 = vpop.f32.mrf.mxu0  ;;  %v589_v46 = vshrl.u32 %v10723_v18, 4  ;;  %v10846_v24 = vadd.s32 176, %v10332_v45  ;;  %v10853_v8 = vadd.s32 17, %v10804_v11  ;;  %v600_v13 = vshrl.u32 %v10742_v26, 4 }
 0x27b   : > { %v3458_v57 = vpop.f32.mrf.mxu1  ;;  %v10857_v41 = vadd.s32 184, %v10332_v45  ;;  %v10860_v18 = vadd.f32 %v3594_v30, %v10202_v5  ;;  %vm783_vm8 = vcmp.ne.s32.totalorder %v10804_v11, 0  ;;  %v10868_v29 = vsub.s32 %v10629_v47, %v568_v54 }
 0x27c   : > { %v3598_v56 = vpop.f32.mrf.mxu0  ;;  %v10865_v57 = vsub.s32 %v10611_v2, %v557_v10  ;;  %v10871_v26 = vsub.s32 %v10637_v20, %v579_v3  ;;  %v10878_v30 = vmul.u32.u64.low 4042322161, %v10834_v32  ;;  %v10879_v0 = vmul.u32.u64.high 4042322161, %v10834_v32, %v10878_v30 }
 0x27d   : > { %v3599_v14 = vadd.f32 %v3598_v56, %v10493_v6  ;;  %v10875_v5 = vpop.f32.mrf.mxu1  ;;  %v10882_v12 = vadd.s32 192, %v10332_v45  ;;  %v590_v2 = vmul.u32 17, %v589_v46  ;;  %v611_v47 = vshrl.u32 %v10790_v55, 4 }
 0x27e   : > { %v7700_v10 = vpop.f32.mrf.mxu0  ;;  %v10886_v54 = vmul.u32.u64.low 4042322161, %v10846_v24  ;;  %v10887_v20 = vmul.u32.u64.high 4042322161, %v10846_v24, %v10886_v54  ;;  %v601_v56 = vmul.u32 17, %v600_v13  ;;  %v622_v55 = vshrl.u32 %v10820_v19, 4 }
 0x27f   : > { %v10890_v3 = vadd.f32 %v3599_v14, %v10212_v62  ;;  %v3463_v6 = vpop.f32.mrf.mxu1  ;;  %v10893_v7 = vmul.u32.u64.low 4042322161, %v10857_v41  ;;  %v10894_v37 = vmul.u32.u64.high 4042322161, %v10857_v41, %v10893_v7  ;;  %v10900_v46 = vadd.s32 200, %v10332_v45 }
 0x280   : > { %v3601_v30 = vpop.f32.mrf.mxu0  ;;  %v10906_v13 = vadd.s32 17, %v10865_v57  ;;  %v10909_v14 = vmul.u32.u64.low 4042322161, %v10882_v12  ;;  %v10910_v7 = vmul.u32.u64.high 4042322161, %v10882_v12, %v10909_v14  ;;  %v10915_v19 = vsub.s32 %v10691_v61, %v590_v2 }
 0x281   : > { %v3602_v10 = vadd.f32 %v3601_v30, %v10527_v44  ;;  %v10903_v62 = vpop.f32.mrf.mxu1  ;;  %v612_v6 = vmul.u32 17, %v611_v47  ;;  %v10921_v40 = vadd.s32 17, %v10868_v29  ;;  %v10925_v14 = vsub.s32 %v10701_v59, %v601_v56 }
 0x282   : > { %v7701_v54 = vpop.f32.mrf.mxu0  ;;  %15142 = vst [vmem:[#allocation89_spill] sm:$0xff] %v10915_v19  ;;  %v623_v34 = vmul.u32 17, %v622_v55  ;;  %v10928_v38 = vmul.u32.u64.low 4042322161, %v10900_v46  ;;  %v10929_v36 = vmul.u32.u64.high 4042322161, %v10900_v46, %v10928_v38  ;;  %v10932_v61 = vadd.s32 208, %v10332_v45 }
 0x283   : > { %v10918_v44 = vadd.f32 %v3602_v10, %v10225_v49  ;;  %v3466_v30 = vpop.f32.mrf.mxu1  ;;  %15143 = vst [vmem:[#allocation39_spill] sm:$0xff] %v10925_v14  ;;  %v10939_v47 = vadd.s32 17, %v10871_v26  ;;  %v633_v59 = vshrl.u32 %v10879_v0, 4  ;;  %v10945_v38 = vsub.s32 %v10726_v22, %v612_v6 }
 0x284   : > { %v3606_v54 = vpop.f32.mrf.mxu0  ;;  %v10948_v55 = vadd.s32 216, %v10332_v45  ;;  %vm15145_vm3 = vcmp.lt.s32.totalorder %v10804_v11, 0  ;;  %v10959_v10 = vadd.s32 17, %v10915_v19  ;;  %v644_v22 = vshrl.u32 %v10887_v20, 4 }
 0x285   : > { %v3607_v49 = vadd.f32 %v3606_v54, %v10586_v33  ;;  %v10935_v2 = vpop.f32.mrf.mxu1  ;;  %15144 = vst [vmem:[#allocation43_spill] sm:$0xff] %v10945_v38  ;;  %vm10954_vm5 = vmand %vm15145_vm3, %vm783_vm8  ;;  %v655_v6 = vshrl.u32 %v10894_v37, 4  ;;  %vm15148_vm10 = vcmp.ne.s32.totalorder %v10865_v57, 0  ;;  %vm15149_vm8 = vcmp.lt.s32.totalorder %v10865_v57, 0 }
 0x286   : > { %v7704_v56 = vpop.f32.mrf.mxu0  ;;  %vm10971_vm3 = vmand %vm15149_vm8, %vm15148_vm10  ;;  %v10979_v21 = vmul.u32.u64.low 4042322161, %v10932_v61  ;;  %v10980_v20 = vmul.u32.u64.high 4042322161, %v10932_v61, %v10979_v21  ;;  %vm15154_vm0 = vcmp.ne.s32.totalorder %v10868_v29, 0  ;;  %vm15155_vm11 = vcmp.lt.s32.totalorder %v10868_v29, 0 }
 0x287   : > { %v3471_v0 = vpop.f32.mrf.mxu1  ;;  %v10965_v30 = vadd.f32 %v3607_v49, %v10234_v9  ;;  %vm10989_vm15 = vmand %vm15155_vm11, %vm15154_vm0  ;;  %vm15158_vm8 = vcmp.ne.s32.totalorder %v10871_v26, 0  ;;  %vm15159_vm9 = vcmp.lt.s32.totalorder %v10871_v26, 0  ;;  %vm15162_vm0 = vcmp.ne.s32.totalorder %v10915_v19, 0 }
 0x288   : > { %v3609_v54 = vpop.f32.mrf.mxu0  ;;  %v10976_v0 = vsub.s32 %v10756_v50, %v623_v34  ;;  %v634_v50 = vmul.u32 17, %v633_v59  ;;  %v666_v34 = vshrl.u32 %v10910_v7, 4  ;;  %vm10999_vm1 = vmand %vm15159_vm9, %vm15158_vm8  ;;  %vm15163_vm10 = vcmp.lt.s32.totalorder %v10915_v19, 0 }
 0x289   : > { %v3610_v37 = vadd.f32 %v3609_v54, %v10650_v27  ;;  %v10983_v9 = vpop.f32.mrf.mxu1  ;;  %v11006_v21 = vmul.u32.u64.low 4042322161, %v10948_v55  ;;  %v11007_v54 = vmul.u32.u64.high 4042322161, %v10948_v55, %v11006_v21  ;;  %vm11016_vm9 = vmand %vm15163_vm10, %vm15162_vm0  ;;  %v11021_v51 = vadd.s32 17, %v10925_v14 }
 0x28a   : > { %15152 = vst [vmem:[#allocation90_spill] sm:$0xff] %v10976_v0  ;;  %15153 = vst [vmem:[#allocation93_spill] sm:$0xff] %v10983_v9  ;;  %v7705_v42 = vpop.f32.mrf.mxu0  ;;  %v645_v35 = vmul.u32 17, %v644_v22  ;;  %v656_v31 = vmul.u32 17, %v655_v6  ;;  %vm15167_vm8 = vcmp.ne.s32.totalorder %v10925_v14, 0  ;;  %vm15168_vm11 = vcmp.lt.s32.totalorder %v10925_v14, 0 }
 0x28b   : > { %v11010_v59 = vadd.f32 %v3610_v37, %v10244_v17  ;;  %v3474_v42 = vpop.f32.mrf.mxu1  ;;  %15166 = vst [vmem:[#allocation44_spill] sm:$0xff] %v11021_v51  ;;  %vm11027_vm2 = vmand %vm15168_vm11, %vm15167_vm8  ;;  %v15169_v17 = vmov 0  ;;  %v11032_v37 = vadd.s32 17, %v10945_v38  ;;  %vm790_vm10 = vcmp.ne.s32.totalorder %v10976_v0, 0 }
 0x28c   : > { %v3614_v28 = vpop.f32.mrf.mxu0  ;;  %v15170_v17 = vsel %vm11027_vm2, 4294967295, %v15169_v17  ;;  %vm824_vm0 = vcmp.lt.s32.totalorder %v10976_v0, 0  ;;  %v677_v21 = vshrl.u32 %v10929_v36, 4  ;;  %vm15172_vm11 = vcmp.ne.s32.totalorder %v10945_v38, 0 }
 0x28d   : > { %15171 = vst [vmem:[#allocation50_spill] sm:$0xff] %v11032_v37  ;;  %v3615_v22 = vadd.f32 %v3614_v28, %v10681_v60  ;;  %v11042_v42 = vpop.f32.mrf.mxu1  ;;  %vm15173_vm8 = vcmp.lt.s32.totalorder %v10945_v38, 0  ;;  %v15174_v9 = vmov 0  ;;  %v11053_v53 = vsub.s32 %v10834_v32, %v634_v50  ;;  %v15218_v38 = vld [vmem:[#allocation35_spill] sm:$0xff] }
 0x28e   : > { %vm11048_vm13 = vmand %vm15173_vm8, %vm15172_vm11  ;;  %v667_v36 = vmul.u32 17, %v666_v34  ;;  %v7708_v60 = vpop.f32.mrf.mxu0  ;;  %v11068_v32 = vadd.s32 17, %v10976_v0  ;;  %v15179_v6 = vmov 0  ;;  %v11086_v11 = vsub.s32 %v10846_v24, %v645_v35 }
 0x28f   : > { %v15175_v9 = vsel %vm11048_vm13, 4294967295, %v15174_v9  ;;  %15177 = vst [vmem:[#allocation51_spill] sm:$0xff] %v11053_v53  ;;  %v11071_v50 = vadd.f32 %v3615_v22, %v10250_v39  ;;  %v3479_v34 = vpop.f32.mrf.mxu1  ;;  %vm11081_vm11 = vmand %vm824_vm0, %vm790_vm10  ;;  %v11089_v39 = vsub.s32 %v10857_v41, %v656_v31  ;;  %v678_v28 = vmul.u32 17, %v677_v21 }
 0x290   : > { %15176 = vst [vmem:[#allocation94_spill] sm:$0xff] %v15175_v9  ;;  %15178 = vst [vmem:[#allocation56_spill] sm:$0xff] %v11068_v32  ;;  %v15180_v6 = vsel %vm11081_vm11, 4294967295, %v15179_v6  ;;  %v3617_v22 = vpop.f32.mrf.mxu0  ;;  %v688_v19 = vshrl.u32 %v10980_v20, 4  ;;  %v11106_v41 = vsub.s32 %v10882_v12, %v667_v36  ;;  %v11113_v21 = vadd.s32 17, %v11053_v53 }
 0x291   : > { %15181 = vst [vmem:[#allocation57_spill] sm:$0xff] %v15180_v6  ;;  %15182 = vst [vmem:[#allocation64_spill] sm:$0xff] %v11086_v11  ;;  %v3618_v35 = vadd.f32 %v3617_v22, %v10714_v16  ;;  %v11101_v24 = vpop.f32.mrf.mxu1  ;;  %v699_v16 = vshrl.u32 %v11007_v54, 4  ;;  %v11117_v20 = vadd.s32 224, %v10332_v45  ;;  %v11122_v12 = vadd.s32 17, %v11086_v11 }
 0x292   : > { %15183 = vst [vmem:[#allocation65_spill] sm:$0xff] %v11089_v39  ;;  %15184 = vst [vmem:[#allocation71_spill] sm:$0xff] %v11106_v41  ;;  %v7709_v31 = vpop.f32.mrf.mxu0  ;;  %v11128_v36 = vld [vmem:[%s14402_s2] ss:$0 sm:$0xff]  ;;  %vm15187_vm11 = vcmp.ne.s32.totalorder %v11053_v53, 0  ;;  %vm15188_vm8 = vcmp.lt.s32.totalorder %v11053_v53, 0  ;;  %v11143_v60 = vsub.s32 %v10900_v46, %v678_v28  ;;  %v15375_v49 = vsel %vm10999_vm1, %v10939_v47, %v10871_v26 }
 0x293   : > { %15185 = vst [vmem:[#allocation72_spill] sm:$0xff] %v11113_v21  ;;  %v3482_v22 = vpop.f32.mrf.mxu1  ;;  %15186 = vst [vmem:[#allocation76_spill] sm:$0xff] %v11122_v12  ;;  %v11131_v54 = vadd.f32 %v3618_v35, %v10259_v15  ;;  %v689_v34 = vmul.u32 17, %v688_v19  ;;  %v15193_v15 = vsel %vm10540_vm14, %v10499_v1, %v10463_v48  ;;  %v15194_v35 = vmov 0 }
 0x294   : > { %v3622_v31 = vpop.f32.mrf.mxu0  ;;  %vm11137_vm13 = vmand %vm15188_vm8, %vm15187_vm11  ;;  %v15189_v22 = vmov 0  ;;  %15192 = vst [vmem:[#allocation82_spill] sm:$0xff] %v11143_v60  ;;  %vm11150_vm10 = vcmp.lt.s32.totalorder %v15193_v15, 16  ;;  %v3759_v0 = vadd.f32 %v11128_v36, %v10729_v4  ;;  %v11160_v46 = vadd.s32 17, %v11089_v39 }
 0x295   : > { %v15190_v22 = vsel %vm11137_vm13, 4294967295, %v15189_v22  ;;  %v15195_v35 = vsel %vm11150_vm10, 4294967295, %v15194_v35  ;;  %v3623_v32 = vadd.f32 %v3622_v31, %v10759_v58  ;;  %v11157_v6 = vpop.f32.mrf.mxu1  ;;  %vm15198_vm8 = vcmp.ne.s32.totalorder %v11086_v11, 0 }
 0x296   : > { %15191 = vst [vmem:[#allocation77_spill] sm:$0xff] %v15190_v22  ;;  %15196 = vst [vmem:[#allocation83_spill] sm:$0xff] %v15195_v35  ;;  %v7712_v63 = vpop.f32.mrf.mxu0  ;;  %vm15199_vm14 = vcmp.lt.s32.totalorder %v11086_v11, 0  ;;  %v15200_v48 = vmov 0  ;;  %v700_v1 = vmul.u32 17, %v699_v16  ;;  %v3758_v19 = vadd.f32 %v11128_v36, %v10694_v52  ;;  %v15240_v11 = vld [vmem:[#allocation30_spill] sm:$0xff] }
 0x297   : > { %15197 = vst [vmem:[#allocation87_spill] sm:$0xff] %v11160_v46  ;;  %vm11167_vm0 = vmand %vm15199_vm14, %vm15198_vm8  ;;  %v11173_v4 = vmul.u32.u64.low 4042322161, %v11117_v20  ;;  %v11174_v58 = vmul.u32.u64.high 4042322161, %v11117_v20, %v11173_v4  ;;  %v11179_v28 = vadd.f32 %v3623_v32, %v10263_v23  ;;  %v3487_v31 = vpop.f32.mrf.mxu1  ;;  %vm15203_vm8 = vcmp.ne.s32.totalorder %v11089_v39, 0  ;;  %v15209_v23 = vld [vmem:[#allocation19_spill] sm:$0xff]  ;;  %v15210_v32 = vld [vmem:[#allocation54_spill] sm:$0xff] }
 0x298   : > { %v15201_v48 = vsel %vm11167_vm0, 4294967295, %v15200_v48  ;;  %vm15204_vm14 = vcmp.lt.s32.totalorder %v11089_v39, 0  ;;  %v15205_v16 = vmov 0  ;;  %v11194_v63 = vadd.s32 232, %v10332_v45  ;;  %v3625_v15 = vpop.f32.mrf.mxu0 }
 0x299   : > { %15202 = vst [vmem:[#allocation88_spill] sm:$0xff] %v15201_v48  ;;  %vm11189_vm2 = vmand %vm15204_vm14, %vm15203_vm8  ;;  %v15211_v4 = vsel %vm10434_vm7, %v15209_v23, %v15210_v32  ;;  %v15212_v31 = vmov 0  ;;  %v11206_v53 = vadd.s32 17, %v11106_v41  ;;  %v11211_v21 = vsub.s32 %v10932_v61, %v689_v34  ;;  %v15219_v23 = vld [vmem:[#allocation26_spill] sm:$0xff]  ;;  %v11225_v14 = vpop.f32.mrf.mxu1 }
 0x29a   : > { %v15206_v16 = vsel %vm11189_vm2, 4294967295, %v15205_v16  ;;  %vm11201_vm11 = vcmp.lt.s32.totalorder %v15211_v4, 16  ;;  %v3827_v22 = vmul.f32 0.2, %v3759_v0  ;;  %v15220_v32 = vsel %vm10554_vm6, %v15218_v38, %v15219_v23  ;;  %v7713_v34 = vpop.f32.mrf.mxu0  ;;  %v15231_v23 = vld [vmem:[#allocation48_spill] sm:$0xff] }
 0x29b   : > { %15207 = vst [vmem:[#allocation92_spill] sm:$0xff] %v15206_v16  ;;  %v15213_v31 = vsel %vm11201_vm11, 4294967295, %v15212_v31  ;;  %15215 = vst [vmem:[#allocation19_spill] sm:$0xff] %v11206_v53  ;;  %vm11218_vm7 = vcmp.lt.s32.totalorder %v15220_v32, 16  ;;  %v15221_v4 = vmov 0  ;;  %v3760_v37 = vadd.f32 %v11128_v36, %v10793_v25  ;;  %v3490_v61 = vpop.f32.mrf.mxu1  ;;  %v15239_v16 = vld [vmem:[#allocation40_spill] sm:$0xff] }
 0x29c   : > { %15214 = vst [vmem:[#allocation25_spill] sm:$0xff] %v15213_v31  ;;  %15216 = vst [vmem:[#allocation54_spill] sm:$0xff] %v11211_v21  ;;  %v15222_v4 = vsel %vm11218_vm7, 4294967295, %v15221_v4  ;;  %v3626_v9 = vadd.f32 %v3625_v15, %v10831_v43  ;;  %vm15224_vm14 = vcmp.ne.s32.totalorder %v11106_v41, 0  ;;  %vm15225_vm6 = vcmp.lt.s32.totalorder %v11106_v41, 0  ;;  %v15280_v31 = vld [vmem:[#allocation16_spill] sm:$0xff] }
 0x29d   : > { %15223 = vst [vmem:[#allocation41_spill] sm:$0xff] %v15222_v4  ;;  %vm11235_vm8 = vmand %vm15225_vm6, %vm15224_vm14  ;;  %v15226_v38 = vmov 0  ;;  %v11244_v43 = vadd.s32 17, %v11143_v60  ;;  %v11247_v15 = vsub.s32 %v10948_v55, %v700_v1  ;;  %v3826_v52 = vmul.f32 0.2, %v3758_v19  ;;  %v3630_v1 = vpop.f32.mrf.mxu0  ;;  %v11282_v48 = vpop.f32.mrf.mxu1 }
 0x29e   : > { %v15227_v38 = vsel %vm11235_vm8, 4294967295, %v15226_v38  ;;  %v11250_v32 = vadd.f32 %v3626_v9, %v15231_v23  ;;  %vm15232_vm14 = vcmp.ne.s32.totalorder %v11143_v60, 0  ;;  %vm15233_vm6 = vcmp.lt.s32.totalorder %v11143_v60, 0 }
 0x29f   : > { %15228 = vst [vmem:[#allocation35_spill] sm:$0xff] %v15227_v38  ;;  %15229 = vst [vmem:[#allocation26_spill] sm:$0xff] %v11244_v43  ;;  %v15234_v34 = vmov 0  ;;  %v11261_v25 = vmul.u32.u64.low 4042322161, %v11194_v63  ;;  %v11262_v39 = vmul.u32.u64.high 4042322161, %v11194_v63, %v11261_v25  ;;  %v3761_v55 = vadd.f32 %v11128_v36, %v10860_v18  ;;  %v7716_v9 = vpop.f32.mrf.mxu0 }
 0x2a0   : > { %15230 = vst [vmem:[#allocation99_spill] sm:$0xff] %v11247_v15  ;;  %vm11256_vm13 = vmand %vm15233_vm6, %vm15232_vm14  ;;  %vm796_vm0 = vcmp.ne.s32.totalorder %v11211_v21, 0  ;;  %vm15237_vm14 = vcmp.ge.f32.partialorder %v3759_v0, 0.0  ;;  %v3828_v23 = vmul.f32 0.2, %v3760_v37  ;;  %v15241_v25 = vsel %vm10565_vm4, %v15239_v16, %v15240_v11  ;;  %v3495_v16 = vpop.f32.mrf.mxu1 }
 0x2a1   : > { %v15235_v34 = vsel %vm11256_vm13, 4294967295, %v15234_v34  ;;  %v3861_v61 = vsel %vm15237_vm14, %v3759_v0, %v3827_v22  ;;  %vm11277_vm6 = vcmp.lt.s32.totalorder %v15241_v25, 16  ;;  %v15242_v12 = vmov 0  ;;  %v15250_v0 = vld [vmem:[#allocation31_spill] sm:$0xff]  ;;  %v15263_v25 = vld [vmem:[#allocation12_spill] sm:$0xff] }
 0x2a2   : > { %15236 = vst [vmem:[#allocation48_spill] sm:$0xff] %v15235_v34  ;;  %v15243_v12 = vsel %vm11277_vm6, 4294967295, %v15242_v12  ;;  %v3631_v18 = vadd.f32 %v3630_v1, %v10875_v5  ;;  %v710_v22 = vshrl.u32 %v11174_v58, 4  ;;  %v11291_v11 = vadd.s32 240, %v10332_v45  ;;  %v15249_v58 = vld [vmem:[#allocation46_spill] sm:$0xff]  ;;  %v15255_v16 = vld [vmem:[#allocation15_spill] sm:$0xff]  ;;  %v3633_v34 = vpop.f32.mrf.mxu0  ;;  %v11338_v41 = vpop.f32.mrf.mxu1 }
 0x2a3   : > { %15244 = vst [vmem:[#allocation45_spill] sm:$0xff] %v15243_v12  ;;  %vm15245_vm4 = vcmp.ge.f32.partialorder %v3758_v19, 0.0  ;;  %v11295_v5 = vadd.s32 17, %v11211_v21  ;;  %v11301_v1 = vsel %vm11150_vm10, %v3861_v61, 0.0  ;;  %v3829_v9 = vmul.f32 0.2, %v3761_v55 }
 0x2a4   : > { %v3860_v46 = vsel %vm15245_vm4, %v3758_v19, %v3826_v52  ;;  %15247 = vst [vmem:[#allocation30_spill] sm:$0xff] %v11301_v1  ;;  %v15251_v60 = vsel %vm10582_vm12, %v15249_v58, %v15250_v0  ;;  %v15252_v19 = vmov 0  ;;  %v3762_v52 = vadd.f32 %v11128_v36, %v10890_v3  ;;  %v15261_v0 = vld [vmem:[#allocation14_spill] sm:$0xff]  ;;  %v7717_v53 = vpop.f32.mrf.mxu0 }
 0x2a5   : > { %15246 = vst [vmem:[#allocation40_spill] sm:$0xff] %v11295_v5  ;;  %vm11308_vm2 = vcmp.lt.s32.totalorder %v15251_v60, 16  ;;  %v11315_v43 = vadd.f32 %v3631_v18, %v15255_v16  ;;  %vm15256_vm4 = vcmp.lt.s32.totalorder %v11211_v21, 0  ;;  %v15257_v61 = vmov 0  ;;  %v15264_v58 = vld [vmem:[#allocation86_spill] sm:$0xff]  ;;  %v15278_v53 = vld [vmem:[#allocation53_spill] sm:$0xff] }
 0x2a6   : > { %v15253_v19 = vsel %vm11308_vm2, 4294967295, %v15252_v19  ;;  %vm11321_vm8 = vmand %vm15256_vm4, %vm796_vm0  ;;  %vm15260_vm12 = vcmp.ge.f32.partialorder %v3760_v37, 0.0  ;;  %vm3795_vm14 = vcmp.ge.f32.partialorder %v3761_v55, 0.0  ;;  %vm15262_vm10 = vnez %v15261_v0  ;;  %v15281_v21 = vld [vmem:[#allocation81_spill] sm:$0xff] }
 0x2a7   : > { %15254 = vst [vmem:[#allocation13_spill] sm:$0xff] %v15253_v19  ;;  %v15258_v61 = vsel %vm11321_vm8, 4294967295, %v15257_v61  ;;  %v3862_v60 = vsel %vm15260_vm12, %v3760_v37, %v3828_v23  ;;  %v15265_v3 = vsel %vm15262_vm10, %v15263_v25, %v15264_v58  ;;  %v15266_v18 = vmov 0  ;;  %v15271_v58 = vld [vmem:[#allocation49_spill] sm:$0xff]  ;;  %v15327_v19 = vld [vmem:[#allocation66_spill] sm:$0xff] }
 0x2a8   : > { %15259 = vst [vmem:[#allocation46_spill] sm:$0xff] %v15258_v61  ;;  %vm11331_vm13 = vcmp.lt.s32.totalorder %v15265_v3, 16  ;;  %v3763_v16 = vadd.f32 %v11128_v36, %v10918_v44  ;;  %v3634_v35 = vadd.f32 %v3633_v34, %v10903_v62  ;;  %v11341_v37 = vadd.s32 17, %v11247_v15  ;;  %v3498_v62 = vpop.f32.mrf.mxu1 }
 0x2a9   : > { %v15267_v18 = vsel %vm11331_vm13, 4294967295, %v15266_v18  ;;  %v711_v23 = vmul.u32 17, %v710_v22  ;;  %v11344_v0 = vmul.u32.u64.low 4042322161, %v11291_v11  ;;  %v11345_v38 = vmul.u32.u64.high 4042322161, %v11291_v11, %v11344_v0 }
 0x2aa   : > { %15268 = vst [vmem:[#allocation31_spill] sm:$0xff] %v15267_v18  ;;  %15269 = vst [vmem:[#allocation15_spill] sm:$0xff] %v11341_v37  ;;  %v11350_v25 = vsel %vm11201_vm11, %v3860_v46, 0.0  ;;  %v11353_v44 = vadd.f32 %v3634_v35, %v15271_v58  ;;  %vm15272_vm10 = vcmp.ne.s32.totalorder %v11247_v15, 0  ;;  %vm15273_vm0 = vcmp.lt.s32.totalorder %v11247_v15, 0  ;;  %v3638_v58 = vpop.f32.mrf.mxu0  ;;  %v11387_v61 = vpop.f32.mrf.mxu1  ;;  %v15292_v37 = vld [vmem:[#allocation60_spill] sm:$0xff] }
 0x2ab   : > { %15270 = vst [vmem:[#allocation14_spill] sm:$0xff] %v11350_v25  ;;  %vm11363_vm4 = vmand %vm15273_vm0, %vm15272_vm10  ;;  %v15274_v34 = vmov 0  ;;  %v721_v22 = vshrl.u32 %v11262_v39, 4  ;;  %v3969_v35 = vmul.f32 %v11301_v1, %v11301_v1  ;;  %v11372_v46 = vsel %vm11218_vm7, %v3862_v60, 0.0 }
 0x2ac   : > { %v15275_v34 = vsel %vm11363_vm4, 4294967295, %v15274_v34  ;;  %15277 = vst [vmem:[#allocation86_spill] sm:$0xff] %v11372_v46  ;;  %v3863_v3 = vsel %vm3795_vm14, %v3761_v55, %v3829_v9  ;;  %v3830_v0 = vmul.f32 0.2, %v3762_v52  ;;  %vm3796_vm12 = vcmp.ge.f32.partialorder %v3762_v52, 0.0  ;;  %v7720_v9 = vpop.f32.mrf.mxu0 }
 0x2ad   : > { %15276 = vst [vmem:[#allocation12_spill] sm:$0xff] %v15275_v34  ;;  %v3831_v62 = vmul.f32 0.2, %v3763_v16  ;;  %vm15279_vm10 = vnez %v15278_v53  ;;  %v15283_v39 = vmov 0  ;;  %v3764_v4 = vadd.f32 %v11128_v36, %v10965_v30 }
 0x2ae   : > { %v15282_v5 = vsel %vm15279_vm10, %v15280_v31, %v15281_v21  ;;  %v3639_v60 = vadd.f32 %v3638_v58, %v10935_v2  ;;  %v3968_v55 = vmul.f32 %v11350_v25, %v11350_v25  ;;  %vm3797_vm14 = vcmp.ge.f32.partialorder %v3763_v16, 0.0  ;;  %v3503_v58 = vpop.f32.mrf.mxu1 }
 0x2af   : > { %vm11380_vm0 = vcmp.lt.s32.totalorder %v15282_v5, 16  ;;  %v11396_v31 = vsub.s32 %v11117_v20, %v711_v23  ;;  %v3928_v30 = vadd.f32 %v11301_v1, %v11350_v25  ;;  %v3970_v2 = vmul.f32 %v11372_v46, %v11372_v46  ;;  %v15287_v5 = vld [vmem:[#allocation55_spill] sm:$0xff]  ;;  %v3641_v1 = vpop.f32.mrf.mxu0  ;;  %v15291_v58 = vld [vmem:[#allocation21_spill] sm:$0xff] }
 0x2b0   : > { %v15284_v39 = vsel %vm11380_vm0, 4294967295, %v15283_v39  ;;  %v11403_v53 = vadd.f32 %v3639_v60, %v15287_v5  ;;  %v11406_v9 = vadd.s32 248, %v10332_v45  ;;  %v4002_v51 = vadd.f32 %v3969_v35, %v3968_v55  ;;  %v15289_v5 = vld [vmem:[#allocation28_spill] sm:$0xff] }
 0x2b1   : > { %15285 = vst [vmem:[#allocation49_spill] sm:$0xff] %v15284_v39  ;;  %15286 = vst [vmem:[#allocation53_spill] sm:$0xff] %v11396_v31  ;;  %v11410_v21 = vsel %vm11277_vm6, %v3863_v3, 0.0  ;;  %v3864_v20 = vsel %vm3796_vm12, %v3762_v52, %v3830_v0  ;;  %v3765_v23 = vadd.f32 %v11128_v36, %v11010_v59  ;;  %v3929_v25 = vadd.f32 %v3928_v30, %v11372_v46  ;;  %v15296_v3 = vld [vmem:[#allocation93_spill] sm:$0xff]  ;;  %v11426_v52 = vpop.f32.mrf.mxu1  ;;  %v7721_v59 = vpop.f32.mrf.mxu0 }
 0x2b2   : > { %15288 = vst [vmem:[#allocation16_spill] sm:$0xff] %v11410_v21  ;;  %v3865_v15 = vsel %vm3797_vm14, %v3763_v16, %v3831_v62  ;;  %v3832_v60 = vmul.f32 0.2, %v3764_v4  ;;  %vm15290_vm10 = vnez %v15289_v5  ;;  %v15294_v35 = vmov 0  ;;  %v15311_v46 = vld [vmem:[#allocation61_spill] sm:$0xff] }
 0x2b3   : > { %v15293_v34 = vsel %vm15290_vm10, %v15291_v58, %v15292_v37  ;;  %v3642_v55 = vadd.f32 %v3641_v1, %v15296_v3  ;;  %vm3798_vm12 = vcmp.ge.f32.partialorder %v3764_v4, 0.0  ;;  %v722_v16 = vmul.u32 17, %v721_v22  ;;  %v3506_v1 = vpop.f32.mrf.mxu1  ;;  %v15299_v58 = vld [vmem:[#allocation75_spill] sm:$0xff]  ;;  %v15302_v22 = vld [vmem:[#allocation20_spill] sm:$0xff] }
 0x2b4   : > { %vm11421_vm7 = vcmp.lt.s32.totalorder %v15293_v34, 16  ;;  %v4003_v0 = vadd.f32 %v4002_v51, %v3970_v2  ;;  %v3930_v62 = vadd.f32 %v3929_v25, %v11410_v21  ;;  %v3971_v37 = vmul.f32 %v11410_v21, %v11410_v21  ;;  %v15301_v3 = vld [vmem:[#allocation23_spill] sm:$0xff]  ;;  %v3646_v1 = vpop.f32.mrf.mxu0  ;;  %v15308_v21 = vld [vmem:[#allocation78_spill] sm:$0xff] }
 0x2b5   : > { %v15295_v35 = vsel %vm11421_vm7, 4294967295, %v15294_v35  ;;  %v11435_v34 = vsel %vm11308_vm2, %v3864_v20, 0.0  ;;  %v11439_v30 = vsel %vm11331_vm13, %v3865_v15, 0.0  ;;  %v3833_v5 = vmul.f32 0.2, %v3765_v23  ;;  %v15307_v20 = vld [vmem:[#allocation18_spill] sm:$0xff] }
 0x2b6   : > { %15297 = vst [vmem:[#allocation81_spill] sm:$0xff] %v11435_v34  ;;  %15298 = vst [vmem:[#allocation55_spill] sm:$0xff] %v11439_v30  ;;  %vm15300_vm10 = vnez %v15299_v58  ;;  %v15304_v25 = vmov 0  ;;  %v3766_v2 = vadd.f32 %v11128_v36, %v11071_v50  ;;  %v11453_v59 = vadd.f32 %v3642_v55, %v15307_v20  ;;  %v15310_v58 = vld [vmem:[#allocation67_spill] sm:$0xff]  ;;  %v11468_v55 = vpop.f32.mrf.mxu1 }
 0x2b7   : > { %v15303_v51 = vsel %vm15300_vm10, %v15301_v3, %v15302_v22  ;;  %v3866_v15 = vsel %vm3798_vm12, %v3764_v4, %v3832_v60  ;;  %vm15309_vm13 = vnez %v15308_v21  ;;  %v15313_v3 = vmov 0  ;;  %15316 = vst [vmem:[#allocation60_spill] sm:$0xff] %v11468_v55  ;;  %v7724_v60 = vpop.f32.mrf.mxu0 }
 0x2b8   : > { %vm11446_vm14 = vcmp.lt.s32.totalorder %v15303_v51, 16  ;;  %v15312_v18 = vsel %vm15309_vm13, %v15310_v58, %v15311_v46  ;;  %v3767_v22 = vadd.f32 %v11128_v36, %v11131_v54  ;;  %v3647_v50 = vadd.f32 %v3646_v1, %v11042_v42  ;;  %v15317_v58 = vld [vmem:[#allocation58_spill] sm:$0xff]  ;;  %v3511_v42 = vpop.f32.mrf.mxu1 }
 0x2b9   : > { %v15305_v25 = vsel %vm11446_vm14, 4294967295, %v15304_v25  ;;  %vm11461_vm10 = vcmp.lt.s32.totalorder %v15312_v18, 16  ;;  %v3972_v4 = vmul.f32 %v11435_v34, %v11435_v34  ;;  %v11473_v21 = vadd.s32 17, %v11396_v31  ;;  %v15324_v42 = vld [vmem:[#allocation33_spill] sm:$0xff] }
 0x2ba   : > { %15306 = vst [vmem:[#allocation28_spill] sm:$0xff] %v15305_v25  ;;  %v15314_v3 = vsel %vm11461_vm10, 4294967295, %v15313_v3  ;;  %v11476_v46 = vmul.u32.u64.low 4042322161, %v11406_v9  ;;  %v11477_v18 = vmul.u32.u64.high 4042322161, %v11406_v9, %v11476_v46  ;;  %v4004_v51 = vadd.f32 %v4003_v0, %v3971_v37  ;;  %v11513_v39 = vpop.f32.mrf.mxu1  ;;  %v15359_v25 = vld [vmem:[#allocation62_spill] sm:$0xff] }
 0x2bb   : > { %15315 = vst [vmem:[#allocation21_spill] sm:$0xff] %v15314_v3  ;;  %v3931_v20 = vadd.f32 %v3930_v62, %v11435_v34  ;;  %v11481_v54 = vadd.f32 %v3647_v50, %v15317_v58  ;;  %vm15318_vm13 = vcmp.ne.s32.totalorder %v11396_v31, 0  ;;  %vm15319_vm12 = vcmp.lt.s32.totalorder %v11396_v31, 0  ;;  %v3649_v46 = vpop.f32.mrf.mxu0  ;;  %v15326_v34 = vld [vmem:[#allocation29_spill] sm:$0xff] }
 0x2bc   : > { %vm11487_vm6 = vmand %vm15319_vm12, %vm15318_vm13  ;;  %v11492_v60 = vsub.s32 %v11194_v63, %v722_v16  ;;  %v3973_v0 = vmul.f32 %v11439_v30, %v11439_v30  ;;  %v11498_v62 = vsel %vm11380_vm0, %v3866_v15, 0.0  ;;  %vm15323_vm2 = vcmp.ge.f32.partialorder %v3765_v23, 0.0 }
 0x2bd   : > { %15322 = vst [vmem:[#allocation93_spill] sm:$0xff] %v11498_v62  ;;  %v3867_v37 = vsel %vm15323_vm2, %v3765_v23, %v3833_v5  ;;  %v3834_v50 = vmul.f32 0.2, %v3766_v2  ;;  %vm3800_vm11 = vcmp.ge.f32.partialorder %v3766_v2, 0.0  ;;  %v3835_v58 = vmul.f32 0.2, %v3767_v22  ;;  %v7725_v55 = vpop.f32.mrf.mxu0 }
 0x2be   : > { %vm15325_vm13 = vnez %v15324_v42  ;;  %v15329_v63 = vmov 0  ;;  %v3768_v16 = vadd.f32 %v11128_v36, %v11179_v28  ;;  %v3650_v15 = vadd.f32 %v3649_v46, %v11101_v24  ;;  %v8257_v23 = vld [vmem:[#allocation7 + $0x168] sm:$0xff]   ;;  %v15332_v42 = vld [vmem:[#allocation63_spill] sm:$0xff]  ;;  %v3514_v46 = vpop.f32.mrf.mxu1 }
 0x2bf   : > { %v15328_v12 = vsel %vm15325_vm13, %v15326_v34, %v15327_v19  ;;  %v4005_v5 = vadd.f32 %v4004_v51, %v3972_v4  ;;  %v3932_v34 = vadd.f32 %v3931_v20, %v11439_v30  ;;  %v3974_v28 = vmul.f32 %v11498_v62, %v11498_v62  ;;  %7763 = vmatpush3.bf16.msra.mxu0 %v8257_v23  ;;  %v15334_v19 = vld [vmem:[#allocation34_spill] sm:$0xff]  ;;  %v15336_v20 = vld [vmem:[#allocation79_spill] sm:$0xff]  ;;  %v3654_v23 = vpop.f32.mrf.mxu0 }
 0x2c0   : > { %vm11506_vm12 = vcmp.lt.s32.totalorder %v15328_v12, 16  ;;  %v732_v12 = vshrl.u32 %v11345_v38, 4  ;;  %v11524_v24 = vadd.f32 %v3650_v15, %v15332_v42  ;;  %v11527_v4 = vadd.s32 256, %v10332_v45  ;;  %v15337_v30 = vld [vmem:[#allocation74_spill] sm:$0xff] }
 0x2c1   : > { %v15330_v63 = vsel %vm11506_vm12, 4294967295, %v15329_v63  ;;  %v4006_v55 = vadd.f32 %v4005_v5, %v3973_v0  ;;  %v11531_v51 = vsel %vm11421_vm7, %v3867_v37, 0.0  ;;  %v3868_v38 = vsel %vm3800_vm11, %v3766_v2, %v3834_v50 }
 0x2c2   : > { %15331 = vst [vmem:[#allocation75_spill] sm:$0xff] %v15330_v63  ;;  %15333 = vst [vmem:[#allocation23_spill] sm:$0xff] %v11531_v51  ;;  %vm15335_vm13 = vnez %v15334_v19  ;;  %v15339_v15 = vmov 0  ;;  %v3769_v42 = vadd.f32 %v11128_v36, %v11250_v32  ;;  %v15342_v0 = vmov 0.0   ;;  %v11549_v19 = vpop.f32.mrf.mxu1 }
 0x2c3   : > { %v15338_v31 = vsel %vm15335_vm13, %v15336_v20, %v15337_v30  ;;  %7764 = vmatprep.subr.bf16.mxu0 %v15342_v0  ;;  %v3933_v37 = vadd.f32 %v3932_v34, %v11498_v62  ;;  %vm15343_vm7 = vcmp.ge.f32.partialorder %v3767_v22, 0.0  ;;  %v3836_v2 = vmul.f32 0.2, %v3768_v16  ;;  %v15348_v62 = vld [vmem:[#allocation24_spill] sm:$0xff] }
 0x2c4   : > { %vm11539_vm2 = vcmp.lt.s32.totalorder %v15338_v31, 16  ;;  %v3869_v5 = vsel %vm15343_vm7, %v3767_v22, %v3835_v58  ;;  %v3655_v50 = vadd.f32 %v3654_v23, %v11157_v6  ;;  %vm3802_vm11 = vcmp.ge.f32.partialorder %v3768_v16, 0.0  ;;  %v7728_v31 = vpop.f32.mrf.mxu0  ;;  %v3519_v58 = vpop.f32.mrf.mxu1  ;;  %v15345_v23 = vld [vmem:[#allocation85_spill] sm:$0xff] }
 0x2c5   : > { %v15340_v15 = vsel %vm11539_vm2, 4294967295, %v15339_v15  ;;  %v11554_v32 = vadd.s32 17, %v11492_v60  ;;  %v4007_v30 = vadd.f32 %v4006_v55, %v3974_v28  ;;  %v3934_v46 = vadd.f32 %v3933_v37, %v11531_v51  ;;  %v15347_v31 = vld [vmem:[#allocation84_spill] sm:$0xff] }
 0x2c6   : > { %15341 = vst [vmem:[#allocation20_spill] sm:$0xff] %v15340_v15  ;;  %v3975_v22 = vmul.f32 %v11531_v51, %v11531_v51  ;;  %v11561_v6 = vsel %vm11446_vm14, %v3868_v38, 0.0  ;;  %v11565_v34 = vsel %vm11461_vm10, %v3869_v5, 0.0  ;;  %v3837_v20 = vmul.f32 0.2, %v3769_v42  ;;  %v15353_v38 = vld [vmem:[#allocation22_spill] sm:$0xff]  ;;  %v3657_v58 = vpop.f32.mrf.mxu0 }
 0x2c7   : > { %15344 = vst [vmem:[#allocation18_spill] sm:$0xff] %v11561_v6  ;;  %vm15346_vm7 = vnez %v15345_v23  ;;  %v15350_v55 = vmov 0  ;;  %v3770_v37 = vadd.f32 %v11128_v36, %v11315_v43  ;;  %v11579_v51 = vadd.f32 %v3655_v50, %v15353_v38  ;;  %v15354_v23 = vld [vmem:[#allocation38_spill] sm:$0xff]  ;;  %v11594_v50 = vpop.f32.mrf.mxu1 }
 0x2c8   : > { %v15349_v28 = vsel %vm15346_vm7, %v15347_v31, %v15348_v62  ;;  %v3870_v5 = vsel %vm3802_vm11, %v3768_v16, %v3836_v2  ;;  %v15355_v3 = vsel %vm10954_vm5, %v10853_v8, %v15354_v23  ;;  %v15356_v62 = vmov 0  ;;  %v7729_v2 = vpop.f32.mrf.mxu0 }
 0x2c9   : > { %vm11572_vm0 = vcmp.lt.s32.totalorder %v15349_v28, 16  ;;  %vm11587_vm7 = vcmp.lt.s32.totalorder %v15355_v3, 16  ;;  %v3771_v31 = vadd.f32 %v11128_v36, %v11353_v44  ;;  %v3658_v43 = vadd.f32 %v3657_v58, %v11225_v14  ;;  %v8258_v28 = vld [vmem:[#allocation7 + $0x138] sm:$0xff]   ;;  %v3522_v14 = vpop.f32.mrf.mxu1 }
 0x2ca   : > { %v15351_v55 = vsel %vm11572_vm0, 4294967295, %v15350_v55  ;;  %v15357_v62 = vsel %vm11587_vm7, 4294967295, %v15356_v62  ;;  %v3976_v16 = vmul.f32 %v11561_v6, %v11561_v6  ;;  %v733_v33 = vmul.u32 17, %v732_v12  ;;  %5259 = vmatpush2.bf16.msra.mxu1 %v8258_v28  ;;  %v8259_v14 = vld [vmem:[#allocation7 + $0x130] sm:$0xff]  }
 0x2cb   : > { %15352 = vst [vmem:[#allocation78_spill] sm:$0xff] %v15351_v55  ;;  %15358 = vst [vmem:[#allocation67_spill] sm:$0xff] %v15357_v62  ;;  %v11599_v38 = vmul.u32.u64.low 4042322161, %v11527_v4  ;;  %v11600_v8 = vmul.u32.u64.high 4042322161, %v11527_v4, %v11599_v38  ;;  %v4008_v3 = vadd.f32 %v4007_v30, %v3975_v22  ;;  %v3935_v23 = vadd.f32 %v3934_v46, %v11561_v6 }
 0x2cc   : > { %v11605_v44 = vadd.f32 %v3658_v43, %v15359_v25  ;;  %vm15360_vm5 = vcmp.ne.s32.totalorder %v11492_v60, 0  ;;  %vm15361_vm11 = vcmp.lt.s32.totalorder %v11492_v60, 0  ;;  %v743_v12 = vshrl.u32 %v11477_v18, 4  ;;  %v3662_v43 = vpop.f32.mrf.mxu0 }
 0x2cd   : > { %vm11611_vm13 = vmand %vm15361_vm11, %vm15360_vm5  ;;  %v3977_v30 = vmul.f32 %v11565_v34, %v11565_v34  ;;  %v11620_v46 = vsel %vm11506_vm12, %v3870_v5, 0.0  ;;  %vm15364_vm10 = vcmp.ge.f32.partialorder %v3769_v42, 0.0  ;;  %v3838_v22 = vmul.f32 0.2, %v3770_v37 }
 0x2ce   : > { %v3871_v25 = vsel %vm15364_vm10, %v3769_v42, %v3837_v20  ;;  %v15365_v2 = vmov 0   ;;  %vm3804_vm5 = vcmp.ge.f32.partialorder %v3770_v37, 0.0  ;;  %v3839_v38 = vmul.f32 0.2, %v3771_v31  ;;  %v11636_v20 = vpop.f32.mrf.mxu1  ;;  %v7732_v56 = vpop.f32.mrf.mxu0 }
 0x2cf   : > { %5260 = vmatprep.subr.bf16.mxu1 %v15365_v2  ;;  %v15366_v18 = vsel %vm10971_vm3, %v10906_v13, %v10865_v57  ;;  %v15367_v28 = vmov 0  ;;  %v3772_v5 = vadd.f32 %v11128_v36, %v11403_v53  ;;  %v3663_v42 = vadd.f32 %v3662_v43, %v11282_v48  ;;  %v15370_v48 = vld [vmem:[#allocation69_spill] sm:$0xff] }
 0x2d0   : > { %vm11629_vm11 = vcmp.lt.s32.totalorder %v15366_v18, 16  ;;  %v4009_v63 = vadd.f32 %v4008_v3, %v3976_v16  ;;  %v3936_v6 = vadd.f32 %v3935_v23, %v11565_v34  ;;  %vm3805_vm10 = vcmp.ge.f32.partialorder %v3771_v31, 0.0  ;;  %v3527_v16 = vpop.f32.mrf.mxu1  ;;  %5261 = vmatpush2.bf16.msra.mxu1 %v8259_v14 }
 0x2d1   : > { %v15368_v28 = vsel %vm11629_vm11, 4294967295, %v15367_v28  ;;  %v3978_v13 = vmul.f32 %v11620_v46, %v11620_v46  ;;  %v11647_v53 = vsel %vm11539_vm2, %v3871_v25, 0.0  ;;  %v11650_v43 = vadd.f32 %v3663_v42, %v15370_v48  ;;  %5262 = vmatprep.subr.bf16.mxu1 %v15365_v2  ;;  %v8260_v16 = vld [vmem:[#allocation7 + $0x160] sm:$0xff]  }
 0x2d2   : > { %15369 = vst [vmem:[#allocation61_spill] sm:$0xff] %v15368_v28  ;;  %v11653_v3 = vsub.s32 %v11291_v11, %v733_v33  ;;  %v4010_v23 = vadd.f32 %v4009_v63, %v3977_v30  ;;  %v3937_v18 = vadd.f32 %v3936_v6, %v11620_v46  ;;  %v3872_v56 = vsel %vm3804_vm5, %v3770_v37, %v3838_v22  ;;  %v3665_v11 = vpop.f32.mrf.mxu0  ;;  %v11682_v37 = vpop.f32.mrf.mxu1  ;;  %v8261_v33 = vld [vmem:[#allocation7 + $0x128] sm:$0xff]  }
 0x2d3   : > { %v15371_v57 = vsel %vm10989_vm15, %v10921_v40, %v10868_v29  ;;  %v15372_v25 = vmov 0  ;;  %v3773_v42 = vadd.f32 %v11128_v36, %v11453_v59  ;;  %v3873_v63 = vsel %vm3805_vm10, %v3771_v31, %v3839_v38  ;;  %7765 = vmatpush3.bf16.msra.mxu0 %v8260_v16  ;;  %v15390_v16 = vld [vmem:[#allocation39_spill] sm:$0xff] }
 0x2d4   : > { %vm11662_vm3 = vcmp.lt.s32.totalorder %v15371_v57, 16  ;;  %v3840_v6 = vmul.f32 0.2, %v3772_v5  ;;  %vm11675_vm5 = vcmp.lt.s32.totalorder %v15375_v49, 16  ;;  %v15376_v40 = vmov 0  ;;  %v7733_v27 = vpop.f32.mrf.mxu0  ;;  %5263 = vmatpush2.bf16.msra.mxu1 %v8261_v33  ;;  %v15379_v57 = vld [vmem:[#allocation27_spill] sm:$0xff]  ;;  %7766 = vmatprep.subr.bf16.mxu0 %v15342_v0 }
 0x2d5   : > { %v15373_v25 = vsel %vm11662_vm3, 4294967295, %v15372_v25  ;;  %v15377_v40 = vsel %vm11675_vm5, 4294967295, %v15376_v40  ;;  %v3774_v29 = vadd.f32 %v11128_v36, %v11481_v54  ;;  %v3666_v59 = vadd.f32 %v3665_v11, %v11338_v41  ;;  %v3530_v41 = vpop.f32.mrf.mxu1  ;;  %5264 = vmatprep.subr.bf16.mxu1 %v15365_v2  ;;  %v15385_v27 = vld [vmem:[#allocation70_spill] sm:$0xff] }
 0x2d6   : > { %15374 = vst [vmem:[#allocation58_spill] sm:$0xff] %v15373_v25  ;;  %15378 = vst [vmem:[#allocation33_spill] sm:$0xff] %v15377_v40  ;;  %v3979_v31 = vmul.f32 %v11647_v53, %v11647_v53  ;;  %vm3806_vm15 = vcmp.ge.f32.partialorder %v3772_v5, 0.0  ;;  %v744_v30 = vmul.u32 17, %v743_v12  ;;  %v11687_v26 = vadd.s32 264, %v10332_v45  ;;  %v3670_v48 = vpop.f32.mrf.mxu0  ;;  %v8265_v40 = vld [vmem:[#allocation7 + $0x110] sm:$0xff]  }
 0x2d7   : > { %v4011_v47 = vadd.f32 %v4010_v23, %v3978_v13  ;;  %v3938_v22 = vadd.f32 %v3937_v18, %v11647_v53  ;;  %v11692_v54 = vsel %vm11572_vm0, %v3872_v56, 0.0  ;;  %v11697_v38 = vsel %vm11587_vm7, %v3873_v63, 0.0  ;;  %v15380_v56 = vld [vmem:[#allocation89_spill] sm:$0xff]  ;;  %v11716_v49 = vpop.f32.mrf.mxu1 }
 0x2d8   : > { %v3841_v14 = vmul.f32 0.2, %v3773_v42  ;;  %v3775_v12 = vadd.f32 %v11128_v36, %v11524_v24  ;;  %v11702_v13 = vadd.f32 %v3666_v59, %v15379_v57  ;;  %v3874_v23 = vsel %vm3806_vm15, %v3772_v5, %v3840_v6  ;;  %v8262_v59 = vld [vmem:[#allocation7 + $0x120] sm:$0xff]   ;;  %v7736_v6 = vpop.f32.mrf.mxu0 }
 0x2d9   : > { %v3842_v18 = vmul.f32 0.2, %v3774_v29  ;;  %v15381_v11 = vsel %vm11016_vm9, %v10959_v10, %v15380_v56  ;;  %v15382_v63 = vmov 0  ;;  %v3671_v24 = vadd.f32 %v3670_v48, %v11387_v61  ;;  %v3535_v61 = vpop.f32.mrf.mxu1  ;;  %5265 = vmatpush2.bf16.msra.mxu1 %v8262_v59  ;;  %v15389_v48 = vld [vmem:[#allocation44_spill] sm:$0xff]  ;;  %v8263_v6 = vld [vmem:[#allocation7 + $0x158] sm:$0xff]  }
 0x2da   : > { %vm11711_vm1 = vcmp.lt.s32.totalorder %v15381_v11, 16  ;;  %v4012_v33 = vadd.f32 %v4011_v47, %v3979_v31  ;;  %v3980_v5 = vmul.f32 %v11692_v54, %v11692_v54  ;;  %v3939_v10 = vadd.f32 %v3938_v22, %v11692_v54  ;;  %v3673_v59 = vpop.f32.mrf.mxu0  ;;  %5266 = vmatprep.subr.bf16.mxu1 %v15365_v2  ;;  %7767 = vmatpush3.bf16.msra.mxu0 %v8263_v6 }
 0x2db   : > { %v15383_v63 = vsel %vm11711_vm1, 4294967295, %v15382_v63  ;;  %v3981_v7 = vmul.f32 %v11697_v38, %v11697_v38  ;;  %v11725_v41 = vadd.f32 %v3671_v24, %v15385_v27  ;;  %v11728_v57 = vadd.s32 17, %v11653_v3  ;;  %7768 = vmatprep.subr.bf16.mxu0 %v15342_v0 }
 0x2dc   : > { %15384 = vst [vmem:[#allocation29_spill] sm:$0xff] %v15383_v63  ;;  %v11733_v31 = vsel %vm11629_vm11, %v3874_v23, 0.0  ;;  %vm15387_vm9 = vcmp.ge.f32.partialorder %v3773_v42, 0.0  ;;  %v3843_v22 = vmul.f32 0.2, %v3775_v12  ;;  %vm15388_vm10 = vnez %v15170_v17  ;;  %v15398_v17 = vld [vmem:[#allocation50_spill] sm:$0xff] }
 0x2dd   : > { %15386 = vst [vmem:[#allocation66_spill] sm:$0xff] %v11733_v31  ;;  %v3875_v47 = vsel %vm15387_vm9, %v3773_v42, %v3841_v14  ;;  %v15391_v56 = vsel %vm15388_vm10, %v15389_v48, %v15390_v16  ;;  %v15392_v11 = vmov 0  ;;  %v3776_v24 = vadd.f32 %v11128_v36, %v11579_v51  ;;  %v15396_v42 = vld [vmem:[#allocation94_spill] sm:$0xff]  ;;  %v15399_v14 = vld [vmem:[#allocation43_spill] sm:$0xff]  ;;  %v11761_v16 = vpop.f32.mrf.mxu1 }
 0x2de   : > { %vm11741_vm15 = vcmp.lt.s32.totalorder %v15391_v56, 16  ;;  %vm15395_vm11 = vcmp.ge.f32.partialorder %v3774_v29, 0.0  ;;  %vm15397_vm7 = vnez %v15396_v42  ;;  %v15401_v61 = vmov 0  ;;  %v8264_v56 = vld [vmem:[#allocation7 + $0x118] sm:$0xff]  }
 0x2df   : > { %v15393_v11 = vsel %vm11741_vm15, 4294967295, %v15392_v11  ;;  %v3876_v23 = vsel %vm15395_vm11, %v3774_v29, %v3842_v18  ;;  %v15400_v27 = vsel %vm15397_vm7, %v15398_v17, %v15399_v14  ;;  %v3777_v48 = vadd.f32 %v11128_v36, %v11605_v44  ;;  %v7737_v29 = vpop.f32.mrf.mxu0  ;;  %5267 = vmatpush2.bf16.msra.mxu1 %v8264_v56  ;;  %v15414_v56 = vld [vmem:[#allocation90_spill] sm:$0xff] }
 0x2e0   : > { %15394 = vst [vmem:[#allocation63_spill] sm:$0xff] %v15393_v11  ;;  %vm11754_vm10 = vcmp.lt.s32.totalorder %v15400_v27, 16  ;;  %v3674_v51 = vadd.f32 %v3673_v59, %v11426_v52  ;;  %v4013_v28 = vadd.f32 %v4012_v33, %v3980_v5  ;;  %v11764_v18 = vsub.s32 %v11406_v9, %v744_v30  ;;  %v15405_v59 = vld [vmem:[#allocation32_spill] sm:$0xff]  ;;  %v3538_v30 = vpop.f32.mrf.mxu1  ;;  %5268 = vmatprep.subr.bf16.mxu1 %v15365_v2 }
 0x2e1   : > { %v15402_v61 = vsel %vm11754_vm10, 4294967295, %v15401_v61  ;;  %v11767_v42 = vmul.u32.u64.low 4042322161, %v11687_v26  ;;  %v11768_v17 = vmul.u32.u64.high 4042322161, %v11687_v26, %v11767_v42  ;;  %v3940_v14 = vadd.f32 %v3939_v10, %v11697_v38  ;;  %v3678_v27 = vpop.f32.mrf.mxu0 }
 0x2e2   : > { %15403 = vst [vmem:[#allocation34_spill] sm:$0xff] %v15402_v61  ;;  %v3982_v44 = vmul.f32 %v11733_v31, %v11733_v31  ;;  %v11775_v52 = vsel %vm11662_vm3, %v3875_v47, 0.0  ;;  %v11778_v33 = vadd.f32 %v3674_v51, %v15405_v59  ;;  %vm15406_vm7 = vcmp.ne.s32.totalorder %v11653_v3, 0  ;;  %v8266_v51 = vld [vmem:[#allocation7 + $0x150] sm:$0xff]   ;;  %v15411_v42 = vld [vmem:[#allocation57_spill] sm:$0xff]  ;;  %v15413_v59 = vld [vmem:[#allocation56_spill] sm:$0xff] }
 0x2e3   : > { %15404 = vst [vmem:[#allocation79_spill] sm:$0xff] %v11775_v52  ;;  %vm15407_vm11 = vcmp.lt.s32.totalorder %v11653_v3, 0  ;;  %v4014_v5 = vadd.f32 %v4013_v28, %v3981_v7  ;;  %v11791_v10 = vsel %vm11675_vm5, %v3876_v23, 0.0  ;;  %vm15410_vm3 = vcmp.ge.f32.partialorder %v3775_v12, 0.0  ;;  %v11807_v23 = vpop.f32.mrf.mxu1  ;;  %7769 = vmatpush3.bf16.msra.mxu0 %v8266_v51  ;;  %5269 = vmatpush2.bf16.msra.mxu1 %v8265_v40  ;;  %v15420_v51 = vld [vmem:[#allocation77_spill] sm:$0xff] }
 0x2e4   : > { %vm11784_vm9 = vmand %vm15407_vm11, %vm15406_vm7  ;;  %v3877_v47 = vsel %vm15410_vm3, %v3775_v12, %v3843_v22  ;;  %v3844_v6 = vmul.f32 0.2, %v3776_v24  ;;  %vm3810_vm7 = vcmp.ge.f32.partialorder %v3776_v24, 0.0  ;;  %v3845_v29 = vmul.f32 0.2, %v3777_v48  ;;  %v15419_v12 = vld [vmem:[#allocation60_spill] sm:$0xff]  ;;  %7770 = vmatprep.subr.bf16.mxu0 %v15342_v0  ;;  %5270 = vmatprep.subr.bf16.mxu1 %v15365_v2 }
 0x2e5   : > { %vm15412_vm11 = vnez %v15411_v42  ;;  %v15416_v28 = vmov 0  ;;  %v3778_v7 = vadd.f32 %v11128_v36, %v11650_v43  ;;  %v3679_v22 = vadd.f32 %v3678_v27, %v15419_v12  ;;  %v7740_v42 = vpop.f32.mrf.mxu0  ;;  %v3543_v62 = vpop.f32.mrf.mxu1  ;;  %v15428_v40 = vld [vmem:[#allocation37_spill] sm:$0xff] }
 0x2e6   : > { %v15415_v30 = vsel %vm15412_vm11, %v15413_v59, %v15414_v56  ;;  %v3983_v25 = vmul.f32 %v11775_v52, %v11775_v52  ;;  %v754_v56 = vshrl.u32 %v11600_v8, 4  ;;  %v3941_v43 = vadd.f32 %v3940_v14, %v11733_v31  ;;  %v8267_v42 = vld [vmem:[#allocation7 + $0x108] sm:$0xff]   ;;  %v15422_v14 = vld [vmem:[#allocation72_spill] sm:$0xff] }
 0x2e7   : > { %vm11800_vm0 = vcmp.lt.s32.totalorder %v15415_v30, 16  ;;  %v8268_v30 = vld [vmem:[#allocation7 + $0x148] sm:$0xff]   ;;  %v4015_v27 = vadd.f32 %v4014_v5, %v3982_v44  ;;  %v3984_v12 = vmul.f32 %v11791_v10, %v11791_v10  ;;  %v11823_v59 = vsel %vm11711_vm1, %v3877_v47, 0.0  ;;  %v15423_v44 = vld [vmem:[#allocation51_spill] sm:$0xff]  ;;  %v3681_v31 = vpop.f32.mrf.mxu0  ;;  %5271 = vmatpush2.bf16.msra.mxu1 %v8267_v42 }
 0x2e8   : > { %v15417_v28 = vsel %vm11800_vm0, 4294967295, %v15416_v28  ;;  %v3878_v8 = vsel %vm3810_vm7, %v3776_v24, %v3844_v6  ;;  %vm15421_vm3 = vnez %v15420_v51  ;;  %v15425_v55 = vmov 0  ;;  %v11842_v51 = vpop.f32.mrf.mxu1  ;;  %7771 = vmatpush3.bf16.msra.mxu0 %v8268_v30  ;;  %5272 = vmatprep.subr.bf16.mxu1 %v15365_v2  ;;  %v15443_v42 = vld [vmem:[#allocation87_spill] sm:$0xff] }
 0x2e9   : > { %15418 = vst [vmem:[#allocation74_spill] sm:$0xff] %v15417_v28  ;;  %v15424_v5 = vsel %vm15421_vm3, %v15422_v14, %v15423_v44  ;;  %v3779_v62 = vadd.f32 %v11128_v36, %v11702_v13  ;;  %v3741_v15 = vadd.f32 %v3679_v22, %v15428_v40  ;;  %vm15429_vm11 = vcmp.ge.f32.partialorder %v3777_v48, 0.0  ;;  %v15432_v13 = vld [vmem:[#allocation76_spill] sm:$0xff]  ;;  %7772 = vmatprep.subr.bf16.mxu0 %v15342_v0 }
 0x2ea   : > { %vm11831_vm5 = vcmp.lt.s32.totalorder %v15424_v5, 16  ;;  %v3879_v47 = vsel %vm15429_vm11, %v3777_v48, %v3845_v29  ;;  %v3846_v24 = vmul.f32 0.2, %v3778_v7  ;;  %v3682_v6 = vadd.f32 %v3681_v31, %v11513_v39  ;;  %v15430_v5 = vld [vmem:[#allocation88_spill] sm:$0xff]  ;;  %v7741_v31 = vpop.f32.mrf.mxu0 }
 0x2eb   : > { %v15426_v55 = vsel %vm11831_vm5, 4294967295, %v15425_v55  ;;  %v3942_v14 = vadd.f32 %v3941_v43, %v11775_v52  ;;  %v4016_v44 = vadd.f32 %v4015_v27, %v3983_v25  ;;  %vm3812_vm3 = vcmp.ge.f32.partialorder %v3778_v7, 0.0  ;;  %v15433_v22 = vld [vmem:[#allocation64_spill] sm:$0xff]  ;;  %v15439_v43 = vld [vmem:[#allocation42_spill] sm:$0xff] }
 0x2ec   : > { %15427 = vst [vmem:[#allocation85_spill] sm:$0xff] %v15426_v55  ;;  %vm15431_vm1 = vnez %v15430_v5  ;;  %v15435_v63 = vmov 0  ;;  %v3780_v39 = vadd.f32 %v11128_v36, %v11725_v41  ;;  %v8270_v48 = vld [vmem:[#allocation7 + $0x140] sm:$0xff]   ;;  %v3985_v29 = vmul.f32 %v11823_v59, %v11823_v59 }
 0x2ed   : > { %v15434_v40 = vsel %vm15431_vm1, %v15432_v13, %v15433_v22  ;;  %v11860_v25 = vsel %vm11741_vm15, %v3878_v8, 0.0  ;;  %v3742_v27 = vadd.f32 %v3682_v6, %v15439_v43  ;;  %v11864_v5 = vadd.s32 17, %v11764_v18  ;;  %v3546_v13 = vpop.f32.mrf.mxu1  ;;  %v8269_v22 = vld [vmem:[#allocation7 + $0x100] sm:$0xff]   ;;  %v3686_v8 = vpop.f32.mrf.mxu0  ;;  %7773 = vmatpush3.bf16.msra.mxu0 %v8270_v48  ;;  %v15458_v48 = vld [vmem:[#allocation19_spill] sm:$0xff] }
 0x2ee   : > { %vm11850_vm2 = vcmp.lt.s32.totalorder %v15434_v40, 16  ;;  %15438 = vst [vmem:[#allocation24_spill] sm:$0xff] %v11860_v25  ;;  %v3943_v41 = vadd.f32 %v3942_v14, %v11791_v10  ;;  %v4017_v30 = vadd.f32 %v4016_v44, %v3984_v12  ;;  %v11870_v40 = vsel %vm11754_vm10, %v3879_v47, 0.0  ;;  %v15441_v43 = vld [vmem:[#allocation92_spill] sm:$0xff]  ;;  %v15444_v13 = vld [vmem:[#allocation65_spill] sm:$0xff]  ;;  %5273 = vmatpush2.bf16.msra.mxu1 %v8269_v22  ;;  %7842 = vmatprep.subr.bf16.mxu0 %v15342_v0 }
 0x2ef   : > { %v15436_v63 = vsel %vm11850_vm2, 4294967295, %v15435_v63  ;;  %15440 = vst [vmem:[#allocation22_spill] sm:$0xff] %v11870_v40  ;;  %v3847_v31 = vmul.f32 0.2, %v3779_v62  ;;  %v3880_v6 = vsel %vm3812_vm3, %v3778_v7, %v3846_v24  ;;  %vm15442_vm11 = vnez %v15441_v43  ;;  %v7744_v7 = vpop.f32.mrf.mxu0  ;;  %5928 = vmatprep.subr.bf16.mxu1 %v15365_v2 }
 0x2f0   : > { %15437 = vst [vmem:[#allocation84_spill] sm:$0xff] %v15436_v63  ;;  %v15445_v11 = vsel %vm15442_vm11, %v15443_v42, %v15444_v13  ;;  %v15446_v52 = vmov 0  ;;  %v3781_v12 = vadd.f32 %v11128_v36, %v11778_v33  ;;  %v3687_v47 = vadd.f32 %v3686_v8, %v11549_v19  ;;  %v15453_v8 = vld [vmem:[#allocation47_spill] sm:$0xff] }
 0x2f1   : > { %vm11879_vm7 = vcmp.lt.s32.totalorder %v15445_v11, 16  ;;  %v3986_v14 = vmul.f32 %v11860_v25, %v11860_v25  ;;  %v3848_v44 = vmul.f32 0.2, %v3780_v39  ;;  %vm15449_vm3 = vcmp.ne.s32.totalorder %v11764_v18, 0 }
 0x2f2   : > { %v15447_v52 = vsel %vm11879_vm7, 4294967295, %v15446_v52  ;;  %vm15450_vm1 = vcmp.lt.s32.totalorder %v11764_v18, 0  ;;  %v755_v11 = vmul.u32 17, %v754_v56  ;;  %v765_v43 = vshrl.u32 %v11768_v17, 4  ;;  %v15456_v17 = vld [vmem:[#allocation35_spill] sm:$0xff] }
 0x2f3   : > { %15448 = vst [vmem:[#allocation38_spill] sm:$0xff] %v15447_v52  ;;  %vm11892_vm10 = vmand %vm15450_vm1, %vm15449_vm3  ;;  %v3944_v33 = vadd.f32 %v3943_v41, %v11823_v59  ;;  %v4018_v19 = vadd.f32 %v4017_v30, %v3985_v29  ;;  %v3743_v42 = vadd.f32 %v3687_v47, %v15453_v8  ;;  %v3987_v13 = vmul.f32 %v11870_v40, %v11870_v40  ;;  %v15459_v41 = vld [vmem:[#allocation71_spill] sm:$0xff]  ;;  %v3689_v47 = vpop.f32.mrf.mxu0 }
 0x2f4   : > { %v11904_v7 = vsel %vm11800_vm0, %v3880_v6, 0.0  ;;  %vm15455_vm1 = vcmp.ge.f32.partialorder %v3779_v62, 0.0  ;;  %vm15457_vm3 = vnez %v15456_v17  ;;  %v15461_v30 = vmov 0 }
 0x2f5   : > { %15454 = vst [vmem:[#allocation62_spill] sm:$0xff] %v11904_v7  ;;  %v3881_v56 = vsel %vm15455_vm1, %v3779_v62, %v3847_v31  ;;  %v15460_v29 = vsel %vm15457_vm3, %v15458_v48, %v15459_v41  ;;  %v3782_v22 = vadd.f32 %v11128_v36, %v3741_v15  ;;  %v3945_v8 = vadd.f32 %v3944_v33, %v11860_v25  ;;  %v15465_v48 = vld [vmem:[#allocation48_spill] sm:$0xff]  ;;  %v15467_v15 = vld [vmem:[#allocation26_spill] sm:$0xff]  ;;  %v7745_v33 = vpop.f32.mrf.mxu0  ;;  %v15481_v62 = vld [vmem:[#allocation59_spill] sm:$0xff] }
 0x2f6   : > { %vm11912_vm11 = vcmp.lt.s32.totalorder %v15460_v29, 16  ;;  %v3849_v6 = vmul.f32 0.2, %v3781_v12  ;;  %v3690_v28 = vadd.f32 %v3689_v47, %v11594_v50  ;;  %v4019_v31 = vadd.f32 %v4018_v19, %v3986_v14  ;;  %v15468_v41 = vld [vmem:[#allocation82_spill] sm:$0xff] }
 0x2f7   : > { %v15462_v30 = vsel %vm11912_vm11, 4294967295, %v15461_v30  ;;  %vm15464_vm1 = vcmp.ge.f32.partialorder %v3780_v39, 0.0  ;;  %vm3815_vm3 = vcmp.ge.f32.partialorder %v3781_v12, 0.0  ;;  %vm15466_vm0 = vnez %v15465_v48 }
 0x2f8   : > { %15463 = vst [vmem:[#allocation69_spill] sm:$0xff] %v15462_v30  ;;  %v3882_v17 = vsel %vm15464_vm1, %v3780_v39, %v3848_v44  ;;  %v15469_v29 = vsel %vm15466_vm0, %v15467_v15, %v15468_v41  ;;  %v15470_v61 = vmov 0  ;;  %v3783_v50 = vadd.f32 %v11128_v36, %v3742_v27  ;;  %v15475_v41 = vld [vmem:[#allocation40_spill] sm:$0xff] }
 0x2f9   : > { %vm11930_vm15 = vcmp.lt.s32.totalorder %v15469_v29, 16  ;;  %v3946_v47 = vadd.f32 %v3945_v8, %v11870_v40  ;;  %v3988_v14 = vmul.f32 %v11904_v7, %v11904_v7  ;;  %v11940_v39 = vsel %vm11831_vm5, %v3881_v56, 0.0  ;;  %v15476_v29 = vld [vmem:[#allocation54_spill] sm:$0xff]  ;;  %v3694_v56 = vpop.f32.mrf.mxu0 }
 0x2fa   : > { %v15471_v61 = vsel %vm11930_vm15, 4294967295, %v15470_v61  ;;  %15473 = vst [vmem:[#allocation89_spill] sm:$0xff] %v11940_v39  ;;  %v11943_v44 = vsub.s32 %v11527_v4, %v755_v11  ;;  %v4020_v19 = vadd.f32 %v4019_v31, %v3987_v13  ;;  %v3850_v48 = vmul.f32 0.2, %v3782_v22 }
 0x2fb   : > { %15472 = vst [vmem:[#allocation27_spill] sm:$0xff] %v15471_v61  ;;  %v15477_v27 = vsel %vm11321_vm8, %v15475_v41, %v15476_v29  ;;  %v15478_v33 = vmov 0  ;;  %v3784_v8 = vadd.f32 %v11128_v36, %v3743_v42  ;;  %v3744_v55 = vadd.f32 %v3690_v28, %v15481_v62  ;;  %v15484_v29 = vld [vmem:[#allocation15_spill] sm:$0xff] }
 0x2fc   : > { %vm11950_vm0 = vcmp.lt.s32.totalorder %v15477_v27, 16  ;;  %v11958_v4 = vsel %vm11850_vm2, %v3882_v17, 0.0  ;;  %v3883_v11 = vsel %vm3815_vm3, %v3781_v12, %v3849_v6  ;;  %vm3816_vm1 = vcmp.ge.f32.partialorder %v3782_v22, 0.0  ;;  %v15485_v27 = vld [vmem:[#allocation99_spill] sm:$0xff]  ;;  %v7748_v17 = vpop.f32.mrf.mxu0 }
 0x2fd   : > { %v15479_v33 = vsel %vm11950_vm0, 4294967295, %v15478_v33  ;;  %15482 = vst [vmem:[#allocation44_spill] sm:$0xff] %v11958_v4  ;;  %v3695_v13 = vadd.f32 %v3694_v56, %v11636_v20  ;;  %v3989_v31 = vmul.f32 %v11940_v39, %v11940_v39  ;;  %v3851_v15 = vmul.f32 0.2, %v3783_v50  ;;  %v15490_v56 = vld [vmem:[#allocation68_spill] sm:$0xff] }
 0x2fe   : > { %15480 = vst [vmem:[#allocation70_spill] sm:$0xff] %v15479_v33  ;;  %v15486_v42 = vsel %vm11363_vm4, %v15484_v29, %v15485_v27  ;;  %v15487_v28 = vmov 0  ;;  %v3785_v62 = vadd.f32 %v11128_v36, %v3744_v55  ;;  %v766_v12 = vmul.u32 17, %v765_v43  ;;  %v15492_v55 = vld [vmem:[#allocation53_spill] sm:$0xff] }
 0x2ff   : > { %vm11968_vm8 = vcmp.lt.s32.totalorder %v15486_v42, 16  ;;  %v3947_v6 = vadd.f32 %v3946_v47, %v11904_v7  ;;  %v4021_v20 = vadd.f32 %v4020_v19, %v3988_v14  ;;  %vm3817_vm3 = vcmp.ge.f32.partialorder %v3783_v50, 0.0  ;;  %v3697_v14 = vpop.f32.mrf.mxu0 }
 0x300   : > { %v15488_v28 = vsel %vm11968_vm8, 4294967295, %v15487_v28  ;;  %v3745_v63 = vadd.f32 %v3695_v13, %v15490_v56  ;;  %v3990_v41 = vmul.f32 %v11958_v4, %v11958_v4  ;;  %v11979_v29 = vsel %vm11879_vm7, %v3883_v11, 0.0 }
 0x301   : > { %15489 = vst [vmem:[#allocation39_spill] sm:$0xff] %v15488_v28  ;;  %15491 = vst [vmem:[#allocation94_spill] sm:$0xff] %v11979_v29  ;;  %v3884_v27 = vsel %vm3816_vm1, %v3782_v22, %v3850_v48  ;;  %v3852_v42 = vmul.f32 0.2, %v3784_v8  ;;  %v15493_v43 = vsel %vm11487_vm6, %v11473_v21, %v15492_v55  ;;  %v15494_v47 = vmov 0  ;;  %v7749_v17 = vpop.f32.mrf.mxu0 }
 0x302   : > { %vm11986_vm4 = vcmp.lt.s32.totalorder %v15493_v43, 16  ;;  %vm3818_vm2 = vcmp.ge.f32.partialorder %v3784_v8, 0.0  ;;  %v3786_v19 = vadd.f32 %v11128_v36, %v3745_v63  ;;  %v3698_v13 = vadd.f32 %v3697_v14, %v11682_v37 }
 0x303   : > { %v15495_v47 = vsel %vm11986_vm4, 4294967295, %v15494_v47  ;;  %vm802_vm7 = vcmp.ne.s32.totalorder %v11943_v44, 0  ;;  %v3948_v22 = vadd.f32 %v3947_v6, %v11940_v39  ;;  %v4022_v48 = vadd.f32 %v4021_v20, %v3989_v31 }
 0x304   : > { %15496 = vst [vmem:[#allocation50_spill] sm:$0xff] %v15495_v47  ;;  %v3885_v11 = vsel %vm3817_vm3, %v3783_v50, %v3851_v15  ;;  %v3853_v1 = vmul.f32 0.2, %v3785_v62  ;;  %v3991_v21 = vmul.f32 %v11979_v29, %v11979_v29  ;;  %v11998_v56 = vsel %vm11912_vm11, %v3884_v27, 0.0  ;;  %v15502_v50 = vld [vmem:[#allocation73_spill] sm:$0xff]  ;;  %v3702_v27 = vpop.f32.mrf.mxu0 }
 0x305   : > { %15497 = vst [vmem:[#allocation43_spill] sm:$0xff] %v11998_v56  ;;  %vm3819_vm6 = vcmp.ge.f32.partialorder %v3785_v62, 0.0  ;;  %v15498_v37 = vsel %vm11611_vm13, %v11554_v32, %v11492_v60  ;;  %v15499_v63 = vmov 0  ;;  %v3746_v31 = vadd.f32 %v3698_v13, %v15502_v50 }
 0x306   : > { %vm12005_vm1 = vcmp.lt.s32.totalorder %v15498_v37, 16  ;;  %v3949_v15 = vadd.f32 %v3948_v22, %v11958_v4  ;;  %v4023_v6 = vadd.f32 %v4022_v48, %v3990_v41  ;;  %v3886_v20 = vsel %vm3818_vm2, %v3784_v8, %v3852_v42  ;;  %v7752_v14 = vpop.f32.mrf.mxu0 }
 0x307   : > { %v15500_v63 = vsel %vm12005_vm1, 4294967295, %v15499_v63  ;;  %v3854_v55 = vmul.f32 0.2, %v3786_v19  ;;  %v12014_v43 = vsel %vm11930_vm15, %v3885_v11, 0.0  ;;  %vm3820_vm3 = vcmp.ge.f32.partialorder %v3786_v19, 0.0 }
 0x308   : > { %15501 = vst [vmem:[#allocation32_spill] sm:$0xff] %v15500_v63  ;;  %15503 = vst [vmem:[#allocation57_spill] sm:$0xff] %v12014_v43  ;;  %v3787_v60 = vadd.f32 %v11128_v36, %v3746_v31  ;;  %v15504_v32 = vsel %vm11784_vm9, %v11728_v57, %v11653_v3  ;;  %v15505_v58 = vmov 0  ;;  %v3703_v8 = vadd.f32 %v3702_v27, %v11716_v49  ;;  %v15594_v63 = vld [vmem:[#allocation18_spill] sm:$0xff] }
 0x309   : > { %vm12022_vm13 = vcmp.lt.s32.totalorder %v15504_v32, 16  ;;  %v3992_v41 = vmul.f32 %v11998_v56, %v11998_v56  ;;  %v3887_v42 = vsel %vm3819_vm6, %v3785_v62, %v3853_v1  ;;  %vm836_vm2 = vcmp.lt.s32.totalorder %v11943_v44, 0  ;;  %v15509_v62 = vld [vmem:[#allocation80_spill] sm:$0xff]  ;;  %v3705_v1 = vpop.f32.mrf.mxu0 }
 0x30a   : > { %v15506_v58 = vsel %vm12022_vm13, 4294967295, %v15505_v58  ;;  %v12031_v13 = vsub.s32 %v11687_v26, %v766_v12  ;;  %v3950_v9 = vadd.f32 %v3949_v15, %v11979_v29  ;;  %v4024_v22 = vadd.f32 %v4023_v6, %v3991_v21 }
 0x30b   : > { %15507 = vst [vmem:[#allocation56_spill] sm:$0xff] %v15506_v58  ;;  %v12036_v3 = vsel %vm11950_vm0, %v3886_v20, 0.0  ;;  %v3855_v57 = vmul.f32 0.2, %v3787_v60  ;;  %v3993_v49 = vmul.f32 %v12014_v43, %v12014_v43  ;;  %v3888_v48 = vsel %vm3820_vm3, %v3786_v19, %v3854_v55  ;;  %v15516_v20 = vld [vmem:[#allocation36_spill] sm:$0xff]  ;;  %v15588_v58 = vld [vmem:[#allocation93_spill] sm:$0xff] }
 0x30c   : > { %15508 = vst [vmem:[#allocation90_spill] sm:$0xff] %v12036_v3  ;;  %vm3821_vm9 = vcmp.ge.f32.partialorder %v3787_v60, 0.0  ;;  %v3747_v11 = vadd.f32 %v3703_v8, %v15509_v62  ;;  %v15510_v26 = vsel %vm11892_vm10, %v11864_v5, %v11764_v18  ;;  %v15511_v12 = vmov 0  ;;  %v7753_v5 = vpop.f32.mrf.mxu0  ;;  %vm12073_vm10 = vmand %vm836_vm2, %vm802_vm7 }
 0x30d   : > { %vm12046_vm6 = vcmp.lt.s32.totalorder %v15510_v26, 16  ;;  %v3951_v17 = vadd.f32 %v3950_v9, %v11998_v56  ;;  %v12053_v21 = vsel %vm11968_vm8, %v3887_v42, 0.0  ;;  %v3706_v19 = vadd.f32 %v3705_v1, %v11761_v16  ;;  %v15520_v26 = vld [vmem:[#allocation52_spill] sm:$0xff] }
 0x30e   : > { %v15512_v12 = vsel %vm12046_vm6, 4294967295, %v15511_v12  ;;  %15514 = vst [vmem:[#allocation77_spill] sm:$0xff] %v12053_v21  ;;  %v904_v37 = vadd.s32 17, %v11943_v44  ;;  %v4025_v50 = vadd.f32 %v4024_v22, %v3992_v41  ;;  %v3994_v24 = vmul.f32 %v12036_v3, %v12036_v3  ;;  %v3710_v8 = vpop.f32.mrf.mxu0 }
 0x30f   : > { %15513 = vst [vmem:[#allocation60_spill] sm:$0xff] %v15512_v12  ;;  %v3788_v18 = vadd.f32 %v11128_v36, %v3747_v11  ;;  %v3952_v31 = vadd.f32 %v3951_v17, %v12014_v43  ;;  %v12064_v15 = vsel %vm11986_vm4, %v3888_v48, 0.0  ;;  %v3889_v6 = vsel %vm3821_vm9, %v3787_v60, %v3855_v57  ;;  %v8353_v60 = vld [vmem:[%s14402_s2] ss:$0 sm:$0xff]  ;;  %v15587_v12 = vld [vmem:[#allocation55_spill] sm:$0xff] }
 0x310   : > { %15515 = vst [vmem:[#allocation72_spill] sm:$0xff] %v12064_v15  ;;  %v3748_v16 = vadd.f32 %v3706_v19, %v15516_v20  ;;  %v4026_v55 = vadd.f32 %v4025_v50, %v3993_v49  ;;  %v3995_v27 = vmul.f32 %v12053_v21, %v12053_v21  ;;  %v3711_v14 = vadd.f32 %v3710_v8, %v11807_v23  ;;  %v7756_v48 = vpop.f32.mrf.mxu0 }
 0x311   : > { %vm3822_vm3 = vcmp.ge.f32.partialorder %v3788_v18, 0.0  ;;  %v3856_v32 = vmul.f32 0.2, %v3788_v18  ;;  %v3953_v41 = vadd.f32 %v3952_v31, %v12036_v3  ;;  %vm837_vm9 = vcmp.lt.s32.totalorder %v12031_v13, 0 }
 0x312   : > { %v3789_v42 = vadd.f32 %v8353_v60, %v3748_v16  ;;  %v4027_v9 = vadd.f32 %v4026_v55, %v3994_v24  ;;  %v3996_v22 = vmul.f32 %v12064_v15, %v12064_v15  ;;  %v12087_v57 = vsel %vm12005_vm1, %v3889_v6, 0.0  ;;  %v3713_v24 = vpop.f32.mrf.mxu0 }
 0x313   : > { %15519 = vst [vmem:[#allocation51_spill] sm:$0xff] %v12087_v57  ;;  %v3890_v49 = vsel %vm3822_vm3, %v3788_v18, %v3856_v32  ;;  %v938_v11 = vsel %vm12073_vm10, %v904_v37, %v11943_v44  ;;  %v3749_v23 = vadd.f32 %v3711_v14, %v15520_v26  ;;  %v3954_v1 = vadd.f32 %v3953_v41, %v12053_v21  ;;  %v15529_v41 = vld [vmem:[#allocation17_spill] sm:$0xff] }
 0x314   : > { %vm3823_vm7 = vcmp.ge.f32.partialorder %v3789_v42, 0.0  ;;  %v3857_v62 = vmul.f32 0.2, %v3789_v42  ;;  %v4028_v17 = vadd.f32 %v4027_v9, %v3995_v27  ;;  %v12096_v19 = vsel %vm12022_vm13, %v3890_v49, 0.0  ;;  %v7757_v55 = vpop.f32.mrf.mxu0 }
 0x315   : > { %15521 = vst [vmem:[#allocation37_spill] sm:$0xff] %v12096_v19  ;;  %v905_v50 = vadd.s32 17, %v12031_v13  ;;  %v3997_v18 = vmul.f32 %v12087_v57, %v12087_v57  ;;  %v3790_v31 = vadd.f32 %v8353_v60, %v3749_v23  ;;  %vm15522_vm2 = vcmp.ne.s32.totalorder %v12031_v13, 0 }
 0x316   : > { %v3891_v5 = vsel %vm3823_vm7, %v3789_v42, %v3857_v62  ;;  %vm12105_vm10 = vmand %vm837_vm9, %vm15522_vm2  ;;  %v3714_v37 = vadd.f32 %v3713_v24, %v11842_v51  ;;  %v3955_v6 = vadd.f32 %v3954_v1, %v12064_v15  ;;  %v4029_v20 = vadd.f32 %v4028_v17, %v3996_v22 }
 0x317   : > { %vm12111_vm3 = vcmp.lt.s32.totalorder %v938_v11, 16  ;;  %v15525_v16 = vmov 0  ;;  %v3998_v27 = vmul.f32 %v12096_v19, %v12096_v19  ;;  %v12119_v32 = vsel %vm12046_vm6, %v3891_v5, 0.0 }
 0x318   : > { %v15526_v16 = vsel %vm12111_vm3, 4294967295, %v15525_v16  ;;  %15528 = vst [vmem:[#allocation76_spill] sm:$0xff] %v12119_v32  ;;  %vm3824_vm9 = vcmp.ge.f32.partialorder %v3790_v31, 0.0  ;;  %v3858_v36 = vmul.f32 0.2, %v3790_v31  ;;  %v3956_v8 = vadd.f32 %v3955_v6, %v12087_v57 }
 0x319   : > { %15527 = vst [vmem:[#allocation88_spill] sm:$0xff] %v15526_v16  ;;  %v939_v51 = vsel %vm12105_vm10, %v905_v50, %v12031_v13  ;;  %v3750_v42 = vadd.f32 %v3714_v37, %v15529_v41  ;;  %v4030_v14 = vadd.f32 %v4029_v20, %v3997_v18  ;;  %v3999_v49 = vmul.f32 %v12119_v32, %v12119_v32 }
 0x31a   : > { %v3892_v9 = vsel %vm3824_vm9, %v3790_v31, %v3858_v36  ;;  %v3957_v22 = vadd.f32 %v3956_v8, %v12096_v19  ;;  %vm12133_vm7 = vcmp.lt.s32.totalorder %v939_v51, 16  ;;  %v15601_v28 = vmov 0 }
 0x31b   : > { %v12131_v48 = vsel %vm12111_vm3, %v3892_v9, 0.0  ;;  %v3791_v62 = vadd.f32 %v8353_v60, %v3750_v42  ;;  %v4031_v11 = vadd.f32 %v4030_v14, %v3998_v27 }
 0x31c   : > { %15530 = vst [vmem:[#allocation64_spill] sm:$0xff] %v12131_v48  ;;  %v3958_v13 = vadd.f32 %v3957_v22, %v12119_v32  ;;  %v4000_v23 = vmul.f32 %v12131_v48, %v12131_v48 }
 0x31d   : > { %vm3825_vm2 = vcmp.ge.f32.partialorder %v3791_v62, 0.0  ;;  %v3859_v1 = vmul.f32 0.2, %v3791_v62  ;;  %v4032_v17 = vadd.f32 %v4031_v11, %v3999_v49 }
 0x31e   : > { %v3959_v50 = vadd.f32 %v3958_v13, %v12131_v48 }
 0x31f   : > { %v3893_v24 = vsel %vm3825_vm2, %v3791_v62, %v3859_v1  ;;  %v4033_v60 = vadd.f32 %v4032_v17, %v4000_v23  ;;  %v4046_v23 = vld [vmem:[%s14403_s3] sm:$0x1]  ;;  %v4053_v1 = vsub.s32 0, %v10332_v45 }
 0x320   : > { %v3927_v18 = vsel %vm12133_vm7, %v3893_v24, 0.0 }
 0x321   : > { %v3960_v5 = vadd.f32 %v3959_v50, %v3927_v18  ;;  %v4001_v31 = vmul.f32 %v3927_v18, %v3927_v18  ;;  %v15533_v50 = vlaneseq }
 0x323   : > { %v3961_v44 = vrot.slane %v3960_v5, 4  ;;  %v4034_v37 = vadd.f32 %v4033_v60, %v4001_v31  ;;  %v12148_v24 = vand.u32 127, %v15533_v50 }
 0x325   : > { %v3962_v6 = vadd.f32 %v3961_v44, %v3960_v5  ;;  %v4035_v20 = vrot.slane %v4034_v37, 4  ;;  %v4048_v5 = vld [vmem:[%s14404_s4] sm:$0x1]  ;;  %vm976_vm10 = vcmp.lt.s32.totalorder %v12148_v24, 4 }
 0x326   : > { %vm1010_vm9 = vmand %vm12133_vm7, %vm976_vm10 }
 0x327   : > { %v3963_v55 = vrot.slane %v3962_v6, 2  ;;  %v4036_v27 = vadd.f32 %v4035_v20, %v4034_v37 }
 0x329   : > { %v3964_v36 = vadd.f32 %v3963_v55, %v3962_v6  ;;  %v4037_v8 = vrot.slane %v4036_v27, 2 }
 0x32b   : > { %v3965_v51 = vrot.slane %v3964_v36, 1  ;;  %v4038_v41 = vadd.f32 %v4037_v8, %v4036_v27 }
 0x32d   : > { %v3966_v42 = vadd.f32 %v3965_v51, %v3964_v36  ;;  %v4039_v14 = vrot.slane %v4038_v41, 1 }
 0x32f   : > { %v3967_v9 = vmul.f32 0.00390625, %v3966_v42  ;;  %v4040_v22 = vadd.f32 %v4039_v14, %v4038_v41 }
 0x331   : > { %v4041_v49 = vmul.f32 0.00390625, %v4040_v22  ;;  %v4042_v62 = vmul.f32 %v3967_v9, %v3967_v9 }
 0x333   : > { %v4043_v11 = vsub.f32 %v4041_v49, %v4042_v62 }
 0x335   : > { %v4044_v13 = vadd.f32 1e-05, %v4043_v11 }
 0x337   : > { %8319 = vrsqrt.f32 %v4044_v13 }
 0x344   : > { %v8320_v17 = vpop.eup %8319 }
 0x345   : > { %v4047_v60 = vmul.f32 %v8320_v17, %v4046_v23 }
 0x347   : > { %v4049_v31 = vmul.f32 %v4047_v60, %v3967_v9  ;;  %v12153_v44 = vrot.slane %v4047_v60, %v4053_v1 }
 0x349   : > { %v4050_v37 = vsub.f32 %v4048_v5, %v4049_v31  ;;  %v4088_v6 = vmul.f32 %v12153_v44, %v3927_v18  ;;  %v4075_v27 = vmul.f32 %v12153_v44, %v11904_v7  ;;  %v4076_v36 = vmul.f32 %v12153_v44, %v11940_v39 }
 0x34a   : > { %v4077_v8 = vmul.f32 %v12153_v44, %v11958_v4  ;;  %v4078_v51 = vmul.f32 %v12153_v44, %v11979_v29  ;;  %v4079_v26 = vmul.f32 %v12153_v44, %v11998_v56  ;;  %v4080_v41 = vmul.f32 %v12153_v44, %v12014_v43  ;;  %v15603_v56 = vld [vmem:[#allocation79_spill] sm:$0xff] }
 0x34b   : > { %v12157_v20 = vrot.slane %v4050_v37, %v4053_v1  ;;  %v4082_v42 = vmul.f32 %v12153_v44, %v12053_v21  ;;  %v4083_v14 = vmul.f32 %v12153_v44, %v12064_v15  ;;  %v4084_v9 = vmul.f32 %v12153_v44, %v12087_v57  ;;  %v15589_v57 = vld [vmem:[#allocation21_spill] sm:$0xff] }
 0x34c   : > { %v4085_v22 = vmul.f32 %v12153_v44, %v12096_v19  ;;  %v4086_v49 = vmul.f32 %v12153_v44, %v12119_v32  ;;  %v4087_v62 = vmul.f32 %v12153_v44, %v12131_v48  ;;  %v4064_v21 = vmul.f32 %v12153_v44, %v11565_v34 }
 0x34d   : > { %v4128_v45 = vadd.f32 %v12157_v20, %v4088_v6  ;;  %v12193_v11 = vadd.f32 %v12157_v20, %v4075_v27  ;;  %v12196_v13 = vadd.f32 %v12157_v20, %v4076_v36  ;;  %v12199_v23 = vadd.f32 %v12157_v20, %v4077_v8  ;;  %v15548_v36 = vld [vmem:[#allocation25_spill] sm:$0xff] }
 0x34e   : > { %v12202_v1 = vadd.f32 %v12157_v20, %v4078_v51  ;;  %v12205_v17 = vadd.f32 %v12157_v20, %v4079_v26  ;;  %v12208_v50 = vadd.f32 %v12157_v20, %v4080_v41  ;;  %v12214_v5 = vadd.f32 %v12157_v20, %v4082_v42  ;;  %v15552_v51 = vld [vmem:[#allocation83_spill] sm:$0xff]  ;;  %v15556_v41 = vld [vmem:[#allocation41_spill] sm:$0xff] }
 0x34f   : > { %v12164_v55 = vsel %vm1010_vm9, %v4128_v45, %v3927_v18  ;;  %v4081_v18 = vmul.f32 %v12153_v44, %v12036_v3  ;;  %15535 = vst [vmem:[#allocation92_spill] sm:$0xff] %v12193_v11  ;;  %15536 = vst [vmem:[#allocation87_spill] sm:$0xff] %v12196_v13  ;;  %v12217_v31 = vadd.f32 %v12157_v20, %v4083_v14  ;;  %vm15549_vm7 = vnez %v15548_v36  ;;  %v15560_v42 = vld [vmem:[#allocation45_spill] sm:$0xff]  ;;  %v15608_v11 = vld [vmem:[#allocation67_spill] sm:$0xff] }
 0x350   : > { %15534 = vst [vmem:[#allocation42_spill] sm:$0xff] %v12164_v55  ;;  %15537 = vst [vmem:[#allocation65_spill] sm:$0xff] %v12199_v23  ;;  %v12220_v37 = vadd.f32 %v12157_v20, %v4084_v9  ;;  %v12223_v6 = vadd.f32 %v12157_v20, %v4085_v22  ;;  %v12226_v45 = vadd.f32 %v12157_v20, %v4086_v49  ;;  %vm15553_vm9 = vnez %v15552_v51  ;;  %v15564_v9 = vld [vmem:[#allocation13_spill] sm:$0xff]  ;;  %v15568_v49 = vld [vmem:[#allocation31_spill] sm:$0xff] }
 0x351   : > { %15538 = vst [vmem:[#allocation47_spill] sm:$0xff] %v12202_v1  ;;  %15539 = vst [vmem:[#allocation35_spill] sm:$0xff] %v12205_v17  ;;  %v12211_v60 = vadd.f32 %v12157_v20, %v4081_v18  ;;  %v12229_v27 = vadd.f32 %v12157_v20, %v4087_v62  ;;  %vm15557_vm6 = vnez %v15556_v41  ;;  %v15572_v36 = vld [vmem:[#allocation49_spill] sm:$0xff]  ;;  %v15576_v41 = vld [vmem:[#allocation14_spill] sm:$0xff]  ;;  %v4065_v47 = vmul.f32 %v12153_v44, %v11620_v46 }
 0x352   : > { %15540 = vst [vmem:[#allocation19_spill] sm:$0xff] %v12208_v50  ;;  %15542 = vst [vmem:[#allocation48_spill] sm:$0xff] %v12214_v5  ;;  %v4063_v5 = vmul.f32 %v12153_v44, %v15594_v63  ;;  %v4067_v3 = vmul.f32 %v12153_v44, %v11692_v54  ;;  %v4068_v33 = vmul.f32 %v12153_v44, %v11697_v38  ;;  %v15598_v50 = vld [vmem:[#allocation66_spill] sm:$0xff]  ;;  %v15599_v17 = vld [vmem:[#allocation20_spill] sm:$0xff]  ;;  %vm15609_vm5 = vnez %v15608_v11 }
 0x353   : > { %15541 = vst [vmem:[#allocation71_spill] sm:$0xff] %v12211_v60  ;;  %15543 = vst [vmem:[#allocation26_spill] sm:$0xff] %v12217_v31  ;;  %v15593_v31 = vld [vmem:[#allocation23_spill] sm:$0xff]  ;;  %v4066_v60 = vmul.f32 %v12153_v44, %v11647_v53  ;;  %v4069_v43 = vmul.f32 %v12153_v44, %v15598_v50  ;;  %vm15600_vm15 = vnez %v15599_v17  ;;  %v4070_v61 = vmul.f32 %v12153_v44, %v15603_v56  ;;  %v15604_v23 = vld [vmem:[#allocation78_spill] sm:$0xff] }
 0x354   : > { %15544 = vst [vmem:[#allocation82_spill] sm:$0xff] %v12220_v37  ;;  %15545 = vst [vmem:[#allocation46_spill] sm:$0xff] %v12223_v6  ;;  %v15586_v6 = vld [vmem:[#allocation81_spill] sm:$0xff]  ;;  %v4061_v37 = vmul.f32 %v12153_v44, %v15588_v58  ;;  %v4062_v15 = vmul.f32 %v12153_v44, %v15593_v31  ;;  %v4071_v30 = vmul.f32 %v12153_v44, %v11791_v10  ;;  %vm15605_vm11 = vnez %v15604_v23 }
 0x355   : > { %15546 = vst [vmem:[#allocation40_spill] sm:$0xff] %v12226_v45  ;;  %15547 = vst [vmem:[#allocation54_spill] sm:$0xff] %v12229_v27  ;;  %v15578_v27 = vld [vmem:[#allocation86_spill] sm:$0xff]  ;;  %v15585_v45 = vld [vmem:[#allocation16_spill] sm:$0xff]  ;;  %v4059_v19 = vmul.f32 %v12153_v44, %v15586_v6  ;;  %v4072_v1 = vmul.f32 %v12153_v44, %v11823_v59  ;;  %v4073_v29 = vmul.f32 %v12153_v44, %v11860_v25  ;;  %v15606_v17 = vmov 0 }
 0x356   : > { %vm12235_vm2 = vmand %vm15549_vm7, %vm976_vm10  ;;  %vm15561_vm7 = vnez %v15560_v42  ;;  %v4055_v42 = vmul.f32 %v12153_v44, %v15576_v41  ;;  %v4058_v32 = vmul.f32 %v12153_v44, %v15585_v45  ;;  %v4074_v4 = vmul.f32 %v12153_v44, %v11870_v40 }
 0x357   : > { %vm12243_vm3 = vmand %vm15553_vm9, %vm976_vm10  ;;  %vm15565_vm9 = vnez %v15564_v9  ;;  %v15577_v9 = vld [vmem:[#allocation30_spill] sm:$0xff]  ;;  %v15610_v7 = vmov 0  ;;  %v4099_v2 = vadd.f32 %v12157_v20, %v4059_v19  ;;  %v4102_v11 = vadd.f32 %v12157_v20, %v4062_v15 }
 0x358   : > { %vm12251_vm13 = vmand %vm15557_vm6, %vm976_vm10  ;;  %vm15569_vm6 = vnez %v15568_v49  ;;  %v4056_v55 = vmul.f32 %v12153_v44, %v15577_v9  ;;  %v4057_v49 = vmul.f32 %v12153_v44, %v15578_v27  ;;  %v4095_v52 = vadd.f32 %v12157_v20, %v4055_v42 }
 0x359   : > { %vm12259_vm1 = vmand %vm15561_vm7, %vm976_vm10  ;;  %vm15573_vm7 = vnez %v15572_v36  ;;  %v4098_v23 = vadd.f32 %v12157_v20, %v4058_v32  ;;  %v4101_v42 = vadd.f32 %v12157_v20, %v4061_v37  ;;  %v4103_v40 = vadd.f32 %v12157_v20, %v4063_v5 }
 0x35a   : > { %vm12267_vm4 = vmand %vm15565_vm9, %vm976_vm10  ;;  %vm15579_vm9 = vnez %v15295_v35  ;;  %v4060_v35 = vmul.f32 %v12153_v44, %v15587_v12  ;;  %v4096_v13 = vadd.f32 %v12157_v20, %v4056_v55  ;;  %v4097_v39 = vadd.f32 %v12157_v20, %v4057_v49  ;;  %v15612_v55 = vld [vmem:[#allocation61_spill] sm:$0xff] }
 0x35b   : > { %vm12275_vm8 = vmand %vm15569_vm6, %vm976_vm10  ;;  %v15614_v49 = vmov 0  ;;  %v4104_v32 = vadd.f32 %v12157_v20, %v4064_v21  ;;  %v4105_v19 = vadd.f32 %v12157_v20, %v4065_v47  ;;  %v15618_v37 = vmov 0  ;;  %v15620_v21 = vld [vmem:[#allocation33_spill] sm:$0xff] }
 0x35c   : > { %vm12283_vm0 = vmand %vm15573_vm7, %vm976_vm10  ;;  %v4100_v44 = vadd.f32 %v12157_v20, %v4060_v35  ;;  %v15616_v35 = vld [vmem:[#allocation58_spill] sm:$0xff]  ;;  %v4107_v0 = vadd.f32 %v12157_v20, %v4067_v3  ;;  %v4108_v15 = vadd.f32 %v12157_v20, %v4068_v33  ;;  %v4109_v5 = vadd.f32 %v12157_v20, %v4069_v43  ;;  %v15624_v33 = vld [vmem:[#allocation29_spill] sm:$0xff] }
 0x35d   : > { %vm12297_vm6 = vmand %vm15579_vm9, %vm976_vm10  ;;  %vm15590_vm9 = vnez %v15589_v57  ;;  %v4111_v25 = vadd.f32 %v12157_v20, %v4071_v30  ;;  %v4113_v3 = vadd.f32 %v12157_v20, %v4073_v29  ;;  %v4130_v30 = vsel %vm12243_vm3, %v4096_v13, %v15577_v9 }
 0x35e   : > { %vm12305_vm7 = vmand %vm11446_vm14, %vm976_vm10  ;;  %v12446_v29 = vsel %vm12251_vm13, %v4097_v39, %v15578_v27  ;;  %v12469_v39 = vsel %vm12275_vm8, %v4100_v44, %v15587_v12  ;;  %v12474_v13 = vsel %vm12283_vm0, %v4101_v42, %v15588_v58  ;;  %v4294_v22 = vrot.slane %v4130_v30, 2 }
 0x35f   : > { %vm12321_vm14 = vmand %vm15590_vm9, %vm976_vm10  ;;  %15628 = vst [vmem:[#allocation59_spill] sm:$0xff] %v12446_v29  ;;  %v4296_v62 = vrot.slane %v12446_v29, 2  ;;  %v4302_v57 = vrot.slane %v12469_v39, 2  ;;  %v15655_v42 = vmov 0.0   ;;  %vm15657_vm3 = vcmask 1046528  }
 0x360   : > { %vm12337_vm9 = vmand %vm11506_vm12, %vm976_vm10  ;;  %15635 = vst [vmem:[#allocation99_spill] sm:$0xff] %v12469_v39  ;;  %v12489_v12 = vsel %vm12321_vm14, %v4104_v32, %v11565_v34 }
 0x361   : > { %vm12353_vm12 = vmand %vm15600_vm15, %vm976_vm10  ;;  %15636 = vst [vmem:[#allocation68_spill] sm:$0xff] %v12474_v13  ;;  %v12494_v58 = vsel %vm12337_vm9, %v4105_v19, %v11620_v46  ;;  %v4197_v19 = vrot.slane %v4130_v30, 1 }
 0x362   : > { %v15602_v28 = vsel %vm12353_vm12, 4294967295, %v15601_v28  ;;  %vm12369_vm15 = vmand %vm15605_vm11, %vm976_vm10  ;;  %vm15613_vm11 = vnez %v15612_v55  ;;  %v4106_v55 = vadd.f32 %v12157_v20, %v4066_v60  ;;  %v4112_v60 = vadd.f32 %v12157_v20, %v4072_v1  ;;  %v15629_v1 = vld [vmem:[#allocation63_spill] sm:$0xff]  ;;  %15639 = vst [vmem:[#allocation80_spill] sm:$0xff] %v12489_v12 }
 0x363   : > { %v15607_v17 = vsel %vm12369_vm15, 4294967295, %v15606_v17  ;;  %vm12382_vm12 = vmand %vm15609_vm5, %vm976_vm10  ;;  %vm15617_vm5 = vnez %v15616_v35  ;;  %v4110_v35 = vadd.f32 %v12157_v20, %v4070_v61  ;;  %v4129_v61 = vsel %vm12235_vm2, %v4095_v52, %v15576_v41  ;;  %15640 = vst [vmem:[#allocation36_spill] sm:$0xff] %v12494_v58 }
 0x364   : > { %v15611_v7 = vsel %vm12382_vm12, 4294967295, %v15610_v7  ;;  %vm12394_vm15 = vmand %vm15613_vm11, %vm976_vm10  ;;  %vm15621_vm11 = vnez %v15620_v21  ;;  %v12435_v21 = vadd.f32 %v12157_v20, %v4074_v4  ;;  %v12459_v52 = vsel %vm12259_vm1, %v4098_v23, %v15585_v45 }
 0x365   : > { %v15615_v49 = vsel %vm12394_vm15, 4294967295, %v15614_v49  ;;  %vm12406_vm12 = vmand %vm15617_vm5, %vm976_vm10  ;;  %vm15625_vm5 = vnez %v15624_v33  ;;  %15633 = vst [vmem:[#allocation12_spill] sm:$0xff] %v12459_v52  ;;  %v12464_v20 = vsel %vm12267_vm4, %v4099_v2, %v15586_v6  ;;  %v12479_v45 = vsel %vm12297_vm6, %v4102_v11, %v15593_v31 }
 0x366   : > { %v15619_v37 = vsel %vm12406_vm12, 4294967295, %v15618_v37  ;;  %vm12418_vm15 = vmand %vm15621_vm11, %vm976_vm10  ;;  %vm15630_vm11 = vnez %v15629_v1  ;;  %15634 = vst [vmem:[#allocation15_spill] sm:$0xff] %v12464_v20  ;;  %v12484_v2 = vsel %vm12305_vm7, %v4103_v40, %v15594_v63  ;;  %vm15641_vm0 = vnez %v15602_v28 }
 0x367   : > { %vm12430_vm12 = vmand %vm15625_vm5, %vm976_vm10  ;;  %15637 = vst [vmem:[#allocation53_spill] sm:$0xff] %v12479_v45  ;;  %v12499_v48 = vsel %vm15641_vm0, %v4106_v55, %v11647_v53  ;;  %vm15643_vm8 = vnez %v15607_v17  ;;  %vm15645_vm4 = vnez %v15611_v7  ;;  %vm15647_vm1 = vnez %v15615_v49 }
 0x368   : > { %vm12452_vm5 = vmand %vm15630_vm11, %vm976_vm10  ;;  %15638 = vst [vmem:[#allocation73_spill] sm:$0xff] %v12484_v2  ;;  %v12504_v40 = vsel %vm15643_vm8, %v4107_v0, %v11692_v54  ;;  %v12509_v34 = vsel %vm15645_vm4, %v4108_v15, %v11697_v38  ;;  %v12514_v46 = vsel %vm15647_vm1, %v4109_v5, %v15598_v50  ;;  %vm15649_vm13 = vnez %v15619_v37  ;;  %v15653_v38 = vld [vmem:[#allocation24_spill] sm:$0xff] }
 0x369   : > { %15642 = vst [vmem:[#allocation52_spill] sm:$0xff] %v12499_v48  ;;  %15644 = vst [vmem:[#allocation17_spill] sm:$0xff] %v12504_v40  ;;  %v12519_v53 = vsel %vm15649_vm13, %v4110_v35, %v15603_v56  ;;  %v12524_v0 = vsel %vm12418_vm15, %v4111_v25, %v11791_v10  ;;  %v12529_v54 = vsel %vm12430_vm12, %v4112_v60, %v11823_v59  ;;  %v4199_v63 = vrot.slane %v12446_v29, 1 }
 0x36a   : > { %15646 = vst [vmem:[#allocation25_spill] sm:$0xff] %v12509_v34  ;;  %15648 = vst [vmem:[#allocation83_spill] sm:$0xff] %v12514_v46  ;;  %v12534_v7 = vsel %vm12452_vm5, %v4113_v3, %v15653_v38  ;;  %v4201_v56 = vrot.slane %v12459_v52, 1  ;;  %v4203_v16 = vrot.slane %v12464_v20, 1  ;;  %v4205_v50 = vrot.slane %v12469_v39, 1 }
 0x36b   : > { %15650 = vst [vmem:[#allocation41_spill] sm:$0xff] %v12519_v53  ;;  %15651 = vst [vmem:[#allocation45_spill] sm:$0xff] %v12524_v0  ;;  %v4207_v10 = vrot.slane %v12474_v13, 1  ;;  %v14713_v25 = vrot.slane %v12479_v45, 1  ;;  %v12549_v14 = vrot.slane %v4129_v61, 2  ;;  %v4298_v9 = vrot.slane %v12459_v52, 2 }
 0x36c   : > { %15652 = vst [vmem:[#allocation13_spill] sm:$0xff] %v12529_v54  ;;  %15654 = vst [vmem:[#allocation31_spill] sm:$0xff] %v12534_v7  ;;  %v4300_v36 = vrot.slane %v12464_v20, 2  ;;  %v12562_v49 = vpack.c.bf16 %v4129_v61, %v15655_v42  ;;  %v12565_v11 = vpack.c.bf16 %v12446_v29, %v4130_v30  ;;  %v12567_v32 = vrot.slane %v4129_v61, 1 }
 0x36d   : > { %v12572_v37 = vsel %vm15657_vm3, %v4199_v63, %v4201_v56  ;;  %vm15659_vm2 = vcmask 1045504   ;;  %vm15663_vm14 = vmmov %vm15657_vm3  ;;  %vm15668_vm15 = vsmask.f32 4352  ;;  %vm15678_vm4 = vmmov 0  }
 0x36e   : > { %15656 = vst [vmem:[#allocation49_spill] sm:$0xff] %v12565_v11  ;;  %15658 = vst [vmem:[#allocation14_spill] sm:$0xff] %v12572_v37  ;;  %v12576_v55 = vsel %vm15659_vm2, %v12549_v14, %v4294_v22  ;;  %v4565_v35 = vshrl.u32 %v12562_v49, 16  ;;  %v4568_v60 = vshll.u32 %v12562_v49, 16  ;;  %v12588_v3 = vsel %vm15663_vm14, %v12567_v32, %v4197_v19 }
 0x36f   : > { %vm15660_vm6 = vmmov %vm15659_vm2  ;;  %v4508_v47 = vpack.c.bf16 %v12576_v55, %v12549_v14  ;;  %v4573_v61 = vshrl.u32 %v12565_v11, 16  ;;  %v4507_v1 = vpack.c.bf16 %v12588_v3, %v12567_v32  ;;  %v15779_v29 = vrot.slane %v12519_v53, 2 }
 0x370   : > { %v4297_v15 = vsel %vm15660_vm6, %v4294_v22, %v4296_v62  ;;  %vm15661_vm7 = vmmov %vm15659_vm2  ;;  %v4567_v41 = vrot.slane %v4565_v35, 3  ;;  %v4570_v51 = vrot.slane %v4568_v60, 4 }
 0x371   : > { %v12580_v5 = vsel %vm15661_vm7, %v4296_v62, %v4298_v9  ;;  %vm15664_vm9 = vmmov %vm15657_vm3  ;;  %v4599_v4 = vshrl.u32 %v4508_v47, 16  ;;  %v4602_v38 = vshll.u32 %v4508_v47, 16  ;;  %v4575_v35 = vrot.slane %v4573_v61, 3 }
 0x372   : > { %15662 = vst [vmem:[#allocation30_spill] sm:$0xff] %v12580_v5  ;;  %v4200_v33 = vsel %vm15664_vm9, %v4197_v19, %v4199_v63  ;;  %v12592_v43 = vpack.c.bf16 %v12580_v5, %v4297_v15  ;;  %v4582_v63 = vshrl.u32 %v4507_v1, 16  ;;  %v4585_v19 = vshll.u32 %v4507_v1, 16  ;;  %vm15666_vm12 = vmmov %vm15657_vm3 }
 0x373   : > { %v12596_v30 = vpack.c.bf16 %v12572_v37, %v4200_v33  ;;  %v4601_v26 = vrot.slane %v4599_v4, 3  ;;  %v4604_v33 = vrot.slane %v4602_v38, 4  ;;  %v4571_v17 = vor.u32 %v4570_v51, %v4567_v41  ;;  %v8275_v38 = vld [vmem:[#allocation7 + $0xb8] sm:$0xff]   ;;  %vm15669_vm11 = vmmov %vm15657_vm3 }
 0x374   : > { %15665 = vst [vmem:[#allocation86_spill] sm:$0xff] %v12592_v43  ;;  %v4607_v22 = vshrl.u32 %v12592_v43, 16  ;;  %v4610_v62 = vshll.u32 %v12592_v43, 16  ;;  %v4584_v6 = vrot.slane %v4582_v63, 3  ;;  %v4587_v44 = vrot.slane %v4585_v19, 4  ;;  %vm15671_vm5 = vmmov %vm15659_vm2  ;;  %v15819_v37 = vld [vmem:[#allocation87_spill] sm:$0xff] }
 0x375   : > { %v4590_v15 = vshrl.u32 %v12596_v30, 16  ;;  %v4593_v18 = vshll.u32 %v12596_v30, 16  ;;  %v4605_v31 = vor.u32 %v4604_v33, %v4601_v26  ;;  %v4576_v1 = vshll.u32 %v12565_v11, 16  ;;  %vm15673_vm0 = vmmov %vm15659_vm2  ;;  %v8278_v33 = vld [vmem:[#allocation7 + $0xb0] sm:$0xff]  }
 0x376   : > { %v4609_v8 = vrot.slane %v4607_v22, 3  ;;  %v4612_v27 = vrot.slane %v4610_v62, 4  ;;  %v4588_v60 = vor.u32 %v4587_v44, %v4584_v6  ;;  %v12612_v4 = vsel %vm15666_vm12, %v4201_v56, %v4203_v16  ;;  %vm15675_vm8 = vmmov %vm15668_vm15  ;;  %v8271_v22 = vld [vmem:[#allocation7 + $0x38] sm:$0xff]  }
 0x377   : > { %v4592_v23 = vrot.slane %v4590_v15, 3  ;;  %v4595_v47 = vrot.slane %v4593_v18, 4  ;;  %15667 = vst [vmem:[#allocation28_spill] sm:$0xff] %v12612_v4  ;;  %v12621_v6 = vsel %vm15669_vm11, %v4203_v16, %v4205_v50  ;;  %v4578_v26 = vrot.slane %v4576_v1, 4  ;;  %vm15680_vm1 = vmmov %vm15657_vm3 }
 0x378   : > { %v12604_v59 = vor.u32 %v4612_v27, %v4609_v8  ;;  %15670 = vst [vmem:[#allocation16_spill] sm:$0xff] %v12621_v6  ;;  %v12624_v27 = vsel %vm15671_vm5, %v4298_v9, %v4300_v36  ;;  %v12629_v8 = vsel %vm15673_vm0, %v4300_v36, %v4302_v57  ;;  %v12647_v9 = vpack.c.bf16 %v12464_v20, %v12459_v52  ;;  %vm15682_vm13 = vmmov %vm15680_vm1 }
 0x379   : > { %v4596_v28 = vor.u32 %v4595_v47, %v4592_v23  ;;  %15672 = vst [vmem:[#allocation81_spill] sm:$0xff] %v12624_v27  ;;  %15674 = vst [vmem:[#allocation55_spill] sm:$0xff] %v12629_v8  ;;  %v12638_v16 = vpack.c.bf16 %v12629_v8, %v12624_v27  ;;  %v12654_v36 = vsel %vm15680_vm1, %v4205_v50, %v4207_v10  ;;  %v15686_v51 = vrot.slane %v12474_v13, 2 }
 0x37a   : > { %v4614_v18 = vsel %vm15668_vm15, %v4605_v31, %v12604_v59  ;;  %v12634_v31 = vpack.c.bf16 %v12621_v6, %v12612_v4  ;;  %15679 = vst [vmem:[#allocation23_spill] sm:$0xff] %v12647_v9  ;;  %15681 = vst [vmem:[#allocation18_spill] sm:$0xff] %v12654_v36  ;;  %v4579_v23 = vor.u32 %v4578_v26, %v4575_v35  ;;  %v4616_v19 = vshrl.u32 %v12647_v9, 16 }
 0x37b   : > { %v4597_v56 = vsel %vm15675_vm8, %v4588_v60, %v4596_v28  ;;  %7775 = vmatmul.mubr.bf16.vlgmr.msra.gmra.mxu0 %v4614_v18  ;;  %15677 = vst [vmem:[#allocation21_spill] sm:$0xff] %v12638_v16  ;;  %v4634_v62 = vshrl.u32 %v12638_v16, 16  ;;  %v4637_v63 = vshll.u32 %v12638_v16, 16  ;;  %v4619_v15 = vshll.u32 %v12647_v9, 16  ;;  %vm15684_vm3 = vmmov %vm15675_vm8 }
 0x37c   : > { %15676 = vst [vmem:[#allocation93_spill] sm:$0xff] %v12634_v31  ;;  %5274 = vmatprep.mubr.bf16.mxu1 %v4597_v56  ;;  %7778 = vmatprep.mubr.msk.bf16.mxu0 %vm15678_vm4, %v15655_v42  ;;  %v4625_v44 = vshrl.u32 %v12634_v31, 16  ;;  %v4628_v61 = vshll.u32 %v12634_v31, 16  ;;  %v12667_v50 = vsel %vm15682_vm13, %v4207_v10, %v14713_v25  ;;  %v4580_v47 = vsel %vm15684_vm3, %v4571_v17, %v4579_v23  ;;  %v8272_v10 = vld [vmem:[#allocation7 + $0x30] sm:$0xff]   ;;  %vm15687_vm2 = vmmov %vm15673_vm0 }
 0x37d   : > { %7843 = vmatpush3.bf16.msra.mxu0 %v8275_v38  ;;  %15683 = vst [vmem:[#allocation75_spill] sm:$0xff] %v12667_v50  ;;  %v4636_v1 = vrot.slane %v4634_v62, 3  ;;  %5275 = vmatmul.mubr.bf16.vlgmr.msra.gmra.mxu1 %v4580_v47  ;;  %v4639_v38 = vrot.slane %v4637_v63, 4  ;;  %v4618_v18 = vrot.slane %v4616_v19, 3  ;;  %v4621_v56 = vrot.slane %v4619_v15, 4  ;;  %vm15691_vm6 = vmmov %vm15673_vm0 }
 0x37e   : > { %7844 = vmatprep.subr.bf16.mxu0 %v15655_v42  ;;  %v4627_v35 = vrot.slane %v4625_v44, 3  ;;  %v4630_v60 = vrot.slane %v4628_v61, 4  ;;  %v12673_v26 = vpack.c.bf16 %v12667_v50, %v12654_v36  ;;  %5929 = vmatpush1.bf16.msra.mxu1 %v8271_v22  ;;  %v12680_v17 = vsel %vm15687_vm2, %v4302_v57, %v15686_v51  ;;  %vm15695_vm7 = vmmov %vm15684_vm3 }
 0x37f   : > { %15688 = vst [vmem:[#allocation20_spill] sm:$0xff] %v12680_v17  ;;  %v15689_v44 = vrot.slane %v12479_v45, 2  ;;  %v15690_v61 = vmov %v15686_v51  ;;  %v12691_v63 = vpack.c.bf16 %v12474_v13, %v12469_v39  ;;  %v4640_v22 = vor.u32 %v4639_v38, %v4636_v1  ;;  %v8281_v1 = vld [vmem:[#allocation7 + $0xa8] sm:$0xff]   ;;  %vm15697_vm14 = vmmov %vm15684_vm3 }
 0x380   : > { %15685 = vst [vmem:[#allocation66_spill] sm:$0xff] %v12673_v26  ;;  %v4631_v41 = vor.u32 %v4630_v60, %v4627_v35  ;;  %v12693_v19 = vor.u32 %v4621_v56, %v4618_v18  ;;  %v4652_v15 = vshrl.u32 %v12673_v26, 16  ;;  %v4655_v47 = vshll.u32 %v12673_v26, 16  ;;  %vm15700_vm9 = vmmov %vm15680_vm1 }
 0x381   : > { %v12687_v62 = vsel %vm15691_vm6, %v15690_v61, %v15689_v44  ;;  %15693 = vst [vmem:[#allocation78_spill] sm:$0xff] %v12691_v63  ;;  %v15694_v57 = vmov 0   ;;  %7845 = vmatpush3.bf16.msra.mxu0 %v8278_v33  ;;  %v4643_v60 = vshrl.u32 %v12691_v63, 16  ;;  %v4646_v44 = vshll.u32 %v12691_v63, 16  ;;  %vm15704_vm12 = vmmov %vm15680_vm1  ;;  %v15973_v63 = vld [vmem:[#allocation91_spill] sm:$0xff] }
 0x382   : > { %15692 = vst [vmem:[#allocation79_spill] sm:$0xff] %v12687_v62  ;;  %5930 = vmatprep.subr.bf16.mxu1 %v15694_v57  ;;  %v4632_v51 = vsel %vm15695_vm7, %v4596_v28, %v4631_v41  ;;  %v12701_v35 = vpack.c.bf16 %v12687_v62, %v12680_v17  ;;  %7846 = vmatprep.subr.bf16.mxu0 %v15655_v42  ;;  %v4654_v33 = vrot.slane %v4652_v15, 3  ;;  %v4657_v56 = vrot.slane %v4655_v47, 4  ;;  %v8273_v62 = vld [vmem:[#allocation7 + $0x28] sm:$0xff]   ;;  %vm15706_vm15 = vmmov %vm15684_vm3 }
 0x383   : > { %5282 = vmatprep.mubr.bf16.mxu1 %v4632_v51  ;;  %v4641_v18 = vsel %vm15697_vm14, %v12604_v59, %v4640_v22  ;;  %5931 = vmatpush1.bf16.msra.mxu1 %v8272_v10  ;;  %v4645_v25 = vrot.slane %v4643_v60, 3  ;;  %v4648_v13 = vrot.slane %v4646_v44, 4  ;;  %v15698_v51 = vrot.slane %v12484_v2, 1  ;;  %vm15708_vm11 = vmmov %vm15684_vm3  ;;  %v8292_v17 = vld [vmem:[#allocation7 + $0x88] sm:$0xff]  }
 0x384   : > { %15696 = vst [vmem:[#allocation67_spill] sm:$0xff] %v12701_v35  ;;  %7779 = vmatmul.mubr.bf16.gmra.mxu0 %v4641_v18  ;;  %v4661_v28 = vshrl.u32 %v12701_v35, 16  ;;  %v4664_v61 = vshll.u32 %v12701_v35, 16  ;;  %v4658_v39 = vor.u32 %v4657_v56, %v4654_v33  ;;  %v15699_v59 = vrot.slane %v12479_v45, 1  ;;  %5932 = vmatprep.subr.bf16.mxu1 %v15694_v57  ;;  %vm15711_vm5 = vmmov %vm15673_vm0 }
 0x385   : > { %7782 = vmatprep.mubr.msk.bf16.mxu0 %vm15678_vm4, %v15655_v42  ;;  %v15702_v10 = vrot.slane %v12489_v12, 1  ;;  %v15703_v47 = vmov %v15698_v51  ;;  %v4623_v44 = vsel %vm15706_vm15, %v4579_v23, %v12693_v19  ;;  %7847 = vmatpush3.bf16.msra.mxu0 %v8281_v1  ;;  %v15709_v50 = vrot.slane %v12484_v2, 2  ;;  %vm15720_vm8 = vmmov %vm15680_vm1 }
 0x386   : > { %v12719_v15 = vsel %vm15700_vm9, %v15699_v59, %v15698_v51  ;;  %v4663_v18 = vrot.slane %v4661_v28, 3  ;;  %v4666_v33 = vrot.slane %v4664_v61, 4  ;;  %v8284_v51 = vld [vmem:[#allocation7 + $0xa0] sm:$0xff]   ;;  %5283 = vmatmul.mubr.bf16.gmra.mxu1 %v4623_v44  ;;  %v4659_v59 = vsel %vm15708_vm11, %v4631_v41, %v4658_v39  ;;  %7848 = vmatprep.subr.bf16.mxu0 %v15655_v42  ;;  %vm15722_vm1 = vmmov %vm15684_vm3 }
 0x387   : > { %15701 = vst [vmem:[#allocation61_spill] sm:$0xff] %v12719_v15  ;;  %v12726_v60 = vsel %vm15704_vm12, %v15703_v47, %v15702_v10  ;;  %v15710_v10 = vrot.slane %v12479_v45, 2  ;;  %v15713_v23 = vrot.slane %v12489_v12, 2  ;;  %v15714_v28 = vmov %v15709_v50  ;;  %5290 = vmatprep.mubr.bf16.mxu1 %v4659_v59  ;;  %5933 = vmatpush1.bf16.msra.mxu1 %v8273_v62  ;;  %vm15725_vm13 = vmmov %vm15720_vm8 }
 0x388   : > { %15705 = vst [vmem:[#allocation58_spill] sm:$0xff] %v12726_v60  ;;  %v12733_v56 = vpack.c.bf16 %v12726_v60, %v12719_v15  ;;  %v12752_v1 = vpack.c.bf16 %v12484_v2, %v12479_v45  ;;  %v12754_v41 = vor.u32 %v4666_v33, %v4663_v18  ;;  %v12756_v44 = vor.u32 %v4648_v13, %v4645_v25  ;;  %vm15730_vm3 = vmmov %vm15673_vm0 }
 0x389   : > { %v12741_v47 = vsel %vm15711_vm5, %v15710_v10, %v15709_v50  ;;  %v12748_v61 = vsel %vm15673_vm0, %v15714_v28, %v15713_v23  ;;  %v8274_v10 = vld [vmem:[#allocation7 + $0x20] sm:$0xff]   ;;  %v15718_v59 = vrot.slane %v12494_v58, 1  ;;  %v15719_v18 = vrot.slane %v12489_v12, 1  ;;  %5934 = vmatprep.subr.bf16.mxu1 %v15694_v57  ;;  %7849 = vmatpush3.bf16.msra.mxu0 %v8284_v51  ;;  %vm15732_vm2 = vmmov %vm15722_vm1 }
 0x38a   : > { %15707 = vst [vmem:[#allocation33_spill] sm:$0xff] %v12733_v56  ;;  %15712 = vst [vmem:[#allocation29_spill] sm:$0xff] %v12741_v47  ;;  %v4679_v38 = vshrl.u32 %v12733_v56, 16  ;;  %v4682_v50 = vshll.u32 %v12733_v56, 16  ;;  %v12762_v60 = vpack.c.bf16 %v12748_v61, %v12741_v47  ;;  %v4670_v23 = vshrl.u32 %v12752_v1, 16  ;;  %v8287_v47 = vld [vmem:[#allocation7 + $0x98] sm:$0xff]   ;;  %7850 = vmatprep.subr.bf16.mxu0 %v15655_v42 }
 0x38b   : > { %15715 = vst [vmem:[#allocation63_spill] sm:$0xff] %v12748_v61  ;;  %15716 = vst [vmem:[#allocation24_spill] sm:$0xff] %v12752_v1  ;;  %v4673_v28 = vshll.u32 %v12752_v1, 16  ;;  %v12771_v13 = vsel %vm15720_vm8, %v15719_v18, %v15718_v59  ;;  %v4668_v25 = vsel %vm15722_vm1, %v4640_v22, %v12754_v41  ;;  %v15723_v2 = vrot.slane %v12499_v48, 1  ;;  %5935 = vmatpush1.bf16.msra.mxu1 %v8274_v10 }
 0x38c   : > { %15717 = vst [vmem:[#allocation100_spill] sm:$0xff] %v12762_v60  ;;  %15721 = vst [vmem:[#allocation101_spill] sm:$0xff] %v12771_v13  ;;  %v4681_v62 = vrot.slane %v4679_v38, 3  ;;  %v4684_v33 = vrot.slane %v4682_v50, 4  ;;  %v15724_v61 = vmov %v15718_v59  ;;  %v4688_v59 = vshrl.u32 %v12762_v60, 16  ;;  %7783 = vmatmul.mubr.bf16.gmra.mxu0 %v4668_v25  ;;  %5936 = vmatprep.subr.bf16.mxu1 %v15694_v57 }
 0x38d   : > { %v12782_v45 = vsel %vm15725_vm13, %v15724_v61, %v15723_v2  ;;  %v4691_v18 = vshll.u32 %v12762_v60, 16  ;;  %v4672_v15 = vrot.slane %v4670_v23, 3  ;;  %v4675_v20 = vrot.slane %v4673_v28, 4  ;;  %v8276_v23 = vld [vmem:[#allocation7 + $0x18] sm:$0xff]   ;;  %7786 = vmatprep.mubr.msk.bf16.mxu0 %vm15678_vm4, %v15655_v42  ;;  %vm15735_vm6 = vmmov %vm15673_vm0  ;;  %7851 = vmatpush3.bf16.msra.mxu0 %v8287_v47 }
 0x38e   : > { %15726 = vst [vmem:[#allocation102_spill] sm:$0xff] %v12782_v45  ;;  %v12788_v38 = vor.u32 %v4684_v33, %v4681_v62  ;;  %v12792_v50 = vpack.c.bf16 %v12782_v45, %v12771_v13  ;;  %v15728_v2 = vrot.slane %v12494_v58, 2  ;;  %v15729_v51 = vrot.slane %v12489_v12, 2  ;;  %vm15738_vm7 = vmmov %vm15722_vm1  ;;  %7852 = vmatprep.subr.bf16.mxu0 %v15655_v42 }
 0x38f   : > { %v4650_v28 = vsel %vm15732_vm2, %v12693_v19, %v12756_v44  ;;  %v4690_v25 = vrot.slane %v4688_v59, 3  ;;  %v4693_v62 = vrot.slane %v4691_v18, 4  ;;  %v15733_v33 = vrot.slane %v12499_v48, 2  ;;  %v8290_v59 = vld [vmem:[#allocation7 + $0x90] sm:$0xff]   ;;  %vm15742_vm14 = vmmov %vm15720_vm8  ;;  %5937 = vmatpush1.bf16.msra.mxu1 %v8276_v23 }
 0x390   : > { %15727 = vst [vmem:[#allocation103_spill] sm:$0xff] %v12792_v50  ;;  %v12799_v61 = vsel %vm15730_vm3, %v15729_v51, %v15728_v2  ;;  %v15734_v10 = vmov %v15728_v2  ;;  %v12814_v2 = vor.u32 %v4675_v20, %v4672_v15  ;;  %v4706_v51 = vshrl.u32 %v12792_v50, 16  ;;  %5291 = vmatmul.mubr.bf16.gmra.mxu1 %v4650_v28  ;;  %vm15745_vm9 = vmmov %vm15720_vm8  ;;  %5938 = vmatprep.subr.bf16.mxu1 %v15694_v57 }
 0x391   : > { %15731 = vst [vmem:[#allocation104_spill] sm:$0xff] %v12799_v61  ;;  %v12811_v22 = vsel %vm15735_vm6, %v15734_v10, %v15733_v33  ;;  %v4709_v19 = vshll.u32 %v12792_v50, 16  ;;  %v4686_v18 = vsel %vm15738_vm7, %v4658_v39, %v12788_v38  ;;  %v12824_v33 = vor.u32 %v4693_v62, %v4690_v25  ;;  %v8277_v25 = vld [vmem:[#allocation7 + $0x10] sm:$0xff]   ;;  %7853 = vmatpush3.bf16.msra.mxu0 %v8290_v59  ;;  %vm15748_vm12 = vmmov %vm15722_vm1  ;;  %v15949_v50 = vld [vmem:[#allocation40_spill] sm:$0xff] }
 0x392   : > { %15736 = vst [vmem:[#allocation105_spill] sm:$0xff] %v12811_v22  ;;  %v12820_v45 = vpack.c.bf16 %v12811_v22, %v12799_v61  ;;  %v12828_v20 = vpack.c.bf16 %v12494_v58, %v12489_v12  ;;  %v15740_v15 = vrot.slane %v12504_v40, 1  ;;  %v15741_v10 = vrot.slane %v12499_v48, 1  ;;  %5298 = vmatprep.mubr.bf16.mxu1 %v4686_v18  ;;  %vm15751_vm15 = vmmov %vm15673_vm0  ;;  %7854 = vmatprep.subr.bf16.mxu0 %v15655_v42 }
 0x393   : > { %v4708_v47 = vrot.slane %v4706_v51, 3  ;;  %v4711_v22 = vrot.slane %v4709_v19, 4  ;;  %v4320_v62 = vrot.slane %v12514_v46, 2  ;;  %v15744_v61 = vrot.slane %v12509_v34, 1  ;;  %vm15755_vm11 = vmmov %vm15673_vm0  ;;  %5939 = vmatpush1.bf16.msra.mxu1 %v8277_v25  ;;  %v15764_v25 = vld [vmem:[#allocation34_spill] sm:$0xff] }
 0x394   : > { %15737 = vst [vmem:[#allocation106_spill] sm:$0xff] %v12820_v45  ;;  %15739 = vst [vmem:[#allocation107_spill] sm:$0xff] %v12828_v20  ;;  %v12835_v13 = vsel %vm15742_vm14, %v15741_v10, %v15740_v15  ;;  %v4715_v28 = vshrl.u32 %v12820_v45, 16  ;;  %v4718_v39 = vshll.u32 %v12820_v45, 16  ;;  %v4697_v58 = vshrl.u32 %v12828_v20, 16  ;;  %5940 = vmatprep.subr.bf16.mxu1 %v15694_v57  ;;  %v15946_v45 = vld [vmem:[#allocation46_spill] sm:$0xff] }
 0x395   : > { %15743 = vst [vmem:[#allocation108_spill] sm:$0xff] %v12835_v13  ;;  %v4700_v12 = vshll.u32 %v12828_v20, 16  ;;  %v12847_v18 = vsel %vm15745_vm9, %v15740_v15, %v15744_v61  ;;  %v4695_v8 = vsel %vm15748_vm12, %v12754_v41, %v12824_v33  ;;  %v12859_v61 = vor.u32 %v4711_v22, %v4708_v47  ;;  %vm15757_vm5 = vmmov %vm15722_vm1  ;;  %7855 = vmatpush3.bf16.msra.mxu0 %v8292_v17 }
 0x396   : > { %15746 = vst [vmem:[#allocation109_spill] sm:$0xff] %v12847_v18  ;;  %v4717_v51 = vrot.slane %v4715_v28, 3  ;;  %v4720_v19 = vrot.slane %v4718_v39, 4  ;;  %v12854_v10 = vpack.c.bf16 %v12847_v18, %v12835_v13  ;;  %v15749_v15 = vrot.slane %v12504_v40, 2  ;;  %7787 = vmatmul.mubr.bf16.gmra.mxu0 %v4695_v8  ;;  %vm15762_vm0 = vmmov %vm15720_vm8  ;;  %7856 = vmatprep.subr.bf16.mxu0 %v15655_v42 }
 0x397   : > { %v15750_v36 = vrot.slane %v12499_v48, 2  ;;  %v15753_v28 = vrot.slane %v12509_v34, 2  ;;  %v4677_v41 = vsel %vm15757_vm5, %v12756_v44, %v12814_v2  ;;  %v4699_v22 = vrot.slane %v4697_v58, 3  ;;  %7790 = vmatprep.mubr.msk.bf16.mxu0 %vm15678_vm4, %v15655_v42  ;;  %vm15770_vm13 = vmmov %vm15762_vm0 }
 0x398   : > { %15747 = vst [vmem:[#allocation110_spill] sm:$0xff] %v12854_v10  ;;  %v15754_v39 = vmov %v15749_v15  ;;  %v4733_v47 = vshrl.u32 %v12854_v10, 16  ;;  %v4702_v18 = vrot.slane %v4700_v12, 4  ;;  %v12889_v8 = vpack.c.bf16 %v12504_v40, %v12499_v48  ;;  %5299 = vmatmul.mubr.bf16.gmra.mxu1 %v4677_v41  ;;  %vm15772_vm3 = vmmov %vm15732_vm2 }
 0x399   : > { %v12866_v23 = vsel %vm15751_vm15, %v15750_v36, %v15749_v15  ;;  %v12873_v59 = vsel %vm15755_vm11, %v15754_v39, %v15753_v28  ;;  %v4736_v36 = vshll.u32 %v12854_v10, 16  ;;  %v8279_v15 = vld [vmem:[#allocation7 + $0x8] sm:$0xff]   ;;  %v15760_v58 = vrot.slane %v12514_v46, 1  ;;  %vm15775_vm2 = vmmov %vm15735_vm6 }
 0x39a   : > { %15752 = vst [vmem:[#allocation111_spill] sm:$0xff] %v12866_v23  ;;  %15756 = vst [vmem:[#allocation112_spill] sm:$0xff] %v12873_v59  ;;  %v12885_v28 = vpack.c.bf16 %v12873_v59, %v12866_v23  ;;  %v15761_v44 = vrot.slane %v12509_v34, 1  ;;  %vm15765_vm8 = vnez %v15764_v25  ;;  %v12906_v59 = vor.u32 %v4720_v19, %v4717_v51  ;;  %5941 = vmatpush1.bf16.msra.mxu1 %v8279_v15  ;;  %v15777_v25 = vld [vmem:[#allocation22_spill] sm:$0xff] }
 0x39b   : > { %15759 = vst [vmem:[#allocation114_spill] sm:$0xff] %v12889_v8  ;;  %vm12902_vm1 = vmand %vm15765_vm8, %vm976_vm10  ;;  %v4735_v23 = vrot.slane %v4733_v47, 3  ;;  %v4738_v40 = vrot.slane %v4736_v36, 4  ;;  %v15768_v48 = vrot.slane %v12519_v53, 1  ;;  %v15769_v13 = vmov %v15760_v58  ;;  %5942 = vmatprep.subr.bf16.mxu1 %v15694_v57  ;;  %v15782_v15 = vld [vmem:[#allocation74_spill] sm:$0xff] }
 0x39c   : > { %15758 = vst [vmem:[#allocation113_spill] sm:$0xff] %v12885_v28  ;;  %v12896_v39 = vsel %vm15762_vm0, %v15761_v44, %v15760_v58  ;;  %v8294_v58 = vld [vmem:[#allocation7 + $0x80] sm:$0xff]   ;;  %v4713_v51 = vsel %vm15772_vm3, %v12788_v38, %v12859_v61  ;;  %v4742_v19 = vshrl.u32 %v12885_v28, 16  ;;  %v4745_v47 = vshll.u32 %v12885_v28, 16  ;;  %vm15780_vm6 = vmmov %vm15775_vm2 }
 0x39d   : > { %15763 = vst [vmem:[#allocation115_spill] sm:$0xff] %v12896_v39  ;;  %v12913_v6 = vsel %vm15770_vm13, %v15769_v13, %v15768_v48  ;;  %5306 = vmatprep.mubr.bf16.mxu1 %v4713_v51  ;;  %v4724_v48 = vshrl.u32 %v12889_v8, 16  ;;  %v4727_v13 = vshll.u32 %v12889_v8, 16  ;;  %v15774_v41 = vrot.slane %v12509_v34, 2  ;;  %v8280_v38 = vld [vmem:[#allocation7] sm:$0xff]   ;;  %vm15786_vm9 = vmmov %vm15772_vm3  ;;  %7857 = vmatpush3.bf16.msra.mxu0 %v8294_v58 }
 0x39e   : > { %15771 = vst [vmem:[#allocation34_spill] sm:$0xff] %v12913_v6  ;;  %v12927_v17 = vpack.c.bf16 %v12913_v6, %v12896_v39  ;;  %v12938_v51 = vsel %vm12902_vm1, %v12435_v21, %v15777_v25  ;;  %v4324_v44 = vrot.slane %v12524_v0, 2  ;;  %v4703_v52 = vor.u32 %v4702_v18, %v4699_v22  ;;  %vm15790_vm12 = vmmov %vm15762_vm0  ;;  %7926 = vmatprep.subr.bf16.mxu0 %v15655_v42 }
 0x39f   : > { %v12932_v36 = vsel %vm15775_vm2, %v15774_v41, %v4320_v62  ;;  %15778 = vst [vmem:[#allocation22_spill] sm:$0xff] %v12938_v51  ;;  %v12944_v6 = vsel %vm15780_vm6, %v4320_v62, %v15779_v29  ;;  %vm15783_vm7 = vnez %v15782_v15  ;;  %v4722_v21 = vsel %vm15786_vm9, %v12824_v33, %v12906_v59  ;;  %vm15795_vm15 = vmmov %vm15762_vm0  ;;  %5943 = vmatpush1.bf16.msra.mxu1 %v8280_v38 }
 0x3a0   : > { %15773 = vst [vmem:[#allocation116_spill] sm:$0xff] %v12927_v17  ;;  %15776 = vst [vmem:[#allocation117_spill] sm:$0xff] %v12932_v36  ;;  %v12958_v18 = vor.u32 %v4738_v40, %v4735_v23  ;;  %v4744_v22 = vrot.slane %v4742_v19, 3  ;;  %v4747_v12 = vrot.slane %v4745_v47, 4  ;;  %v4760_v29 = vshrl.u32 %v12927_v17, 16  ;;  %7791 = vmatmul.mubr.bf16.gmra.mxu0 %v4722_v21  ;;  %5944 = vmatprep.subr.bf16.mxu1 %v15694_v57 }
 0x3a1   : > { %15781 = vst [vmem:[#allocation118_spill] sm:$0xff] %v12944_v6  ;;  %vm12951_vm14 = vmand %vm15783_vm7, %vm976_vm10  ;;  %v4763_v62 = vshll.u32 %v12927_v17, 16  ;;  %v12964_v25 = vpack.c.bf16 %v12944_v6, %v12932_v36  ;;  %v15788_v15 = vrot.slane %v12524_v0, 1  ;;  %v15789_v39 = vrot.slane %v12519_v53, 1  ;;  %v8282_v6 = vld [vmem:[#allocation7 + $0x78] sm:$0xff]   ;;  %7794 = vmatprep.mubr.msk.bf16.mxu0 %vm15678_vm4, %v15655_v42 }
 0x3a2   : > { %v4726_v40 = vrot.slane %v4724_v48, 3  ;;  %v4729_v33 = vrot.slane %v4727_v13, 4  ;;  %v12976_v23 = vpack.c.bf16 %v12514_v46, %v12509_v34  ;;  %v15793_v58 = vrot.slane %v12529_v54, 1  ;;  %vm15800_vm11 = vmmov %vm15772_vm3 }
 0x3a3   : > { %15787 = vst [vmem:[#allocation74_spill] sm:$0xff] %v12964_v25  ;;  %v12971_v5 = vsel %vm15790_vm12, %v15789_v39, %v15788_v15  ;;  %v15794_v19 = vmov %v15788_v15  ;;  %v15797_v39 = vld [vmem:[#allocation62_spill] sm:$0xff]  ;;  %v15798_v15 = vld [vmem:[#allocation92_spill] sm:$0xff]  ;;  %v4326_v48 = vrot.slane %v12529_v54, 2  ;;  %v4769_v13 = vshrl.u32 %v12964_v25, 16  ;;  %vm15802_vm5 = vmmov %vm15772_vm3  ;;  %5945 = vmatpush2.bf16.msra.mxu1 %v8282_v6 }
 0x3a4   : > { %15791 = vst [vmem:[#allocation119_spill] sm:$0xff] %v12971_v5  ;;  %15792 = vst [vmem:[#allocation120_spill] sm:$0xff] %v12976_v23  ;;  %v12983_v47 = vsel %vm15795_vm15, %v15794_v19, %v15793_v58  ;;  %v12989_v21 = vsel %vm12951_vm14, %v15798_v15, %v15797_v39  ;;  %v4772_v46 = vshll.u32 %v12964_v25, 16  ;;  %v4231_v38 = vrot.slane %v12534_v7, 1  ;;  %5946 = vmatprep.subr.bf16.mxu1 %v15694_v57 }
 0x3a5   : > { %15796 = vst [vmem:[#allocation121_spill] sm:$0xff] %v12983_v47  ;;  %15799 = vst [vmem:[#allocation62_spill] sm:$0xff] %v12989_v21  ;;  %v4704_v41 = vsel %vm15800_vm11, %v12814_v2, %v4703_v52  ;;  %v13003_v19 = vpack.c.bf16 %v12983_v47, %v12971_v5  ;;  %v4740_v39 = vsel %vm15802_vm5, %v12859_v61, %v12958_v18  ;;  %v4762_v34 = vrot.slane %v4760_v29, 3  ;;  %v15806_v61 = vld [vmem:[#allocation85_spill] sm:$0xff] }
 0x3a6   : > { %5307 = vmatmul.mubr.bf16.gmra.mxu1 %v4704_v41  ;;  %v4748_v15 = vor.u32 %v4747_v12, %v4744_v22  ;;  %v4765_v36 = vrot.slane %v4763_v62, 4  ;;  %v4328_v27 = vrot.slane %v12534_v7, 2  ;;  %v13009_v4 = vor.u32 %v4729_v33, %v4726_v40  ;;  %vm15804_vm0 = vmmov %vm15775_vm2  ;;  %v8283_v41 = vld [vmem:[#allocation7 + $0x70] sm:$0xff]   ;;  %v15818_v5 = vld [vmem:[#allocation89_spill] sm:$0xff] }
 0x3a7   : > { %15801 = vst [vmem:[#allocation92_spill] sm:$0xff] %v13003_v19  ;;  %5314 = vmatprep.mubr.bf16.mxu1 %v4740_v39  ;;  %v4751_v58 = vshrl.u32 %v12976_v23, 16  ;;  %v15803_v2 = vrot.slane %v12519_v53, 2  ;;  %vm15807_vm8 = vnez %v15806_v61  ;;  %v4771_v22 = vrot.slane %v4769_v13, 3  ;;  %vm15808_vm13 = vmmov %vm15804_vm0  ;;  %5947 = vmatpush2.bf16.msra.mxu1 %v8283_v41  ;;  %v8285_v41 = vld [vmem:[#allocation7 + $0x68] sm:$0xff]  }
 0x3a8   : > { %vm998_vm1 = vmand %vm15807_vm8, %vm976_vm10  ;;  %v4774_v12 = vrot.slane %v4772_v46, 4  ;;  %v4754_v29 = vshll.u32 %v12976_v23, 16  ;;  %v13023_v62 = vsel %vm15808_vm13, %v4324_v44, %v4326_v48  ;;  %v4787_v33 = vshrl.u32 %v13003_v19, 16  ;;  %5948 = vmatprep.subr.bf16.mxu1 %v15694_v57  ;;  %v8288_v23 = vld [vmem:[#allocation7 + $0x58] sm:$0xff]  }
 0x3a9   : > { %v13015_v47 = vsel %vm15804_vm0, %v15803_v2, %v4324_v44  ;;  %15809 = vst [vmem:[#allocation85_spill] sm:$0xff] %v13023_v62  ;;  %v4790_v6 = vshll.u32 %v13003_v19, 16  ;;  %v15810_v39 = vrot.slane %v12529_v54, 1  ;;  %vm15811_vm3 = vmmov %vm15790_vm12  ;;  %v13036_v13 = vor.u32 %v4765_v36, %v4762_v34  ;;  %v15823_v36 = vld [vmem:[#allocation84_spill] sm:$0xff] }
 0x3aa   : > { %15805 = vst [vmem:[#allocation122_spill] sm:$0xff] %v13015_v47  ;;  %vm15813_vm2 = vmmov %vm15802_vm5  ;;  %v13040_v44 = vpack.c.bf16 %v13023_v62, %v13015_v47  ;;  %v15815_v61 = vrot.slane %v12938_v51, 1  ;;  %v13049_v19 = vsel %vm998_vm1, %v15819_v37, %v15818_v5  ;;  %vm15824_vm14 = vnez %v15823_v36 }
 0x3ab   : > { %v13032_v2 = vsel %vm15811_vm3, %v15810_v39, %v4231_v38  ;;  %v4749_v46 = vsel %vm15813_vm2, %v12906_v59, %v4748_v15  ;;  %vm15816_vm6 = vmmov %vm15811_vm3  ;;  %15820 = vst [vmem:[#allocation89_spill] sm:$0xff] %v13049_v19  ;;  %v4235_v39 = vrot.slane %v12989_v21, 1  ;;  %v13056_v59 = vpack.c.bf16 %v12524_v0, %v12519_v53  ;;  %5949 = vmatpush2.bf16.msra.mxu1 %v8285_v41 }
 0x3ac   : > { %15812 = vst [vmem:[#allocation123_spill] sm:$0xff] %v13032_v2  ;;  %15814 = vst [vmem:[#allocation124_spill] sm:$0xff] %v13040_v44  ;;  %v13045_v40 = vsel %vm15816_vm6, %v4231_v38, %v15815_v61  ;;  %7795 = vmatmul.mubr.bf16.gmra.mxu0 %v4749_v46  ;;  %v13068_v37 = vor.u32 %v4774_v12, %v4771_v22  ;;  %v4753_v5 = vrot.slane %v4751_v58, 3  ;;  %v15828_v61 = vld [vmem:[#allocation38_spill] sm:$0xff]  ;;  %v4789_v36 = vrot.slane %v4787_v33, 3 }
 0x3ad   : > { %15817 = vst [vmem:[#allocation125_spill] sm:$0xff] %v13045_v40  ;;  %vm15821_vm7 = vmmov %vm15813_vm2  ;;  %7798 = vmatprep.mubr.msk.bf16.mxu0 %vm15678_vm4, %v15655_v42  ;;  %v13072_v46 = vpack.c.bf16 %v13045_v40, %v13032_v2  ;;  %vm15829_vm12 = vnez %v15828_v61  ;;  %v4792_v0 = vrot.slane %v4790_v6, 4  ;;  %v15832_v58 = vrot.slane %v12938_v51, 2  ;;  %v15836_v6 = vld [vmem:[#allocation44_spill] sm:$0xff]  ;;  %v15837_v40 = vld [vmem:[#allocation65_spill] sm:$0xff]  ;;  %5950 = vmatprep.subr.bf16.mxu1 %v15694_v57 }
 0x3ae   : > { %v4731_v34 = vsel %vm15821_vm7, %v4703_v52, %v13009_v4  ;;  %15822 = vst [vmem:[#allocation87_spill] sm:$0xff] %v13056_v59  ;;  %vm13062_vm9 = vmand %vm15824_vm14, %vm976_vm10  ;;  %v4756_v52 = vrot.slane %v4754_v29, 4  ;;  %v4237_v12 = vrot.slane %v13049_v19, 1  ;;  %v4796_v61 = vshrl.u32 %v13040_v44, 16  ;;  %v15840_v2 = vld [vmem:[#allocation47_spill] sm:$0xff] }
 0x3af   : > { %15827 = vst [vmem:[#allocation84_spill] sm:$0xff] %v13072_v46  ;;  %vm1000_vm15 = vmand %vm15829_vm12, %vm976_vm10  ;;  %5315 = vmatmul.mubr.bf16.gmra.mxu1 %v4731_v34  ;;  %v4799_v33 = vshll.u32 %v13040_v44, 16  ;;  %v15839_v34 = vld [vmem:[#allocation94_spill] sm:$0xff]  ;;  %v4817_v47 = vshll.u32 %v13072_v46, 16  ;;  %v4332_v38 = vrot.slane %v12989_v21, 2 }
 0x3b0   : > { %vm15830_vm11 = vmmov %vm15804_vm0  ;;  %v13103_v53 = vsel %vm1000_vm15, %v15840_v2, %v15839_v34  ;;  %v15844_v2 = vld [vmem:[#allocation69_spill] sm:$0xff]  ;;  %v4798_v41 = vrot.slane %v4796_v61, 3  ;;  %v15866_v34 = vrot.slane %v12938_v51, 2 }
 0x3b1   : > { %v13080_v62 = vsel %vm15830_vm11, %v4326_v48, %v4328_v27  ;;  %vm15833_vm5 = vmmov %vm15804_vm0  ;;  %v13097_v48 = vsel %vm13062_vm9, %v15837_v40, %v15836_v6  ;;  %15841 = vst [vmem:[#allocation65_spill] sm:$0xff] %v13103_v53  ;;  %v8286_v40 = vld [vmem:[#allocation7 + $0x60] sm:$0xff]   ;;  %v4757_v6 = vor.u32 %v4756_v52, %v4753_v5  ;;  %vm15845_vm1 = vnez %v15844_v2 }
 0x3b2   : > { %15831 = vst [vmem:[#allocation38_spill] sm:$0xff] %v13080_v62  ;;  %v13085_v22 = vsel %vm15833_vm5, %v4328_v27, %v15832_v58  ;;  %vm15835_vm0 = vmmov %vm15813_vm2  ;;  %v4778_v27 = vshrl.u32 %v13056_v59, 16  ;;  %v4781_v58 = vshll.u32 %v13056_v59, 16  ;;  %v13114_v59 = vor.u32 %v4792_v0, %v4789_v36  ;;  %5951 = vmatpush2.bf16.msra.mxu1 %v8286_v40  ;;  %v15862_v40 = vld [vmem:[#allocation57_spill] sm:$0xff] }
 0x3b3   : > { %15834 = vst [vmem:[#allocation126_spill] sm:$0xff] %v13085_v22  ;;  %v4767_v29 = vsel %vm15835_vm0, %v12958_v18, %v13036_v13  ;;  %15838 = vst [vmem:[#allocation44_spill] sm:$0xff] %v13097_v48  ;;  %v4814_v18 = vshrl.u32 %v13072_v46, 16  ;;  %v13109_v44 = vpack.c.bf16 %v13085_v22, %v13080_v62  ;;  %v4801_v22 = vrot.slane %v4799_v33, 4  ;;  %5952 = vmatprep.subr.bf16.mxu1 %v15694_v57 }
 0x3b4   : > { %5322 = vmatprep.mubr.bf16.mxu1 %v4767_v29  ;;  %vm15843_vm8 = vmmov %vm15835_vm0  ;;  %v15848_v62 = vrot.slane %v12938_v51, 1  ;;  %v4780_v36 = vrot.slane %v4778_v27, 3  ;;  %v4783_v61 = vrot.slane %v4781_v58, 4  ;;  %v4819_v33 = vrot.slane %v4817_v47, 4  ;;  %v15859_v47 = vld [vmem:[#allocation43_spill] sm:$0xff] }
 0x3b5   : > { %15842 = vst [vmem:[#allocation94_spill] sm:$0xff] %v13109_v44  ;;  %v4776_v29 = vsel %vm15843_vm8, %v4748_v15, %v13068_v37  ;;  %vm13121_vm13 = vmand %vm15845_vm1, %vm976_vm10  ;;  %v15852_v15 = vld [vmem:[#allocation27_spill] sm:$0xff]  ;;  %v4823_v2 = vshrl.u32 %v13109_v44, 16  ;;  %v4239_v52 = vrot.slane %v13097_v48, 1  ;;  %v15869_v5 = vrot.slane %v13049_v19, 2 }
 0x3b6   : > { %v13128_v46 = vsel %vm15811_vm3, %v15848_v62, %v4235_v39  ;;  %vm15850_vm2 = vmmov %vm15811_vm3  ;;  %vm15853_vm6 = vnez %v15852_v15  ;;  %7799 = vmatmul.mubr.bf16.gmra.mxu0 %v4776_v29  ;;  %v13144_v62 = vpack.c.bf16 %v12534_v7, %v12529_v54  ;;  %v4826_v15 = vshll.u32 %v13109_v44, 16  ;;  %v15863_v54 = vld [vmem:[#allocation19_spill] sm:$0xff]  ;;  %5953 = vmatpush2.bf16.msra.mxu1 %v8288_v23 }
 0x3b7   : > { %15849 = vst [vmem:[#allocation47_spill] sm:$0xff] %v13128_v46  ;;  %v13131_v0 = vsel %vm15850_vm2, %v4235_v39, %v4237_v12  ;;  %vm13137_vm7 = vmand %vm15853_vm6, %vm976_vm10  ;;  %7802 = vmatprep.mubr.msk.bf16.mxu0 %vm15678_vm4, %v15655_v42  ;;  %v4816_v39 = vrot.slane %v4814_v18, 3  ;;  %v15860_v18 = vld [vmem:[#allocation35_spill] sm:$0xff]  ;;  %5954 = vmatprep.subr.bf16.mxu1 %v15694_v57 }
 0x3b8   : > { %15851 = vst [vmem:[#allocation69_spill] sm:$0xff] %v13131_v0  ;;  %15856 = vst [vmem:[#allocation27_spill] sm:$0xff] %v13144_v62  ;;  %v13156_v29 = vpack.c.bf16 %v13131_v0, %v13128_v46  ;;  %v13163_v7 = vsel %vm13121_vm13, %v15860_v18, %v15859_v47  ;;  %v13169_v27 = vsel %vm13137_vm7, %v15863_v54, %v15862_v40  ;;  %v4805_v44 = vshrl.u32 %v13144_v62, 16 }
 0x3b9   : > { %vm15857_vm14 = vmmov %vm15835_vm0  ;;  %15861 = vst [vmem:[#allocation43_spill] sm:$0xff] %v13163_v7  ;;  %v4802_v0 = vor.u32 %v4801_v22, %v4798_v41  ;;  %v13174_v46 = vor.u32 %v4783_v61, %v4780_v36  ;;  %v4825_v18 = vrot.slane %v4823_v2, 3  ;;  %v4808_v22 = vshll.u32 %v13144_v62, 16  ;;  %v8289_v41 = vld [vmem:[#allocation7 + $0x50] sm:$0xff]  }
 0x3ba   : > { %v4758_v58 = vsel %vm15857_vm14, %v13009_v4, %v4757_v6  ;;  %15858 = vst [vmem:[#allocation127_spill] sm:$0xff] %v13156_v29  ;;  %15864 = vst [vmem:[#allocation35_spill] sm:$0xff] %v13169_v27  ;;  %v4841_v36 = vshrl.u32 %v13156_v29, 16  ;;  %v4844_v61 = vshll.u32 %v13156_v29, 16  ;;  %5955 = vmatpush2.bf16.msra.mxu1 %v8289_v41 }
 0x3bb   : > { %5323 = vmatmul.mubr.bf16.gmra.mxu1 %v4758_v58  ;;  %vm15865_vm9 = vmmov %vm15835_vm0  ;;  %v13187_v58 = vor.u32 %v4819_v33, %v4816_v39  ;;  %v4336_v39 = vrot.slane %v13097_v48, 2  ;;  %v4338_v33 = vrot.slane %v13103_v53, 2  ;;  %v4803_v23 = vsel %vm15835_vm0, %v13068_v37, %v4802_v0  ;;  %5956 = vmatprep.subr.bf16.mxu1 %v15694_v57 }
 0x3bc   : > { %v4794_v4 = vsel %vm15865_vm9, %v13036_v13, %v13114_v59  ;;  %vm15867_vm12 = vmmov %vm15833_vm5  ;;  %v4828_v13 = vrot.slane %v4826_v15, 4 }
 0x3bd   : > { %5330 = vmatprep.mubr.bf16.mxu1 %v4794_v4  ;;  %v13180_v47 = vsel %vm15867_vm12, %v15866_v34, %v4332_v38  ;;  %vm15870_vm15 = vmmov %vm15833_vm5  ;;  %v15874_v4 = vrot.slane %v13103_v53, 1  ;;  %v15877_v34 = vld [vmem:[#allocation70_spill] sm:$0xff] }
 0x3be   : > { %15868 = vst [vmem:[#allocation57_spill] sm:$0xff] %v13180_v47  ;;  %v13185_v54 = vsel %vm15870_vm15, %v4332_v38, %v15869_v5  ;;  %vm15872_vm11 = vmmov %vm15850_vm2  ;;  %7803 = vmatmul.mubr.bf16.gmra.mxu0 %v4803_v23  ;;  %vm15878_vm8 = vnez %v15877_v34  ;;  %v4810_v23 = vrot.slane %v4808_v22, 4  ;;  %v15883_v22 = vrot.slane %v13049_v19, 2 }
 0x3bf   : > { %15871 = vst [vmem:[#allocation19_spill] sm:$0xff] %v13185_v54  ;;  %v13193_v40 = vsel %vm15872_vm11, %v4237_v12, %v4239_v52  ;;  %vm15875_vm5 = vmmov %vm15850_vm2  ;;  %v13207_v2 = vpack.c.bf16 %v13185_v54, %v13180_v47  ;;  %v4243_v12 = vrot.slane %v13163_v7, 1  ;;  %7806 = vmatprep.mubr.msk.bf16.mxu0 %vm15678_vm4, %v15655_v42  ;;  %v13234_v54 = vor.u32 %v4828_v13, %v4825_v18  ;;  %v15889_v18 = vld [vmem:[#allocation71_spill] sm:$0xff] }
 0x3c0   : > { %15873 = vst [vmem:[#allocation128_spill] sm:$0xff] %v13193_v40  ;;  %v13198_v38 = vsel %vm15875_vm5, %v4239_v52, %v15874_v4  ;;  %v13213_v52 = vpack.c.bf16 %v12989_v21, %v12938_v51  ;;  %vm13219_vm1 = vmand %vm15878_vm8, %vm976_vm10  ;;  %v4807_v4 = vrot.slane %v4805_v44, 3  ;;  %v8291_v21 = vld [vmem:[#allocation7 + $0x48] sm:$0xff]   ;;  %v4843_v51 = vrot.slane %v4841_v36, 3 }
 0x3c1   : > { %15876 = vst [vmem:[#allocation129_spill] sm:$0xff] %v13198_v38  ;;  %vm15881_vm13 = vmmov %vm15835_vm0  ;;  %v13229_v15 = vpack.c.bf16 %v13198_v38, %v13193_v40  ;;  %v4846_v47 = vrot.slane %v4844_v61, 4  ;;  %v4850_v44 = vshrl.u32 %v13207_v2, 16  ;;  %5957 = vmatpush2.bf16.msra.mxu1 %v8291_v21  ;;  %v15896_v40 = vrot.slane %v13103_v53, 1 }
 0x3c2   : > { %v4785_v37 = vsel %vm15881_vm13, %v4757_v6, %v13174_v46  ;;  %vm15882_vm3 = vmmov %vm15835_vm0  ;;  %v4853_v6 = vshll.u32 %v13207_v2, 16  ;;  %v4832_v36 = vshrl.u32 %v13213_v52, 16  ;;  %v4835_v61 = vshll.u32 %v13213_v52, 16  ;;  %5958 = vmatprep.subr.bf16.mxu1 %v15694_v57 }
 0x3c3   : > { %v4821_v34 = vsel %vm15882_vm3, %v13114_v59, %v13187_v58  ;;  %5331 = vmatmul.mubr.bf16.gmra.mxu1 %v4785_v37  ;;  %vm15884_vm2 = vmmov %vm15867_vm12  ;;  %v15888_v59 = vld [vmem:[#allocation90_spill] sm:$0xff]  ;;  %v15891_v37 = vld [vmem:[#allocation39_spill] sm:$0xff]  ;;  %v4868_v5 = vshrl.u32 %v13229_v15, 16  ;;  %v4811_v29 = vor.u32 %v4810_v23, %v4807_v4  ;;  %v4847_v62 = vor.u32 %v4846_v47, %v4843_v51 }
 0x3c4   : > { %v13242_v41 = vsel %vm15884_vm2, %v15883_v22, %v4336_v39  ;;  %vm15886_vm6 = vmmov %vm15884_vm2  ;;  %v13251_v13 = vsel %vm13219_vm1, %v15889_v18, %v15888_v59  ;;  %5338 = vmatprep.mubr.bf16.mxu1 %v4821_v34  ;;  %vm15892_vm7 = vnez %v15891_v37  ;;  %v4871_v34 = vshll.u32 %v13229_v15, 16  ;;  %v8293_v59 = vld [vmem:[#allocation7 + $0x40] sm:$0xff]   ;;  %v15902_v51 = vld [vmem:[#allocation50_spill] sm:$0xff] }
 0x3c5   : > { %15885 = vst [vmem:[#allocation70_spill] sm:$0xff] %v13242_v41  ;;  %v13245_v38 = vsel %vm15886_vm6, %v4336_v39, %v4338_v33  ;;  %15890 = vst [vmem:[#allocation90_spill] sm:$0xff] %v13251_v13  ;;  %v4340_v39 = vrot.slane %v13163_v7, 2  ;;  %v4852_v25 = vrot.slane %v4850_v44, 3  ;;  %v4855_v17 = vrot.slane %v4853_v6, 4  ;;  %v15906_v47 = vld [vmem:[#allocation77_spill] sm:$0xff]  ;;  %5959 = vmatpush2.bf16.msra.mxu1 %v8293_v59 }
 0x3c6   : > { %15887 = vst [vmem:[#allocation130_spill] sm:$0xff] %v13245_v38  ;;  %vm13259_vm14 = vmand %vm15892_vm7, %vm976_vm10  ;;  %v13271_v37 = vpack.c.bf16 %v13245_v38, %v13242_v41  ;;  %v15899_v21 = vrot.slane %v13169_v27, 1  ;;  %vm15903_vm11 = vnez %v15902_v51  ;;  %v15907_v4 = vld [vmem:[#allocation48_spill] sm:$0xff]  ;;  %v4837_v44 = vrot.slane %v4835_v61, 4  ;;  %6509 = vmatprep.subr.bf16.mxu1 %v15694_v57 }
 0x3c7   : > { %vm15895_vm9 = vmmov %vm15835_vm0  ;;  %v13296_v23 = vsel %vm13259_vm14, %v15907_v4, %v15906_v47  ;;  %v15909_v6 = vld [vmem:[#allocation32_spill] sm:$0xff]  ;;  %v4870_v22 = vrot.slane %v4868_v5, 3  ;;  %v4873_v51 = vrot.slane %v4871_v34, 4  ;;  %v15915_v61 = vrot.slane %v13169_v27, 2  ;;  %v15919_v34 = vld [vmem:[#allocation26_spill] sm:$0xff] }
 0x3c8   : > { %v4830_v18 = vsel %vm15895_vm9, %v4802_v0, %v13234_v54  ;;  %vm15897_vm12 = vmmov %vm15875_vm5  ;;  %15908 = vst [vmem:[#allocation50_spill] sm:$0xff] %v13296_v23  ;;  %vm15910_vm0 = vnez %v15909_v6  ;;  %v4812_v47 = vsel %vm15882_vm3, %v13174_v46, %v4811_v29  ;;  %v4877_v4 = vshrl.u32 %v13271_v37, 16 }
 0x3c9   : > { %v13277_v8 = vsel %vm15897_vm12, %v15896_v40, %v4243_v12  ;;  %vm15900_vm15 = vmmov %vm15875_vm5  ;;  %7807 = vmatmul.mubr.bf16.gmra.mxu0 %v4830_v18  ;;  %v4834_v40 = vrot.slane %v4832_v36, 3  ;;  %v4880_v6 = vshll.u32 %v13271_v37, 16  ;;  %v4856_v59 = vor.u32 %v4855_v17, %v4852_v25 }
 0x3ca   : > { %15898 = vst [vmem:[#allocation71_spill] sm:$0xff] %v13277_v8  ;;  %v13282_v28 = vsel %vm15900_vm15, %v4243_v12, %v15899_v21  ;;  %vm13288_vm5 = vmand %vm15903_vm11, %vm976_vm10  ;;  %v13300_v12 = vpack.c.bf16 %v13097_v48, %v13049_v19  ;;  %7810 = vmatprep.mubr.msk.bf16.mxu0 %vm15678_vm4, %v15655_v42  ;;  %v15923_v48 = vld [vmem:[#allocation82_spill] sm:$0xff] }
 0x3cb   : > { %15901 = vst [vmem:[#allocation39_spill] sm:$0xff] %v13282_v28  ;;  %vm13306_vm8 = vmand %vm15910_vm0, %vm976_vm10  ;;  %v13326_v5 = vpack.c.bf16 %v13282_v28, %v13277_v8  ;;  %5339 = vmatmul.mubr.bf16.gmra.mxu1 %v4812_v47  ;;  %v4247_v28 = vrot.slane %v13251_v13, 1  ;;  %v4249_v8 = vrot.slane %v13296_v23, 1  ;;  %v4838_v47 = vor.u32 %v4837_v44, %v4834_v40 }
 0x3cc   : > { %vm15913_vm1 = vmmov %vm15884_vm2  ;;  %v4859_v17 = vshrl.u32 %v13300_v12, 16  ;;  %v4862_v25 = vshll.u32 %v13300_v12, 16  ;;  %v4882_v21 = vrot.slane %v4880_v6, 4 }
 0x3cd   : > { %v13313_v36 = vsel %vm15913_vm1, %v4338_v33, %v4340_v39  ;;  %vm15916_vm13 = vmmov %vm15913_vm1  ;;  %v15918_v33 = vld [vmem:[#allocation72_spill] sm:$0xff]  ;;  %v4898_v44 = vshll.u32 %v13326_v5, 16 }
 0x3ce   : > { %15914 = vst [vmem:[#allocation77_spill] sm:$0xff] %v13313_v36  ;;  %v13318_v18 = vsel %vm15916_vm13, %v4340_v39, %v15915_v61  ;;  %v13333_v39 = vsel %vm13288_vm5, %v15919_v34, %v15918_v33  ;;  %vm15921_vm2 = vmmov %vm15882_vm3  ;;  %v15922_v61 = vld [vmem:[#allocation51_spill] sm:$0xff]  ;;  %v13349_v33 = vor.u32 %v4873_v51, %v4870_v22  ;;  %v13356_v34 = vpack.c.bf16 %v13163_v7, %v13103_v53 }
 0x3cf   : > { %15917 = vst [vmem:[#allocation48_spill] sm:$0xff] %v13318_v18  ;;  %15920 = vst [vmem:[#allocation32_spill] sm:$0xff] %v13333_v39  ;;  %v4848_v46 = vsel %vm15921_vm2, %v13187_v58, %v4847_v62  ;;  %v13341_v38 = vsel %vm13306_vm8, %v15923_v48, %v15922_v61  ;;  %v13347_v0 = vpack.c.bf16 %v13318_v18, %v13313_v36  ;;  %v4879_v58 = vrot.slane %v4877_v4, 3  ;;  %v15931_v18 = vld [vmem:[#allocation56_spill] sm:$0xff] }
 0x3d0   : > { %15924 = vst [vmem:[#allocation72_spill] sm:$0xff] %v13341_v38  ;;  %5346 = vmatprep.mubr.bf16.mxu1 %v4848_v46  ;;  %v4895_v48 = vshrl.u32 %v13326_v5, 16  ;;  %v4344_v46 = vrot.slane %v13251_v13, 2  ;;  %v4346_v61 = vrot.slane %v13296_v23, 2  ;;  %vm15925_vm6 = vmmov %vm15921_vm2  ;;  %v15926_v4 = vrot.slane %v13169_v27, 1 }
 0x3d1   : > { %v4857_v40 = vsel %vm15925_vm6, %v13234_v54, %v4856_v59  ;;  %v4904_v22 = vshrl.u32 %v13347_v0, 16  ;;  %v4907_v51 = vshll.u32 %v13347_v0, 16  ;;  %vm15927_vm7 = vmmov %vm15897_vm12  ;;  %vm15932_vm9 = vnez %v15931_v18 }
 0x3d2   : > { %7811 = vmatmul.mubr.bf16.gmra.mxu0 %v4857_v40  ;;  %v13368_v6 = vsel %vm15927_vm7, %v15926_v4, %v4247_v28  ;;  %vm15929_vm14 = vmmov %vm15927_vm7  ;;  %v4861_v4 = vrot.slane %v4859_v17, 3  ;;  %v4864_v36 = vrot.slane %v4862_v25, 4  ;;  %v4883_v19 = vor.u32 %v4882_v21, %v4879_v58 }
 0x3d3   : > { %15928 = vst [vmem:[#allocation26_spill] sm:$0xff] %v13368_v6  ;;  %v13371_v7 = vsel %vm15929_vm14, %v4247_v28, %v4249_v8  ;;  %vm13377_vm12 = vmand %vm15932_vm9, %vm976_vm10  ;;  %7814 = vmatprep.mubr.msk.bf16.mxu0 %vm15678_vm4, %v15655_v42  ;;  %v15937_v28 = vld [vmem:[#allocation60_spill] sm:$0xff]  ;;  %v4897_v41 = vrot.slane %v4895_v48, 3  ;;  %v4889_v10 = vshll.u32 %v13356_v34, 16  ;;  %v15941_v25 = vrot.slane %v13169_v27, 2 }
 0x3d4   : > { %15930 = vst [vmem:[#allocation51_spill] sm:$0xff] %v13371_v7  ;;  %vm15935_vm15 = vmmov %vm15921_vm2  ;;  %vm15938_vm5 = vnez %v15937_v28  ;;  %v13398_v17 = vpack.c.bf16 %v13371_v7, %v13368_v6  ;;  %v13406_v20 = vsel %vm15913_vm1, %v4344_v46, %v4346_v61  ;;  %v4251_v58 = vrot.slane %v13333_v39, 1  ;;  %v15948_v6 = vld [vmem:[#allocation76_spill] sm:$0xff] }
 0x3d5   : > { %v4839_v40 = vsel %vm15935_vm15, %v4811_v29, %v4838_v47  ;;  %vm15936_vm11 = vmmov %vm15921_vm2  ;;  %v4886_v29 = vshrl.u32 %v13356_v34, 16  ;;  %15944 = vst [vmem:[#allocation56_spill] sm:$0xff] %v13406_v20  ;;  %v4253_v21 = vrot.slane %v13341_v38, 1  ;;  %v4906_v48 = vrot.slane %v4904_v22, 3 }
 0x3d6   : > { %v4875_v53 = vsel %vm15936_vm11, %v4847_v62, %v13349_v33  ;;  %vm13390_vm0 = vmand %vm15938_vm5, %vm976_vm10  ;;  %5347 = vmatmul.mubr.bf16.gmra.mxu1 %v4839_v40  ;;  %v4900_v62 = vrot.slane %v4898_v44, 4  ;;  %v4909_v40 = vrot.slane %v4907_v51, 4  ;;  %v15945_v44 = vld [vmem:[#allocation37_spill] sm:$0xff]  ;;  %v4865_v1 = vor.u32 %v4864_v36, %v4861_v4 }
 0x3d7   : > { %vm15942_vm8 = vmmov %vm15913_vm1  ;;  %5354 = vmatprep.mubr.bf16.mxu1 %v4875_v53  ;;  %v13414_v7 = vsel %vm13377_vm12, %v15946_v45, %v15945_v44  ;;  %v15951_v53 = vld [vmem:[#allocation88_spill] sm:$0xff]  ;;  %v14805_v22 = vrot.slane %v13341_v38, 2  ;;  %v4884_v51 = vsel %vm15921_vm2, %v4856_v59, %v4883_v19  ;;  %v4888_v45 = vrot.slane %v4886_v29, 3 }
 0x3d8   : > { %v13403_v28 = vsel %vm15942_vm8, %v15941_v25, %v4344_v46  ;;  %15947 = vst [vmem:[#allocation60_spill] sm:$0xff] %v13414_v7  ;;  %v13420_v25 = vsel %vm13390_vm0, %v15949_v50, %v15948_v6  ;;  %v4348_v46 = vrot.slane %v13333_v39, 2  ;;  %vm15952_vm13 = vnez %v15951_v53  ;;  %vm15955_vm6 = vmmov %vm15927_vm7  ;;  %v15956_v44 = vld [vmem:[#allocation64_spill] sm:$0xff] }
 0x3d9   : > { %15943 = vst [vmem:[#allocation82_spill] sm:$0xff] %v13403_v28  ;;  %15950 = vst [vmem:[#allocation37_spill] sm:$0xff] %v13420_v25  ;;  %v13431_v54 = vpack.c.bf16 %v13406_v20, %v13403_v28  ;;  %v4901_v18 = vor.u32 %v4900_v62, %v4897_v41  ;;  %v4891_v50 = vrot.slane %v4889_v10, 4  ;;  %v4922_v6 = vshrl.u32 %v13398_v17, 16  ;;  %v15957_v41 = vld [vmem:[#allocation54_spill] sm:$0xff] }
 0x3da   : > { %vm1009_vm3 = vmand %vm15952_vm13, %vm976_vm10  ;;  %v4925_v36 = vshll.u32 %v13398_v17, 16  ;;  %7815 = vmatmul.mubr.bf16.gmra.mxu0 %v4884_v51  ;;  %v13435_v24 = vor.u32 %v4909_v40, %v4906_v48  ;;  %v13439_v4 = vpack.c.bf16 %v13251_v13, %v13169_v27  ;;  %v13445_v29 = vsel %vm15955_vm6, %v4251_v58, %v4253_v21 }
 0x3db   : > { %vm15953_vm10 = vmmov %vm15927_vm7  ;;  %v13449_v10 = vsel %vm1009_vm3, %v15957_v41, %v15956_v44  ;;  %v4255_v62 = vrot.slane %v13414_v7, 1  ;;  %7818 = vmatprep.mubr.msk.bf16.mxu0 %vm15678_vm4, %v15655_v42  ;;  %v13456_v48 = vrot.slane %v13420_v25, 1  ;;  %v4934_v40 = vshll.u32 %v13431_v54, 16 }
 0x3dc   : > { %v13442_v59 = vsel %vm15953_vm10, %v4249_v8, %v4251_v58  ;;  %15958 = vst [vmem:[#allocation76_spill] sm:$0xff] %v13449_v10  ;;  %vm15959_vm7 = vmmov %vm15921_vm2  ;;  %v4931_v8 = vshrl.u32 %v13431_v54, 16  ;;  %v4924_v44 = vrot.slane %v4922_v6, 3  ;;  %v4927_v41 = vrot.slane %v4925_v36, 4  ;;  %v15965_v36 = vld [vmem:[#allocation42_spill] sm:$0xff] }
 0x3dd   : > { %15954 = vst [vmem:[#allocation46_spill] sm:$0xff] %v13442_v59  ;;  %v4866_v53 = vsel %vm15959_vm7, %v4838_v47, %v4865_v1  ;;  %vm15960_vm14 = vmmov %vm15913_vm1  ;;  %v13472_v13 = vpack.c.bf16 %v13445_v29, %v13442_v59  ;;  %v4352_v20 = vrot.slane %v13414_v7, 2  ;;  %v4892_v27 = vor.u32 %v4891_v50, %v4888_v45 }
 0x3de   : > { %v13461_v58 = vsel %vm15960_vm14, %v4346_v61, %v4348_v46  ;;  %vm15962_vm9 = vmmov %vm15913_vm1  ;;  %5355 = vmatmul.mubr.bf16.gmra.mxu1 %v4866_v53  ;;  %v4916_v53 = vshll.u32 %v13439_v4, 16  ;;  %v4498_v6 = vrot.slane %v13449_v10, 2  ;;  %v4933_v59 = vrot.slane %v4931_v8, 3 }
 0x3df   : > { %15961 = vst [vmem:[#allocation40_spill] sm:$0xff] %v13461_v58  ;;  %v13466_v51 = vsel %vm15962_vm9, %v4348_v46, %v14805_v22  ;;  %vm15963_vm12 = vmmov %vm15921_vm2  ;;  %v4913_v46 = vshrl.u32 %v13439_v4, 16  ;;  %v4500_v22 = vrot.slane %v15965_v36, 2  ;;  %v4936_v28 = vrot.slane %v4934_v40, 4 }
 0x3e0   : > { %v4902_v47 = vsel %vm15963_vm12, %v13349_v33, %v4901_v18  ;;  %vm15964_vm15 = vmmov %vm15921_vm2  ;;  %v13481_v33 = vpack.c.bf16 %v13466_v51, %v13461_v58  ;;  %v4928_v45 = vor.u32 %v4927_v41, %v4924_v44  ;;  %v4949_v50 = vshrl.u32 %v13472_v13, 16 }
 0x3e1   : > { %5362 = vmatprep.mubr.bf16.mxu1 %v4902_v47  ;;  %v4911_v61 = vsel %vm15964_vm15, %v4883_v19, %v13435_v24  ;;  %vm15966_vm11 = vmmov %vm15955_vm6  ;;  %v4952_v60 = vshll.u32 %v13472_v13, 16  ;;  %v13496_v58 = vpack.c.bf16 %v13333_v39, %v13296_v23  ;;  %v13499_v56 = vrot.slane %v13420_v25, 2 }
 0x3e2   : > { %v13486_v47 = vsel %vm15966_vm11, %v4253_v21, %v4255_v62  ;;  %vm15967_vm5 = vmmov %vm15955_vm6  ;;  %7819 = vmatmul.mubr.bf16.gmra.mxu0 %v4911_v61  ;;  %v4490_v8 = vrot.slane %v13449_v10, 1  ;;  %v4958_v40 = vshrl.u32 %v13481_v33, 16  ;;  %v4961_v44 = vshll.u32 %v13481_v33, 16 }
 0x3e3   : > { %v13490_v19 = vsel %vm15967_vm5, %v4255_v62, %v13456_v48  ;;  %vm15969_vm0 = vmmov %vm15921_vm2  ;;  %v13504_v62 = vrot.slane %v15965_v36, 1  ;;  %7822 = vmatprep.mubr.msk.bf16.mxu0 %vm15678_vm4, %v15655_v42  ;;  %v4915_v39 = vrot.slane %v4913_v46, 3  ;;  %v4918_v23 = vrot.slane %v4916_v53, 4 }
 0x3e4   : > { %15968 = vst [vmem:[#allocation88_spill] sm:$0xff] %v13490_v19  ;;  %v4893_v21 = vsel %vm15969_vm0, %v4865_v1, %v4892_v27  ;;  %v13512_v41 = vpack.c.bf16 %v13490_v19, %v13486_v47  ;;  %vm15971_vm8 = vmmov %vm15913_vm1  ;;  %v4937_v1 = vor.u32 %v4936_v28, %v4933_v59  ;;  %v13519_v35 = vsel %vm15913_vm1, %v4500_v22, %v15973_v63 }
 0x3e5   : > { %15970 = vst [vmem:[#allocation64_spill] sm:$0xff] %v13504_v62  ;;  %v13515_v61 = vsel %vm15971_vm8, %v4498_v6, %v4500_v22  ;;  %15974 = vst [vmem:[#allocation42_spill] sm:$0xff] %v13519_v35  ;;  %v4951_v9 = vrot.slane %v4949_v50, 3  ;;  %v4954_v16 = vrot.slane %v4952_v60, 4  ;;  %v4940_v31 = vshrl.u32 %v13496_v58, 16 }
 0x3e6   : > { %15972 = vst [vmem:[#allocation54_spill] sm:$0xff] %v13515_v61  ;;  %5363 = vmatmul.mubr.bf16.gmra.mxu1 %v4893_v21  ;;  %vm15975_vm13 = vmmov %vm15969_vm0  ;;  %v4943_v11 = vshll.u32 %v13496_v58, 16  ;;  %v15976_v57 = vrot.slane %v13341_v38, 2  ;;  %v4963_v46 = vrot.slane %v4961_v44, 4  ;;  %v4976_v60 = vshrl.u32 %v13512_v41, 16 }
 0x3e7   : > { %v4929_v26 = vsel %vm15975_vm13, %v4901_v18, %v4928_v45  ;;  %vm15977_vm3 = vmmov %vm15913_vm1  ;;  %v4960_v18 = vrot.slane %v4958_v40, 3  ;;  %v4919_v50 = vor.u32 %v4918_v23, %v4915_v39  ;;  %v4955_v21 = vor.u32 %v4954_v16, %v4951_v9 }
 0x3e8   : > { %5370 = vmatprep.mubr.bf16.mxu1 %v4929_v26  ;;  %v13527_v28 = vsel %vm15977_vm3, %v15976_v57, %v4352_v20  ;;  %vm15979_vm2 = vmmov %vm15913_vm1  ;;  %v4979_v26 = vshll.u32 %v13512_v41, 16  ;;  %v4942_v44 = vrot.slane %v4940_v31, 3  ;;  %v4945_v22 = vrot.slane %v4943_v11, 4 }
 0x3e9   : > { %15978 = vst [vmem:[#allocation91_spill] sm:$0xff] %v13527_v28  ;;  %v13531_v59 = vsel %vm15979_vm2, %v4352_v20, %v13499_v56  ;;  %vm15981_vm10 = vmmov %vm15969_vm0  ;;  %v4964_v16 = vor.u32 %v4963_v46, %v4960_v18  ;;  %v4978_v9 = vrot.slane %v4976_v60, 3  ;;  %v13559_v39 = vpack.c.bf16 %v13414_v7, %v13341_v38 }
 0x3ea   : > { %15980 = vst [vmem:[#allocation131_spill] sm:$0xff] %v13531_v59  ;;  %v4938_v53 = vsel %vm15981_vm10, %v13435_v24, %v4937_v1  ;;  %v13541_v57 = vpack.c.bf16 %v13531_v59, %v13527_v28  ;;  %vm15982_vm6 = vmmov %vm15967_vm5  ;;  %v4981_v23 = vrot.slane %v4979_v26, 4  ;;  %v4509_v11 = vpack.c.bf16 %v13449_v10, %v13420_v25 }
 0x3eb   : > { %v13545_v20 = vsel %vm15982_vm6, %v13456_v48, %v4490_v8  ;;  %vm15984_vm7 = vmmov %vm15967_vm5  ;;  %7823 = vmatmul.mubr.bf16.gmra.mxu0 %v4938_v53  ;;  %v4946_v60 = vor.u32 %v4945_v22, %v4942_v44  ;;  %v4967_v10 = vshrl.u32 %v13559_v39, 16  ;;  %v4512_v28 = vpack.c.bf16 %v15965_v36, %v15965_v36 }
 0x3ec   : > { %15983 = vst [vmem:[#allocation132_spill] sm:$0xff] %v13545_v20  ;;  %v13549_v40 = vsel %vm15984_vm7, %v4490_v8, %v13504_v62  ;;  %vm15986_vm14 = vmmov %vm15913_vm1  ;;  %7826 = vmatprep.mubr.msk.bf16.mxu0 %vm15678_vm4, %v15655_v42  ;;  %v4985_v53 = vshrl.u32 %v13541_v57, 16  ;;  %v4988_v18 = vshll.u32 %v13541_v57, 16  ;;  %v4982_v7 = vor.u32 %v4981_v23, %v4978_v9 }
 0x3ed   : > { %15985 = vst [vmem:[#allocation133_spill] sm:$0xff] %v13549_v40  ;;  %v13553_v24 = vsel %vm15986_vm14, %v13499_v56, %v4498_v6  ;;  %vm15988_vm9 = vmmov %vm15969_vm0  ;;  %v4510_v31 = vpack.c.bf16 %v13549_v40, %v13545_v20  ;;  %v4994_v25 = vshrl.u32 %v4509_v11, 16  ;;  %v4997_v43 = vshll.u32 %v4509_v11, 16 }
 0x3ee   : > { %15987 = vst [vmem:[#allocation134_spill] sm:$0xff] %v13553_v24  ;;  %v4920_v8 = vsel %vm15988_vm9, %v4892_v27, %v4919_v50  ;;  %vm15989_vm12 = vmmov %vm15969_vm0  ;;  %v4511_v46 = vpack.c.bf16 %v13515_v61, %v13553_v24  ;;  %v4513_v27 = vpack.c.bf16 %v13504_v62, %v13504_v62  ;;  %v4987_v40 = vrot.slane %v4985_v53, 3 }
 0x3ef   : > { %5371 = vmatmul.mubr.bf16.gmra.mxu1 %v4920_v8  ;;  %v4956_v6 = vsel %vm15989_vm12, %v4928_v45, %v4955_v21  ;;  %vm15990_vm15 = vmmov %vm15969_vm0  ;;  %v4970_v8 = vshll.u32 %v13559_v39, 16  ;;  %v5003_v45 = vshrl.u32 %v4510_v31, 16  ;;  %v5006_v38 = vshll.u32 %v4510_v31, 16 }
 0x3f0   : > { %5378 = vmatprep.mubr.bf16.mxu1 %v4956_v6  ;;  %v4965_v26 = vsel %vm15990_vm15, %v4937_v1, %v4964_v16  ;;  %v4990_v59 = vrot.slane %v4988_v18, 4  ;;  %v5012_v20 = vshrl.u32 %v4511_v46, 16  ;;  %v5015_v61 = vshll.u32 %v4511_v46, 16  ;;  %vm15991_vm11 = vmmov %vm15969_vm0 }
 0x3f1   : > { %v5030_v22 = vshrl.u32 %v4513_v27, 16  ;;  %v5033_v44 = vshll.u32 %v4513_v27, 16  ;;  %v4514_v6 = vpack.c.bf16 %v13519_v35, %v13519_v35  ;;  %v4947_v1 = vsel %vm15991_vm11, %v4919_v50, %v4946_v60  ;;  %vm15992_vm5 = vmmov %vm15969_vm0 }
 0x3f2   : > { %v4969_v9 = vrot.slane %v4967_v10, 3  ;;  %v4972_v23 = vrot.slane %v4970_v8, 4  ;;  %v5005_v31 = vrot.slane %v5003_v45, 3  ;;  %v5008_v62 = vrot.slane %v5006_v38, 4  ;;  %vm15994_vm8 = vmmov %vm15982_vm6 }
 0x3f3   : > { %7827 = vmatmul.mubr.bf16.gmra.mxu0 %v4965_v26  ;;  %v4996_v11 = vrot.slane %v4994_v25, 3  ;;  %v4999_v53 = vrot.slane %v4997_v43, 4  ;;  %v4983_v18 = vsel %vm15992_vm5, %v4955_v21, %v4982_v7  ;;  %v4991_v46 = vor.u32 %v4990_v59, %v4987_v40  ;;  %v15993_v21 = vld [vmem:[#allocation95_spill] sm:$0xff]  ;;  %vm15995_vm1 = vmmov %vm15969_vm0 }
 0x3f4   : > { %7830 = vmatprep.mubr.msk.bf16.mxu0 %vm15678_vm4, %v15655_v42  ;;  %v5014_v26 = vrot.slane %v5012_v20, 3  ;;  %v5017_v27 = vrot.slane %v5015_v61, 4  ;;  %v5032_v24 = vrot.slane %v5030_v22, 3  ;;  %v5035_v35 = vrot.slane %v5033_v44, 4  ;;  %vm15996_vm13 = vmmov %vm15969_vm0 }
 0x3f5   : > { %v5039_v19 = vshrl.u32 %v4514_v6, 16  ;;  %v5042_v50 = vshll.u32 %v4514_v6, 16  ;;  %v4973_v10 = vor.u32 %v4972_v23, %v4969_v9  ;;  %v5009_v8 = vor.u32 %v5008_v62, %v5005_v31  ;;  %vm15997_vm3 = vmmov %vm15969_vm0 }
 0x3f6   : > { %v13584_v45 = vor.u32 %v4999_v53, %v4996_v11  ;;  %v4992_v43 = vsel %vm15969_vm0, %v4964_v16, %v4991_v46  ;;  %v13587_v38 = vor.u32 %v5017_v27, %v5014_v26  ;;  %v5036_v25 = vor.u32 %v5035_v35, %v5032_v24  ;;  %vm15998_vm2 = vmmov %vm15969_vm0 }
 0x3f7   : > { %5379 = vmatmul.mubr.bf16.gmra.mxu1 %v4947_v1  ;;  %v5041_v59 = vrot.slane %v5039_v19, 3  ;;  %v5044_v61 = vrot.slane %v5042_v50, 4  ;;  %v4196_v20 = vsel %vm15994_vm8, %v15993_v21, %v12567_v32  ;;  %v5021_v40 = vshrl.u32 %v4512_v28, 16  ;;  %vm15999_vm10 = vmmov %vm15969_vm0 }
 0x3f8   : > { %5386 = vmatprep.mubr.bf16.mxu1 %v4983_v18  ;;  %v5024_v22 = vshll.u32 %v4512_v28, 16  ;;  %v4974_v62 = vsel %vm15995_vm1, %v4946_v60, %v4973_v10  ;;  %v5010_v44 = vsel %vm15996_vm13, %v4982_v7, %v5009_v8  ;;  %v5001_v16 = vsel %vm15997_vm3, %v4973_v10, %v13584_v45 }
 0x3f9   : > { %v14845_v35 = vrot.slane %v13207_v2, 3  ;;  %v5019_v19 = vsel %vm15998_vm2, %v4991_v46, %v13587_v38  ;;  %v4390_v32 = vpack.c.bf16 %v12588_v3, %v4196_v20  ;;  %v14844_v24 = vrot.slane %v13213_v52, 3 }
 0x3fa   : > { %v14843_v6 = vrot.slane %v13229_v15, 3  ;;  %v5037_v28 = vsel %vm15999_vm10, %v5009_v8, %v5036_v25  ;;  %v5045_v60 = vor.u32 %v5044_v61, %v5041_v59  ;;  %v5701_v7 = vrot.slane %v13271_v37, 3 }
 0x3fb   : > { %7831 = vmatmul.mubr.bf16.gmra.mxu0 %v4992_v43  ;;  %v5697_v1 = vrot.slane %v13300_v12, 3  ;;  %v5023_v9 = vrot.slane %v5021_v40, 3  ;;  %v5026_v23 = vrot.slane %v5024_v22, 4  ;;  %v5705_v31 = vrot.slane %v13326_v5, 3 }
 0x3fc   : > { %7834 = vmatprep.mubr.msk.bf16.mxu0 %vm15678_vm4, %v15655_v42  ;;  %v5707_v11 = vrot.slane %v13347_v0, 3  ;;  %vm16000_vm6 = vcmask 1044480   ;;  %v5703_v37 = vrot.slane %v13356_v34, 3  ;;  %v5711_v12 = vrot.slane %v13398_v17, 3 }
 0x3fd   : > { %v13612_v3 = vsel %vm16000_vm6, %v14845_v35, %v5701_v7  ;;  %vm16001_vm7 = vmmov %vm16000_vm6  ;;  %v5713_v18 = vrot.slane %v13431_v54, 3  ;;  %v5709_v46 = vrot.slane %v13439_v4, 3  ;;  %v5717_v17 = vrot.slane %v13472_v13, 3  ;;  %v16080_v35 = vld [vmem:[#allocation84_spill] sm:$0xff] }
 0x3fe   : > { %v13617_v53 = vsel %vm16001_vm7, %v14844_v24, %v5697_v1  ;;  %vm16002_vm14 = vmmov %vm16000_vm6  ;;  %v5719_v27 = vrot.slane %v13481_v33, 3  ;;  %v5715_v4 = vrot.slane %v13496_v58, 3  ;;  %v5723_v10 = vrot.slane %v13512_v41, 3 }
 0x3ff   : > { %5387 = vmatmul.mubr.bf16.gmra.mxu1 %v4974_v62  ;;  %v13624_v5 = vsel %vm16002_vm14, %v14843_v6, %v5705_v31  ;;  %vm16003_vm9 = vmmov %vm16000_vm6  ;;  %v5725_v33 = vrot.slane %v13541_v57, 3  ;;  %v14842_v43 = vrot.slane %v13559_v39, 3  ;;  %v4438_v58 = vpack.c.bf16 %v13456_v48, %v13456_v48 }
 0x400   : > { %5394 = vmatprep.mubr.bf16.mxu1 %v5010_v44  ;;  %v13627_v0 = vsel %vm16003_vm9, %v5701_v7, %v5707_v11  ;;  %vm16004_vm12 = vmmov %vm16000_vm6  ;;  %v4439_v41 = vpack.c.bf16 %v13499_v56, %v13499_v56  ;;  %vm16012_vm3 = vcmask 1045504   ;;  %v5027_v62 = vor.u32 %v5026_v23, %v5023_v9  ;;  %v16022_v7 = vld [vmem:[#allocation98_spill] sm:$0xff] }
 0x401   : > { %v13632_v26 = vsel %vm16004_vm12, %v5697_v1, %v5703_v37  ;;  %vm16005_vm15 = vmmov %vm16000_vm6  ;;  %v4293_v57 = vsel %vm16012_vm3, %v15973_v63, %v12549_v14  ;;  %v5729_v40 = vrot.slane %v4438_v58, 3  ;;  %v5633_v48 = vrot.slane %v4390_v32, 3 }
 0x402   : > { %v13635_v34 = vsel %vm16005_vm15, %v5705_v31, %v5711_v12  ;;  %vm16006_vm11 = vmmov %vm16000_vm6  ;;  %v5731_v22 = vrot.slane %v4439_v41, 3  ;;  %v4391_v44 = vpack.c.bf16 %v12576_v55, %v4293_v57  ;;  %v13694_v55 = vld [vmem:[#allocation7 + $0x238] sm:$0xff]   ;;  %v16023_v1 = vrot.slane %v16022_v7, 3  ;;  %v16034_v41 = vld [vmem:[#allocation133_spill] sm:$0xff] }
 0x403   : > { %7835 = vmatmul.mubr.bf16.gmra.mxu0 %v5019_v19  ;;  %v13642_v50 = vsel %vm16006_vm11, %v5707_v11, %v5713_v18  ;;  %vm16007_vm5 = vmmov %vm16000_vm6  ;;  %vm16015_vm6 = vsmask.f32 4352  ;;  %v16019_v19 = vld [vmem:[#allocation96_spill] sm:$0xff]  ;;  %v5639_v23 = vrot.slane %v12596_v30, 3  ;;  %v8295_v31 = vld [vmem:[#allocation7 + $0x1b8] sm:$0xff]   ;;  %vm16031_vm11 = vcmask 1046528  }
 0x404   : > { %7838 = vmatprep.mubr.msk.bf16.mxu0 %vm15678_vm4, %v15655_v42  ;;  %v13645_v54 = vsel %vm16007_vm5, %v5703_v37, %v5709_v46  ;;  %vm16008_vm0 = vmmov %vm16007_vm5  ;;  %v5046_v56 = vsel %vm16015_vm6, %v13587_v38, %v5045_v60  ;;  %v16020_v32 = vrot.slane %v16019_v19, 3  ;;  %v5631_v60 = vrot.slane %v12562_v49, 3  ;;  %v16025_v11 = vld [vmem:[#allocation91_spill] sm:$0xff]  ;;  %v13712_v30 = vld [vmem:[#allocation7 + $0x230] sm:$0xff]  }
 0x405   : > { %v13650_v8 = vsel %vm16008_vm0, %v5711_v12, %v5717_v17  ;;  %vm16009_vm8 = vmmov %vm16008_vm0  ;;  %v16026_v12 = vld [vmem:[#allocation88_spill] sm:$0xff]  ;;  %v16057_v49 = vld [vmem:[#allocation103_spill] sm:$0xff] }
 0x406   : > { %v13653_v13 = vsel %vm16009_vm8, %v5713_v18, %v5719_v27  ;;  %vm16010_vm1 = vmmov %vm16008_vm0  ;;  %v16027_v18 = vld [vmem:[#allocation132_spill] sm:$0xff] }
 0x407   : > { %5395 = vmatmul.mubr.bf16.gmra.mxu1 %v5001_v16  ;;  %v13658_v25 = vsel %vm16010_vm1, %v5709_v46, %v5715_v4  ;;  %vm16011_vm13 = vmmov %vm16008_vm0  ;;  %v5663_v46 = vrot.slane %v16057_v49, 3  ;;  %v16061_v49 = vld [vmem:[#allocation107_spill] sm:$0xff] }
 0x408   : > { %v13661_v59 = vsel %vm16011_vm13, %v5717_v17, %v5723_v10  ;;  %5402 = vmatprep.mubr.bf16.mxu1 %v5037_v28  ;;  %vm16013_vm2 = vmmov %vm16008_vm0  ;;  %v5635_v28 = vrot.slane %v4391_v44, 3  ;;  %v16028_v17 = vld [vmem:[#allocation131_spill] sm:$0xff]  ;;  %v16036_v44 = vmov 0  }
 0x409   : > { %v13671_v61 = vsel %vm16013_vm2, %v5719_v27, %v5725_v33  ;;  %vm16014_vm10 = vmmov %vm16008_vm0  ;;  %v16029_v27 = vld [vmem:[#allocation134_spill] sm:$0xff] }
 0x40a   : > { %v13676_v20 = vsel %vm16014_vm10, %v5715_v4, %v14842_v43  ;;  %vm16016_vm7 = vmmov %vm16008_vm0  ;;  %v16030_v4 = vld [vmem:[#allocation64_spill] sm:$0xff] }
 0x40b   : > { %v13682_v16 = vsel %vm16016_vm7, %v5723_v10, %v5729_v40  ;;  %vm16017_vm14 = vmmov %vm16008_vm0  ;;  %7839 = vmatmul.mubr.bf16.gmra.mxu0 %v5046_v56  ;;  %v13717_v10 = vsel %vm16031_vm11, %v16030_v4, %v15993_v21  ;;  %v5640_v40 = vsel %vm16008_vm0, %v5633_v48, %v5639_v23  ;;  %v8296_v56 = vld [vmem:[#allocation7 + $0x1b0] sm:$0xff]   ;;  %v16037_v21 = vld [vmem:[#allocation49_spill] sm:$0xff] }
 0x40c   : > { %v13685_v14 = vsel %vm16017_vm14, %v5725_v33, %v5731_v22  ;;  %7858 = vmatprep.mubr.msk.bf16.mxu0 %vm15678_vm4, %v15655_v42  ;;  %vm16018_vm9 = vmmov %vm16015_vm6  ;;  %v16032_v33 = vld [vmem:[#allocation97_spill] sm:$0xff]  ;;  %v16035_v22 = vld [vmem:[#allocation86_spill] sm:$0xff] }
 0x40d   : > { %v5028_v63 = vsel %vm16018_vm9, %v13584_v45, %v5027_v62  ;;  %vm16021_vm12 = vmmov %vm16008_vm0  ;;  %v5641_v62 = vrot.slane %v16035_v22, 3  ;;  %v13739_v4 = vld [vmem:[#allocation7 + $0x220] sm:$0xff]   ;;  %v16043_v22 = vld [vmem:[#allocation23_spill] sm:$0xff] }
 0x40e   : > { %v5634_v38 = vsel %vm16021_vm12, %v16020_v32, %v5633_v48  ;;  %vm16024_vm15 = vmmov %vm16008_vm0  ;;  %v13730_v32 = vld [vmem:[#allocation7 + $0x228] sm:$0xff]  }
 0x40f   : > { %5403 = vmatmul.mubr.bf16.gmra.mxu1 %v5028_v63  ;;  %v5636_v9 = vsel %vm16024_vm15, %v16023_v1, %v5635_v28  ;;  %vm16033_vm5 = vmmov %vm16008_vm0  ;;  %v5637_v63 = vrot.slane %v16037_v21, 3  ;;  %v16039_v1 = vld [vmem:[#allocation93_spill] sm:$0xff] }
 0x410   : > { %5960 = vmatprep.mubr.bf16.mxu1 %v5634_v38  ;;  %v5632_v58 = vsel %vm16033_vm5, %v16032_v33, %v5631_v60  ;;  %vm16038_vm8 = vmmov %vm16008_vm0  ;;  %v8297_v48 = vld [vmem:[#allocation7 + $0x1a8] sm:$0xff]  }
 0x411   : > { %v5642_v38 = vsel %vm16038_vm8, %v5635_v28, %v5641_v62  ;;  %vm16040_vm1 = vmmov %vm16008_vm0  ;;  %v16042_v28 = vld [vmem:[#allocation21_spill] sm:$0xff] }
 0x412   : > { %vm16041_vm13 = vmmov %vm16008_vm0  ;;  %v8309_v45 = vld [vmem:[#allocation7 + $0x1e8] sm:$0xff]  }
 0x413   : > { %7859 = vmatmul.mubr.bf16.vlgmr.msra.gmra.mxu0 %v5636_v9  ;;  %v5645_v9 = vrot.slane %v16039_v1, 3  ;;  %vm16044_vm3 = vmmov %vm16008_vm0 }
 0x414   : > { %7862 = vmatprep.mubr.msk.bf16.mxu0 %vm15678_vm4, %v15655_v42  ;;  %7927 = vmatpush3.bf16.msra.mxu0 %v13694_v55  ;;  %vm16046_vm2 = vmmov %vm16008_vm0 }
 0x415   : > { %7928 = vmatprep.subr.bf16.mxu0 %v15655_v42  ;;  %v5646_v33 = vsel %vm16041_vm13, %v5639_v23, %v5645_v9  ;;  %v8300_v23 = vld [vmem:[#allocation7 + $0x198] sm:$0xff]   ;;  %vm16047_vm10 = vmmov %vm16008_vm0 }
 0x416   : > { %vm16050_vm6 = vmmov %vm16008_vm0 }
 0x417   : > { %5961 = vmatmul.mubr.bf16.vlgmr.msra.gmra.mxu1 %v5632_v58  ;;  %v5647_v58 = vrot.slane %v16042_v28, 3  ;;  %vm16052_vm7 = vmmov %vm16008_vm0 }
 0x418   : > { %5968 = vmatprep.mubr.bf16.mxu1 %v5640_v40  ;;  %6510 = vmatpush1.bf16.msra.mxu1 %v8295_v31  ;;  %v5638_v31 = vsel %vm16040_vm1, %v5631_v60, %v5637_v63  ;;  %v8298_v40 = vld [vmem:[#allocation7 + $0x1a0] sm:$0xff]   ;;  %v13747_v60 = vld [vmem:[#allocation7 + $0x218] sm:$0xff]   ;;  %vm16053_vm14 = vmmov %vm16008_vm0 }
 0x419   : > { %6511 = vmatprep.subr.bf16.mxu1 %v16036_v44  ;;  %7929 = vmatpush3.bf16.msra.mxu0 %v13712_v30  ;;  %v5648_v21 = vsel %vm16044_vm3, %v5641_v62, %v5647_v58  ;;  %vm16056_vm9 = vmmov %vm16008_vm0 }
 0x41a   : > { %7930 = vmatprep.subr.bf16.mxu0 %v15655_v42  ;;  %vm16058_vm12 = vmmov %vm16008_vm0 }
 0x41b   : > { %7863 = vmatmul.mubr.bf16.gmra.mxu0 %v5642_v38  ;;  %v16045_v38 = vld [vmem:[#allocation66_spill] sm:$0xff]  ;;  %vm16059_vm15 = vmmov %vm16008_vm0 }
 0x41c   : > { %6512 = vmatpush1.bf16.msra.mxu1 %v8296_v56  ;;  %7866 = vmatprep.mubr.msk.bf16.mxu0 %vm15678_vm4, %v15655_v42  ;;  %v5643_v56 = vrot.slane %v16043_v22, 3  ;;  %v5651_v1 = vrot.slane %v16045_v38, 3  ;;  %v16049_v22 = vld [vmem:[#allocation78_spill] sm:$0xff]  ;;  %vm16062_vm11 = vmmov %vm16008_vm0 }
 0x41d   : > { %6513 = vmatprep.subr.bf16.mxu1 %v16036_v44  ;;  %7931 = vmatpush3.bf16.msra.mxu0 %v13730_v32  ;;  %vm16064_vm5 = vmmov %vm16008_vm0 }
 0x41e   : > { %7932 = vmatprep.subr.bf16.mxu0 %v15655_v42  ;;  %v5652_v62 = vsel %vm16047_vm10, %v5645_v9, %v5651_v1  ;;  %v8303_v9 = vld [vmem:[#allocation7 + $0x188] sm:$0xff]   ;;  %vm16067_vm8 = vmmov %vm16008_vm0 }
 0x41f   : > { %5969 = vmatmul.mubr.bf16.gmra.mxu1 %v5638_v31  ;;  %v13757_v31 = vld [vmem:[#allocation7 + $0x210] sm:$0xff]   ;;  %vm16069_vm1 = vmmov %vm16008_vm0 }
 0x420   : > { %5976 = vmatprep.mubr.bf16.mxu1 %v5646_v33  ;;  %6514 = vmatpush1.bf16.msra.mxu1 %v8297_v48  ;;  %v5644_v48 = vsel %vm16046_vm2, %v5637_v63, %v5643_v56  ;;  %v16048_v33 = vld [vmem:[#allocation67_spill] sm:$0xff]  ;;  %v13765_v63 = vld [vmem:[#allocation7 + $0x208] sm:$0xff]   ;;  %vm16070_vm13 = vmmov %vm16008_vm0 }
 0x421   : > { %6515 = vmatprep.subr.bf16.mxu1 %v16036_v44  ;;  %7933 = vmatpush3.bf16.msra.mxu0 %v13739_v4  ;;  %v5653_v28 = vrot.slane %v16048_v33, 3  ;;  %v16054_v33 = vld [vmem:[#allocation100_spill] sm:$0xff]  ;;  %vm16073_vm3 = vmmov %vm16008_vm0 }
 0x422   : > { %7934 = vmatprep.subr.bf16.mxu0 %v15655_v42  ;;  %vm16075_vm2 = vmmov %vm16008_vm0 }
 0x423   : > { %7867 = vmatmul.mubr.bf16.gmra.mxu0 %v5648_v21  ;;  %v5649_v21 = vrot.slane %v16049_v22, 3  ;;  %v5654_v38 = vsel %vm16050_vm6, %v5647_v58, %v5653_v28  ;;  %v5659_v22 = vrot.slane %v16054_v33, 3  ;;  %vm16076_vm10 = vmmov %vm16008_vm0 }
 0x424   : > { %6516 = vmatpush1.bf16.msra.mxu1 %v8298_v40  ;;  %7870 = vmatprep.mubr.msk.bf16.mxu0 %vm15678_vm4, %v15655_v42  ;;  %v8301_v40 = vld [vmem:[#allocation7 + $0x190] sm:$0xff]   ;;  %vm16079_vm6 = vmmov %vm16008_vm0 }
 0x425   : > { %6517 = vmatprep.subr.bf16.mxu1 %v16036_v44  ;;  %7935 = vmatpush3.bf16.msra.mxu0 %v13747_v60 }
 0x426   : > { %7936 = vmatprep.subr.bf16.mxu0 %v15655_v42 }
 0x427   : > { %5977 = vmatmul.mubr.bf16.gmra.mxu1 %v5644_v48  ;;  %v16051_v48 = vld [vmem:[#allocation33_spill] sm:$0xff] }
 0x428   : > { %5984 = vmatprep.mubr.bf16.mxu1 %v5652_v62  ;;  %6518 = vmatpush1.bf16.msra.mxu1 %v8300_v23  ;;  %v5657_v57 = vrot.slane %v16051_v48, 3  ;;  %v5650_v23 = vsel %vm16052_vm7, %v5643_v56, %v5649_v21  ;;  %v13775_v62 = vld [vmem:[#allocation7 + $0x200] sm:$0xff]   ;;  %v5660_v56 = vsel %vm16056_vm9, %v5653_v28, %v5659_v22  ;;  %v8307_v28 = vld [vmem:[#allocation7 + $0x1f0] sm:$0xff]   ;;  %vm16081_vm7 = vmmov %vm16008_vm0 }
 0x429   : > { %6519 = vmatprep.subr.bf16.mxu1 %v16036_v44  ;;  %7937 = vmatpush3.bf16.msra.mxu0 %v13757_v31  ;;  %vm16085_vm9 = vmmov %vm16008_vm0 }
 0x42a   : > { %7938 = vmatprep.subr.bf16.mxu0 %v15655_v42  ;;  %v5658_v58 = vsel %vm16053_vm14, %v5651_v1, %v5657_v57  ;;  %v8306_v1 = vld [vmem:[#allocation7 + $0x1f8] sm:$0xff]   ;;  %vm16082_vm14 = vmmov %vm16008_vm0 }
 0x42b   : > { %7871 = vmatmul.mubr.bf16.gmra.mxu0 %v5654_v38  ;;  %v16055_v38 = vld [vmem:[#allocation24_spill] sm:$0xff] }
 0x42c   : > { %6520 = vmatpush1.bf16.msra.mxu1 %v8301_v40  ;;  %7874 = vmatprep.mubr.msk.bf16.mxu0 %vm15678_vm4, %v15655_v42  ;;  %v8304_v40 = vld [vmem:[#allocation7 + $0x180] sm:$0xff]   ;;  %v5655_v48 = vrot.slane %v16055_v38, 3 }
 0x42d   : > { %6521 = vmatprep.subr.bf16.mxu1 %v16036_v44  ;;  %7939 = vmatpush3.bf16.msra.mxu0 %v13765_v63 }
 0x42e   : > { %7940 = vmatprep.subr.bf16.mxu0 %v15655_v42 }
 0x42f   : > { %5985 = vmatmul.mubr.bf16.gmra.mxu1 %v5650_v23  ;;  %v5664_v23 = vsel %vm16059_vm15, %v5657_v57, %v5663_v46  ;;  %vm16088_vm15 = vmmov %vm16008_vm0 }
 0x430   : > { %5992 = vmatprep.mubr.bf16.mxu1 %v5658_v58  ;;  %6522 = vmatpush1.bf16.msra.mxu1 %v8303_v9  ;;  %v5656_v9 = vsel %vm16058_vm12, %v5649_v21, %v5655_v48  ;;  %v16060_v58 = vld [vmem:[#allocation106_spill] sm:$0xff]  ;;  %vm16087_vm12 = vmmov %vm16008_vm0 }
 0x431   : > { %6523 = vmatprep.subr.bf16.mxu1 %v16036_v44  ;;  %7941 = vmatpush3.bf16.msra.mxu0 %v13775_v62  ;;  %v5665_v33 = vrot.slane %v16060_v58, 3 }
 0x433   : > { %7875 = vmatmul.mubr.bf16.gmra.mxu0 %v5660_v56  ;;  %v5666_v38 = vsel %vm16062_vm11, %v5659_v22, %v5665_v33  ;;  %v16063_v56 = vld [vmem:[#allocation110_spill] sm:$0xff]  ;;  %v8310_v22 = vld [vmem:[#allocation7 + $0x1e0] sm:$0xff]   ;;  %vm16090_vm11 = vmmov %vm16008_vm0 }
 0x434   : > { %6524 = vmatpush1.bf16.msra.mxu1 %v8304_v40  ;;  %7878 = vmatprep.mubr.msk.bf16.mxu0 %vm15678_vm4, %v15655_v42  ;;  %v5661_v40 = vrot.slane %v16061_v49, 3  ;;  %v5669_v37 = vrot.slane %v16063_v56, 3  ;;  %v16068_v49 = vld [vmem:[#allocation116_spill] sm:$0xff]  ;;  %v8312_v56 = vld [vmem:[#allocation7 + $0x1d8] sm:$0xff]  }
 0x435   : > { %6525 = vmatprep.subr.bf16.mxu1 %v16036_v44 }
 0x436   : > { %v5662_v57 = vsel %vm16064_vm5, %v5655_v48, %v5661_v40  ;;  %v5670_v21 = vsel %vm16008_vm0, %v5663_v46, %v5669_v37  ;;  %v16071_v48 = vld [vmem:[#allocation74_spill] sm:$0xff]  ;;  %vm16092_vm5 = vmmov %vm16008_vm0 }
 0x437   : > { %5993 = vmatmul.mubr.bf16.gmra.mxu1 %v5656_v9 }
 0x438   : > { %6000 = vmatprep.mubr.bf16.mxu1 %v5664_v23  ;;  %6526 = vmatpush2.bf16.msra.mxu1 %v8306_v1  ;;  %v16065_v1 = vld [vmem:[#allocation113_spill] sm:$0xff]  ;;  %v16066_v23 = vld [vmem:[#allocation114_spill] sm:$0xff] }
 0x439   : > { %6527 = vmatprep.subr.bf16.mxu1 %v16036_v44  ;;  %v5671_v9 = vrot.slane %v16065_v1, 3  ;;  %v5667_v58 = vrot.slane %v16066_v23, 3  ;;  %v16072_v1 = vld [vmem:[#allocation120_spill] sm:$0xff] }
 0x43b   : > { %7879 = vmatmul.mubr.bf16.gmra.mxu0 %v5666_v38  ;;  %v5675_v38 = vrot.slane %v16068_v49, 3  ;;  %v5668_v46 = vsel %vm16069_vm1, %v5661_v40, %v5667_v58  ;;  %v8315_v40 = vld [vmem:[#allocation7 + $0x1c8] sm:$0xff]  }
 0x43c   : > { %6528 = vmatpush2.bf16.msra.mxu1 %v8307_v28  ;;  %7882 = vmatprep.mubr.msk.bf16.mxu0 %vm15678_vm4, %v15655_v42  ;;  %v5672_v28 = vsel %vm16067_vm8, %v5665_v33, %v5671_v9  ;;  %v8313_v33 = vld [vmem:[#allocation7 + $0x1d0] sm:$0xff]   ;;  %vm16096_vm8 = vmmov %vm16008_vm0 }
 0x43d   : > { %6529 = vmatprep.subr.bf16.mxu1 %v16036_v44 }
 0x43f   : > { %6001 = vmatmul.mubr.bf16.gmra.mxu1 %v5662_v57  ;;  %v5677_v57 = vrot.slane %v16071_v48, 3  ;;  %v16077_v48 = vld [vmem:[#allocation124_spill] sm:$0xff] }
 0x440   : > { %6008 = vmatprep.mubr.bf16.mxu1 %v5670_v21  ;;  %6530 = vmatpush2.bf16.msra.mxu1 %v8309_v45  ;;  %v5676_v45 = vsel %vm16070_vm13, %v5669_v37, %v5675_v38  ;;  %v5445_v21 = vpop.f32.mrf.mxu0 }
 0x441   : > { %6531 = vmatprep.subr.bf16.mxu1 %v16036_v44  ;;  %v5678_v23 = vsel %vm16073_vm3, %v5671_v9, %v5677_v57  ;;  %v5683_v9 = vrot.slane %v16077_v48, 3 }
 0x442   : > { %v7776_v43 = vpop.f32.mrf.mxu0 }
 0x443   : > { %7883 = vmatmul.mubr.bf16.gmra.mxu0 %v5672_v28  ;;  %v16074_v28 = vld [vmem:[#allocation92_spill] sm:$0xff] }
 0x444   : > { %6532 = vmatpush2.bf16.msra.mxu1 %v8310_v22  ;;  %7886 = vmatprep.mubr.msk.bf16.mxu0 %vm15678_vm4, %v15655_v42  ;;  %v5673_v22 = vrot.slane %v16072_v1, 3  ;;  %v5681_v49 = vrot.slane %v16074_v28, 3  ;;  %v16078_v28 = vld [vmem:[#allocation87_spill] sm:$0xff] }
 0x445   : > { %6533 = vmatprep.subr.bf16.mxu1 %v16036_v44  ;;  %v5679_v6 = vrot.slane %v16078_v28, 3 }
 0x446   : > { %v5674_v37 = vsel %vm16075_vm2, %v5667_v58, %v5673_v22  ;;  %v5684_v58 = vsel %vm16079_vm6, %v5677_v57, %v5683_v9 }
 0x447   : > { %6009 = vmatmul.mubr.bf16.gmra.mxu1 %v5668_v46  ;;  %v5276_v46 = vpop.f32.mrf.mxu1 }
 0x448   : > { %6016 = vmatprep.mubr.bf16.mxu1 %v5676_v45  ;;  %6534 = vmatpush2.bf16.msra.mxu1 %v8312_v56  ;;  %v5448_v56 = vpop.f32.mrf.mxu0  ;;  %v5682_v45 = vsel %vm16076_vm10, %v5675_v38, %v5681_v49  ;;  %v13821_v1 = vadd.f32 %v5445_v21, %v5276_v46 }
 0x449   : > { %6535 = vmatprep.subr.bf16.mxu1 %v16036_v44 }
 0x44a   : > { %v7777_v43 = vpop.f32.mrf.mxu0 }
 0x44b   : > { %7887 = vmatmul.mubr.bf16.gmra.mxu0 %v5678_v23  ;;  %v5278_v23 = vpop.f32.mrf.mxu1 }
 0x44c   : > { %6536 = vmatpush2.bf16.msra.mxu1 %v8313_v33  ;;  %7890 = vmatprep.mubr.msk.bf16.mxu0 %vm15678_vm4, %v15655_v42  ;;  %v8317_v33 = vld [vmem:[#allocation7 + $0x1c0] sm:$0xff]   ;;  %v5453_v38 = vpop.f32.mrf.mxu0 }
 0x44d   : > { %6537 = vmatprep.subr.bf16.mxu1 %v16036_v44  ;;  %v5279_v24 = vpop.f32.mrf.mxu1 }
 0x44e   : > { %v13827_v7 = vadd.f32 %v5448_v56, %v5279_v24 }
 0x44f   : > { %6017 = vmatmul.mubr.bf16.gmra.mxu1 %v5674_v37  ;;  %v5687_v37 = vrot.slane %v16080_v35, 3  ;;  %v5281_v21 = vpop.f32.mrf.mxu1 }
 0x450   : > { %6024 = vmatprep.mubr.bf16.mxu1 %v5682_v45  ;;  %6538 = vmatpush2.bf16.msra.mxu1 %v8315_v40  ;;  %v7780_v40 = vpop.f32.mrf.mxu0  ;;  %v16083_v45 = vld [vmem:[#allocation94_spill] sm:$0xff]  ;;  %v16086_v21 = vld [vmem:[#allocation127_spill] sm:$0xff] }
 0x451   : > { %6539 = vmatprep.subr.bf16.mxu1 %v16036_v44  ;;  %v5680_v44 = vsel %vm16081_vm7, %v5673_v22, %v5679_v6  ;;  %v5284_v46 = vpop.f32.mrf.mxu1  ;;  %v5688_v57 = vsel %vm16082_vm14, %v5681_v49, %v5687_v37  ;;  %v5689_v35 = vrot.slane %v16083_v45, 3  ;;  %v5693_v22 = vrot.slane %v16086_v21, 3 }
 0x452   : > { %v13835_v24 = vadd.f32 %v5453_v38, %v5284_v46  ;;  %v5456_v56 = vpop.f32.mrf.mxu0 }
 0x453   : > { %7891 = vmatmul.mubr.bf16.gmra.mxu0 %v5684_v58  ;;  %v5286_v48 = vpop.f32.mrf.mxu1  ;;  %v5690_v58 = vsel %vm16085_vm9, %v5683_v9, %v5689_v35  ;;  %v5694_v45 = vsel %vm16088_vm15, %v5687_v37, %v5693_v22  ;;  %v16091_v37 = vrot.slane %v13213_v52, 3 }
 0x454   : > { %6540 = vmatpush2.bf16.msra.mxu1 %v8317_v33  ;;  %7894 = vmatprep.mubr.msk.bf16.mxu0 %vm15678_vm4, %v15655_v42  ;;  %v7781_v43 = vpop.f32.mrf.mxu0  ;;  %v16084_v33 = vld [vmem:[#allocation27_spill] sm:$0xff] }
 0x455   : > { %8010 = vmatprep.subr.bf16.mxu1 %v15655_v42  ;;  %v5685_v23 = vrot.slane %v16084_v33, 3  ;;  %v5287_v28 = vpop.f32.mrf.mxu1 }
 0x456   : > { %v13840_v40 = vadd.f32 %v5456_v56, %v5287_v28  ;;  %v16089_v28 = vrot.slane %v13207_v2, 3 }
 0x457   : > { %6025 = vmatmul.mubr.bf16.gmra.mxu1 %v5680_v44  ;;  %v5461_v44 = vpop.f32.mrf.mxu0  ;;  %v5289_v49 = vpop.f32.mrf.mxu1  ;;  %v5686_v38 = vsel %vm16087_vm12, %v5679_v6, %v5685_v23 }
 0x458   : > { %6032 = vmatprep.mubr.bf16.mxu1 %v5688_v57 }
 0x459   : > { %v7784_v46 = vpop.f32.mrf.mxu0  ;;  %v5292_v57 = vpop.f32.mrf.mxu1 }
 0x45a   : > { %v13846_v48 = vadd.f32 %v5461_v44, %v5292_v57  ;;  %v5692_v44 = vsel %vm16092_vm5, %v5685_v23, %v16091_v37  ;;  %v16093_v57 = vrot.slane %v13229_v15, 3 }
 0x45b   : > { %7895 = vmatmul.mubr.bf16.gmra.mxu0 %v5690_v58  ;;  %v5464_v9 = vpop.f32.mrf.mxu0  ;;  %v5294_v43 = vpop.f32.mrf.mxu1  ;;  %v5696_v58 = vsel %vm16090_vm11, %v5689_v35, %v16089_v28 }
 0x45c   : > { %7898 = vmatprep.mubr.msk.bf16.mxu0 %vm15678_vm4, %v15655_v42  ;;  %v5700_v2 = vsel %vm16008_vm0, %v5693_v22, %v16093_v57 }
 0x45d   : > { %v7785_v56 = vpop.f32.mrf.mxu0  ;;  %v5295_v33 = vpop.f32.mrf.mxu1 }
 0x45e   : > { %v13851_v21 = vadd.f32 %v5464_v9, %v5295_v33 }
 0x45f   : > { %6033 = vmatmul.mubr.bf16.gmra.mxu1 %v5686_v38  ;;  %v5469_v49 = vpop.f32.mrf.mxu0  ;;  %v5297_v6 = vpop.f32.mrf.mxu1 }
 0x460   : > { %6040 = vmatprep.mubr.bf16.mxu1 %v5694_v45 }
 0x461   : > { %v7788_v38 = vpop.f32.mrf.mxu0  ;;  %v5300_v46 = vpop.f32.mrf.mxu1 }
 0x462   : > { %v13861_v35 = vadd.f32 %v5469_v49, %v5300_v46 }
 0x463   : > { %7899 = vmatmul.mubr.bf16.gmra.mxu0 %v5696_v58  ;;  %v5472_v45 = vpop.f32.mrf.mxu0  ;;  %v5302_v9 = vpop.f32.mrf.mxu1 }
 0x464   : > { %7902 = vmatprep.mubr.msk.bf16.mxu0 %vm15678_vm4, %v15655_v42 }
 0x465   : > { %v7789_v43 = vpop.f32.mrf.mxu0  ;;  %v5303_v56 = vpop.f32.mrf.mxu1 }
 0x466   : > { %v13863_v33 = vadd.f32 %v5472_v45, %v5303_v56 }
 0x467   : > { %6041 = vmatmul.mubr.bf16.gmra.mxu1 %v5692_v44  ;;  %v5477_v28 = vpop.f32.mrf.mxu0  ;;  %v5305_v52 = vpop.f32.mrf.mxu1 }
 0x468   : > { %6048 = vmatprep.mubr.bf16.mxu1 %v5700_v2 }
 0x469   : > { %v7792_v23 = vpop.f32.mrf.mxu0  ;;  %v5308_v15 = vpop.f32.mrf.mxu1 }
 0x46a   : > { %v13869_v22 = vadd.f32 %v5477_v28, %v5308_v15 }
 0x46b   : > { %7903 = vmatmul.mubr.bf16.gmra.mxu0 %v13612_v3  ;;  %v5480_v58 = vpop.f32.mrf.mxu0  ;;  %v5310_v49 = vpop.f32.mrf.mxu1 }
 0x46c   : > { %7906 = vmatprep.mubr.msk.bf16.mxu0 %vm15678_vm4, %v15655_v42 }
 0x46d   : > { %v7793_v6 = vpop.f32.mrf.mxu0  ;;  %v5311_v37 = vpop.f32.mrf.mxu1 }
 0x46e   : > { %v13872_v44 = vadd.f32 %v5480_v58, %v5311_v37 }
 0x46f   : > { %6049 = vmatmul.mubr.bf16.gmra.mxu1 %v13617_v53  ;;  %v5485_v38 = vpop.f32.mrf.mxu0  ;;  %v5313_v3 = vpop.f32.mrf.mxu1 }
 0x470   : > { %6056 = vmatprep.mubr.bf16.mxu1 %v13624_v5 }
 0x471   : > { %v7796_v46 = vpop.f32.mrf.mxu0  ;;  %v5316_v57 = vpop.f32.mrf.mxu1 }
 0x472   : > { %v13878_v53 = vadd.f32 %v5485_v38, %v5316_v57 }
 0x473   : > { %7907 = vmatmul.mubr.bf16.gmra.mxu0 %v13627_v0  ;;  %v5488_v5 = vpop.f32.mrf.mxu0  ;;  %v5318_v2 = vpop.f32.mrf.mxu1 }
 0x474   : > { %7910 = vmatprep.mubr.msk.bf16.mxu0 %vm15678_vm4, %v15655_v42 }
 0x475   : > { %v7797_v45 = vpop.f32.mrf.mxu0  ;;  %v5319_v9 = vpop.f32.mrf.mxu1 }
 0x476   : > { %v13881_v43 = vadd.f32 %v5488_v5, %v5319_v9  ;;  %v16094_v9 = vld [vmem:[#allocation37_spill] sm:$0xff] }
 0x477   : > { %6057 = vmatmul.mubr.bf16.gmra.mxu1 %v13632_v26  ;;  %v5493_v56 = vpop.f32.mrf.mxu0  ;;  %v5321_v0 = vpop.f32.mrf.mxu1 }
 0x478   : > { %6064 = vmatprep.mubr.bf16.mxu1 %v13635_v34 }
 0x479   : > { %v7800_v28 = vpop.f32.mrf.mxu0 }
 0x47b   : > { %7911 = vmatmul.mubr.bf16.gmra.mxu0 %v13642_v50  ;;  %v5324_v52 = vpop.f32.mrf.mxu1  ;;  %v5496_v34 = vpop.f32.mrf.mxu0 }
 0x47c   : > { %7914 = vmatprep.mubr.msk.bf16.mxu0 %vm15678_vm4, %v15655_v42  ;;  %v13887_v26 = vadd.f32 %v5493_v56, %v5324_v52 }
 0x47d   : > { %v5326_v23 = vpop.f32.mrf.mxu1  ;;  %v7801_v15 = vpop.f32.mrf.mxu0 }
 0x47f   : > { %6065 = vmatmul.mubr.bf16.gmra.mxu1 %v13645_v54  ;;  %v5327_v58 = vpop.f32.mrf.mxu1  ;;  %v5501_v6 = vpop.f32.mrf.mxu0 }
 0x480   : > { %6072 = vmatprep.mubr.bf16.mxu1 %v13650_v8  ;;  %v13890_v49 = vadd.f32 %v5496_v34, %v5327_v58 }
 0x481   : > { %v5329_v50 = vpop.f32.mrf.mxu1  ;;  %v7804_v37 = vpop.f32.mrf.mxu0 }
 0x482   : > { %v16098_v37 = vld [vmem:[#allocation28_spill] sm:$0xff] }
 0x483   : > { %7915 = vmatmul.mubr.bf16.gmra.mxu0 %v13653_v13  ;;  %v5332_v38 = vpop.f32.mrf.mxu1  ;;  %v5504_v8 = vpop.f32.mrf.mxu0 }
 0x484   : > { %7918 = vmatprep.mubr.msk.bf16.mxu0 %vm15678_vm4, %v15655_v42  ;;  %v13896_v54 = vadd.f32 %v5501_v6, %v5332_v38 }
 0x485   : > { %v5334_v3 = vpop.f32.mrf.mxu1  ;;  %v7805_v46 = vpop.f32.mrf.mxu0 }
 0x487   : > { %6073 = vmatmul.mubr.bf16.gmra.mxu1 %v13658_v25  ;;  %v5335_v57 = vpop.f32.mrf.mxu1  ;;  %v4437_v25 = vpack.c.bf16 %v16094_v9, %v16094_v9 }
 0x488   : > { %6080 = vmatprep.mubr.bf16.mxu1 %v13661_v59  ;;  %v13899_v5 = vadd.f32 %v5504_v8, %v5335_v57 }
 0x489   : > { %v5509_v2 = vpop.f32.mrf.mxu0  ;;  %v5337_v13 = vpop.f32.mrf.mxu1  ;;  %v5727_v34 = vrot.slane %v4437_v25, 3  ;;  %v16099_v25 = vld [vmem:[#allocation81_spill] sm:$0xff] }
 0x48b   : > { %7919 = vmatmul.mubr.bf16.gmra.mxu0 %v13671_v61  ;;  %v7808_v45 = vpop.f32.mrf.mxu0  ;;  %v5340_v56 = vpop.f32.mrf.mxu1 }
 0x48c   : > { %7922 = vmatprep.mubr.msk.bf16.mxu0 %vm15678_vm4, %v15655_v42  ;;  %v13907_v59 = vadd.f32 %v5509_v2, %v5340_v56 }
 0x48d   : > { %v5512_v0 = vpop.f32.mrf.mxu0  ;;  %v5342_v28 = vpop.f32.mrf.mxu1 }
 0x48e   : > { %v16102_v28 = vld [vmem:[#allocation59_spill] sm:$0xff] }
 0x48f   : > { %6081 = vmatmul.mubr.bf16.gmra.mxu1 %v13676_v20  ;;  %v7809_v52 = vpop.f32.mrf.mxu0  ;;  %v5343_v61 = vpop.f32.mrf.mxu1  ;;  %v16095_v20 = vrot.slane %v13559_v39, 3  ;;  %v16100_v39 = vld [vmem:[#allocation30_spill] sm:$0xff] }
 0x490   : > { %6088 = vmatprep.mubr.bf16.mxu1 %v13682_v16  ;;  %v13910_v23 = vadd.f32 %v5512_v0, %v5343_v61  ;;  %v16097_v16 = vld [vmem:[#allocation14_spill] sm:$0xff]  ;;  %v16101_v56 = vpack.c.bf16 %v16099_v25, %v16100_v39  ;;  %v16103_v52 = vld [vmem:[#allocation12_spill] sm:$0xff]  ;;  %v16108_v39 = vld [vmem:[#allocation15_spill] sm:$0xff] }
 0x491   : > { %v5345_v58 = vpop.f32.mrf.mxu1  ;;  %v5728_v6 = vsel %vm16096_vm8, %v16095_v20, %v5727_v34  ;;  %v6269_v38 = vpack.c.bf16 %v16098_v37, %v16097_v16  ;;  %v6268_v34 = vpack.c.bf16 %v16103_v52, %v16102_v28  ;;  %v16110_v28 = vld [vmem:[#allocation75_spill] sm:$0xff]  ;;  %v16111_v52 = vld [vmem:[#allocation61_spill] sm:$0xff] }
 0x492   : > { %v5517_v15 = vpop.f32.mrf.mxu0  ;;  %v16105_v58 = vld [vmem:[#allocation18_spill] sm:$0xff] }
 0x493   : > { %7923 = vmatmul.mubr.bf16.gmra.mxu0 %v13685_v14 }
 0x494   : > { %7942 = vmatprep.mubr.msk.bf16.mxu0 %vm15678_vm4, %v15655_v42  ;;  %v7812_v50 = vpop.f32.mrf.mxu0 }
 0x496   : > { %v5348_v8 = vpop.f32.mrf.mxu1  ;;  %v5520_v46 = vpop.f32.mrf.mxu0 }
 0x497   : > { %6089 = vmatmul.mubr.bf16.gmra.mxu1 %v5728_v6  ;;  %v13920_v3 = vadd.f32 %v5517_v15, %v5348_v8  ;;  %v16104_v15 = vld [vmem:[#allocation16_spill] sm:$0xff]  ;;  %v16106_v8 = vld [vmem:[#allocation55_spill] sm:$0xff] }
 0x498   : > { %6541 = vmatprep.mubr.bf16.mxu1 %v6269_v38  ;;  %v5350_v57 = vpop.f32.mrf.mxu1  ;;  %v7813_v14 = vpop.f32.mrf.mxu0  ;;  %v6272_v20 = vpack.c.bf16 %v16105_v58, %v16104_v15 }
 0x49a   : > { %v5351_v2 = vpop.f32.mrf.mxu1  ;;  %v5525_v45 = vpop.f32.mrf.mxu0 }
 0x49b   : > { %v13922_v13 = vadd.f32 %v5520_v46, %v5351_v2  ;;  %7943 = vmatmul.mubr.bf16.vlgmr.msra.gmra.mxu0 %v16101_v56  ;;  %v16107_v46 = vld [vmem:[#allocation20_spill] sm:$0xff]  ;;  %v16109_v56 = vld [vmem:[#allocation99_spill] sm:$0xff] }
 0x49c   : > { %v5353_v0 = vpop.f32.mrf.mxu1  ;;  %7946 = vmatprep.mubr.msk.bf16.mxu0 %vm15678_vm4, %v15655_v42  ;;  %v7816_v61 = vpop.f32.mrf.mxu0  ;;  %v6273_v57 = vpack.c.bf16 %v16107_v46, %v16106_v8 }
 0x49d   : > { %v6271_v0 = vpack.c.bf16 %v16109_v56, %v16108_v39  ;;  %v16116_v39 = vld [vmem:[#allocation58_spill] sm:$0xff]  ;;  %v16117_v56 = vld [vmem:[#allocation101_spill] sm:$0xff] }
 0x49e   : > { %v5356_v6 = vpop.f32.mrf.mxu1  ;;  %v5528_v16 = vpop.f32.mrf.mxu0 }
 0x49f   : > { %6542 = vmatmul.mubr.bf16.vlgmr.msra.gmra.mxu1 %v6268_v34  ;;  %v13933_v50 = vadd.f32 %v5525_v45, %v5356_v6  ;;  %v6275_v34 = vpack.c.bf16 %v16111_v52, %v16110_v28  ;;  %v16112_v6 = vld [vmem:[#allocation79_spill] sm:$0xff] }
 0x4a0   : > { %6549 = vmatprep.mubr.bf16.mxu1 %v6272_v20  ;;  %8018 = vmatpush3.bf16.msra.mxu1 %v13694_v55  ;;  %v5358_v37 = vpop.f32.mrf.mxu1  ;;  %v7817_v38 = vpop.f32.mrf.mxu0 }
 0x4a1   : > { %8011 = vmatprep.subr.bf16.mxu1 %v15655_v42 }
 0x4a2   : > { %v5359_v14 = vpop.f32.mrf.mxu1  ;;  %v5533_v25 = vpop.f32.mrf.mxu0 }
 0x4a3   : > { %v13939_v2 = vadd.f32 %v5528_v16, %v5359_v14  ;;  %7947 = vmatmul.mubr.bf16.gmra.mxu0 %v6273_v57  ;;  %v16113_v16 = vld [vmem:[#allocation29_spill] sm:$0xff]  ;;  %v16114_v14 = vld [vmem:[#allocation68_spill] sm:$0xff] }
 0x4a4   : > { %8019 = vmatpush3.bf16.msra.mxu1 %v13712_v30  ;;  %v5361_v45 = vpop.f32.mrf.mxu1  ;;  %7950 = vmatprep.mubr.msk.bf16.mxu0 %vm15678_vm4, %v15655_v42  ;;  %v7820_v55 = vpop.f32.mrf.mxu0  ;;  %v6276_v37 = vpack.c.bf16 %v16113_v16, %v16112_v6 }
 0x4a5   : > { %8012 = vmatprep.subr.bf16.mxu1 %v15655_v42 }
 0x4a6   : > { %v5364_v61 = vpop.f32.mrf.mxu1  ;;  %v5536_v58 = vpop.f32.mrf.mxu0 }
 0x4a7   : > { %6550 = vmatmul.mubr.bf16.gmra.mxu1 %v6271_v0  ;;  %v13949_v15 = vadd.f32 %v5533_v25, %v5364_v61  ;;  %v16115_v25 = vld [vmem:[#allocation53_spill] sm:$0xff]  ;;  %v6278_v0 = vpack.c.bf16 %v16117_v56, %v16116_v39  ;;  %v16118_v61 = vld [vmem:[#allocation63_spill] sm:$0xff] }
 0x4a8   : > { %6557 = vmatprep.mubr.bf16.mxu1 %v6275_v34  ;;  %8020 = vmatpush3.bf16.msra.mxu1 %v13730_v32  ;;  %v5366_v30 = vpop.f32.mrf.mxu1  ;;  %v7821_v20 = vpop.f32.mrf.mxu0  ;;  %v6274_v45 = vpack.c.bf16 %v16115_v25, %v16114_v14  ;;  %v16122_v14 = vld [vmem:[#allocation102_spill] sm:$0xff]  ;;  %v16123_v25 = vld [vmem:[#allocation108_spill] sm:$0xff] }
 0x4a9   : > { %8013 = vmatprep.subr.bf16.mxu1 %v15655_v42 }
 0x4aa   : > { %v5367_v38 = vpop.f32.mrf.mxu1 }
 0x4ab   : > { %v13955_v8 = vadd.f32 %v5536_v58, %v5367_v38  ;;  %v5541_v46 = vpop.f32.mrf.mxu0  ;;  %7951 = vmatmul.mubr.bf16.gmra.mxu0 %v6276_v37  ;;  %v16119_v58 = vld [vmem:[#allocation104_spill] sm:$0xff]  ;;  %v16120_v38 = vld [vmem:[#allocation73_spill] sm:$0xff] }
 0x4ac   : > { %8021 = vmatpush3.bf16.msra.mxu1 %v13739_v4  ;;  %v5369_v57 = vpop.f32.mrf.mxu1  ;;  %7954 = vmatprep.mubr.msk.bf16.mxu0 %vm15678_vm4, %v15655_v42  ;;  %v6279_v30 = vpack.c.bf16 %v16119_v58, %v16118_v61 }
 0x4ad   : > { %8014 = vmatprep.subr.bf16.mxu1 %v15655_v42  ;;  %v7824_v32 = vpop.f32.mrf.mxu0 }
 0x4af   : > { %v5372_v55 = vpop.f32.mrf.mxu1  ;;  %6558 = vmatmul.mubr.bf16.gmra.mxu1 %v6274_v45  ;;  %v5544_v52 = vpop.f32.mrf.mxu0  ;;  %v6281_v45 = vpack.c.bf16 %v16123_v25, %v16122_v14 }
 0x4b0   : > { %v13965_v28 = vadd.f32 %v5541_v46, %v5372_v55  ;;  %6565 = vmatprep.mubr.bf16.mxu1 %v6278_v0  ;;  %8022 = vmatpush3.bf16.msra.mxu1 %v13747_v60  ;;  %v16121_v46 = vld [vmem:[#allocation80_spill] sm:$0xff]  ;;  %v16124_v55 = vld [vmem:[#allocation105_spill] sm:$0xff] }
 0x4b1   : > { %v5374_v4 = vpop.f32.mrf.mxu1  ;;  %8015 = vmatprep.subr.bf16.mxu1 %v15655_v42  ;;  %v7825_v34 = vpop.f32.mrf.mxu0  ;;  %v6277_v57 = vpack.c.bf16 %v16121_v46, %v16120_v38  ;;  %v16128_v38 = vld [vmem:[#allocation109_spill] sm:$0xff]  ;;  %v16129_v46 = vld [vmem:[#allocation115_spill] sm:$0xff] }
 0x4b3   : > { %v5375_v20 = vpop.f32.mrf.mxu1  ;;  %v5549_v16 = vpop.f32.mrf.mxu0  ;;  %7955 = vmatmul.mubr.bf16.gmra.mxu0 %v6279_v30 }
 0x4b4   : > { %v13971_v6 = vadd.f32 %v5544_v52, %v5375_v20  ;;  %8023 = vmatpush3.bf16.msra.mxu1 %v13757_v31  ;;  %7958 = vmatprep.mubr.msk.bf16.mxu0 %vm15678_vm4, %v15655_v42  ;;  %v16125_v52 = vld [vmem:[#allocation111_spill] sm:$0xff]  ;;  %v16126_v20 = vld [vmem:[#allocation36_spill] sm:$0xff] }
 0x4b5   : > { %v5377_v37 = vpop.f32.mrf.mxu1  ;;  %8016 = vmatprep.subr.bf16.mxu1 %v15655_v42  ;;  %v7828_v60 = vpop.f32.mrf.mxu0  ;;  %v6282_v4 = vpack.c.bf16 %v16125_v52, %v16124_v55 }
 0x4b7   : > { %v5380_v32 = vpop.f32.mrf.mxu1  ;;  %6566 = vmatmul.mubr.bf16.gmra.mxu1 %v6277_v57  ;;  %v5552_v56 = vpop.f32.mrf.mxu0  ;;  %v6284_v57 = vpack.c.bf16 %v16129_v46, %v16128_v38 }
 0x4b8   : > { %v13981_v39 = vadd.f32 %v5549_v16, %v5380_v32  ;;  %6573 = vmatprep.mubr.bf16.mxu1 %v6281_v45  ;;  %8024 = vmatpush3.bf16.msra.mxu1 %v13765_v63  ;;  %v16127_v16 = vld [vmem:[#allocation52_spill] sm:$0xff] }
 0x4b9   : > { %v5382_v31 = vpop.f32.mrf.mxu1  ;;  %8017 = vmatprep.subr.bf16.mxu1 %v15655_v42  ;;  %v7829_v0 = vpop.f32.mrf.mxu0  ;;  %v6280_v37 = vpack.c.bf16 %v16127_v16, %v16126_v20  ;;  %v16134_v16 = vld [vmem:[#allocation34_spill] sm:$0xff] }
 0x4bb   : > { %v5383_v34 = vpop.f32.mrf.mxu1  ;;  %v5557_v58 = vpop.f32.mrf.mxu0  ;;  %7959 = vmatmul.mubr.bf16.gmra.mxu0 %v6282_v4 }
 0x4bc   : > { %v13987_v61 = vadd.f32 %v5552_v56, %v5383_v34  ;;  %8025 = vmatpush3.bf16.msra.mxu1 %v13775_v62  ;;  %7962 = vmatprep.mubr.msk.bf16.mxu0 %vm15678_vm4, %v15655_v42  ;;  %v16130_v62 = vld [vmem:[#allocation112_spill] sm:$0xff]  ;;  %v16131_v56 = vld [vmem:[#allocation117_spill] sm:$0xff] }
 0x4bd   : > { %v5385_v30 = vpop.f32.mrf.mxu1  ;;  %v7832_v63 = vpop.f32.mrf.mxu0  ;;  %v6285_v31 = vpack.c.bf16 %v16131_v56, %v16130_v62  ;;  %v16132_v34 = vld [vmem:[#allocation17_spill] sm:$0xff] }
 0x4be   : > { %v16133_v30 = vld [vmem:[#allocation25_spill] sm:$0xff] }
 0x4bf   : > { %v5388_v60 = vpop.f32.mrf.mxu1  ;;  %6574 = vmatmul.mubr.bf16.gmra.mxu1 %v6280_v37  ;;  %v5560_v25 = vpop.f32.mrf.mxu0  ;;  %v6283_v20 = vpack.c.bf16 %v16133_v30, %v16132_v34  ;;  %v16135_v37 = vld [vmem:[#allocation119_spill] sm:$0xff]  ;;  %v16140_v30 = vld [vmem:[#allocation41_spill] sm:$0xff] }
 0x4c0   : > { %v13996_v14 = vadd.f32 %v5557_v58, %v5388_v60  ;;  %6581 = vmatprep.mubr.bf16.mxu1 %v6284_v57  ;;  %v6287_v63 = vpack.c.bf16 %v16135_v37, %v16134_v16  ;;  %v16139_v34 = vld [vmem:[#allocation83_spill] sm:$0xff] }
 0x4c1   : > { %v5390_v45 = vpop.f32.mrf.mxu1  ;;  %v7833_v32 = vpop.f32.mrf.mxu0  ;;  %v16142_v16 = vld [vmem:[#allocation123_spill] sm:$0xff] }
 0x4c2   : > { %v16136_v45 = vld [vmem:[#allocation118_spill] sm:$0xff] }
 0x4c3   : > { %v5391_v0 = vpop.f32.mrf.mxu1  ;;  %v5565_v52 = vpop.f32.mrf.mxu0  ;;  %7963 = vmatmul.mubr.bf16.gmra.mxu0 %v6285_v31  ;;  %v16137_v32 = vld [vmem:[#allocation122_spill] sm:$0xff] }
 0x4c4   : > { %v14000_v55 = vadd.f32 %v5560_v25, %v5391_v0  ;;  %7966 = vmatprep.mubr.msk.bf16.mxu0 %vm15678_vm4, %v15655_v42  ;;  %v6288_v62 = vpack.c.bf16 %v16137_v32, %v16136_v45  ;;  %v16143_v45 = vld [vmem:[#allocation85_spill] sm:$0xff]  ;;  %v16144_v32 = vld [vmem:[#allocation38_spill] sm:$0xff] }
 0x4c5   : > { %v5393_v4 = vpop.f32.mrf.mxu1  ;;  %v7836_v58 = vpop.f32.mrf.mxu0 }
 0x4c6   : > { %v6286_v58 = vpack.c.bf16 %v16140_v30, %v16139_v34 }
 0x4c7   : > { %v5396_v38 = vpop.f32.mrf.mxu1  ;;  %6582 = vmatmul.mubr.bf16.gmra.mxu1 %v6283_v20  ;;  %v5568_v57 = vpop.f32.mrf.mxu0  ;;  %v16141_v20 = vld [vmem:[#allocation121_spill] sm:$0xff] }
 0x4c8   : > { %v14008_v46 = vadd.f32 %v5565_v52, %v5396_v38  ;;  %6589 = vmatprep.mubr.bf16.mxu1 %v6287_v63  ;;  %v6290_v37 = vpack.c.bf16 %v16142_v16, %v16141_v20  ;;  %v16149_v16 = vld [vmem:[#allocation47_spill] sm:$0xff] }
 0x4c9   : > { %v5398_v60 = vpop.f32.mrf.mxu1  ;;  %v7837_v25 = vpop.f32.mrf.mxu0 }
 0x4cb   : > { %v5399_v56 = vpop.f32.mrf.mxu1  ;;  %v5573_v0 = vpop.f32.mrf.mxu0  ;;  %7967 = vmatmul.mubr.bf16.gmra.mxu0 %v6288_v62  ;;  %v6291_v62 = vpack.c.bf16 %v16144_v32, %v16143_v45 }
 0x4cc   : > { %v14012_v31 = vadd.f32 %v5568_v57, %v5399_v56  ;;  %7970 = vmatprep.mubr.msk.bf16.mxu0 %vm15678_vm4, %v15655_v42 }
 0x4cd   : > { %v5401_v4 = vpop.f32.mrf.mxu1  ;;  %v7840_v52 = vpop.f32.mrf.mxu0 }
 0x4ce   : > { %16138 = vst [vmem:[#allocation95_spill] sm:$0xff] %v14012_v31  ;;  %v16146_v52 = vld [vmem:[#allocation45_spill] sm:$0xff] }
 0x4cf   : > { %v5404_v63 = vpop.f32.mrf.mxu1  ;;  %6590 = vmatmul.mubr.bf16.gmra.mxu1 %v6286_v58  ;;  %v5576_v57 = vpop.f32.mrf.mxu0  ;;  %v16147_v31 = vld [vmem:[#allocation13_spill] sm:$0xff] }
 0x4d0   : > { %v14020_v38 = vadd.f32 %v5573_v0, %v5404_v63  ;;  %6597 = vmatprep.mubr.bf16.mxu1 %v6290_v37  ;;  %v6289_v20 = vpack.c.bf16 %v16147_v31, %v16146_v52  ;;  %v16148_v58 = vld [vmem:[#allocation125_spill] sm:$0xff] }
 0x4d1   : > { %v5406_v60 = vpop.f32.mrf.mxu1  ;;  %v7841_v25 = vpop.f32.mrf.mxu0  ;;  %v6293_v37 = vpack.c.bf16 %v16149_v16, %v16148_v58  ;;  %v16152_v58 = vld [vmem:[#allocation31_spill] sm:$0xff]  ;;  %v16153_v16 = vld [vmem:[#allocation22_spill] sm:$0xff] }
 0x4d3   : > { %v5407_v56 = vpop.f32.mrf.mxu1  ;;  %v6131_v34 = vpop.f32.mrf.mxu0  ;;  %7971 = vmatmul.mubr.bf16.gmra.mxu0 %v6291_v62  ;;  %v16150_v62 = vld [vmem:[#allocation126_spill] sm:$0xff] }
 0x4d4   : > { %v14024_v4 = vadd.f32 %v5576_v57, %v5407_v56  ;;  %7974 = vmatprep.mubr.msk.bf16.mxu0 %vm15678_vm4, %v15655_v42  ;;  %v16151_v56 = vld [vmem:[#allocation57_spill] sm:$0xff] }
 0x4d5   : > { %v5409_v30 = vpop.f32.mrf.mxu1  ;;  %v7860_v0 = vpop.f32.mrf.mxu0  ;;  %v6294_v31 = vpack.c.bf16 %v16151_v56, %v16150_v62 }
 0x4d6   : > { %16145 = vst [vmem:[#allocation96_spill] sm:$0xff] %v14024_v4 }
 0x4d7   : > { %v5962_v63 = vpop.f32.mrf.mxu1  ;;  %6598 = vmatmul.mubr.bf16.gmra.mxu1 %v6289_v20  ;;  %v6134_v57 = vpop.f32.mrf.mxu0  ;;  %v6292_v20 = vpack.c.bf16 %v16153_v16, %v16152_v58 }
 0x4d8   : > { %v5963_v60 = vadd.f32 %v5962_v63, %v13821_v1  ;;  %6605 = vmatprep.mubr.bf16.mxu1 %v6293_v37  ;;  %v16154_v37 = vld [vmem:[#allocation69_spill] sm:$0xff]  ;;  %v16155_v63 = vld [vmem:[#allocation128_spill] sm:$0xff] }
 0x4d9   : > { %v5964_v25 = vpop.f32.mrf.mxu1  ;;  %v7861_v32 = vpop.f32.mrf.mxu0 }
 0x4da   : > { %v14033_v45 = vadd.f32 %v6131_v34, %v5963_v60  ;;  %v6296_v60 = vpack.c.bf16 %v16155_v63, %v16154_v37  ;;  %v16158_v37 = vld [vmem:[#allocation62_spill] sm:$0xff]  ;;  %v16159_v63 = vld [vmem:[#allocation89_spill] sm:$0xff] }
 0x4db   : > { %v5965_v30 = vpop.f32.mrf.mxu1  ;;  %v6139_v0 = vpop.f32.mrf.mxu0  ;;  %7975 = vmatmul.mubr.bf16.gmra.mxu0 %v6294_v31  ;;  %v16156_v31 = vld [vmem:[#allocation19_spill] sm:$0xff] }
 0x4dc   : > { %v5966_v52 = vadd.f32 %v5965_v30, %v13827_v7  ;;  %7978 = vmatprep.mubr.msk.bf16.mxu0 %vm15678_vm4, %v15655_v42  ;;  %v16157_v30 = vld [vmem:[#allocation70_spill] sm:$0xff] }
 0x4dd   : > { %v5967_v4 = vpop.f32.mrf.mxu1  ;;  %v7864_v34 = vpop.f32.mrf.mxu0  ;;  %v6297_v58 = vpack.c.bf16 %v16157_v30, %v16156_v31 }
 0x4de   : > { %v14042_v1 = vadd.f32 %v6134_v57, %v5966_v52 }
 0x4df   : > { %v5970_v25 = vpop.f32.mrf.mxu1  ;;  %6606 = vmatmul.mubr.bf16.gmra.mxu1 %v6292_v20  ;;  %v6142_v7 = vpop.f32.mrf.mxu0  ;;  %v6295_v20 = vpack.c.bf16 %v16159_v63, %v16158_v37 }
 0x4e0   : > { %v5971_v32 = vadd.f32 %v5970_v25, %v13835_v24  ;;  %6613 = vmatprep.mubr.bf16.mxu1 %v6296_v60  ;;  %v16160_v60 = vld [vmem:[#allocation129_spill] sm:$0xff]  ;;  %v16161_v25 = vld [vmem:[#allocation71_spill] sm:$0xff] }
 0x4e1   : > { %v5972_v62 = vpop.f32.mrf.mxu1  ;;  %v7865_v56 = vpop.f32.mrf.mxu0 }
 0x4e2   : > { %v14047_v4 = vadd.f32 %v6139_v0, %v5971_v32  ;;  %v6299_v32 = vpack.c.bf16 %v16161_v25, %v16160_v60  ;;  %v16164_v60 = vld [vmem:[#allocation44_spill] sm:$0xff]  ;;  %v16165_v25 = vld [vmem:[#allocation65_spill] sm:$0xff] }
 0x4e3   : > { %v5973_v16 = vpop.f32.mrf.mxu1  ;;  %v6147_v52 = vpop.f32.mrf.mxu0  ;;  %7979 = vmatmul.mubr.bf16.gmra.mxu0 %v6297_v58 }
 0x4e4   : > { %v5974_v57 = vadd.f32 %v5973_v16, %v13840_v40  ;;  %7982 = vmatprep.mubr.msk.bf16.mxu0 %vm15678_vm4, %v15655_v42  ;;  %v16162_v16 = vld [vmem:[#allocation130_spill] sm:$0xff] }
 0x4e5   : > { %v5975_v34 = vpop.f32.mrf.mxu1  ;;  %v7868_v0 = vpop.f32.mrf.mxu0 }
 0x4e6   : > { %v14056_v24 = vadd.f32 %v6142_v7, %v5974_v57  ;;  %v16163_v34 = vld [vmem:[#allocation77_spill] sm:$0xff] }
 0x4e7   : > { %v5978_v62 = vpop.f32.mrf.mxu1  ;;  %6614 = vmatmul.mubr.bf16.gmra.mxu1 %v6295_v20  ;;  %v6150_v40 = vpop.f32.mrf.mxu0  ;;  %v6300_v37 = vpack.c.bf16 %v16163_v34, %v16162_v16  ;;  %v6298_v20 = vpack.c.bf16 %v16165_v25, %v16164_v60 }
 0x4e8   : > { %v5979_v56 = vadd.f32 %v5978_v62, %v13846_v48  ;;  %6621 = vmatprep.mubr.bf16.mxu1 %v6299_v32  ;;  %v16166_v32 = vld [vmem:[#allocation39_spill] sm:$0xff]  ;;  %v16167_v62 = vld [vmem:[#allocation26_spill] sm:$0xff] }
 0x4e9   : > { %v5980_v31 = vpop.f32.mrf.mxu1  ;;  %v7869_v58 = vpop.f32.mrf.mxu0 }
 0x4ea   : > { %v14061_v30 = vadd.f32 %v6147_v52, %v5979_v56  ;;  %v6302_v56 = vpack.c.bf16 %v16167_v62, %v16166_v32  ;;  %v16170_v32 = vld [vmem:[#allocation43_spill] sm:$0xff] }
 0x4eb   : > { %v5981_v63 = vpop.f32.mrf.mxu1  ;;  %v6155_v57 = vpop.f32.mrf.mxu0  ;;  %7983 = vmatmul.mubr.bf16.gmra.mxu0 %v6300_v37  ;;  %v16171_v62 = vld [vmem:[#allocation35_spill] sm:$0xff] }
 0x4ec   : > { %v5982_v7 = vadd.f32 %v5981_v63, %v13851_v21  ;;  %7986 = vmatprep.mubr.msk.bf16.mxu0 %vm15678_vm4, %v15655_v42  ;;  %v16168_v63 = vld [vmem:[#allocation48_spill] sm:$0xff] }
 0x4ed   : > { %v5983_v0 = vpop.f32.mrf.mxu1  ;;  %v7872_v52 = vpop.f32.mrf.mxu0 }
 0x4ee   : > { %v14070_v48 = vadd.f32 %v6150_v40, %v5982_v7  ;;  %v16169_v0 = vld [vmem:[#allocation82_spill] sm:$0xff] }
 0x4ef   : > { %v5986_v31 = vpop.f32.mrf.mxu1  ;;  %6622 = vmatmul.mubr.bf16.gmra.mxu1 %v6298_v20  ;;  %v6158_v21 = vpop.f32.mrf.mxu0  ;;  %v6303_v60 = vpack.c.bf16 %v16169_v0, %v16168_v63  ;;  %v6301_v20 = vpack.c.bf16 %v16171_v62, %v16170_v32 }
 0x4f0   : > { %v5987_v58 = vadd.f32 %v5986_v31, %v13861_v35  ;;  %6629 = vmatprep.mubr.bf16.mxu1 %v6302_v56  ;;  %v16172_v56 = vld [vmem:[#allocation51_spill] sm:$0xff]  ;;  %v16173_v31 = vld [vmem:[#allocation46_spill] sm:$0xff] }
 0x4f1   : > { %v5988_v16 = vpop.f32.mrf.mxu1  ;;  %v7873_v37 = vpop.f32.mrf.mxu0 }
 0x4f2   : > { %v14075_v34 = vadd.f32 %v6155_v57, %v5987_v58  ;;  %v6305_v58 = vpack.c.bf16 %v16173_v31, %v16172_v56  ;;  %v16176_v56 = vld [vmem:[#allocation90_spill] sm:$0xff] }
 0x4f3   : > { %v5989_v25 = vpop.f32.mrf.mxu1  ;;  %v6163_v7 = vpop.f32.mrf.mxu0  ;;  %7987 = vmatmul.mubr.bf16.gmra.mxu0 %v6303_v60  ;;  %v16177_v31 = vld [vmem:[#allocation50_spill] sm:$0xff] }
 0x4f4   : > { %v5990_v40 = vadd.f32 %v5989_v25, %v13863_v33  ;;  %7990 = vmatprep.mubr.msk.bf16.mxu0 %vm15678_vm4, %v15655_v42  ;;  %v16174_v25 = vld [vmem:[#allocation56_spill] sm:$0xff] }
 0x4f5   : > { %v5991_v52 = vpop.f32.mrf.mxu1  ;;  %v7876_v57 = vpop.f32.mrf.mxu0 }
 0x4f6   : > { %v14084_v35 = vadd.f32 %v6158_v21, %v5990_v40  ;;  %v16175_v52 = vld [vmem:[#allocation40_spill] sm:$0xff] }
 0x4f7   : > { %v5994_v16 = vpop.f32.mrf.mxu1  ;;  %6630 = vmatmul.mubr.bf16.gmra.mxu1 %v6301_v20  ;;  %v6166_v33 = vpop.f32.mrf.mxu0  ;;  %v6306_v32 = vpack.c.bf16 %v16175_v52, %v16174_v25  ;;  %v6304_v20 = vpack.c.bf16 %v16177_v31, %v16176_v56 }
 0x4f8   : > { %v5995_v37 = vadd.f32 %v5994_v16, %v13869_v22  ;;  %6637 = vmatprep.mubr.bf16.mxu1 %v6305_v58 }
 0x4f9   : > { %v5996_v63 = vpop.f32.mrf.mxu1  ;;  %v7877_v60 = vpop.f32.mrf.mxu0 }
 0x4fa   : > { %v14089_v0 = vadd.f32 %v6163_v7, %v5995_v37  ;;  %v16178_v37 = vpack.c.bf16 %v13486_v47, %v13445_v29 }
 0x4fb   : > { %v5997_v62 = vpop.f32.mrf.mxu1  ;;  %v6171_v40 = vpop.f32.mrf.mxu0  ;;  %7991 = vmatmul.mubr.bf16.gmra.mxu0 %v6306_v32 }
 0x4fc   : > { %v5998_v21 = vadd.f32 %v5997_v62, %v13872_v44  ;;  %7994 = vmatprep.mubr.msk.bf16.mxu0 %vm15678_vm4, %v15655_v42 }
 0x4fd   : > { %v5999_v57 = vpop.f32.mrf.mxu1  ;;  %v7880_v7 = vpop.f32.mrf.mxu0 }
 0x4fe   : > { %v14098_v22 = vadd.f32 %v6166_v33, %v5998_v21  ;;  %v16179_v33 = vpack.c.bf16 %v16025_v11, %v13466_v51  ;;  %v16180_v57 = vld [vmem:[#allocation32_spill] sm:$0xff] }
 0x4ff   : > { %v6002_v58 = vpop.f32.mrf.mxu1  ;;  %6638 = vmatmul.mubr.bf16.gmra.mxu1 %v6304_v20  ;;  %v6174_v44 = vpop.f32.mrf.mxu0 }
 0x500   : > { %v6003_v16 = vadd.f32 %v6002_v58, %v13878_v53  ;;  %6645 = vmatprep.mubr.bf16.mxu1 %v16178_v37  ;;  %v16181_v53 = vld [vmem:[#allocation72_spill] sm:$0xff] }
 0x501   : > { %v6004_v63 = vpop.f32.mrf.mxu1  ;;  %v7881_v25 = vpop.f32.mrf.mxu0  ;;  %v6307_v56 = vpack.c.bf16 %v16181_v53, %v16180_v57 }
 0x502   : > { %v14104_v60 = vadd.f32 %v6171_v40, %v6003_v16  ;;  %v16184_v25 = vld [vmem:[#allocation60_spill] sm:$0xff] }
 0x503   : > { %v6005_v52 = vpop.f32.mrf.mxu1  ;;  %v6179_v62 = vpop.f32.mrf.mxu0  ;;  %7995 = vmatmul.mubr.bf16.gmra.mxu0 %v16179_v33 }
 0x504   : > { %v6006_v32 = vadd.f32 %v6005_v52, %v13881_v43  ;;  %7998 = vmatprep.mubr.msk.bf16.mxu0 %vm15678_vm4, %v15655_v42  ;;  %v16182_v43 = vpack.c.bf16 %v16027_v18, %v16026_v12 }
 0x505   : > { %v6007_v21 = vpop.f32.mrf.mxu1  ;;  %v7884_v47 = vpop.f32.mrf.mxu0 }
 0x506   : > { %v14114_v29 = vadd.f32 %v6174_v44, %v6006_v32  ;;  %v16183_v44 = vpack.c.bf16 %v16029_v27, %v16028_v17 }
 0x507   : > { %v6010_v40 = vpop.f32.mrf.mxu1  ;;  %6646 = vmatmul.mubr.bf16.gmra.mxu1 %v6307_v56  ;;  %v6182_v51 = vpop.f32.mrf.mxu0  ;;  %v16186_v56 = vld [vmem:[#allocation76_spill] sm:$0xff] }
 0x508   : > { %v6011_v31 = vadd.f32 %v6010_v40, %v13887_v26  ;;  %6653 = vmatprep.mubr.bf16.mxu1 %v16182_v43  ;;  %v6310_v26 = vpack.c.bf16 %v16094_v9, %v16184_v25  ;;  %v6313_v47 = vpack.c.bf16 %v15965_v36, %v16186_v56 }
 0x509   : > { %v6012_v11 = vpop.f32.mrf.mxu1  ;;  %v7885_v7 = vpop.f32.mrf.mxu0 }
 0x50a   : > { %v14120_v20 = vadd.f32 %v6179_v62, %v6011_v31  ;;  %v16185_v62 = vpack.c.bf16 %v13717_v10, %v16034_v41 }
 0x50b   : > { %v6013_v58 = vpop.f32.mrf.mxu1  ;;  %v6187_v37 = vpop.f32.mrf.mxu0  ;;  %7999 = vmatmul.mubr.bf16.gmra.mxu0 %v16183_v44 }
 0x50c   : > { %v6014_v16 = vadd.f32 %v6013_v58, %v13890_v49 }
 0x50d   : > { %v6015_v63 = vpop.f32.mrf.mxu1  ;;  %v7888_v12 = vpop.f32.mrf.mxu0 }
 0x50e   : > { %v14128_v52 = vadd.f32 %v6182_v51, %v6014_v16  ;;  %v16187_v63 = vmov 0.0|0.0  }
 0x50f   : > { %v6018_v18 = vpop.f32.mrf.mxu1  ;;  %6654 = vmatmul.mubr.bf16.gmra.mxu1 %v6310_v26  ;;  %v6190_v49 = vpop.f32.mrf.mxu0 }
 0x510   : > { %v6019_v32 = vadd.f32 %v6018_v18, %v13896_v54  ;;  %6661 = vmatprep.mubr.bf16.mxu1 %v16185_v62 }
 0x511   : > { %v6020_v33 = vpop.f32.mrf.mxu1  ;;  %v7889_v17 = vpop.f32.mrf.mxu0 }
 0x512   : > { %v14134_v21 = vadd.f32 %v6187_v37, %v6019_v32 }
 0x513   : > { %v6021_v27 = vpop.f32.mrf.mxu1  ;;  %v6195_v9 = vpop.f32.mrf.mxu0 }
 0x514   : > { %v6022_v57 = vadd.f32 %v6021_v27, %v13899_v5  ;;  %v16188_v27 = vld [vmem:[#allocation42_spill] sm:$0xff] }
 0x515   : > { %v6023_v53 = vpop.f32.mrf.mxu1  ;;  %v7892_v54 = vpop.f32.mrf.mxu0 }
 0x516   : > { %v14139_v40 = vadd.f32 %v6190_v49, %v6022_v57  ;;  %v16189_v57 = vld [vmem:[#allocation54_spill] sm:$0xff] }
 0x517   : > { %v6026_v31 = vpop.f32.mrf.mxu1  ;;  %6662 = vmatmul.mubr.bf16.gmra.mxu1 %v6313_v47  ;;  %v6198_v41 = vpop.f32.mrf.mxu0 }
 0x518   : > { %v6027_v10 = vadd.f32 %v6026_v31, %v13907_v59  ;;  %6669 = vmatprep.mubr.bf16.mxu1 %v16019_v19 }
 0x519   : > { %v6028_v43 = vpop.f32.mrf.mxu1  ;;  %v7893_v11 = vpop.f32.mrf.mxu0 }
 0x51a   : > { %v14143_v51 = vadd.f32 %v6195_v9, %v6027_v10 }
 0x51b   : > { %v6029_v5 = vpop.f32.mrf.mxu1  ;;  %v6203_v58 = vpop.f32.mrf.mxu0 }
 0x51c   : > { %v6030_v7 = vadd.f32 %v6029_v5, %v13910_v23 }
 0x51d   : > { %v6031_v16 = vpop.f32.mrf.mxu1  ;;  %v7896_v37 = vpop.f32.mrf.mxu0 }
 0x51e   : > { %v14146_v36 = vadd.f32 %v6198_v41, %v6030_v7  ;;  %v16191_v7 = vld [vmem:[#allocation98_spill] sm:$0xff] }
 0x51f   : > { %v6034_v44 = vpop.f32.mrf.mxu1  ;;  %6670 = vmatmul.mubr.bf16.gmra.mxu1 %v16187_v63  ;;  %v6206_v25 = vpop.f32.mrf.mxu0 }
 0x520   : > { %v6035_v59 = vadd.f32 %v6034_v44, %v13920_v3  ;;  %8002 = vmatprep.mubr.msk.bf16.mxu1 %vm15678_vm4, %v15655_v42  ;;  %v16190_v3 = vpack.c.bf16 %v16188_v27, %v16189_v57 }
 0x521   : > { %v6036_v19 = vpop.f32.mrf.mxu1  ;;  %v7897_v12 = vpop.f32.mrf.mxu0 }
 0x522   : > { %v14152_v26 = vadd.f32 %v6203_v58, %v6035_v59 }
 0x523   : > { %v6037_v18 = vpop.f32.mrf.mxu1  ;;  %v6211_v32 = vpop.f32.mrf.mxu0 }
 0x524   : > { %v6038_v23 = vadd.f32 %v6037_v18, %v13922_v13 }
 0x525   : > { %v6039_v62 = vpop.f32.mrf.mxu1  ;;  %v7900_v33 = vpop.f32.mrf.mxu0 }
 0x526   : > { %v14155_v49 = vadd.f32 %v6206_v25, %v6038_v23 }
 0x527   : > { %v6042_v17 = vpop.f32.mrf.mxu1  ;;  %8003 = vmatmul.mubr.bf16.vlgmr.msra.gmra.mxu1 %v16190_v3  ;;  %v6214_v53 = vpop.f32.mrf.mxu0 }
 0x528   : > { %v6043_v9 = vadd.f32 %v6042_v17, %v13933_v50  ;;  %8006 = vmatprep.mubr.msk.bf16.mxu1 %vm15678_vm4, %v15655_v42 }
 0x529   : > { %v6044_v56 = vpop.f32.mrf.mxu1  ;;  %v7901_v13 = vpop.f32.mrf.mxu0 }
 0x52a   : > { %v14163_v47 = vadd.f32 %v6211_v32, %v6043_v9 }
 0x52b   : > { %v6045_v54 = vpop.f32.mrf.mxu1  ;;  %v6219_v10 = vpop.f32.mrf.mxu0 }
 0x52c   : > { %v6046_v31 = vadd.f32 %v6045_v54, %v13939_v2 }
 0x52d   : > { %v6047_v41 = vpop.f32.mrf.mxu1  ;;  %v7904_v11 = vpop.f32.mrf.mxu0 }
 0x52e   : > { %v14166_v43 = vadd.f32 %v6214_v53, %v6046_v31 }
 0x52f   : > { %v6050_v5 = vpop.f32.mrf.mxu1  ;;  %8007 = vmatmul.mubr.bf16.gmra.mxu1 %v16191_v7  ;;  %v6222_v58 = vpop.f32.mrf.mxu0 }
 0x530   : > { %v6051_v50 = vadd.f32 %v6050_v5, %v13949_v15 }
 0x531   : > { %v6052_v16 = vpop.f32.mrf.mxu1  ;;  %v7905_v37 = vpop.f32.mrf.mxu0 }
 0x532   : > { %v14170_v42 = vadd.f32 %v6219_v10, %v6051_v50 }
 0x533   : > { %v6053_v44 = vpop.f32.mrf.mxu1  ;;  %v6227_v59 = vpop.f32.mrf.mxu0 }
 0x534   : > { %v6054_v63 = vadd.f32 %v6053_v44, %v13955_v8 }
 0x535   : > { %v6055_v2 = vpop.f32.mrf.mxu1  ;;  %v7908_v19 = vpop.f32.mrf.mxu0 }
 0x536   : > { %v14173_v25 = vadd.f32 %v6222_v58, %v6054_v63 }
 0x537   : > { %v6058_v12 = vpop.f32.mrf.mxu1  ;;  %v6230_v23 = vpop.f32.mrf.mxu0 }
 0x538   : > { %v6059_v18 = vadd.f32 %v6058_v12, %v13965_v28 }
 0x539   : > { %v6060_v32 = vpop.f32.mrf.mxu1  ;;  %v7909_v15 = vpop.f32.mrf.mxu0 }
 0x53a   : > { %v14176_v62 = vadd.f32 %v6227_v59, %v6059_v18 }
 0x53b   : > { %v6061_v33 = vpop.f32.mrf.mxu1  ;;  %v6235_v27 = vpop.f32.mrf.mxu0 }
 0x53c   : > { %v6062_v17 = vadd.f32 %v6061_v33, %v13971_v6 }
 0x53d   : > { %v6063_v57 = vpop.f32.mrf.mxu1  ;;  %v7912_v8 = vpop.f32.mrf.mxu0 }
 0x53e   : > { %v14179_v3 = vadd.f32 %v6230_v23, %v6062_v17  ;;  %v16192_v17 = vld [vmem:[#allocation95_spill] sm:$0xff] }
 0x53f   : > { %v6066_v9 = vpop.f32.mrf.mxu1  ;;  %v6238_v56 = vpop.f32.mrf.mxu0 }
 0x540   : > { %v6067_v53 = vadd.f32 %v6066_v9, %v13981_v39 }
 0x541   : > { %v6068_v13 = vpop.f32.mrf.mxu1  ;;  %v7913_v28 = vpop.f32.mrf.mxu0 }
 0x542   : > { %v14182_v54 = vadd.f32 %v6235_v27, %v6067_v53 }
 0x543   : > { %v6069_v31 = vpop.f32.mrf.mxu1  ;;  %v6243_v41 = vpop.f32.mrf.mxu0 }
 0x544   : > { %v6070_v10 = vadd.f32 %v6069_v31, %v13987_v61 }
 0x545   : > { %v6071_v11 = vpop.f32.mrf.mxu1  ;;  %v7916_v6 = vpop.f32.mrf.mxu0 }
 0x546   : > { %v14185_v5 = vadd.f32 %v6238_v56, %v6070_v10 }
 0x547   : > { %v6074_v7 = vpop.f32.mrf.mxu1  ;;  %v6246_v58 = vpop.f32.mrf.mxu0 }
 0x548   : > { %v6075_v50 = vadd.f32 %v6074_v7, %v13996_v14 }
 0x549   : > { %v6076_v16 = vpop.f32.mrf.mxu1  ;;  %v7917_v39 = vpop.f32.mrf.mxu0 }
 0x54a   : > { %v14188_v37 = vadd.f32 %v6243_v41, %v6075_v50  ;;  %v16193_v41 = vld [vmem:[#allocation96_spill] sm:$0xff] }
 0x54b   : > { %v6077_v44 = vpop.f32.mrf.mxu1  ;;  %v6251_v59 = vpop.f32.mrf.mxu0 }
 0x54c   : > { %v6078_v63 = vadd.f32 %v6077_v44, %v14000_v55 }
 0x54d   : > { %v6079_v2 = vpop.f32.mrf.mxu1  ;;  %v7920_v61 = vpop.f32.mrf.mxu0 }
 0x54e   : > { %v14191_v19 = vadd.f32 %v6246_v58, %v6078_v63 }
 0x54f   : > { %v6082_v12 = vpop.f32.mrf.mxu1  ;;  %v6254_v23 = vpop.f32.mrf.mxu0 }
 0x550   : > { %v6083_v18 = vadd.f32 %v6082_v12, %v14008_v46 }
 0x551   : > { %v6084_v32 = vpop.f32.mrf.mxu1  ;;  %v7921_v14 = vpop.f32.mrf.mxu0 }
 0x552   : > { %v14194_v15 = vadd.f32 %v6251_v59, %v6083_v18 }
 0x553   : > { %v6085_v33 = vpop.f32.mrf.mxu1  ;;  %v6259_v57 = vpop.f32.mrf.mxu0 }
 0x554   : > { %v6086_v27 = vadd.f32 %v6085_v33, %v16192_v17 }
 0x555   : > { %v6087_v8 = vpop.f32.mrf.mxu1  ;;  %v7924_v55 = vpop.f32.mrf.mxu0 }
 0x556   : > { %v14197_v9 = vadd.f32 %v6254_v23, %v6086_v27 }
 0x557   : > { %v6090_v53 = vpop.f32.mrf.mxu1  ;;  %v6262_v13 = vpop.f32.mrf.mxu0 }
 0x558   : > { %v6091_v56 = vadd.f32 %v6090_v53, %v14020_v38  ;;  %v14208_v38 = vld [vmem:[%s14406_s6] ss:$0 sm:$0xff] }
 0x559   : > { %v6092_v28 = vpop.f32.mrf.mxu1  ;;  %v7925_v46 = vpop.f32.mrf.mxu0  ;;  %v8354_v53 = vld [vmem:[%s8725_s13] sm:$0xff] }
 0x55a   : > { %v14200_v31 = vadd.f32 %v6259_v57, %v6091_v56 }
 0x55b   : > { %v6093_v10 = vpop.f32.mrf.mxu1  ;;  %v6712_v6 = vpop.f32.mrf.mxu0 }
 0x55c   : > { %v6094_v11 = vadd.f32 %v6093_v10, %v16193_v41 }
 0x55d   : > { %v6095_v7 = vpop.f32.mrf.mxu1  ;;  %v7944_v58 = vpop.f32.mrf.mxu0 }
 0x55e   : > { %v14203_v50 = vadd.f32 %v6262_v13, %v6094_v11  ;;  %v8355_v58 = vld [vmem:[%s8725_s13 + $0x8] sm:$0xff] }
 0x55f   : > { %v6543_v16 = vpop.f32.mrf.mxu1  ;;  %v6715_v44 = vpop.f32.mrf.mxu0 }
 0x560   : > { %v6713_v39 = vadd.f32 %v6712_v6, %v6543_v16 }
 0x561   : > { %v6545_v63 = vpop.f32.mrf.mxu1  ;;  %v7945_v2 = vpop.f32.mrf.mxu0 }
 0x562   : > { %v6847_v59 = vadd.f32 %v6713_v39, %v14033_v45 }
 0x563   : > { %v6546_v61 = vpop.f32.mrf.mxu1  ;;  %v6720_v23 = vpop.f32.mrf.mxu0 }
 0x564   : > { %v6888_v12 = vadd.f32 %v14208_v38, %v6847_v59  ;;  %v6716_v18 = vadd.f32 %v6715_v44, %v6546_v61 }
 0x565   : > { %v6548_v32 = vpop.f32.mrf.mxu1  ;;  %v7948_v17 = vpop.f32.mrf.mxu0 }
 0x566   : > { %vm6922_vm4 = vcmp.ge.f32.partialorder %v6888_v12, 0.0  ;;  %v6956_v14 = vmul.f32 0.2, %v6888_v12  ;;  %v6848_v33 = vadd.f32 %v6716_v18, %v14042_v1 }
 0x567   : > { %v6551_v27 = vpop.f32.mrf.mxu1  ;;  %v6723_v45 = vpop.f32.mrf.mxu0 }
 0x568   : > { %v6990_v57 = vsel %vm6922_vm4, %v6888_v12, %v6956_v14  ;;  %v6889_v8 = vadd.f32 %v14208_v38, %v6848_v33  ;;  %v6721_v55 = vadd.f32 %v6720_v23, %v6551_v27  ;;  %v8356_v23 = vld [vmem:[%s8725_s13 + $0x10] sm:$0xff] }
 0x569   : > { %v7024_v56 = vadd.f32 %v8354_v53, %v6990_v57  ;;  %v6553_v13 = vpop.f32.mrf.mxu1  ;;  %v7949_v10 = vpop.f32.mrf.mxu0  ;;  %v8357_v53 = vld [vmem:[%s8725_s13 + $0x18] sm:$0xff] }
 0x56a   : > { %vm6923_vm1 = vcmp.ge.f32.partialorder %v6889_v8, 0.0  ;;  %v6957_v28 = vmul.f32 0.2, %v6889_v8  ;;  %v6849_v46 = vadd.f32 %v6721_v55, %v14047_v4 }
 0x56b   : > { %7058 = vst [vmem:[%s14218_s29] sm:$0xff] %v7024_v56  ;;  %v6554_v1 = vpop.f32.mrf.mxu1  ;;  %v6728_v7 = vpop.f32.mrf.mxu0 }
 0x56c   : > { %v6991_v41 = vsel %vm6923_vm1, %v6889_v8, %v6957_v28  ;;  %v6890_v11 = vadd.f32 %v14208_v38, %v6849_v46  ;;  %v6724_v6 = vadd.f32 %v6723_v45, %v6554_v1 }
 0x56d   : > { %v7025_v16 = vadd.f32 %v8355_v58, %v6991_v41  ;;  %v6556_v39 = vpop.f32.mrf.mxu1  ;;  %v7952_v63 = vpop.f32.mrf.mxu0 }
 0x56e   : > { %vm6924_vm13 = vcmp.ge.f32.partialorder %v6890_v11, 0.0  ;;  %v6958_v44 = vmul.f32 0.2, %v6890_v11  ;;  %v6850_v4 = vadd.f32 %v6724_v6, %v14056_v24 }
 0x56f   : > { %7059 = vst [vmem:[%s14218_s29 + $0x8] sm:$0xff] %v7025_v16  ;;  %v6559_v59 = vpop.f32.mrf.mxu1  ;;  %v6731_v18 = vpop.f32.mrf.mxu0 }
 0x570   : > { %v6992_v2 = vsel %vm6924_vm13, %v6890_v11, %v6958_v44  ;;  %v6891_v61 = vadd.f32 %v14208_v38, %v6850_v4  ;;  %v6729_v12 = vadd.f32 %v6728_v7, %v6559_v59  ;;  %v8358_v7 = vld [vmem:[%s8725_s13 + $0x20] sm:$0xff] }
 0x571   : > { %v7026_v32 = vadd.f32 %v8356_v23, %v6992_v2  ;;  %v6561_v14 = vpop.f32.mrf.mxu1  ;;  %v7953_v27 = vpop.f32.mrf.mxu0 }
 0x572   : > { %vm6925_vm3 = vcmp.ge.f32.partialorder %v6891_v61, 0.0  ;;  %v6959_v33 = vmul.f32 0.2, %v6891_v61  ;;  %v6851_v17 = vadd.f32 %v6729_v12, %v14061_v30  ;;  %v8359_v12 = vld [vmem:[%s8725_s13 + $0x28] sm:$0xff] }
 0x573   : > { %7060 = vst [vmem:[%s14218_s29 + $0x10] sm:$0xff] %v7026_v32  ;;  %v6562_v24 = vpop.f32.mrf.mxu1  ;;  %v6736_v45 = vpop.f32.mrf.mxu0 }
 0x574   : > { %v6993_v57 = vsel %vm6925_vm3, %v6891_v61, %v6959_v33  ;;  %v6892_v8 = vadd.f32 %v14208_v38, %v6851_v17  ;;  %v6732_v55 = vadd.f32 %v6731_v18, %v6562_v24 }
 0x575   : > { %v7027_v56 = vadd.f32 %v8357_v53, %v6993_v57  ;;  %v6564_v13 = vpop.f32.mrf.mxu1  ;;  %v7956_v10 = vpop.f32.mrf.mxu0 }
 0x576   : > { %vm6926_vm2 = vcmp.ge.f32.partialorder %v6892_v8, 0.0  ;;  %v6960_v28 = vmul.f32 0.2, %v6892_v8  ;;  %v6852_v46 = vadd.f32 %v6732_v55, %v14070_v48 }
 0x577   : > { %7061 = vst [vmem:[%s14218_s29 + $0x18] sm:$0xff] %v7027_v56  ;;  %v6567_v30 = vpop.f32.mrf.mxu1  ;;  %v6739_v6 = vpop.f32.mrf.mxu0 }
 0x578   : > { %v6994_v1 = vsel %vm6926_vm2, %v6892_v8, %v6960_v28  ;;  %v6893_v41 = vadd.f32 %v14208_v38, %v6852_v46  ;;  %v6737_v11 = vadd.f32 %v6736_v45, %v6567_v30  ;;  %v8360_v8 = vld [vmem:[%s8725_s13 + $0x30] sm:$0xff] }
 0x579   : > { %v7028_v58 = vadd.f32 %v8358_v7, %v6994_v1  ;;  %v6569_v16 = vpop.f32.mrf.mxu1  ;;  %v7957_v4 = vpop.f32.mrf.mxu0  ;;  %v8361_v1 = vld [vmem:[%s8725_s13 + $0x38] sm:$0xff] }
 0x57a   : > { %vm6927_vm10 = vcmp.ge.f32.partialorder %v6893_v41, 0.0  ;;  %v6961_v39 = vmul.f32 0.2, %v6893_v41  ;;  %v6853_v44 = vadd.f32 %v6737_v11, %v14075_v34 }
 0x57b   : > { %7062 = vst [vmem:[%s14218_s29 + $0x20] sm:$0xff] %v7028_v58  ;;  %v6570_v48 = vpop.f32.mrf.mxu1  ;;  %v6744_v61 = vpop.f32.mrf.mxu0 }
 0x57c   : > { %v6995_v63 = vsel %vm6927_vm10, %v6893_v41, %v6961_v39  ;;  %v6894_v59 = vadd.f32 %v14208_v38, %v6853_v44  ;;  %v6740_v2 = vadd.f32 %v6739_v6, %v6570_v48  ;;  %v8362_v48 = vld [vmem:[%s8725_s13 + $0x40] sm:$0xff] }
 0x57d   : > { %v7029_v18 = vadd.f32 %v8359_v12, %v6995_v63  ;;  %v6572_v23 = vpop.f32.mrf.mxu1  ;;  %v7960_v33 = vpop.f32.mrf.mxu0 }
 0x57e   : > { %vm6928_vm6 = vcmp.ge.f32.partialorder %v6894_v59, 0.0  ;;  %v6962_v32 = vmul.f32 0.2, %v6894_v59  ;;  %v6854_v14 = vadd.f32 %v6740_v2, %v14084_v35  ;;  %v8363_v33 = vld [vmem:[%s8725_s13 + $0x48] sm:$0xff] }
 0x57f   : > { %7063 = vst [vmem:[%s14218_s29 + $0x28] sm:$0xff] %v7029_v18  ;;  %v6575_v34 = vpop.f32.mrf.mxu1  ;;  %v6747_v57 = vpop.f32.mrf.mxu0 }
 0x580   : > { %v6996_v17 = vsel %vm6928_vm6, %v6894_v59, %v6962_v32  ;;  %v6895_v27 = vadd.f32 %v14208_v38, %v6854_v14  ;;  %v6745_v24 = vadd.f32 %v6744_v61, %v6575_v34 }
 0x581   : > { %v7030_v55 = vadd.f32 %v8360_v8, %v6996_v17  ;;  %v6577_v45 = vpop.f32.mrf.mxu1  ;;  %v7961_v13 = vpop.f32.mrf.mxu0 }
 0x582   : > { %vm6929_vm7 = vcmp.ge.f32.partialorder %v6895_v27, 0.0  ;;  %v6963_v53 = vmul.f32 0.2, %v6895_v27  ;;  %v6855_v56 = vadd.f32 %v6745_v24, %v14089_v0 }
 0x583   : > { %7064 = vst [vmem:[%s14218_s29 + $0x30] sm:$0xff] %v7030_v55  ;;  %v6578_v35 = vpop.f32.mrf.mxu1  ;;  %v6752_v30 = vpop.f32.mrf.mxu0 }
 0x584   : > { %v6997_v28 = vsel %vm6929_vm7, %v6895_v27, %v6963_v53  ;;  %v6896_v46 = vadd.f32 %v14208_v38, %v6855_v56  ;;  %v6748_v10 = vadd.f32 %v6747_v57, %v6578_v35  ;;  %v8364_v56 = vld [vmem:[%s8725_s13 + $0x50] sm:$0xff] }
 0x585   : > { %v7031_v41 = vadd.f32 %v8361_v1, %v6997_v28  ;;  %v6580_v11 = vpop.f32.mrf.mxu1  ;;  %v7964_v58 = vpop.f32.mrf.mxu0 }
 0x586   : > { %vm6930_vm14 = vcmp.ge.f32.partialorder %v6896_v46, 0.0  ;;  %v6964_v6 = vmul.f32 0.2, %v6896_v46  ;;  %v6856_v7 = vadd.f32 %v6748_v10, %v14098_v22 }
 0x587   : > { %7065 = vst [vmem:[%s14218_s29 + $0x38] sm:$0xff] %v7031_v41  ;;  %v6583_v0 = vpop.f32.mrf.mxu1  ;;  %v6755_v4 = vpop.f32.mrf.mxu0 }
 0x588   : > { %v6998_v16 = vsel %vm6930_vm14, %v6896_v46, %v6964_v6  ;;  %v6897_v39 = vadd.f32 %v14208_v38, %v6856_v7  ;;  %v6753_v44 = vadd.f32 %v6752_v30, %v6583_v0  ;;  %v8365_v6 = vld [vmem:[%s8725_s13 + $0x58] sm:$0xff] }
 0x589   : > { %v7032_v63 = vadd.f32 %v8362_v48, %v6998_v16  ;;  %v6585_v59 = vpop.f32.mrf.mxu1  ;;  %v7965_v12 = vpop.f32.mrf.mxu0 }
 0x58a   : > { %vm6931_vm9 = vcmp.ge.f32.partialorder %v6897_v39, 0.0  ;;  %v6965_v2 = vmul.f32 0.2, %v6897_v39  ;;  %v6857_v61 = vadd.f32 %v6753_v44, %v14104_v60  ;;  %v8366_v59 = vld [vmem:[%s8725_s13 + $0x60] sm:$0xff] }
 0x58b   : > { %7066 = vst [vmem:[%s14218_s29 + $0x40] sm:$0xff] %v7032_v63  ;;  %v6586_v22 = vpop.f32.mrf.mxu1  ;;  %v6760_v14 = vpop.f32.mrf.mxu0 }
 0x58c   : > { %v6999_v18 = vsel %vm6931_vm9, %v6897_v39, %v6965_v2  ;;  %v6898_v23 = vadd.f32 %v14208_v38, %v6857_v61  ;;  %v6756_v32 = vadd.f32 %v6755_v4, %v6586_v22 }
 0x58d   : > { %v7033_v34 = vadd.f32 %v8363_v33, %v6999_v18  ;;  %v6588_v17 = vpop.f32.mrf.mxu1  ;;  %v7968_v57 = vpop.f32.mrf.mxu0 }
 0x58e   : > { %vm6932_vm12 = vcmp.ge.f32.partialorder %v6898_v23, 0.0  ;;  %v6966_v27 = vmul.f32 0.2, %v6898_v23  ;;  %v6858_v24 = vadd.f32 %v6756_v32, %v14114_v29 }
 0x58f   : > { %7067 = vst [vmem:[%s14218_s29 + $0x48] sm:$0xff] %v7033_v34  ;;  %v6591_v60 = vpop.f32.mrf.mxu1  ;;  %v6763_v53 = vpop.f32.mrf.mxu0  ;;  %v8367_v34 = vld [vmem:[%s8725_s13 + $0x68] sm:$0xff] }
 0x590   : > { %v7000_v8 = vsel %vm6932_vm12, %v6898_v23, %v6966_v27  ;;  %v6899_v55 = vadd.f32 %v14208_v38, %v6858_v24  ;;  %v6761_v45 = vadd.f32 %v6760_v14, %v6591_v60 }
 0x591   : > { %v7034_v13 = vadd.f32 %v8364_v56, %v7000_v8  ;;  %v6593_v35 = vpop.f32.mrf.mxu1  ;;  %v7969_v10 = vpop.f32.mrf.mxu0  ;;  %v8368_v56 = vld [vmem:[%s8725_s13 + $0x70] sm:$0xff] }
 0x592   : > { %vm6933_vm15 = vcmp.ge.f32.partialorder %v6899_v55, 0.0  ;;  %v6967_v28 = vmul.f32 0.2, %v6899_v55  ;;  %v6859_v46 = vadd.f32 %v6761_v45, %v14120_v20 }
 0x593   : > { %7068 = vst [vmem:[%s14218_s29 + $0x50] sm:$0xff] %v7034_v13  ;;  %v6594_v29 = vpop.f32.mrf.mxu1  ;;  %v6768_v11 = vpop.f32.mrf.mxu0 }
 0x594   : > { %v7001_v30 = vsel %vm6933_vm15, %v6899_v55, %v6967_v28  ;;  %v6900_v1 = vadd.f32 %v14208_v38, %v6859_v46  ;;  %v6764_v41 = vadd.f32 %v6763_v53, %v6594_v29 }
 0x595   : > { %v7035_v7 = vadd.f32 %v8365_v6, %v7001_v30  ;;  %v6596_v58 = vpop.f32.mrf.mxu1  ;;  %v7972_v39 = vpop.f32.mrf.mxu0 }
 0x596   : > { %vm6934_vm11 = vcmp.ge.f32.partialorder %v6900_v1, 0.0  ;;  %v6968_v0 = vmul.f32 0.2, %v6900_v1  ;;  %v6860_v16 = vadd.f32 %v6764_v41, %v14128_v52 }
 0x597   : > { %7069 = vst [vmem:[%s14218_s29 + $0x58] sm:$0xff] %v7035_v7  ;;  %v6599_v20 = vpop.f32.mrf.mxu1  ;;  %v6771_v63 = vpop.f32.mrf.mxu0 }
 0x598   : > { %v7002_v44 = vsel %vm6934_vm11, %v6900_v1, %v6968_v0  ;;  %v6901_v4 = vadd.f32 %v14208_v38, %v6860_v16  ;;  %v6769_v48 = vadd.f32 %v6768_v11, %v6599_v20  ;;  %v8369_v11 = vld [vmem:[%s8725_s13 + $0x78] sm:$0xff] }
 0x599   : > { %v7036_v2 = vadd.f32 %v8366_v59, %v7002_v44  ;;  %v6601_v61 = vpop.f32.mrf.mxu1  ;;  %v7973_v18 = vpop.f32.mrf.mxu0 }
 0x59a   : > { %vm6935_vm5 = vcmp.ge.f32.partialorder %v6901_v4, 0.0  ;;  %v6969_v12 = vmul.f32 0.2, %v6901_v4  ;;  %v6861_v22 = vadd.f32 %v6769_v48, %v14134_v21  ;;  %v8370_v48 = vld [vmem:[%s8725_s13 + $0x80] sm:$0xff] }
 0x59b   : > { %7070 = vst [vmem:[%s14218_s29 + $0x60] sm:$0xff] %v7036_v2  ;;  %v6602_v52 = vpop.f32.mrf.mxu1  ;;  %v6776_v33 = vpop.f32.mrf.mxu0 }
 0x59c   : > { %v7003_v23 = vsel %vm6935_vm5, %v6901_v4, %v6969_v12  ;;  %v6902_v32 = vadd.f32 %v14208_v38, %v6861_v22  ;;  %v6772_v14 = vadd.f32 %v6771_v63, %v6602_v52 }
 0x59d   : > { %v7037_v17 = vadd.f32 %v8367_v34, %v7003_v23  ;;  %v6604_v27 = vpop.f32.mrf.mxu1  ;;  %v7976_v60 = vpop.f32.mrf.mxu0 }
 0x59e   : > { %vm6936_vm0 = vcmp.ge.f32.partialorder %v6902_v32, 0.0  ;;  %v6970_v24 = vmul.f32 0.2, %v6902_v32  ;;  %v6862_v57 = vadd.f32 %v6772_v14, %v14139_v40 }
 0x59f   : > { %7071 = vst [vmem:[%s14218_s29 + $0x68] sm:$0xff] %v7037_v17  ;;  %v6607_v21 = vpop.f32.mrf.mxu1  ;;  %v6779_v53 = vpop.f32.mrf.mxu0 }
 0x5a0   : > { %v7004_v8 = vsel %vm6936_vm0, %v6902_v32, %v6970_v24  ;;  %v6903_v55 = vadd.f32 %v14208_v38, %v6862_v57  ;;  %v6777_v45 = vadd.f32 %v6776_v33, %v6607_v21  ;;  %v8371_v32 = vld [vmem:[%s8725_s13 + $0x88] sm:$0xff] }
 0x5a1   : > { %v7038_v13 = vadd.f32 %v8368_v56, %v7004_v8  ;;  %v6609_v35 = vpop.f32.mrf.mxu1  ;;  %v7977_v10 = vpop.f32.mrf.mxu0  ;;  %v8372_v8 = vld [vmem:[%s8725_s13 + $0x90] sm:$0xff] }
 0x5a2   : > { %vm6937_vm8 = vcmp.ge.f32.partialorder %v6903_v55, 0.0  ;;  %v6971_v28 = vmul.f32 0.2, %v6903_v55  ;;  %v6863_v46 = vadd.f32 %v6777_v45, %v14143_v51 }
 0x5a3   : > { %7072 = vst [vmem:[%s14218_s29 + $0x70] sm:$0xff] %v7038_v13  ;;  %v6610_v40 = vpop.f32.mrf.mxu1  ;;  %v6784_v41 = vpop.f32.mrf.mxu0 }
 0x5a4   : > { %v7005_v29 = vsel %vm6937_vm8, %v6903_v55, %v6971_v28  ;;  %v6904_v30 = vadd.f32 %v14208_v38, %v6863_v46  ;;  %v6780_v1 = vadd.f32 %v6779_v53, %v6610_v40  ;;  %v8373_v40 = vld [vmem:[%s8725_s13 + $0x98] sm:$0xff] }
 0x5a5   : > { %v7039_v6 = vadd.f32 %v8369_v11, %v7005_v29  ;;  %v6612_v7 = vpop.f32.mrf.mxu1  ;;  %v7980_v16 = vpop.f32.mrf.mxu0 }
 0x5a6   : > { %vm6938_vm4 = vcmp.ge.f32.partialorder %v6904_v30, 0.0  ;;  %v6972_v58 = vmul.f32 0.2, %v6904_v30  ;;  %v6864_v0 = vadd.f32 %v6780_v1, %v14146_v36  ;;  %v8374_v16 = vld [vmem:[%s8725_s13 + $0xa0] sm:$0xff] }
 0x5a7   : > { %7073 = vst [vmem:[%s14218_s29 + $0x78] sm:$0xff] %v7039_v6  ;;  %v6615_v51 = vpop.f32.mrf.mxu1  ;;  %v6787_v4 = vpop.f32.mrf.mxu0 }
 0x5a8   : > { %v7006_v39 = vsel %vm6938_vm4, %v6904_v30, %v6972_v58  ;;  %v6905_v20 = vadd.f32 %v14208_v38, %v6864_v0  ;;  %v6785_v44 = vadd.f32 %v6784_v41, %v6615_v51 }
 0x5a9   : > { %v7040_v63 = vadd.f32 %v8370_v48, %v7006_v39  ;;  %v6617_v59 = vpop.f32.mrf.mxu1  ;;  %v7981_v12 = vpop.f32.mrf.mxu0 }
 0x5aa   : > { %vm6939_vm1 = vcmp.ge.f32.partialorder %v6905_v20, 0.0  ;;  %v6973_v2 = vmul.f32 0.2, %v6905_v20  ;;  %v6865_v61 = vadd.f32 %v6785_v44, %v14152_v26 }
 0x5ab   : > { %7074 = vst [vmem:[%s14218_s29 + $0x80] sm:$0xff] %v7040_v63  ;;  %v6618_v36 = vpop.f32.mrf.mxu1  ;;  %v6792_v23 = vpop.f32.mrf.mxu0 }
 0x5ac   : > { %v7007_v22 = vsel %vm6939_vm1, %v6905_v20, %v6973_v2  ;;  %v6906_v18 = vadd.f32 %v14208_v38, %v6865_v61  ;;  %v6788_v52 = vadd.f32 %v6787_v4, %v6618_v36  ;;  %v8375_v61 = vld [vmem:[%s8725_s13 + $0xa8] sm:$0xff] }
 0x5ad   : > { %v7041_v14 = vadd.f32 %v8371_v32, %v7007_v22  ;;  %v6620_v33 = vpop.f32.mrf.mxu1  ;;  %v7984_v27 = vpop.f32.mrf.mxu0 }
 0x5ae   : > { %vm6940_vm13 = vcmp.ge.f32.partialorder %v6906_v18, 0.0  ;;  %v6974_v34 = vmul.f32 0.2, %v6906_v18  ;;  %v6866_v17 = vadd.f32 %v6788_v52, %v14155_v49 }
 0x5af   : > { %7075 = vst [vmem:[%s14218_s29 + $0x88] sm:$0xff] %v7041_v14  ;;  %v6623_v26 = vpop.f32.mrf.mxu1  ;;  %v6795_v21 = vpop.f32.mrf.mxu0 }
 0x5b0   : > { %v7008_v24 = vsel %vm6940_vm13, %v6906_v18, %v6974_v34  ;;  %v6907_v57 = vadd.f32 %v14208_v38, %v6866_v17  ;;  %v6793_v60 = vadd.f32 %v6792_v23, %v6623_v26  ;;  %v8376_v34 = vld [vmem:[%s8725_s13 + $0xb0] sm:$0xff] }
 0x5b1   : > { %v7042_v55 = vadd.f32 %v8372_v8, %v7008_v24  ;;  %v6625_v45 = vpop.f32.mrf.mxu1  ;;  %v7985_v13 = vpop.f32.mrf.mxu0 }
 0x5b2   : > { %vm6941_vm3 = vcmp.ge.f32.partialorder %v6907_v57, 0.0  ;;  %v6975_v53 = vmul.f32 0.2, %v6907_v57  ;;  %v6867_v56 = vadd.f32 %v6793_v60, %v14163_v47  ;;  %v8377_v45 = vld [vmem:[%s8725_s13 + $0xb8] sm:$0xff] }
 0x5b3   : > { %7076 = vst [vmem:[%s14218_s29 + $0x90] sm:$0xff] %v7042_v55  ;;  %v6626_v49 = vpop.f32.mrf.mxu1  ;;  %v6800_v10 = vpop.f32.mrf.mxu0 }
 0x5b4   : > { %v7009_v35 = vsel %vm6941_vm3, %v6907_v57, %v6975_v53  ;;  %v6908_v28 = vadd.f32 %v14208_v38, %v6867_v56  ;;  %v6796_v46 = vadd.f32 %v6795_v21, %v6626_v49 }
 0x5b5   : > { %v7043_v29 = vadd.f32 %v8373_v40, %v7009_v35  ;;  %v6628_v30 = vpop.f32.mrf.mxu1  ;;  %v7988_v11 = vpop.f32.mrf.mxu0 }
 0x5b6   : > { %vm6942_vm2 = vcmp.ge.f32.partialorder %v6908_v28, 0.0  ;;  %v6976_v1 = vmul.f32 0.2, %v6908_v28  ;;  %v6868_v41 = vadd.f32 %v6796_v46, %v14166_v43 }
 0x5b7   : > { %7077 = vst [vmem:[%s14218_s29 + $0x98] sm:$0xff] %v7043_v29  ;;  %v6631_v47 = vpop.f32.mrf.mxu1  ;;  %v6803_v0 = vpop.f32.mrf.mxu0  ;;  %v8378_v29 = vld [vmem:[%s8725_s13 + $0xc0] sm:$0xff] }
 0x5b8   : > { %v7010_v6 = vsel %vm6942_vm2, %v6908_v28, %v6976_v1  ;;  %v6909_v7 = vadd.f32 %v14208_v38, %v6868_v41  ;;  %v6801_v58 = vadd.f32 %v6800_v10, %v6631_v47 }
 0x5b9   : > { %v7044_v51 = vadd.f32 %v8374_v16, %v7010_v6  ;;  %v6633_v39 = vpop.f32.mrf.mxu1  ;;  %v7989_v4 = vpop.f32.mrf.mxu0  ;;  %v8379_v16 = vld [vmem:[%s8725_s13 + $0xc8] sm:$0xff] }
 0x5ba   : > { %vm6943_vm10 = vcmp.ge.f32.partialorder %v6909_v7, 0.0  ;;  %v6977_v20 = vmul.f32 0.2, %v6909_v7  ;;  %v6869_v44 = vadd.f32 %v6801_v58, %v14170_v42 }
 0x5bb   : > { %7078 = vst [vmem:[%s14218_s29 + $0xa0] sm:$0xff] %v7044_v51  ;;  %v6634_v43 = vpop.f32.mrf.mxu1  ;;  %v6808_v2 = vpop.f32.mrf.mxu0 }
 0x5bc   : > { %v7011_v48 = vsel %vm6943_vm10, %v6909_v7, %v6977_v20  ;;  %v6910_v63 = vadd.f32 %v14208_v38, %v6869_v44  ;;  %v6804_v59 = vadd.f32 %v6803_v0, %v6634_v43 }
 0x5bd   : > { %v7045_v12 = vadd.f32 %v8375_v61, %v7011_v48  ;;  %v6636_v36 = vpop.f32.mrf.mxu1  ;;  %v7992_v52 = vpop.f32.mrf.mxu0 }
 0x5be   : > { %vm6944_vm6 = vcmp.ge.f32.partialorder %v6910_v63, 0.0  ;;  %v6978_v22 = vmul.f32 0.2, %v6910_v63  ;;  %v6870_v18 = vadd.f32 %v6804_v59, %v14173_v25 }
 0x5bf   : > { %7079 = vst [vmem:[%s14218_s29 + $0xa8] sm:$0xff] %v7045_v12  ;;  %v6639_v42 = vpop.f32.mrf.mxu1  ;;  %v6811_v33 = vpop.f32.mrf.mxu0 }
 0x5c0   : > { %v7012_v23 = vsel %vm6944_vm6, %v6910_v63, %v6978_v22  ;;  %v6911_v32 = vadd.f32 %v14208_v38, %v6870_v18  ;;  %v6809_v14 = vadd.f32 %v6808_v2, %v6639_v42  ;;  %v8380_v2 = vld [vmem:[%s8725_s13 + $0xd0] sm:$0xff] }
 0x5c1   : > { %v7046_v17 = vadd.f32 %v8376_v34, %v7012_v23  ;;  %v6641_v27 = vpop.f32.mrf.mxu1  ;;  %v7993_v57 = vpop.f32.mrf.mxu0 }
 0x5c2   : > { %vm6945_vm7 = vcmp.ge.f32.partialorder %v6911_v32, 0.0  ;;  %v6979_v26 = vmul.f32 0.2, %v6911_v32  ;;  %v6871_v24 = vadd.f32 %v6809_v14, %v14176_v62 }
 0x5c3   : > { %7080 = vst [vmem:[%s14218_s29 + $0xb0] sm:$0xff] %v7046_v17  ;;  %v6642_v25 = vpop.f32.mrf.mxu1  ;;  %v6816_v55 = vpop.f32.mrf.mxu0 }
 0x5c4   : > { %v7013_v60 = vsel %vm6945_vm7, %v6911_v32, %v6979_v26  ;;  %v6912_v21 = vadd.f32 %v14208_v38, %v6871_v24  ;;  %v6812_v8 = vadd.f32 %v6811_v33, %v6642_v25  ;;  %v8381_v32 = vld [vmem:[%s8725_s13 + $0xd8] sm:$0xff]  ;;  %v8382_v24 = vld [vmem:[%s8725_s13 + $0xe0] sm:$0xff] }
 0x5c5   : > { %v7047_v53 = vadd.f32 %v8377_v45, %v7013_v60  ;;  %v6644_v56 = vpop.f32.mrf.mxu1  ;;  %v7996_v35 = vpop.f32.mrf.mxu0 }
 0x5c6   : > { %vm6946_vm14 = vcmp.ge.f32.partialorder %v6912_v21, 0.0  ;;  %v6980_v13 = vmul.f32 0.2, %v6912_v21  ;;  %v6872_v49 = vadd.f32 %v6812_v8, %v14179_v3 }
 0x5c7   : > { %7081 = vst [vmem:[%s14218_s29 + $0xb8] sm:$0xff] %v7047_v53  ;;  %v6647_v62 = vpop.f32.mrf.mxu1  ;;  %v6819_v40 = vpop.f32.mrf.mxu0 }
 0x5c8   : > { %v7014_v28 = vsel %vm6946_vm14, %v6912_v21, %v6980_v13  ;;  %v6913_v46 = vadd.f32 %v14208_v38, %v6872_v49  ;;  %v6817_v10 = vadd.f32 %v6816_v55, %v6647_v62  ;;  %v8383_v55 = vld [vmem:[%s8725_s13 + $0xe8] sm:$0xff] }
 0x5c9   : > { %v7048_v30 = vadd.f32 %v8378_v29, %v7014_v28  ;;  %v6649_v1 = vpop.f32.mrf.mxu1  ;;  %v7997_v47 = vpop.f32.mrf.mxu0 }
 0x5ca   : > { %vm6947_vm9 = vcmp.ge.f32.partialorder %v6913_v46, 0.0  ;;  %v6981_v41 = vmul.f32 0.2, %v6913_v46  ;;  %v6873_v11 = vadd.f32 %v6817_v10, %v14182_v54 }
 0x5cb   : > { %7082 = vst [vmem:[%s14218_s29 + $0xc0] sm:$0xff] %v7048_v30  ;;  %v6650_v3 = vpop.f32.mrf.mxu1  ;;  %v6824_v0 = vpop.f32.mrf.mxu0 }
 0x5cc   : > { %v7015_v6 = vsel %vm6947_vm9, %v6913_v46, %v6981_v41  ;;  %v6914_v7 = vadd.f32 %v14208_v38, %v6873_v11  ;;  %v6820_v58 = vadd.f32 %v6819_v40, %v6650_v3 }
 0x5cd   : > { %v7049_v51 = vadd.f32 %v8379_v16, %v7015_v6  ;;  %v6652_v39 = vpop.f32.mrf.mxu1  ;;  %v8000_v4 = vpop.f32.mrf.mxu0 }
 0x5ce   : > { %vm6948_vm12 = vcmp.ge.f32.partialorder %v6914_v7, 0.0  ;;  %v6982_v20 = vmul.f32 0.2, %v6914_v7  ;;  %v6874_v44 = vadd.f32 %v6820_v58, %v14185_v5 }
 0x5cf   : > { %7083 = vst [vmem:[%s14218_s29 + $0xc8] sm:$0xff] %v7049_v51  ;;  %v6655_v54 = vpop.f32.mrf.mxu1  ;;  %v6827_v59 = vpop.f32.mrf.mxu0 }
 0x5d0   : > { %v7016_v43 = vsel %vm6948_vm12, %v6914_v7, %v6982_v20  ;;  %v6915_v48 = vadd.f32 %v14208_v38, %v6874_v44  ;;  %v6825_v63 = vadd.f32 %v6824_v0, %v6655_v54  ;;  %v8384_v7 = vld [vmem:[%s8725_s13 + $0xf0] sm:$0xff]  ;;  %v8385_v44 = vld [vmem:[%s8725_s13 + $0xf8] sm:$0xff] }
 0x5d1   : > { %v7050_v61 = vadd.f32 %v8380_v2, %v7016_v43  ;;  %v6657_v12 = vpop.f32.mrf.mxu1  ;;  %v8001_v18 = vpop.f32.mrf.mxu0 }
 0x5d2   : > { %vm6949_vm15 = vcmp.ge.f32.partialorder %v6915_v48, 0.0  ;;  %v6983_v36 = vmul.f32 0.2, %v6915_v48  ;;  %v6875_v22 = vadd.f32 %v6825_v63, %v14188_v37 }
 0x5d3   : > { %7084 = vst [vmem:[%s14218_s29 + $0xd0] sm:$0xff] %v7050_v61  ;;  %v6658_v5 = vpop.f32.mrf.mxu1 }
 0x5d4   : > { %v7017_v52 = vsel %vm6949_vm15, %v6915_v48, %v6983_v36  ;;  %v6916_v42 = vadd.f32 %v14208_v38, %v6875_v22  ;;  %v6828_v23 = vadd.f32 %v6827_v59, %v6658_v5  ;;  %v8386_v59 = vld [vmem:[%s8725_s13 + $0x100] sm:$0xff] }
 0x5d5   : > { %v7051_v14 = vadd.f32 %v8381_v32, %v7017_v52  ;;  %v6660_v33 = vpop.f32.mrf.mxu1 }
 0x5d6   : > { %vm6950_vm11 = vcmp.ge.f32.partialorder %v6916_v42, 0.0  ;;  %v6984_v34 = vmul.f32 0.2, %v6916_v42  ;;  %v6876_v17 = vadd.f32 %v6828_v23, %v14191_v19 }
 0x5d7   : > { %7085 = vst [vmem:[%s14218_s29 + $0xd8] sm:$0xff] %v7051_v14  ;;  %v6663_v37 = vpop.f32.mrf.mxu1 }
 0x5d8   : > { %v7018_v27 = vsel %vm6950_vm11, %v6916_v42, %v6984_v34  ;;  %v6917_v26 = vadd.f32 %v14208_v38, %v6876_v17 }
 0x5d9   : > { %v7052_v57 = vadd.f32 %v8382_v24, %v7018_v27  ;;  %v6665_v25 = vpop.f32.mrf.mxu1 }
 0x5da   : > { %vm6951_vm5 = vcmp.ge.f32.partialorder %v6917_v26, 0.0  ;;  %v6985_v60 = vmul.f32 0.2, %v6917_v26 }
 0x5db   : > { %7086 = vst [vmem:[%s14218_s29 + $0xe0] sm:$0xff] %v7052_v57  ;;  %v6666_v21 = vpop.f32.mrf.mxu1 }
 0x5dc   : > { %v7019_v8 = vsel %vm6951_vm5, %v6917_v26, %v6985_v60 }
 0x5dd   : > { %v7053_v45 = vadd.f32 %v8383_v55, %v7019_v8  ;;  %v6668_v53 = vpop.f32.mrf.mxu1 }
 0x5df   : > { %7087 = vst [vmem:[%s14218_s29 + $0xe8] sm:$0xff] %v7053_v45  ;;  %v6671_v56 = vpop.f32.mrf.mxu1 }
 0x5e1   : > { %v6673_v19 = vpop.f32.mrf.mxu1 }
 0x5e3   : > { %v6674_v13 = vpop.f32.mrf.mxu1 }
 0x5e5   : > { %v6676_v49 = vpop.f32.mrf.mxu1 }
 0x5e7   : > { %v6832_v35 = vpop.f32.mrf.mxu1 }
 0x5e8   : > { %v6833_v62 = vadd.f32 %v6832_v35, %v6663_v37 }
 0x5e9   : > { %v8004_v28 = vpop.f32.mrf.mxu1 }
 0x5ea   : > { %v6877_v46 = vadd.f32 %v6833_v62, %v14194_v15 }
 0x5eb   : > { %v6835_v10 = vpop.f32.mrf.mxu1 }
 0x5ec   : > { %v6918_v40 = vadd.f32 %v14208_v38, %v6877_v46  ;;  %v6836_v29 = vadd.f32 %v6835_v10, %v6666_v21 }
 0x5ed   : > { %v8005_v30 = vpop.f32.mrf.mxu1 }
 0x5ee   : > { %vm6952_vm0 = vcmp.ge.f32.partialorder %v6918_v40, 0.0  ;;  %v6986_v1 = vmul.f32 0.2, %v6918_v40  ;;  %v6878_v41 = vadd.f32 %v6836_v29, %v14197_v9 }
 0x5ef   : > { %v6840_v11 = vpop.f32.mrf.mxu1 }
 0x5f0   : > { %v7020_v47 = vsel %vm6952_vm0, %v6918_v40, %v6986_v1  ;;  %v6919_v3 = vadd.f32 %v14208_v38, %v6878_v41  ;;  %v6841_v6 = vadd.f32 %v6840_v11, %v6671_v56 }
 0x5f1   : > { %v7054_v58 = vadd.f32 %v8384_v7, %v7020_v47  ;;  %v8008_v15 = vpop.f32.mrf.mxu1 }
 0x5f2   : > { %vm6953_vm8 = vcmp.ge.f32.partialorder %v6919_v3, 0.0  ;;  %v6987_v0 = vmul.f32 0.2, %v6919_v3  ;;  %v6879_v16 = vadd.f32 %v6841_v6, %v14200_v31 }
 0x5f3   : > { %7088 = vst [vmem:[%s14218_s29 + $0xf0] sm:$0xff] %v7054_v58  ;;  %v6843_v51 = vpop.f32.mrf.mxu1 }
 0x5f4   : > { %v7021_v39 = vsel %vm6953_vm8, %v6919_v3, %v6987_v0  ;;  %v6920_v9 = vadd.f32 %v14208_v38, %v6879_v16  ;;  %v6844_v20 = vadd.f32 %v6843_v51, %v6674_v13 }
 0x5f5   : > { %v7055_v4 = vadd.f32 %v8385_v44, %v7021_v39  ;;  %v8009_v54 = vpop.f32.mrf.mxu1 }
 0x5f6   : > { %vm6954_vm4 = vcmp.ge.f32.partialorder %v6920_v9, 0.0  ;;  %v6988_v43 = vmul.f32 0.2, %v6920_v9  ;;  %v6880_v48 = vadd.f32 %v6844_v20, %v14203_v50  ;;  %v8387_v50 = vld [vmem:[%s8725_s13 + $0x108] sm:$0xff] }
 0x5f7   : > { %7089 = vst [vmem:[%s14218_s29 + $0xf8] sm:$0xff] %v7055_v4 }
 0x5f8   : > { %v7022_v31 = vsel %vm6954_vm4, %v6920_v9, %v6988_v43  ;;  %v6921_v63 = vadd.f32 %v14208_v38, %v6880_v48 }
 0x5f9   : > { %v7056_v2 = vadd.f32 %v8386_v59, %v7022_v31 }
 0x5fa   : > { %vm6955_vm1 = vcmp.ge.f32.partialorder %v6921_v63, 0.0  ;;  %v6989_v61 = vmul.f32 0.2, %v6921_v63 }
 0x5fb   : > { %7090 = vst [vmem:[%s14218_s29 + $0x100] sm:$0xff] %v7056_v2 }
 0x5fc   : > { %v7023_v12 = vsel %vm6955_vm1, %v6921_v63, %v6989_v61 }
 0x5fd   : > { %v7057_v36 = vadd.f32 %v8387_v50, %v7023_v12 }
 0x5ff   : > { %7091 = vst [vmem:[%s14218_s29 + $0x108] sm:$0xff] %v7057_v36 }
 0x600   : > { %8481 = shalt.err (!%p8478_p9)
}
 0x601   : > { %s8482_s13 = scalar_lea.hbm %s14353_s16, 4352  ;;  %s8486_s1 = scalar_lea.hbm %s14407_s7, 8704 }
 0x602   : > { %p8483_p13 = scmp.ne.s32.totalorder %s14353_s16, %s8482_s13  ;;  %p8487_p4 = scmp.lt.s32.totalorder %s14353_s16, %s14407_s7 }
 0x603   : > { %p8488_p8 = scmp.lt.s32.totalorder %s8486_s1, %s8482_s13 }
 0x604   : > { %p8484_p5 = pnand %p8483_p13, %p16194_p10 }
 0x605   : > { %p8489_p3 = por %p8488_p8, %p8487_p4 }
 0x606   : > { %p8485_p0 = pneg %p8484_p5 }
 0x608   : > { %p8490_p11 = pnand %p8489_p3, %p8485_p0 }
 0x60a   : > { %8493 = shalt.err (!%p8490_p11)
}
 0x60b   : > { %s8550_s30 = smov 128   ;;  %s8551_s9 = smov 8  }
 0x60c   : > { %8108 = dma.vmem_to_hbm [thread:$0]  (%p16194_p10), %s14356_s18, 4352, %s14353_s16, %s7093_s28, %s8550_s30, %s8550_s30, %s8551_s9  }
 0x60d PF: > { %s7121_s19 = sand.u32 1, %s8524_s24   ;;  %p16195_p1 = scmp.ne.s32.totalorder %s14848_s8, 0 }
 0x60e   : > { %p16196_p2 = scmp.ge.s32.totalorder %s8536_s27, 2  ;;  %s7122_s21 = scalar_lea.sflag [#allocation4], %s7121_s19 }
 0x610   : > { %p8122_p6 = pnand %p16196_p2, %p16195_p1 }
 0x612   : > { %p8123_p12 = pneg %p8122_p6 }
 0x614   : > { %8519 = dma.done.wait (%p8123_p12), %s7122_s21, 4352  }
 0x615   : > { %8521 = vsyncadd (%p8123_p12), %s7122_s21, 4294962944  ;;  %p21_p7 = scmp.ge.s32.totalorder %s8664_s23, 4   ;;  %s16197_s24 = smov %s8528_s25 }
 0x616   : > { %s16198_s25 = smov %s8532_s26  ;;  %s16199_s26 = smov %s8680_s12 }
 0x617   : > { %s16200_s27 = smov %s8664_s23  ;;  %23 = sbr.rel (!%p21_p7) target bundleno = 8 (0x8), region = 105 }
 0x61c   :  { %7127 = vsyncpa [#allocation3], 1 }
 0x61d   :  { %7129 = vsyncpa [#allocation3 + $0x1], 1 }
 0x61e   :  { %7130 = vsyncpa [#allocation6], 1 }
 0x61f   :  { %7131 = vsyncpa [#allocation4], 1 }
 0x620   :  { %7133 = vsyncpa [#allocation4 + $0x1], 1 }

</bundles_post_ra>
